<compile_context>
chip_gen: v6e
topology: v6e:2x2x1
jax: 0.10.0
libtpu: 0.0.40
codegen_flags: <defaults>
</compile_context>

<pallas_src>
import functools
import math

import jax
import jax.numpy as jnp
from jax.experimental import pallas as pl
from jax.experimental.pallas import tpu as pltpu


def temporal_attention_kernel(x_ref, pos_ref, wqkv_ref, wl_ref, bl_ref, o_ref,
                              *, n_heads, num_time_steps, feat_dim,
                              matmul_dtype, batched_heads):
    T, F, H = num_time_steps, feat_dim, n_heads
    Dh = F // H
    Bn = x_ref.shape[0]

    # Lane-dense loads: x block is (Bn, T*F), pos is (1, T*F).
    x = x_ref[...].astype(jnp.float32).reshape(Bn, T, F)
    pos = pos_ref[...].astype(jnp.float32).reshape(1, T, F)
    ti = x + pos                                          # temporal_inputs

    # Fused QKV projection: one 2-D MXU matmul, M = Bn*T rows, f32 accumulate.
    ti2 = ti.reshape(Bn * T, F)
    qkv = jnp.dot(ti2.astype(matmul_dtype), wqkv_ref[...],
                  preferred_element_type=jnp.float32)     # (Bn*T, 3F)
    q2 = qkv[:, 0 * F:1 * F].astype(matmul_dtype)
    k2 = qkv[:, 1 * F:2 * F].astype(matmul_dtype)
    v2 = qkv[:, 2 * F:3 * F].astype(matmul_dtype)

    scale = jnp.float32(1.0 / (num_time_steps ** 0.5))    # DySAT: 1/sqrt(T)
    neg = jnp.float32(-2.0 ** 32 + 1)
    row = jax.lax.broadcasted_iota(jnp.int32, (T, T), 0)
    col = jax.lax.broadcasted_iota(jnp.int32, (T, T), 1)
    causal = col <= row                                   # tril == 1

    if batched_heads:
        # Heads split by a *free* reshape of the contiguous last dim; one
        # batched dot per stage, no concatenates / relayout copies.
        q4 = q2.reshape(Bn, T, H, Dh)
        k4 = k2.reshape(Bn, T, H, Dh)
        v4 = v2.reshape(Bn, T, H, Dh)
        s = jnp.einsum('bthd,bshd->bhts', q4, k4,
                       preferred_element_type=jnp.float32) * scale
        s = jnp.where(causal[None, None], s, neg)
        s = s - jnp.max(s, axis=-1, keepdims=True)
        e = jnp.exp(s)
        p = e * pl.reciprocal(jnp.sum(e, axis=-1, keepdims=True), approx=True)
        o4 = jnp.einsum('bhts,bshd->bthd', p.astype(matmul_dtype), v4,
                        preferred_element_type=jnp.float32)
        attn_out = o4.reshape(Bn, T, F)
    else:
        # Fallback: per-head 3-D batched dots (single batch dim) + lane-slice
        # split and a single feature-axis concat merge.
        q3 = q2.reshape(Bn, T, F)
        k3 = k2.reshape(Bn, T, F)
        v3 = v2.reshape(Bn, T, F)
        outs = []
        for h in range(H):
            sl = slice(h * Dh, (h + 1) * Dh)
            s = jnp.einsum('btd,bsd->bts', q3[:, :, sl], k3[:, :, sl],
                           preferred_element_type=jnp.float32) * scale
            s = jnp.where(causal[None], s, neg)
            s = s - jnp.max(s, axis=-1, keepdims=True)
            e = jnp.exp(s)
            p = e * pl.reciprocal(jnp.sum(e, axis=-1, keepdims=True),
                                  approx=True)
            outs.append(jnp.einsum('bts,bsd->btd', p.astype(matmul_dtype),
                                   v3[:, :, sl],
                                   preferred_element_type=jnp.float32))
        attn_out = jnp.concatenate(outs, axis=-1)          # (Bn, T, F)

    # feedforward: relu(lin(x)) + x, then residual + temporal_inputs.
    a2 = attn_out.reshape(Bn * T, F)
    lin = jnp.dot(a2.astype(matmul_dtype), wl_ref[...],
                  preferred_element_type=jnp.float32)
    lin = lin + bl_ref[...].astype(jnp.float32)            # (1, F) broadcast
    out = jnp.maximum(lin, 0.0).reshape(Bn, T, F) + attn_out + ti

    # Lane-dense store: (Bn, T*F) unmasked vst.
    o_ref[...] = out.reshape(Bn, T * F).astype(o_ref.dtype)


def pick_vmem_budget():
    """Generation-aware scoped-VMEM budget (bytes)."""
    cap = 64 << 20
    try:
        cap = int(pltpu.get_tpu_info().vmem_capacity_bytes)
    except Exception:  # noqa: BLE001 - info query is best-effort
        pass
    if cap >= (100 << 20):                 # v5e / v6e: 128 MiB physical
        return 96 << 20
    # v7x: 64 MiB per TensorCore -> leave headroom.
    return max(16 << 20, min(cap - (16 << 20), 46 << 20))


def choose_block_n(N, T, F, in_itemsize, out_itemsize, n_heads,
                   vmem_budget_bytes, mxu_rows=256):
    """Node-tile size: block_n*T a multiple of the MXU height, >=512 lane-dense
    rows when N and the VMEM budget allow.  Caller pads N up to block_n."""
    per_node = (2 * T * F * (in_itemsize + out_itemsize)   # dbl-buffered I/O
                + 16 * T * F * 4                           # (T, F) f32 temps
                + 3 * n_heads * T * T * 4)                 # scores / exp / probs
    max_block = max(1, int(vmem_budget_bytes) // per_node)
    step = mxu_rows // math.gcd(mxu_rows, T)   # smallest b: (b*T) % mxu_rows == 0
    n_ceil = pl.cdiv(N, step) * step           # whole problem, step-padded
    desired = min(max(512, step), n_ceil)      # lane-dense slab target
    block = min(desired, max_block)
    if block >= step:
        block = (block // step) * step         # keep MXU-row alignment
    return max(1, min(block, n_ceil))


def temporal_attention(x, pos, wq, wk, wv, wl, bl, *, n_heads,
                       block_n=None, matmul_dtype=None, out_dtype=None):
    N, T, F = x.shape
    assert F % n_heads == 0
    matmul_dtype = x.dtype if matmul_dtype is None else matmul_dtype
    out_dtype = x.dtype if out_dtype is None else out_dtype

    in_item = jnp.dtype(x.dtype).itemsize
    out_item = jnp.dtype(out_dtype).itemsize
    budget = pick_vmem_budget()
    if block_n is None:
        block_n = choose_block_n(N, T, F, in_item, out_item, n_heads, budget)

    # Pad N up to a block multiple (padded rows computed, then discarded).
    n_pad = pl.cdiv(N, block_n) * block_n
    x_flat = x.reshape(N, T * F)                    # lane-dense HBM layout
    if n_pad != N:
        x_flat = jnp.pad(x_flat, ((0, n_pad - N), (0, 0)))
    pos_flat = jnp.asarray(pos).reshape(1, T * F)

    # Fused [Wq | Wk | Wv] -> (F, 3F); weights pre-cast to MXU operand dtype.
    wqkv = jnp.concatenate([wq, wk, wv], axis=1).astype(matmul_dtype)
    wl_c = jnp.asarray(wl).astype(matmul_dtype)
    bl2 = jnp.asarray(bl, jnp.float32).reshape(1, F)

    # VMEM estimate (includes the T^2 score temporaries) -> scoped limit.
    w_bytes = (F * 3 * F + F * F) * jnp.dtype(matmul_dtype).itemsize \
        + T * F * in_item + F * 4
    est = (2 * block_n * T * F * (in_item + out_item)
           + 16 * block_n * T * F * 4
           + 3 * block_n * n_heads * T * T * 4
           + int(w_bytes) + (2 << 20))
    vmem_limit = int(min(max(est, 32 << 20), budget))

    flops = 8 * n_pad * T * F * F + 4 * n_pad * T * T * F
    transcendentals = n_pad * n_heads * T * T
    bytes_accessed = n_pad * T * F * (in_item + out_item) + int(w_bytes)

    def build(batched_heads, single_buffer_invariants):
        kernel = functools.partial(
            temporal_attention_kernel, n_heads=n_heads, num_time_steps=T,
            feat_dim=F, matmul_dtype=matmul_dtype, batched_heads=batched_heads)
        inv = ({'pipeline_mode': pl.Buffered(1)}
               if single_buffer_invariants else {})
        grid_spec = pltpu.PrefetchScalarGridSpec(
            num_scalar_prefetch=0,
            grid=(n_pad // block_n,),
            in_specs=[
                pl.BlockSpec((block_n, T * F), lambda i: (i, 0)),       # x
                pl.BlockSpec((1, T * F), lambda i: (0, 0), **inv),      # pos
                pl.BlockSpec((F, 3 * F), lambda i: (0, 0), **inv),      # Wqkv
                pl.BlockSpec((F, F), lambda i: (0, 0), **inv),          # Wlin
                pl.BlockSpec((1, F), lambda i: (0, 0), **inv),          # b_lin
            ],
            out_specs=pl.BlockSpec((block_n, T * F), lambda i: (i, 0)),
        )
        return pl.pallas_call(
            kernel,
            out_shape=jax.ShapeDtypeStruct((n_pad, T * F), out_dtype),
            grid_spec=grid_spec,
            compiler_params=pltpu.CompilerParams(
                dimension_semantics=("parallel",),
                vmem_limit_bytes=vmem_limit),
            cost_estimate=pl.CostEstimate(flops=flops,
                                          transcendentals=transcendentals,
                                          bytes_accessed=bytes_accessed),
        )

    # Prefer the no-relayout batched-heads kernel + single-buffered invariant
    # operands; fall back if this JAX/Mosaic build rejects either feature.
    out_flat, last_err = None, None
    for cfg in ((True, True), (True, False), (False, False)):
        try:
            out_flat = build(*cfg)(x_flat, pos_flat, wqkv, wl_c, bl2)
            break
        except Exception as e:  # noqa: BLE001 - lowering/compile fallback
            last_err = e
    if out_flat is None:
        raise last_err
    return out_flat[:N].reshape(N, T, F)


def reference(x, pos, wq, wk, wv, wl, bl, n_heads):
    """Plain-JAX transcription of the PyTorch forward (eval mode)."""
    N, T, F = x.shape
    ti = x + pos[None]
    q = ti @ wq
    k = ti @ wk
    v = ti @ wv
    q_ = jnp.concatenate(jnp.split(q, n_heads, axis=2), axis=0)
    k_ = jnp.concatenate(jnp.split(k, n_heads, axis=2), axis=0)
    v_ = jnp.concatenate(jnp.split(v, n_heads, axis=2), axis=0)
    s = jnp.einsum('btd,bsd->bts', q_, k_) / (T ** 0.5)
    mask = jnp.tril(jnp.ones((T, T), jnp.float32))
    s = jnp.where(mask[None] == 0, jnp.float32(-2.0 ** 32 + 1), s)
    p = jax.nn.softmax(s, axis=2)
    o = jnp.einsum('bts,bsd->btd', p, v_)
    o = jnp.concatenate(jnp.split(o, n_heads, axis=0), axis=2)
    lin = o @ wl + bl
    return jnp.maximum(lin, 0.0) + o + ti


def xavier_uniform(key, shape):
    fan_out, fan_in = shape[0], shape[1]
    limit = (6.0 / (fan_in + fan_out)) ** 0.5
    return jax.random.uniform(key, shape, jnp.float32, -limit, limit)


if __name__ == "__main__":
    # Small shapes consistent with the module: N nodes, T time steps, F feats.
    N, T, F, H = 16, 8, 32, 4
    key = jax.random.PRNGKey(0)
    k_x, k_pos, k_q, k_k, k_v, k_wl, k_bl = jax.random.split(key, 7)

    x = jax.random.normal(k_x, (N, T, F), jnp.float32)

    pos = xavier_uniform(k_pos, (T, F))                 # position_embeddings
    wq = xavier_uniform(k_q, (F, F))                    # Q_embedding_weights
    wk = xavier_uniform(k_k, (F, F))                    # K_embedding_weights
    wv = xavier_uniform(k_v, (F, F))                    # V_embedding_weights
    # nn.Linear(F, F): store weight already transposed as (in, out).
    bound = 1.0 / (F ** 0.5)
    wl = jax.random.uniform(k_wl, (F, F), jnp.float32, -bound, bound)
    bl = jax.random.uniform(k_bl, (F,), jnp.float32, -bound, bound)

    # --- f32 path (only the approx softmax reciprocal differs from ref) ---
    out = temporal_attention(x, pos, wq, wk, wv, wl, bl, n_heads=H)
    out = jax.block_until_ready(out)
    ref = reference(x, pos, wq, wk, wv, wl, bl, H)
    assert out.shape == (N, T, F) and out.dtype == jnp.float32
    err = float(jnp.max(jnp.abs(out - ref)))
    assert jnp.allclose(out, ref, atol=3e-2, rtol=1e-2), err

    # --- bf16 MXU-operand fast path (f32 elementwise + f32 HBM I/O, which is
    #     also the recommended v5e configuration) ---
    out_bf = temporal_attention(x, pos, wq, wk, wv, wl, bl, n_heads=H,
                                matmul_dtype=jnp.bfloat16,
                                out_dtype=jnp.float32)
    out_bf = jax.block_until_ready(out_bf)
    assert out_bf.shape == (N, T, F) and out_bf.dtype == jnp.float32
    err_bf = float(jnp.max(jnp.abs(out_bf - ref)))
    assert jnp.allclose(out_bf, ref, atol=2e-1, rtol=1e-1), err_bf

    print("KERNEL_OK")
</pallas_src>

<mosaic_0001>
module attributes {stable_mosaic.version = 11 : i64} {
  func.func @temporal_attention_kernel(%arg0: i32, %arg1: memref<32x256xf32, #tpu.memory_space<vmem>>, %arg2: memref<1x256xf32, #tpu.memory_space<vmem>>, %arg3: memref<32x96xf32, #tpu.memory_space<vmem>>, %arg4: memref<32x32xf32, #tpu.memory_space<vmem>>, %arg5: memref<1x32xf32, #tpu.memory_space<vmem>>, %arg6: memref<32x256xf32, #tpu.memory_space<vmem>>) attributes {dimension_semantics = [#tpu.dimension_semantics<parallel>], iteration_bounds = array<i64: 1>, scalar_prefetch = 0 : i64, scratch_operands = 0 : i64, tpu.core_type = #tpu.core_type<tc>, window_params = [{transform_indices = @transform_0, window_bounds = array<i64: 32, 256>}, {pipeline_mode = #tpu.pipeline_mode<synchronous>, transform_indices = @transform_1, window_bounds = array<i64: 1, 256>}, {pipeline_mode = #tpu.pipeline_mode<synchronous>, transform_indices = @transform_2, window_bounds = array<i64: 32, 96>}, {pipeline_mode = #tpu.pipeline_mode<synchronous>, transform_indices = @transform_3, window_bounds = array<i64: 32, 32>}, {pipeline_mode = #tpu.pipeline_mode<synchronous>, transform_indices = @transform_4, window_bounds = array<i64: 1, 32>}, {transform_indices = @transform_5, window_bounds = array<i64: 32, 256>}]} {
    %c0 = arith.constant 0 : index
    %c0_0 = arith.constant 0 : index
    %0 = vector.load %arg1[%c0, %c0_0] : memref<32x256xf32, #tpu.memory_space<vmem>>, vector<32x256xf32>
    %1 = vector.shape_cast %0 : vector<32x256xf32> to vector<32x8x32xf32>
    %c0_1 = arith.constant 0 : index
    %c0_2 = arith.constant 0 : index
    %2 = vector.load %arg2[%c0_1, %c0_2] : memref<1x256xf32, #tpu.memory_space<vmem>>, vector<1x256xf32>
    %3 = vector.shape_cast %2 : vector<1x256xf32> to vector<1x8x32xf32>
    %4 = vector.broadcast %3 : vector<1x8x32xf32> to vector<32x8x32xf32>
    %5 = arith.addf %1, %4 : vector<32x8x32xf32>
    %6 = vector.shape_cast %5 : vector<32x8x32xf32> to vector<256x32xf32>
    %c0_3 = arith.constant 0 : index
    %c0_4 = arith.constant 0 : index
    %7 = vector.load %arg3[%c0_3, %c0_4] : memref<32x96xf32, #tpu.memory_space<vmem>>, vector<32x96xf32>
    %cst = arith.constant dense<0.000000e+00> : vector<256x96xf32>
    %8 = tpu.matmul %6, %7, %cst {dimension_numbers = #tpu.dot_dimension_numbers<[1], [0], [0], [1], [0, 0, 1, 1], [], []>} : vector<256x32xf32>, vector<32x96xf32>, vector<256x96xf32> -> vector<256x96xf32>
    %9 = vector.extract_strided_slice %8 {offsets = [0, 0], sizes = [256, 32], strides = [1, 1]} : vector<256x96xf32> to vector<256x32xf32>
    %10 = vector.extract_strided_slice %8 {offsets = [0, 32], sizes = [256, 32], strides = [1, 1]} : vector<256x96xf32> to vector<256x32xf32>
    %11 = vector.extract_strided_slice %8 {offsets = [0, 64], sizes = [256, 32], strides = [1, 1]} : vector<256x96xf32> to vector<256x32xf32>
    %12 = tpu.iota {dimensions = array<i32: 0>} : vector<8x8xi32>
    %13 = tpu.iota {dimensions = array<i32: 1>} : vector<8x8xi32>
    %14 = arith.cmpi sle, %13, %12 : vector<8x8xi32>
    %15 = vector.shape_cast %9 : vector<256x32xf32> to vector<32x8x32xf32>
    %16 = vector.shape_cast %10 : vector<256x32xf32> to vector<32x8x32xf32>
    %17 = vector.shape_cast %11 : vector<256x32xf32> to vector<32x8x32xf32>
    %18 = vector.extract_strided_slice %15 {offsets = [0, 0, 0], sizes = [32, 8, 8], strides = [1, 1, 1]} : vector<32x8x32xf32> to vector<32x8x8xf32>
    %19 = vector.extract_strided_slice %16 {offsets = [0, 0, 0], sizes = [32, 8, 8], strides = [1, 1, 1]} : vector<32x8x32xf32> to vector<32x8x8xf32>
    "tpu.trace_start"() <{level = 10 : i32, message = "btd,bsd->bts"}> : () -> ()
    %cst_5 = arith.constant dense<0.000000e+00> : vector<32x8x8xf32>
    %20 = tpu.matmul %18, %19, %cst_5 {dimension_numbers = #tpu.dot_dimension_numbers<[2], [2], [1], [1], [0, 0, 0, 1, 1, 1], [0], [0]>} : vector<32x8x8xf32>, vector<32x8x8xf32>, vector<32x8x8xf32> -> vector<32x8x8xf32>
    "tpu.trace_stop"() : () -> ()
    %cst_6 = arith.constant 0.353553385 : f32
    %21 = vector.broadcast %cst_6 : f32 to vector<32x8x8xf32>
    %22 = arith.mulf %20, %21 : vector<32x8x8xf32>
    %23 = vector.shape_cast %14 : vector<8x8xi1> to vector<1x8x8xi1>
    %cst_7 = arith.constant -4.2949673E+9 : f32
    %24 = vector.shape_cast %23 : vector<1x8x8xi1> to vector<1x8x8xi1>
    %25 = vector.broadcast %24 : vector<1x8x8xi1> to vector<32x8x8xi1>
    %26 = vector.broadcast %cst_7 : f32 to vector<32x8x8xf32>
    %27 = arith.select %25, %22, %26 : vector<32x8x8xi1>, vector<32x8x8xf32>
    %cst_8 = arith.constant dense<0xFF800000> : vector<32x8xf32>
    %28 = vector.multi_reduction <maximumf>, %27, %cst_8 [2] : vector<32x8x8xf32> to vector<32x8xf32>
    %29 = vector.shape_cast %28 : vector<32x8xf32> to vector<32x8x1xf32>
    %30 = vector.broadcast %29 : vector<32x8x1xf32> to vector<32x8x8xf32>
    %31 = arith.subf %27, %30 : vector<32x8x8xf32>
    %32 = math.exp %31 : vector<32x8x8xf32>
    %cst_9 = arith.constant dense<0.000000e+00> : vector<32x8xf32>
    %33 = vector.multi_reduction <add>, %32, %cst_9 [2] : vector<32x8x8xf32> to vector<32x8xf32>
    %34 = vector.shape_cast %33 : vector<32x8xf32> to vector<32x8x1xf32>
    %35 = tpu.reciprocal %34 {approx = true} : vector<32x8x1xf32> -> vector<32x8x1xf32>
    %36 = vector.broadcast %35 : vector<32x8x1xf32> to vector<32x8x8xf32>
    %37 = arith.mulf %32, %36 : vector<32x8x8xf32>
    %38 = vector.extract_strided_slice %17 {offsets = [0, 0, 0], sizes = [32, 8, 8], strides = [1, 1, 1]} : vector<32x8x32xf32> to vector<32x8x8xf32>
    "tpu.trace_start"() <{level = 10 : i32, message = "bts,bsd->btd"}> : () -> ()
    %cst_10 = arith.constant dense<0.000000e+00> : vector<32x8x8xf32>
    %39 = tpu.matmul %37, %38, %cst_10 {dimension_numbers = #tpu.dot_dimension_numbers<[2], [1], [1], [2], [0, 0, 0, 1, 1, 2], [0], [0]>} : vector<32x8x8xf32>, vector<32x8x8xf32>, vector<32x8x8xf32> -> vector<32x8x8xf32>
    "tpu.trace_stop"() : () -> ()
    %40 = vector.extract_strided_slice %15 {offsets = [0, 0, 8], sizes = [32, 8, 8], strides = [1, 1, 1]} : vector<32x8x32xf32> to vector<32x8x8xf32>
    %41 = vector.extract_strided_slice %16 {offsets = [0, 0, 8], sizes = [32, 8, 8], strides = [1, 1, 1]} : vector<32x8x32xf32> to vector<32x8x8xf32>
    "tpu.trace_start"() <{level = 10 : i32, message = "btd,bsd->bts"}> : () -> ()
    %cst_11 = arith.constant dense<0.000000e+00> : vector<32x8x8xf32>
    %42 = tpu.matmul %40, %41, %cst_11 {dimension_numbers = #tpu.dot_dimension_numbers<[2], [2], [1], [1], [0, 0, 0, 1, 1, 1], [0], [0]>} : vector<32x8x8xf32>, vector<32x8x8xf32>, vector<32x8x8xf32> -> vector<32x8x8xf32>
    "tpu.trace_stop"() : () -> ()
    %cst_12 = arith.constant 0.353553385 : f32
    %43 = vector.broadcast %cst_12 : f32 to vector<32x8x8xf32>
    %44 = arith.mulf %42, %43 : vector<32x8x8xf32>
    %45 = vector.shape_cast %14 : vector<8x8xi1> to vector<1x8x8xi1>
    %cst_13 = arith.constant -4.2949673E+9 : f32
    %46 = vector.shape_cast %45 : vector<1x8x8xi1> to vector<1x8x8xi1>
    %47 = vector.broadcast %46 : vector<1x8x8xi1> to vector<32x8x8xi1>
    %48 = vector.broadcast %cst_13 : f32 to vector<32x8x8xf32>
    %49 = arith.select %47, %44, %48 : vector<32x8x8xi1>, vector<32x8x8xf32>
    %cst_14 = arith.constant dense<0xFF800000> : vector<32x8xf32>
    %50 = vector.multi_reduction <maximumf>, %49, %cst_14 [2] : vector<32x8x8xf32> to vector<32x8xf32>
    %51 = vector.shape_cast %50 : vector<32x8xf32> to vector<32x8x1xf32>
    %52 = vector.broadcast %51 : vector<32x8x1xf32> to vector<32x8x8xf32>
    %53 = arith.subf %49, %52 : vector<32x8x8xf32>
    %54 = math.exp %53 : vector<32x8x8xf32>
    %cst_15 = arith.constant dense<0.000000e+00> : vector<32x8xf32>
    %55 = vector.multi_reduction <add>, %54, %cst_15 [2] : vector<32x8x8xf32> to vector<32x8xf32>
    %56 = vector.shape_cast %55 : vector<32x8xf32> to vector<32x8x1xf32>
    %57 = tpu.reciprocal %56 {approx = true} : vector<32x8x1xf32> -> vector<32x8x1xf32>
    %58 = vector.broadcast %57 : vector<32x8x1xf32> to vector<32x8x8xf32>
    %59 = arith.mulf %54, %58 : vector<32x8x8xf32>
    %60 = vector.extract_strided_slice %17 {offsets = [0, 0, 8], sizes = [32, 8, 8], strides = [1, 1, 1]} : vector<32x8x32xf32> to vector<32x8x8xf32>
    "tpu.trace_start"() <{level = 10 : i32, message = "bts,bsd->btd"}> : () -> ()
    %cst_16 = arith.constant dense<0.000000e+00> : vector<32x8x8xf32>
    %61 = tpu.matmul %59, %60, %cst_16 {dimension_numbers = #tpu.dot_dimension_numbers<[2], [1], [1], [2], [0, 0, 0, 1, 1, 2], [0], [0]>} : vector<32x8x8xf32>, vector<32x8x8xf32>, vector<32x8x8xf32> -> vector<32x8x8xf32>
    "tpu.trace_stop"() : () -> ()
    %62 = vector.extract_strided_slice %15 {offsets = [0, 0, 16], sizes = [32, 8, 8], strides = [1, 1, 1]} : vector<32x8x32xf32> to vector<32x8x8xf32>
    %63 = vector.extract_strided_slice %16 {offsets = [0, 0, 16], sizes = [32, 8, 8], strides = [1, 1, 1]} : vector<32x8x32xf32> to vector<32x8x8xf32>
    "tpu.trace_start"() <{level = 10 : i32, message = "btd,bsd->bts"}> : () -> ()
    %cst_17 = arith.constant dense<0.000000e+00> : vector<32x8x8xf32>
    %64 = tpu.matmul %62, %63, %cst_17 {dimension_numbers = #tpu.dot_dimension_numbers<[2], [2], [1], [1], [0, 0, 0, 1, 1, 1], [0], [0]>} : vector<32x8x8xf32>, vector<32x8x8xf32>, vector<32x8x8xf32> -> vector<32x8x8xf32>
    "tpu.trace_stop"() : () -> ()
    %cst_18 = arith.constant 0.353553385 : f32
    %65 = vector.broadcast %cst_18 : f32 to vector<32x8x8xf32>
    %66 = arith.mulf %64, %65 : vector<32x8x8xf32>
    %67 = vector.shape_cast %14 : vector<8x8xi1> to vector<1x8x8xi1>
    %cst_19 = arith.constant -4.2949673E+9 : f32
    %68 = vector.shape_cast %67 : vector<1x8x8xi1> to vector<1x8x8xi1>
    %69 = vector.broadcast %68 : vector<1x8x8xi1> to vector<32x8x8xi1>
    %70 = vector.broadcast %cst_19 : f32 to vector<32x8x8xf32>
    %71 = arith.select %69, %66, %70 : vector<32x8x8xi1>, vector<32x8x8xf32>
    %cst_20 = arith.constant dense<0xFF800000> : vector<32x8xf32>
    %72 = vector.multi_reduction <maximumf>, %71, %cst_20 [2] : vector<32x8x8xf32> to vector<32x8xf32>
    %73 = vector.shape_cast %72 : vector<32x8xf32> to vector<32x8x1xf32>
    %74 = vector.broadcast %73 : vector<32x8x1xf32> to vector<32x8x8xf32>
    %75 = arith.subf %71, %74 : vector<32x8x8xf32>
    %76 = math.exp %75 : vector<32x8x8xf32>
    %cst_21 = arith.constant dense<0.000000e+00> : vector<32x8xf32>
    %77 = vector.multi_reduction <add>, %76, %cst_21 [2] : vector<32x8x8xf32> to vector<32x8xf32>
    %78 = vector.shape_cast %77 : vector<32x8xf32> to vector<32x8x1xf32>
    %79 = tpu.reciprocal %78 {approx = true} : vector<32x8x1xf32> -> vector<32x8x1xf32>
    %80 = vector.broadcast %79 : vector<32x8x1xf32> to vector<32x8x8xf32>
    %81 = arith.mulf %76, %80 : vector<32x8x8xf32>
    %82 = vector.extract_strided_slice %17 {offsets = [0, 0, 16], sizes = [32, 8, 8], strides = [1, 1, 1]} : vector<32x8x32xf32> to vector<32x8x8xf32>
    "tpu.trace_start"() <{level = 10 : i32, message = "bts,bsd->btd"}> : () -> ()
    %cst_22 = arith.constant dense<0.000000e+00> : vector<32x8x8xf32>
    %83 = tpu.matmul %81, %82, %cst_22 {dimension_numbers = #tpu.dot_dimension_numbers<[2], [1], [1], [2], [0, 0, 0, 1, 1, 2], [0], [0]>} : vector<32x8x8xf32>, vector<32x8x8xf32>, vector<32x8x8xf32> -> vector<32x8x8xf32>
    "tpu.trace_stop"() : () -> ()
    %84 = vector.extract_strided_slice %15 {offsets = [0, 0, 24], sizes = [32, 8, 8], strides = [1, 1, 1]} : vector<32x8x32xf32> to vector<32x8x8xf32>
    %85 = vector.extract_strided_slice %16 {offsets = [0, 0, 24], sizes = [32, 8, 8], strides = [1, 1, 1]} : vector<32x8x32xf32> to vector<32x8x8xf32>
    "tpu.trace_start"() <{level = 10 : i32, message = "btd,bsd->bts"}> : () -> ()
    %cst_23 = arith.constant dense<0.000000e+00> : vector<32x8x8xf32>
    %86 = tpu.matmul %84, %85, %cst_23 {dimension_numbers = #tpu.dot_dimension_numbers<[2], [2], [1], [1], [0, 0, 0, 1, 1, 1], [0], [0]>} : vector<32x8x8xf32>, vector<32x8x8xf32>, vector<32x8x8xf32> -> vector<32x8x8xf32>
    "tpu.trace_stop"() : () -> ()
    %cst_24 = arith.constant 0.353553385 : f32
    %87 = vector.broadcast %cst_24 : f32 to vector<32x8x8xf32>
    %88 = arith.mulf %86, %87 : vector<32x8x8xf32>
    %89 = vector.shape_cast %14 : vector<8x8xi1> to vector<1x8x8xi1>
    %cst_25 = arith.constant -4.2949673E+9 : f32
    %90 = vector.shape_cast %89 : vector<1x8x8xi1> to vector<1x8x8xi1>
    %91 = vector.broadcast %90 : vector<1x8x8xi1> to vector<32x8x8xi1>
    %92 = vector.broadcast %cst_25 : f32 to vector<32x8x8xf32>
    %93 = arith.select %91, %88, %92 : vector<32x8x8xi1>, vector<32x8x8xf32>
    %cst_26 = arith.constant dense<0xFF800000> : vector<32x8xf32>
    %94 = vector.multi_reduction <maximumf>, %93, %cst_26 [2] : vector<32x8x8xf32> to vector<32x8xf32>
    %95 = vector.shape_cast %94 : vector<32x8xf32> to vector<32x8x1xf32>
    %96 = vector.broadcast %95 : vector<32x8x1xf32> to vector<32x8x8xf32>
    %97 = arith.subf %93, %96 : vector<32x8x8xf32>
    %98 = math.exp %97 : vector<32x8x8xf32>
    %cst_27 = arith.constant dense<0.000000e+00> : vector<32x8xf32>
    %99 = vector.multi_reduction <add>, %98, %cst_27 [2] : vector<32x8x8xf32> to vector<32x8xf32>
    %100 = vector.shape_cast %99 : vector<32x8xf32> to vector<32x8x1xf32>
    %101 = tpu.reciprocal %100 {approx = true} : vector<32x8x1xf32> -> vector<32x8x1xf32>
    %102 = vector.broadcast %101 : vector<32x8x1xf32> to vector<32x8x8xf32>
    %103 = arith.mulf %98, %102 : vector<32x8x8xf32>
    %104 = vector.extract_strided_slice %17 {offsets = [0, 0, 24], sizes = [32, 8, 8], strides = [1, 1, 1]} : vector<32x8x32xf32> to vector<32x8x8xf32>
    "tpu.trace_start"() <{level = 10 : i32, message = "bts,bsd->btd"}> : () -> ()
    %cst_28 = arith.constant dense<0.000000e+00> : vector<32x8x8xf32>
    %105 = tpu.matmul %103, %104, %cst_28 {dimension_numbers = #tpu.dot_dimension_numbers<[2], [1], [1], [2], [0, 0, 0, 1, 1, 2], [0], [0]>} : vector<32x8x8xf32>, vector<32x8x8xf32>, vector<32x8x8xf32> -> vector<32x8x8xf32>
    "tpu.trace_stop"() : () -> ()
    %106 = tpu.concatenate %39, %61, %83, %105 in 2 : vector<32x8x8xf32>, vector<32x8x8xf32>, vector<32x8x8xf32>, vector<32x8x8xf32> -> vector<32x8x32xf32>
    %107 = vector.shape_cast %106 : vector<32x8x32xf32> to vector<256x32xf32>
    %c0_29 = arith.constant 0 : index
    %c0_30 = arith.constant 0 : index
    %108 = vector.load %arg4[%c0_29, %c0_30] : memref<32x32xf32, #tpu.memory_space<vmem>>, vector<32x32xf32>
    %cst_31 = arith.constant dense<0.000000e+00> : vector<256x32xf32>
    %109 = tpu.matmul %107, %108, %cst_31 {dimension_numbers = #tpu.dot_dimension_numbers<[1], [0], [0], [1], [0, 0, 1, 1], [], []>} : vector<256x32xf32>, vector<32x32xf32>, vector<256x32xf32> -> vector<256x32xf32>
    %c0_32 = arith.constant 0 : index
    %c0_33 = arith.constant 0 : index
    %110 = vector.load %arg5[%c0_32, %c0_33] : memref<1x32xf32, #tpu.memory_space<vmem>>, vector<1x32xf32>
    %111 = vector.broadcast %110 : vector<1x32xf32> to vector<256x32xf32>
    %112 = arith.addf %109, %111 : vector<256x32xf32>
    %cst_34 = arith.constant 0.000000e+00 : f32
    %113 = vector.broadcast %cst_34 : f32 to vector<256x32xf32>
    %114 = arith.maximumf %112, %113 : vector<256x32xf32>
    %115 = vector.shape_cast %114 : vector<256x32xf32> to vector<32x8x32xf32>
    %116 = arith.addf %115, %106 : vector<32x8x32xf32>
    %117 = arith.addf %116, %5 : vector<32x8x32xf32>
    %118 = vector.shape_cast %117 : vector<32x8x32xf32> to vector<32x256xf32>
    %c0_35 = arith.constant 0 : index
    %c0_36 = arith.constant 0 : index
    %119 = vector.load %arg6[%c0_35, %c0_36] : memref<32x256xf32, #tpu.memory_space<vmem>>, vector<32x256xf32>
    tpu.vector_store %arg6[%c0_35, %c0_36], %118 {strides = array<i32>} : memref<32x256xf32, #tpu.memory_space<vmem>>, vector<32x256xf32>,
    return
  }
  func.func @transform_0(%arg0: i32) -> (i32, i32) {
    %c0_i32 = arith.constant 0 : i32
    %c0_i32_0 = arith.constant 0 : i32
    return %arg0, %c0_i32 : i32, i32
  }
  func.func @transform_1(%arg0: i32) -> (i32, i32) {
    %c0_i32 = arith.constant 0 : i32
    %c0_i32_0 = arith.constant 0 : i32
    %c0_i32_1 = arith.constant 0 : i32
    return %c0_i32, %c0_i32_0 : i32, i32
  }
  func.func @transform_2(%arg0: i32) -> (i32, i32) {
    %c0_i32 = arith.constant 0 : i32
    %c0_i32_0 = arith.constant 0 : i32
    %c0_i32_1 = arith.constant 0 : i32
    return %c0_i32, %c0_i32_0 : i32, i32
  }
  func.func @transform_3(%arg0: i32) -> (i32, i32) {
    %c0_i32 = arith.constant 0 : i32
    %c0_i32_0 = arith.constant 0 : i32
    %c0_i32_1 = arith.constant 0 : i32
    return %c0_i32, %c0_i32_0 : i32, i32
  }
  func.func @transform_4(%arg0: i32) -> (i32, i32) {
    %c0_i32 = arith.constant 0 : i32
    %c0_i32_0 = arith.constant 0 : i32
    %c0_i32_1 = arith.constant 0 : i32
    return %c0_i32, %c0_i32_0 : i32, i32
  }
  func.func @transform_5(%arg0: i32) -> (i32, i32) {
    %c0_i32 = arith.constant 0 : i32
    %c0_i32_0 = arith.constant 0 : i32
    return %arg0, %c0_i32 : i32, i32
  }
}

</mosaic_0001>

<bundles_post_ra>
// kernel: tpu_custom_call.1
= control target key start
LH: loop header
LB: loop body
LE: loop exit
PB: predicated region body
PF: predicated region fallthrough
CT: control target
= control target key end

     0   :  { %10 = vsyncpa [#allocation3], 0  ;;  %s32877_s0 = inlined_call_operand.hbm [shape: f32[32,256], index: 0, kind: input, shape index: {}]   ;;  %s32878_s1 = inlined_call_operand.hbm [shape: f32[1,256], index: 1, kind: input, shape index: {}]   ;;  %s32879_s2 = inlined_call_operand.hbm [shape: f32[32,96], index: 2, kind: input, shape index: {}]   ;;  %s32880_s3 = inlined_call_operand.hbm [shape: f32[32,32], index: 3, kind: input, shape index: {}]   ;;  %s32881_s4 = inlined_call_operand.vmem [shape: f32[1,32], index: 4, kind: input, shape index: {}]   ;;  %s32882_s5 = inlined_call_operand.hbm [shape: f32[32,256], index: 5, kind: output, shape index: {}]  }
   0x1   :  { %11 = vsyncpa [#allocation6], 0 }
   0x2   :  { %12 = vsyncpa [#allocation9], 0 }
   0x3   :  { %13 = vsyncpa [#allocation4], 0  ;;  %s27161_s18 = smov [#allocation5]   ;;  %s27162_s20 = smov [#allocation2]  }
   0x4   :  { %s32_s19 = sshll.u32 %s27161_s18, 4  ;;  %s19_s21 = sshll.u32 %s27162_s20, 4  ;;  %s33_s19 = int_to_ptr.vmem [resolvable:$true] %s32_s19  ;;  %s20_s21 = int_to_ptr.vmem [resolvable:$true] %s19_s21 }
   0x5   :  { %s27061_s22 = scalar_lea.vmem %s33_s19, 32  ;;  %p27066_p1 = scmp.lt.s32.totalorder %s33_s19, %s33_s19 }
   0x6   :  { %p27062_p0 = scmp.ne.s32.totalorder %s33_s19, %s27061_s22  ;;  %p27067_p2 = scmp.lt.s32.totalorder %s27061_s22, %s27061_s22 }
   0x8   :  { %p27068_p3 = por %p27067_p2, %p27066_p1 }
   0xa   :  { %p27069_p4 = pnand %p27068_p3, %p27062_p0 }
   0xc   :  { %27072 = shalt.err (!%p27069_p4)
}
   0xd   :  { %35 = dma.hbm_to_vmem [thread:$0]  %s32878_s1, 32, %s33_s19, [#allocation6]  }
   0xe   :  { %s27081_s25 = scalar_lea.vmem %s20_s21, 1024  ;;  %p27086_p6 = scmp.lt.s32.totalorder %s20_s21, %s20_s21 }
   0xf   :  { %p27082_p5 = scmp.ne.s32.totalorder %s20_s21, %s27081_s25  ;;  %p27087_p7 = scmp.lt.s32.totalorder %s27081_s25, %s27081_s25 }
  0x11   :  { %p27088_p8 = por %p27087_p7, %p27086_p6 }
  0x13   :  { %p27089_p9 = pnand %p27088_p8, %p27082_p5 }
  0x15   :  { %27092 = shalt.err (!%p27089_p9)
}
  0x16   :  { %s27163_s26 = smov 256   ;;  %s27164_s27 = smov 16  }
  0x17   :  { %25 = dma.hbm_to_vmem [thread:$0]  %s32877_s0, 1024, %s20_s21, [#allocation3], %s27163_s26, %s27163_s26, %s27164_s27  }
  0x18   :  { %s27165_s30 = smov [#allocation7]  }
  0x19   :  { %s41_s6 = sshll.u32 %s27165_s30, 4  ;;  %s42_s6 = int_to_ptr.vmem [resolvable:$true] %s41_s6 }
  0x1a   :  { %s27101_s1 = scalar_lea.vmem %s42_s6, 512  ;;  %p27106_p11 = scmp.lt.s32.totalorder %s42_s6, %s42_s6 }
  0x1b   :  { %p27102_p10 = scmp.ne.s32.totalorder %s42_s6, %s27101_s1  ;;  %p27107_p12 = scmp.lt.s32.totalorder %s27101_s1, %s27101_s1 }
  0x1d   :  { %p27108_p13 = por %p27107_p12, %p27106_p11 }
  0x1f   :  { %p27109_p0 = pnand %p27108_p13, %p27102_p10 }
  0x21   :  { %27112 = shalt.err (!%p27109_p0)
}
  0x22   :  { %s27166_s7 = smov 128   ;;  %s27167_s8 = smov 8  }
  0x23   :  { %47 = dma.hbm_to_vmem [thread:$0]  %s32879_s2, 512, %s42_s6, [#allocation6], %s27166_s7, %s27166_s7, %s27167_s8  }
  0x24   :  { %s27168_s11 = smov [#allocation8]  }
  0x25   :  { %s53_s12 = sshll.u32 %s27168_s11, 4  ;;  %s54_s12 = int_to_ptr.vmem [resolvable:$true] %s53_s12 }
  0x26   :  { %s27121_s0 = scalar_lea.vmem %s54_s12, 512  ;;  %p27126_p2 = scmp.lt.s32.totalorder %s54_s12, %s54_s12 }
  0x27   :  { %p27122_p1 = scmp.ne.s32.totalorder %s54_s12, %s27121_s0  ;;  %p27127_p3 = scmp.lt.s32.totalorder %s27121_s0, %s27121_s0 }
  0x29   :  { %p27128_p4 = por %p27127_p3, %p27126_p2 }
  0x2b   :  { %p27129_p5 = pnand %p27128_p4, %p27122_p1 }
  0x2d   :  { %27132 = shalt.err (!%p27129_p5)
}
  0x2e   :  { %59 = dma.hbm_to_vmem [thread:$0]  %s32880_s3, 512, %s54_s12, [#allocation9], %s27166_s7, %s27166_s7, %s27167_s8  }
  0x2f   :  { %27153 = dma.done.wait [#allocation3], 1024  }
  0x30   :  { %27154 = vsyncadd [#allocation3], 4294966272 }
  0x31   :  { %27155 = dma.done.wait [#allocation6], 544  }
  0x32   :  { %27156 = vsyncadd [#allocation6], 4294966752 }
  0x33   :  { %27157 = dma.done.wait [#allocation9], 512  }
  0x34   :  { %27158 = vsyncadd [#allocation9], 4294966784  ;;  %v167_v0 = vlaneseq  ;;  %v33020_v3 = vmov 0  ;;  %v27242_v4 = vld [vmem:[#allocation5] sm:$0x3]  ;;  %s27169_s2 = smov 32  }
  0x35   :  { %715 = vrot.lane.b32.xlu1 %v27242_v4, %s27169_s2  ;;  %s27170_s3 = smov 96   ;;  %v27248_v5 = vld [vmem:[#allocation2] sm:$0xff]  ;;  %s27171_s15 = smov 64   ;;  %v27258_v7 = vld [vmem:[#allocation2 + $0x8] sm:$0xff]  ;;  %v802_v8 = vld [vmem:[#allocation7 + $0x10] sm:$0xff]  ;;  %v708_v29 = vrot.slane %v27242_v4, 1 }
  0x36   :  { %v27235_v1 = vshrl.u32 %v167_v0, 7  ;;  %v1129_v2 = vand.u32 127, %v167_v0  ;;  %709 = vrot.lane.b32.xlu0 %v27242_v4, %s27170_s3  ;;  %v803_v6 = vld [vmem:[#allocation7 + $0x18] sm:$0xff]  ;;  %v801_v9 = vld [vmem:[#allocation7 + $0x8] sm:$0xff]  ;;  %v800_v11 = vld [vmem:[#allocation7] sm:$0xff]  ;;  %vm804_vm1 = vcmask 261120  }
  0x37   :  { %25114 = vmatprep.subr.mxu0 %v803_v6  ;;  %v27264_v10 = vld [vmem:[#allocation2 + $0x10] sm:$0xff]  ;;  %v27274_v12 = vld [vmem:[#allocation2 + $0x18] sm:$0xff]  ;;  %v27280_v13 = vld [vmem:[#allocation2 + $0x20] sm:$0xff]  ;;  %v27172_v19 = vmov 1983009808   ;;  %vm27176_vm2 = vmmov 0  }
  0x38   :  { %vm27238_vm0 = vcmp.le.s32.totalorder %v1129_v2, %v27235_v1  ;;  %25115 = vmatpush3.msra.mxu0 %v803_v6  ;;  %v27290_v14 = vld [vmem:[#allocation2 + $0x28] sm:$0xff]  ;;  %v27296_v15 = vld [vmem:[#allocation2 + $0x30] sm:$0xff]  ;;  %v27306_v16 = vld [vmem:[#allocation2 + $0x38] sm:$0xff]  ;;  %v165_v20 = vunpack.c.l.s4 %v27172_v19  ;;  %v27173_v21 = vmov 1966171168   ;;  %s27177_s16 = smov 88  }
  0x39   :  { %v33021_v3 = vsel %vm27238_vm0, 4294967295, %v33020_v3  ;;  %86 = vrot.lane.b32.xlu1 %v27248_v5, %s27170_s3  ;;  %25116 = vmatprep.subr.mxu0 %v802_v8  ;;  %v723_v22 = vunpack.c.l.s4 %v27173_v21  ;;  %v27174_v35 = vmov 1934713408   ;;  %s27178_s17 = smov 120   ;;  %vm1134_vm3 = vcmask 64512   ;;  %s27179_s18 = smov 56  }
  0x3a   :  { %33022 = vst [vmem:[#allocation15_spill] sm:$0xff] %v33021_v3  ;;  %712 = vrot.lane.b32.xlu0 %v27242_v4, %s27171_s15  ;;  %25117 = vmatpush3.msra.mxu0 %v802_v8  ;;  %v166_v27 = vunpack.c.0.s8 %v165_v20  ;;  %v229_v36 = vunpack.c.l.s4 %v27174_v35  ;;  %s27180_s19 = smov 80   ;;  %s27181_s20 = smov 112   ;;  %vm22927_vm4 = vcmask 195584   ;;  %vm22894_vm5 = vcmask 130048  }
  0x3b   :  { %25118 = vmatprep.subr.mxu0 %v801_v9  ;;  %v724_v28 = vunpack.c.0.s8 %v723_v22  ;;  %s27182_s21 = smov 48   ;;  %s27183_s22 = smov 72   ;;  %vm24032_vm6 = vcmask 523264   ;;  %vm24037_vm7 = vcmask 785408  }
  0x3c   :  { %25119 = vmatpush3.msra.mxu0 %v801_v9  ;;  %v27316_v34 = vsub.s32 %v166_v27, %v27235_v1  ;;  %v230_v50 = vunpack.c.0.s8 %v229_v36  ;;  %s27184_s23 = smov 104   ;;  %s27185_s24 = smov 40  }
  0x3d   :  { %110 = vrot.lane.b32.xlu1 %v27248_v5, %s27169_s2  ;;  %25120 = vmatprep.subr.mxu0 %v800_v11  ;;  %v727_v37 = vsub.s32 %v724_v28, %v27235_v1  ;;  %s27186_s25 = smov 24  }
  0x3e   :  { %98 = vrot.lane.b32.xlu0 %v27248_v5, %s27171_s15  ;;  %25121 = vmatpush3.msra.mxu0 %v800_v11  ;;  %33023 = vst [vmem:[#allocation16_spill] sm:$0xff] %v27316_v34  ;;  %v27339_v8 = vsub.s32 %v230_v50, %v27235_v1 }
  0x40   :  { %33024 = vst [vmem:[#allocation17_spill] sm:$0xff] %v27339_v8 }
  0x41   :  { %138 = vrot.lane.b32.xlu1 %v27258_v7, %s27171_s15 }
  0x42   :  { %126 = vrot.lane.b32.xlu0 %v27258_v7, %s27170_s3 }
  0x45   :  { %88 = vrot.lane.b32.xlu1 %v27264_v10, %s27170_s3 }
  0x46   :  { %150 = vrot.lane.b32.xlu0 %v27258_v7, %s27169_s2 }
  0x49   :  { %112 = vrot.lane.b32.xlu1 %v27264_v10, %s27169_s2 }
  0x4a   :  { %100 = vrot.lane.b32.xlu0 %v27264_v10, %s27171_s15 }
  0x4d   :  { %140 = vrot.lane.b32.xlu1 %v27274_v12, %s27171_s15 }
  0x4e   :  { %128 = vrot.lane.b32.xlu0 %v27274_v12, %s27170_s3 }
  0x51   :  { %90 = vrot.lane.b32.xlu1 %v27280_v13, %s27170_s3 }
  0x52   :  { %152 = vrot.lane.b32.xlu0 %v27274_v12, %s27169_s2 }
  0x55   :  { %114 = vrot.lane.b32.xlu1 %v27280_v13, %s27169_s2 }
  0x56   :  { %102 = vrot.lane.b32.xlu0 %v27280_v13, %s27171_s15 }
  0x59   :  { %142 = vrot.lane.b32.xlu1 %v27290_v14, %s27171_s15 }
  0x5a   :  { %130 = vrot.lane.b32.xlu0 %v27290_v14, %s27170_s3 }
  0x5d   :  { %92 = vrot.lane.b32.xlu1 %v27296_v15, %s27170_s3 }
  0x5e   :  { %154 = vrot.lane.b32.xlu0 %v27290_v14, %s27169_s2 }
  0x61   :  { %116 = vrot.lane.b32.xlu1 %v27296_v15, %s27169_s2 }
  0x62   :  { %104 = vrot.lane.b32.xlu0 %v27296_v15, %s27171_s15 }
  0x65   :  { %144 = vrot.lane.b32.xlu1 %v27306_v16, %s27171_s15 }
  0x66   :  { %132 = vrot.lane.b32.xlu0 %v27306_v16, %s27170_s3 }
  0x6a   :  { %156 = vrot.lane.b32.xlu0 %v27306_v16, %s27169_s2 }
  0xa7   :  { %v716_v17 = vpop.permute.xlu1 %715 }
  0xa8   :  { %v710_v18 = vpop.permute.xlu0 %709  ;;  %v717_v25 = vrot.slane %v716_v17, 1 }
  0xa9   :  { %v711_v30 = vrot.slane %v710_v18, 1  ;;  %v718_v45 = vcombine.low %v27242_v4, %v710_v18 }
  0xab   :  { %v87_v24 = vpop.permute.xlu1 %86  ;;  %v720_v38 = vcombine.low %v708_v29, %v711_v30  ;;  %v728_v60 = vrot.slane %v718_v45, %v727_v37 }
  0xac   :  { %v713_v23 = vpop.permute.xlu0 %712 }
  0xad   :  { %v714_v26 = vrot.slane %v713_v23, 1  ;;  %v719_v39 = vcombine.low %v713_v23, %v716_v17  ;;  %v742_v51 = vrot.slane %v720_v38, %v727_v37 }
  0xaf   :  { %v111_v32 = vpop.permute.xlu1 %110  ;;  %v721_v33 = vcombine.low %v714_v26, %v717_v25  ;;  %v735_v52 = vrot.slane %v719_v39, %v727_v37 }
  0xb0   :  { %v99_v31 = vpop.permute.xlu0 %98  ;;  %v178_v43 = vcombine.low %v87_v24, %v111_v32  ;;  %v179_v48 = vcombine.high %v87_v24, %v111_v32 }
  0xb1   :  { %v162_v40 = vcombine.low %v27248_v5, %v99_v31  ;;  %v749_v46 = vrot.slane %v721_v33, %v727_v37  ;;  %v163_v47 = vcombine.high %v27248_v5, %v99_v31  ;;  %v750_v5 = vcombine.low %v728_v60, %v735_v52 }
  0xb2   :  { %v186_v56 = vrot.slane %v178_v43, %v27316_v34  ;;  %v193_v63 = vrot.slane %v179_v48, %v27316_v34 }
  0xb3   :  { %v139_v42 = vpop.permute.xlu1 %138  ;;  %v170_v53 = vrot.slane %v162_v40, %v27316_v34  ;;  %v751_v61 = vcombine.low %v742_v51, %v749_v46  ;;  %v177_v62 = vrot.slane %v163_v47, %v27316_v34  ;;  %v758_v23 = vrot.slane %v750_v5, %v727_v37 }
  0xb4   :  { %v127_v41 = vpop.permute.xlu0 %126  ;;  %v194_v44 = vcombine.low %v27258_v7, %v139_v42  ;;  %v195_v49 = vcombine.high %v27258_v7, %v139_v42 }
  0xb5   :  { %v227_v9 = vcombine.high %v170_v53, %v186_v56  ;;  %v226_v17 = vcombine.low %v170_v53, %v186_v56  ;;  %v765_v18 = vrot.slane %v751_v61, %v727_v37  ;;  %v242_v19 = vcombine.low %v177_v62, %v193_v63 }
  0xb6   :  { %v202_v59 = vrot.slane %v194_v44, %v27316_v34  ;;  %v209_v4 = vrot.slane %v195_v49, %v27316_v34  ;;  %v243_v32 = vcombine.high %v177_v62, %v193_v63 }
  0xb7   :  { %v27325_v55 = vpop.permute.xlu1 %88  ;;  %v241_v28 = vrot.slane %v227_v9, %v27339_v8  ;;  %v234_v30 = vrot.slane %v226_v17, %v27339_v8  ;;  %v27350_v31 = vcombine.low %v758_v23, %v765_v18  ;;  %v250_v33 = vrot.slane %v242_v19, %v27339_v8 }
  0xb8   :  { %v151_v54 = vpop.permute.xlu0 %150 }
  0xb9   :  { %v210_v57 = vcombine.low %v127_v41, %v151_v54  ;;  %v211_v58 = vcombine.high %v127_v41, %v151_v54  ;;  %v257_v54 = vrot.slane %v243_v32, %v27339_v8 }
  0xbb   :  { %v218_v0 = vrot.slane %v210_v57, %v27316_v34  ;;  %v225_v2 = vrot.slane %v211_v58, %v27316_v34  ;;  %v27336_v7 = vpop.permute.xlu1 %112 }
  0xbc   :  { %v27334_v6 = vpop.permute.xlu0 %100  ;;  %v314_v26 = vcombine.low %v27325_v55, %v27336_v7  ;;  %v315_v57 = vcombine.high %v27325_v55, %v27336_v7 }
  0xbd   :  { %v259_v11 = vcombine.high %v202_v59, %v218_v0  ;;  %v258_v20 = vcombine.low %v202_v59, %v218_v0  ;;  %v274_v22 = vcombine.low %v209_v4, %v225_v2  ;;  %v298_v24 = vcombine.low %v27264_v10, %v27334_v6 }
  0xbe   :  { %v275_v35 = vcombine.high %v209_v4, %v225_v2  ;;  %v322_v41 = vrot.slane %v314_v26, %v27316_v34  ;;  %v299_v56 = vcombine.high %v27264_v10, %v27334_v6  ;;  %v329_v7 = vrot.slane %v315_v57, %v27316_v34 }
  0xbf   :  { %v273_v21 = vrot.slane %v259_v11, %v27339_v8  ;;  %v141_v27 = vpop.permute.xlu1 %140  ;;  %v266_v1 = vrot.slane %v258_v20, %v27339_v8  ;;  %v282_v36 = vrot.slane %v274_v22, %v27339_v8  ;;  %v306_v40 = vrot.slane %v298_v24, %v27316_v34 }
  0xc0   :  { %v129_v25 = vpop.permute.xlu0 %128  ;;  %v330_v29 = vcombine.low %v27274_v12, %v141_v27  ;;  %v331_v43 = vcombine.high %v27274_v12, %v141_v27  ;;  %v289_v51 = vrot.slane %v275_v35, %v27339_v8  ;;  %v313_v6 = vrot.slane %v299_v56, %v27316_v34 }
  0xc1   :  { %v290_v37 = vcombine.low %v234_v30, %v266_v1  ;;  %v291_v38 = vcombine.high %v234_v30, %v266_v1  ;;  %v292_v39 = vcombine.low %v241_v28, %v273_v21  ;;  %v293_v50 = vcombine.high %v241_v28, %v273_v21 }
  0xc2   :  { %v338_v44 = vrot.slane %v330_v29, %v27316_v34  ;;  %v294_v53 = vcombine.low %v250_v33, %v282_v36  ;;  %v362_v60 = vcombine.low %v306_v40, %v322_v41  ;;  %v345_v62 = vrot.slane %v331_v43, %v27316_v34 }
  0xc3   :  { %v27358_v45 = vpop.permute.xlu1 %90  ;;  %v27361_v48 = vadd.f32 %v27350_v31, %v290_v37  ;;  %v27364_v49 = vadd.f32 %v27350_v31, %v291_v38  ;;  %v27371_v12 = vadd.f32 %v27350_v31, %v292_v39  ;;  %v27389_v10 = vadd.f32 %v27350_v31, %v293_v50 }
  0xc4   :  { %v153_v42 = vpop.permute.xlu0 %152  ;;  %v295_v55 = vcombine.high %v250_v33, %v282_v36  ;;  %v27393_v4 = vadd.f32 %v27350_v31, %v294_v53  ;;  %v296_v5 = vcombine.low %v257_v54, %v289_v51  ;;  %v363_v17 = vcombine.high %v306_v40, %v322_v41 }
  0xc5   :  { %v346_v46 = vcombine.low %v129_v25, %v153_v42  ;;  %v347_v47 = vcombine.high %v129_v25, %v153_v42  ;;  %33025 = vst [vmem:[#allocation18_spill] sm:$0xff] %v27361_v48  ;;  %33026 = vst [vmem:[#allocation19_spill] sm:$0xff] %v27364_v49  ;;  %25122 = vmatprep.mubr.msk.f32.mxu0 %vm804_vm1, %v27361_v48  ;;  %v370_v18 = vrot.slane %v362_v60, %v27339_v8 }
  0xc6   :  { %33027 = vst [vmem:[#allocation20_spill] sm:$0xff] %v27371_v12  ;;  %25123 = vmatmul.mubr.msk.f32.vlgmr.msra.gmra.mxu0 %vm804_vm1, %v27364_v49  ;;  %33028 = vst [vmem:[#allocation21_spill] sm:$0xff] %v27389_v10  ;;  %v27407_v22 = vadd.f32 %v27350_v31, %v295_v55  ;;  %v297_v23 = vcombine.high %v257_v54, %v289_v51  ;;  %v27411_v25 = vadd.f32 %v27350_v31, %v296_v5 }
  0xc7   :  { %v354_v52 = vrot.slane %v346_v46, %v27316_v34  ;;  %v27382_v59 = vpop.permute.xlu1 %114  ;;  %v361_v61 = vrot.slane %v347_v47, %v27316_v34  ;;  %25125 = vmatprep.mubr.msk.f32.mxu0 %vm804_vm1, %v27371_v12  ;;  %33029 = vst [vmem:[#allocation22_spill] sm:$0xff] %v27393_v4  ;;  %v378_v1 = vcombine.low %v313_v6, %v329_v7 }
  0xc8   :  { %v27380_v58 = vpop.permute.xlu0 %102  ;;  %v450_v21 = vcombine.low %v27358_v45, %v27382_v59  ;;  %33030 = vst [vmem:[#allocation23_spill] sm:$0xff] %v27407_v22  ;;  %33031 = vst [vmem:[#allocation24_spill] sm:$0xff] %v27411_v25  ;;  %v377_v30 = vrot.slane %v363_v17, %v27339_v8  ;;  %v27425_v38 = vadd.f32 %v27350_v31, %v297_v23 }
  0xc9   :  { %v394_v63 = vcombine.low %v338_v44, %v354_v52  ;;  %v395_v0 = vcombine.high %v338_v44, %v354_v52  ;;  %v410_v19 = vcombine.low %v345_v62, %v361_v61  ;;  %v434_v20 = vcombine.low %v27280_v13, %v27380_v58 }
  0xca   :  { %25126 = vmatmul.mubr.msk.f32.gmra.mxu0 %vm804_vm1, %v27389_v10  ;;  %v411_v32 = vcombine.high %v345_v62, %v361_v61  ;;  %v458_v37 = vrot.slane %v450_v21, %v27316_v34  ;;  %33032 = vst [vmem:[#allocation25_spill] sm:$0xff] %v27425_v38  ;;  %v379_v44 = vcombine.high %v313_v6, %v329_v7 }
  0xcb   :  { %v402_v2 = vrot.slane %v394_v63, %v27339_v8  ;;  %v143_v11 = vpop.permute.xlu1 %142  ;;  %25128 = vmatprep.mubr.msk.f32.mxu0 %vm804_vm1, %v27393_v4  ;;  %v409_v24 = vrot.slane %v395_v0, %v27339_v8  ;;  %v418_v33 = vrot.slane %v410_v19, %v27339_v8  ;;  %v442_v36 = vrot.slane %v434_v20, %v27316_v34 }
  0xcc   :  { %v131_v9 = vpop.permute.xlu0 %130  ;;  %v466_v26 = vcombine.low %v27290_v14, %v143_v11  ;;  %v435_v46 = vcombine.high %v27280_v13, %v27380_v58  ;;  %v386_v50 = vrot.slane %v378_v1, %v27339_v8  ;;  %v451_v51 = vcombine.high %v27358_v45, %v27382_v59 }
  0xcd   :  { %v426_v27 = vcombine.low %v370_v18, %v402_v2  ;;  %v427_v39 = vcombine.high %v370_v18, %v402_v2  ;;  %v428_v43 = vcombine.low %v377_v30, %v409_v24  ;;  %v467_v53 = vcombine.high %v27290_v14, %v143_v11 }
  0xce   :  { %25129 = vmatmul.mubr.msk.f32.gmra.mxu0 %vm804_vm1, %v27407_v22  ;;  %v474_v41 = vrot.slane %v466_v26, %v27316_v34  ;;  %v425_v54 = vrot.slane %v411_v32, %v27339_v8  ;;  %v429_v57 = vcombine.high %v377_v30, %v409_v24  ;;  %v498_v58 = vcombine.low %v442_v36, %v458_v37 }
  0xcf   :  { %v27416_v29 = vpop.permute.xlu1 %92  ;;  %25131 = vmatprep.mubr.msk.f32.mxu0 %vm804_vm1, %v27411_v25  ;;  %v27430_v42 = vadd.f32 %v27350_v31, %v426_v27  ;;  %v27446_v13 = vadd.f32 %v27350_v31, %v427_v39  ;;  %v27451_v61 = vadd.f32 %v27350_v31, %v428_v43  ;;  %v430_v45 = vcombine.low %v386_v50, %v418_v33 }
  0xd0   :  { %v155_v28 = vpop.permute.xlu0 %154  ;;  %v393_v59 = vrot.slane %v379_v44, %v27339_v8  ;;  %v449_v14 = vrot.slane %v435_v46, %v27316_v34  ;;  %v465_v63 = vrot.slane %v451_v51, %v27316_v34  ;;  %v499_v55 = vcombine.high %v442_v36, %v458_v37 }
  0xd1   :  { %v482_v35 = vcombine.low %v131_v9, %v155_v28  ;;  %33033 = vst [vmem:[#allocation26_spill] sm:$0xff] %v27430_v42  ;;  %v483_v52 = vcombine.high %v131_v9, %v155_v28  ;;  %33034 = vst [vmem:[#allocation27_spill] sm:$0xff] %v27446_v13  ;;  %v481_v2 = vrot.slane %v467_v53, %v27316_v34 }
  0xd2   :  { %25132 = vmatmul.mubr.msk.f32.gmra.mxu0 %vm804_vm1, %v27425_v38  ;;  %33035 = vst [vmem:[#allocation28_spill] sm:$0xff] %v27451_v61  ;;  %v27465_v6 = vadd.f32 %v27350_v31, %v429_v57  ;;  %v431_v7 = vcombine.high %v386_v50, %v418_v33  ;;  %v506_v9 = vrot.slane %v498_v58, %v27339_v8 }
  0xd3   :  { %v490_v40 = vrot.slane %v482_v35, %v27316_v34  ;;  %25134 = vmatprep.mubr.msk.f32.mxu0 %vm804_vm1, %v27430_v42  ;;  %v27448_v56 = vpop.permute.xlu1 %116  ;;  %v497_v0 = vrot.slane %v483_v52, %v27316_v34  ;;  %v27470_v17 = vadd.f32 %v27350_v31, %v430_v45  ;;  %v432_v18 = vcombine.low %v393_v59, %v425_v54 }
  0xd4   :  { %v27436_v47 = vpop.permute.xlu0 %104  ;;  %33036 = vst [vmem:[#allocation29_spill] sm:$0xff] %v27465_v6  ;;  %v513_v21 = vrot.slane %v499_v55, %v27339_v8  ;;  %v514_v23 = vcombine.low %v449_v14, %v465_v63  ;;  %v433_v26 = vcombine.high %v393_v59, %v425_v54  ;;  %v586_v28 = vcombine.low %v27416_v29, %v27448_v56 }
  0xd5   :  { %v530_v60 = vcombine.low %v474_v41, %v490_v40  ;;  %v531_v5 = vcombine.high %v474_v41, %v490_v40  ;;  %33037 = vst [vmem:[#allocation30_spill] sm:$0xff] %v27470_v17  ;;  %v546_v24 = vcombine.low %v481_v2, %v497_v0  ;;  %v570_v1 = vcombine.low %v27296_v15, %v27436_v47 }
  0xd6   :  { %25135 = vmatmul.mubr.msk.f32.gmra.mxu0 %vm804_vm1, %v27446_v13  ;;  %v27483_v30 = vadd.f32 %v27350_v31, %v431_v7  ;;  %v27488_v35 = vadd.f32 %v27350_v31, %v432_v18  ;;  %v515_v37 = vcombine.high %v449_v14, %v465_v63  ;;  %v522_v39 = vrot.slane %v514_v23, %v27339_v8 }
  0xd7   :  { %25137 = vmatprep.mubr.msk.f32.mxu0 %vm804_vm1, %v27451_v61  ;;  %v538_v11 = vrot.slane %v530_v60, %v27339_v8  ;;  %v145_v20 = vpop.permute.xlu1 %144  ;;  %v545_v27 = vrot.slane %v531_v5, %v27339_v8  ;;  %v547_v40 = vcombine.high %v481_v2, %v497_v0  ;;  %v554_v41 = vrot.slane %v546_v24, %v27339_v8 }
  0xd8   :  { %v27457_v62 = vpop.permute.xlu0 %132  ;;  %33038 = vst [vmem:[#allocation31_spill] sm:$0xff] %v27483_v30  ;;  %v602_v33 = vcombine.low %v27306_v16, %v145_v20  ;;  %33039 = vst [vmem:[#allocation32_spill] sm:$0xff] %v27488_v35  ;;  %v578_v43 = vrot.slane %v570_v1, %v27316_v34  ;;  %v594_v44 = vrot.slane %v586_v28, %v27316_v34 }
  0xd9   :  { %v562_v36 = vcombine.low %v506_v9, %v538_v11  ;;  %v27499_v46 = vadd.f32 %v27350_v31, %v433_v26  ;;  %v563_v50 = vcombine.high %v506_v9, %v538_v11  ;;  %v564_v54 = vcombine.low %v513_v21, %v545_v27 }
  0xda   :  { %25138 = vmatmul.mubr.msk.f32.gmra.mxu0 %vm804_vm1, %v27465_v6  ;;  %v610_v52 = vrot.slane %v602_v33, %v27316_v34  ;;  %v529_v57 = vrot.slane %v515_v37, %v27339_v8  ;;  %v571_v58 = vcombine.high %v27296_v15, %v27436_v47  ;;  %v587_v60 = vcombine.high %v27416_v29, %v27448_v56 }
  0xdb   :  { %25140 = vmatprep.mubr.msk.f32.mxu0 %vm804_vm1, %v27470_v17  ;;  %33040 = vst [vmem:[#allocation33_spill] sm:$0xff] %v27499_v46  ;;  %v27504_v53 = vadd.f32 %v27350_v31, %v562_v36  ;;  %v603_v45 = vcombine.high %v27306_v16, %v145_v20  ;;  %v634_v59 = vcombine.low %v578_v43, %v594_v44 }
  0xdc   :  { %v157_v19 = vpop.permute.xlu0 %156  ;;  %v27518_v63 = vadd.f32 %v27350_v31, %v563_v50  ;;  %v565_v55 = vcombine.high %v513_v21, %v545_v27  ;;  %v561_v0 = vrot.slane %v547_v40, %v27339_v8  ;;  %v27522_v15 = vadd.f32 %v27350_v31, %v564_v54 }
  0xdd   :  { %v618_v32 = vcombine.low %v27457_v62, %v157_v19  ;;  %33041 = vst [vmem:[#allocation34_spill] sm:$0xff] %v27504_v53  ;;  %v619_v14 = vcombine.high %v27457_v62, %v157_v19  ;;  %v566_v47 = vcombine.low %v522_v39, %v554_v41  ;;  %v585_v16 = vrot.slane %v571_v58, %v27316_v34 }
  0xde   :  { %25141 = vmatmul.mubr.msk.f32.gmra.mxu0 %vm804_vm1, %v27483_v30  ;;  %33042 = vst [vmem:[#allocation35_spill] sm:$0xff] %v27518_v63  ;;  %33043 = vst [vmem:[#allocation36_spill] sm:$0xff] %v27522_v15  ;;  %v601_v29 = vrot.slane %v587_v60, %v27316_v34  ;;  %v635_v56 = vcombine.high %v578_v43, %v594_v44  ;;  %v617_v62 = vrot.slane %v603_v45, %v27316_v34 }
  0xdf   :  { %25143 = vmatprep.mubr.msk.f32.mxu0 %vm804_vm1, %v27488_v35  ;;  %v626_v51 = vrot.slane %v618_v32, %v27316_v34  ;;  %v642_v5 = vrot.slane %v634_v59, %v27339_v8  ;;  %v633_v7 = vrot.slane %v619_v14, %v27316_v34  ;;  %v27534_v9 = vadd.f32 %v27350_v31, %v565_v55 }
  0xe0   :  { %v567_v11 = vcombine.high %v522_v39, %v554_v41  ;;  %v27538_v20 = vadd.f32 %v27350_v31, %v566_v47  ;;  %v568_v21 = vcombine.low %v529_v57, %v561_v0  ;;  %v649_v23 = vrot.slane %v635_v56, %v27339_v8 }
  0xe1   :  { %v666_v2 = vcombine.low %v610_v52, %v626_v51  ;;  %33044 = vst [vmem:[#allocation37_spill] sm:$0xff] %v27534_v9  ;;  %v667_v18 = vcombine.high %v610_v52, %v626_v51  ;;  %v650_v24 = vcombine.low %v585_v16, %v601_v29  ;;  %v569_v27 = vcombine.high %v529_v57, %v561_v0 }
  0xe2   :  { %25144 = vmatmul.mubr.msk.f32.gmra.mxu0 %vm804_vm1, %v27499_v46  ;;  %33045 = vst [vmem:[#allocation38_spill] sm:$0xff] %v27538_v20  ;;  %v27546_v26 = vadd.f32 %v27350_v31, %v567_v11  ;;  %v682_v28 = vcombine.low %v617_v62, %v633_v7  ;;  %v27550_v32 = vadd.f32 %v27350_v31, %v568_v21 }
  0xe3   :  { %25146 = vmatprep.mubr.msk.f32.mxu0 %vm804_vm1, %v27504_v53  ;;  %v674_v19 = vrot.slane %v666_v2, %v27339_v8  ;;  %v681_v1 = vrot.slane %v667_v18, %v27339_v8  ;;  %v651_v36 = vcombine.high %v585_v16, %v601_v29  ;;  %v658_v37 = vrot.slane %v650_v24, %v27339_v8 }
  0xe4   :  { %33046 = vst [vmem:[#allocation39_spill] sm:$0xff] %v27546_v26  ;;  %33047 = vst [vmem:[#allocation40_spill] sm:$0xff] %v27550_v32  ;;  %v27558_v39 = vadd.f32 %v27350_v31, %v569_v27  ;;  %v683_v41 = vcombine.high %v617_v62, %v633_v7  ;;  %v690_v43 = vrot.slane %v682_v28, %v27339_v8  ;;  %v32883_v29 = vmov 0.0  }
  0xe5   :  { %v698_v33 = vcombine.low %v642_v5, %v674_v19  ;;  %v699_v40 = vcombine.high %v642_v5, %v674_v19  ;;  %v700_v50 = vcombine.low %v649_v23, %v681_v1  ;;  %v701_v52 = vcombine.high %v649_v23, %v681_v1  ;;  %25170 = vmatprep.subr.mxu1 %v32883_v29 }
  0xe6   :  { %25147 = vmatmul.mubr.msk.f32.gmra.mxu0 %vm804_vm1, %v27518_v63  ;;  %33048 = vst [vmem:[#allocation41_spill] sm:$0xff] %v27558_v39  ;;  %v665_v54 = vrot.slane %v651_v36, %v27339_v8  ;;  %v697_v57 = vrot.slane %v683_v41, %v27339_v8  ;;  %v702_v60 = vcombine.low %v658_v37, %v690_v43 }
  0xe7   :  { %25149 = vmatprep.mubr.msk.f32.mxu0 %vm804_vm1, %v27522_v15  ;;  %v27562_v44 = vadd.f32 %v27350_v31, %v698_v33  ;;  %v27569_v51 = vadd.f32 %v27350_v31, %v699_v40  ;;  %v27574_v58 = vadd.f32 %v27350_v31, %v700_v50  ;;  %v27581_v45 = vadd.f32 %v27350_v31, %v701_v52 }
  0xe8   :  { %v703_v59 = vcombine.high %v658_v37, %v690_v43  ;;  %v27584_v14 = vadd.f32 %v27350_v31, %v702_v60  ;;  %v704_v55 = vcombine.low %v665_v54, %v697_v57  ;;  %v705_v2 = vcombine.high %v665_v54, %v697_v57  ;;  %25255 = vmatprep.subr.mxu0 %v32883_v29 }
  0xe9   :  { %33049 = vst [vmem:[#allocation42_spill] sm:$0xff] %v27562_v44  ;;  %33050 = vst [vmem:[#allocation43_spill] sm:$0xff] %v27569_v51  ;;  %25172 = vmatprep.mubr.msk.f32.mxu1 %vm27176_vm2, %v32883_v29 }
  0xea   :  { %25150 = vmatmul.mubr.msk.f32.gmra.mxu0 %vm804_vm1, %v27534_v9  ;;  %33051 = vst [vmem:[#allocation44_spill] sm:$0xff] %v27574_v58  ;;  %33052 = vst [vmem:[#allocation45_spill] sm:$0xff] %v27581_v45  ;;  %v27591_v0 = vadd.f32 %v27350_v31, %v703_v59  ;;  %v27594_v47 = vadd.f32 %v27350_v31, %v704_v55  ;;  %v27601_v16 = vadd.f32 %v27350_v31, %v705_v2 }
  0xeb   :  { %25152 = vmatprep.mubr.msk.f32.mxu0 %vm804_vm1, %v27538_v20  ;;  %33053 = vst [vmem:[#allocation46_spill] sm:$0xff] %v27584_v14 }
  0xec   :  { %33054 = vst [vmem:[#allocation47_spill] sm:$0xff] %v27591_v0  ;;  %33055 = vst [vmem:[#allocation48_spill] sm:$0xff] %v27594_v47 }
  0xed   :  { %33056 = vst [vmem:[#allocation49_spill] sm:$0xff] %v27601_v16 }
  0xee   :  { %25153 = vmatmul.mubr.msk.f32.gmra.mxu0 %vm804_vm1, %v27546_v26 }
  0xef   :  { %25155 = vmatprep.mubr.msk.f32.mxu0 %vm804_vm1, %v27550_v32 }
  0xf2   :  { %25156 = vmatmul.mubr.msk.f32.gmra.mxu0 %vm804_vm1, %v27558_v39 }
  0xf3   :  { %25158 = vmatprep.mubr.msk.f32.mxu0 %vm804_vm1, %v27562_v44  ;;  %v33087_v44 = vmov 0.0  }
  0xf6   :  { %25159 = vmatmul.mubr.msk.f32.gmra.mxu0 %vm804_vm1, %v27569_v51 }
  0xf7   :  { %25161 = vmatprep.mubr.msk.f32.mxu0 %vm804_vm1, %v27574_v58 }
  0xfa   :  { %25162 = vmatmul.mubr.msk.f32.gmra.mxu0 %vm804_vm1, %v27581_v45 }
  0xfb   :  { %25164 = vmatprep.mubr.msk.f32.mxu0 %vm804_vm1, %v27584_v14 }
  0xfe   :  { %25165 = vmatmul.mubr.msk.f32.gmra.mxu0 %vm804_vm1, %v27591_v0 }
  0xff   :  { %25167 = vmatprep.mubr.msk.f32.mxu0 %vm804_vm1, %v27594_v47 }
 0x102   :  { %25168 = vmatmul.mubr.msk.f32.gmra.mxu0 %vm804_vm1, %v27601_v16 }
 0x103   :  { %25257 = vmatprep.mubr.msk.f32.mxu0 %vm27176_vm2, %v32883_v29 }
 0x186   :  { %v27611_v56 = vpop.f32.mrf.mxu0 }
 0x187   :  { %33057 = vst [vmem:[#allocation50_spill] sm:$0xff] %v27611_v56  ;;  %1210 = vrot.lane.b32.xlu0 %v27611_v56, %s27170_s3 }
 0x188   :  { %v27615_v31 = vpop.f32.mrf.mxu0 }
 0x189   :  { %33058 = vst [vmem:[#allocation51_spill] sm:$0xff] %v27615_v31  ;;  %1132 = vrot.lane.b32.xlu1 %v27615_v31, %s27170_s3 }
 0x18a   :  { %v27619_v62 = vpop.f32.mrf.mxu0 }
 0x18b   :  { %33059 = vst [vmem:[#allocation52_spill] sm:$0xff] %v27619_v62  ;;  %1364 = vrot.lane.b32.xlu0 %v27619_v62, %s27170_s3 }
 0x18c   :  { %v27623_v5 = vpop.f32.mrf.mxu0 }
 0x18d   :  { %33060 = vst [vmem:[#allocation53_spill] sm:$0xff] %v27623_v5  ;;  %1287 = vrot.lane.b32.xlu1 %v27623_v5, %s27170_s3 }
 0x18e   :  { %v27627_v7 = vpop.f32.mrf.mxu0 }
 0x18f   :  { %33061 = vst [vmem:[#allocation54_spill] sm:$0xff] %v27627_v7  ;;  %1518 = vrot.lane.b32.xlu0 %v27627_v7, %s27170_s3 }
 0x190   :  { %v27631_v11 = vpop.f32.mrf.mxu0 }
 0x191   :  { %33062 = vst [vmem:[#allocation55_spill] sm:$0xff] %v27631_v11  ;;  %1441 = vrot.lane.b32.xlu1 %v27631_v11, %s27170_s3 }
 0x192   :  { %v27635_v18 = vpop.f32.mrf.mxu0 }
 0x193   :  { %33063 = vst [vmem:[#allocation56_spill] sm:$0xff] %v27635_v18  ;;  %1672 = vrot.lane.b32.xlu0 %v27635_v18, %s27170_s3 }
 0x194   :  { %v27639_v19 = vpop.f32.mrf.mxu0 }
 0x195   :  { %33064 = vst [vmem:[#allocation57_spill] sm:$0xff] %v27639_v19  ;;  %1595 = vrot.lane.b32.xlu1 %v27639_v19, %s27170_s3 }
 0x196   :  { %v27643_v21 = vpop.f32.mrf.mxu0 }
 0x197   :  { %33065 = vst [vmem:[#allocation58_spill] sm:$0xff] %v27643_v21  ;;  %1826 = vrot.lane.b32.xlu0 %v27643_v21, %s27170_s3 }
 0x198   :  { %v27647_v23 = vpop.f32.mrf.mxu0 }
 0x199   :  { %33066 = vst [vmem:[#allocation59_spill] sm:$0xff] %v27647_v23  ;;  %1749 = vrot.lane.b32.xlu1 %v27647_v23, %s27170_s3 }
 0x19a   :  { %v27651_v24 = vpop.f32.mrf.mxu0 }
 0x19b   :  { %33067 = vst [vmem:[#allocation60_spill] sm:$0xff] %v27651_v24  ;;  %1980 = vrot.lane.b32.xlu0 %v27651_v24, %s27170_s3 }
 0x19c   :  { %v27655_v27 = vpop.f32.mrf.mxu0 }
 0x19d   :  { %33068 = vst [vmem:[#allocation61_spill] sm:$0xff] %v27655_v27  ;;  %1903 = vrot.lane.b32.xlu1 %v27655_v27, %s27170_s3 }
 0x19e   :  { %v27659_v1 = vpop.f32.mrf.mxu0 }
 0x19f   :  { %33069 = vst [vmem:[#allocation62_spill] sm:$0xff] %v27659_v1  ;;  %2134 = vrot.lane.b32.xlu0 %v27659_v1, %s27170_s3 }
 0x1a0   :  { %v27663_v28 = vpop.f32.mrf.mxu0 }
 0x1a1   :  { %33070 = vst [vmem:[#allocation63_spill] sm:$0xff] %v27663_v28  ;;  %2057 = vrot.lane.b32.xlu1 %v27663_v28, %s27170_s3 }
 0x1a2   :  { %v27667_v33 = vpop.f32.mrf.mxu0 }
 0x1a3   :  { %33071 = vst [vmem:[#allocation64_spill] sm:$0xff] %v27667_v33  ;;  %2288 = vrot.lane.b32.xlu0 %v27667_v33, %s27170_s3 }
 0x1a4   :  { %v27671_v36 = vpop.f32.mrf.mxu0 }
 0x1a5   :  { %33072 = vst [vmem:[#allocation65_spill] sm:$0xff] %v27671_v36  ;;  %2211 = vrot.lane.b32.xlu1 %v27671_v36, %s27170_s3 }
 0x1a6   :  { %v27675_v37 = vpop.f32.mrf.mxu0 }
 0x1a7   :  { %2442 = vrot.lane.b32.xlu0 %v27675_v37, %s27170_s3 }
 0x1a8   :  { %v27679_v40 = vpop.f32.mrf.mxu0 }
 0x1a9   :  { %2365 = vrot.lane.b32.xlu1 %v27679_v40, %s27170_s3 }
 0x1aa   :  { %v27683_v41 = vpop.f32.mrf.mxu0 }
 0x1ab   :  { %33073 = vst [vmem:[#allocation66_spill] sm:$0xff] %v27683_v41  ;;  %2596 = vrot.lane.b32.xlu0 %v27683_v41, %s27170_s3 }
 0x1ac   :  { %v27687_v43 = vpop.f32.mrf.mxu0 }
 0x1ad   :  { %33074 = vst [vmem:[#allocation67_spill] sm:$0xff] %v27687_v43  ;;  %2519 = vrot.lane.b32.xlu1 %v27687_v43, %s27170_s3 }
 0x1ae   :  { %v27691_v50 = vpop.f32.mrf.mxu0 }
 0x1af   :  { %33075 = vst [vmem:[#allocation68_spill] sm:$0xff] %v27691_v50  ;;  %2750 = vrot.lane.b32.xlu0 %v27691_v50, %s27170_s3 }
 0x1b0   :  { %v27695_v52 = vpop.f32.mrf.mxu0 }
 0x1b1   :  { %33076 = vst [vmem:[#allocation69_spill] sm:$0xff] %v27695_v52  ;;  %2673 = vrot.lane.b32.xlu1 %v27695_v52, %s27170_s3 }
 0x1b2   :  { %v27699_v54 = vpop.f32.mrf.mxu0 }
 0x1b3   :  { %33077 = vst [vmem:[#allocation70_spill] sm:$0xff] %v27699_v54  ;;  %2904 = vrot.lane.b32.xlu0 %v27699_v54, %s27170_s3 }
 0x1b4   :  { %v27703_v57 = vpop.f32.mrf.mxu0 }
 0x1b5   :  { %33078 = vst [vmem:[#allocation71_spill] sm:$0xff] %v27703_v57  ;;  %2827 = vrot.lane.b32.xlu1 %v27703_v57, %s27170_s3 }
 0x1b6   :  { %v27707_v60 = vpop.f32.mrf.mxu0 }
 0x1b7   :  { %33079 = vst [vmem:[#allocation72_spill] sm:$0xff] %v27707_v60  ;;  %3058 = vrot.lane.b32.xlu0 %v27707_v60, %s27170_s3 }
 0x1b8   :  { %v27711_v59 = vpop.f32.mrf.mxu0 }
 0x1b9   :  { %33080 = vst [vmem:[#allocation73_spill] sm:$0xff] %v27711_v59  ;;  %2981 = vrot.lane.b32.xlu1 %v27711_v59, %s27170_s3 }
 0x1ba   :  { %v27715_v55 = vpop.f32.mrf.mxu0 }
 0x1bb   :  { %33081 = vst [vmem:[#allocation74_spill] sm:$0xff] %v27715_v55  ;;  %3212 = vrot.lane.b32.xlu0 %v27715_v55, %s27170_s3 }
 0x1bc   :  { %v27719_v2 = vpop.f32.mrf.mxu0 }
 0x1bd   :  { %33082 = vst [vmem:[#allocation75_spill] sm:$0xff] %v27719_v2  ;;  %3135 = vrot.lane.b32.xlu1 %v27719_v2, %s27170_s3 }
 0x1be   :  { %v27723_v29 = vpop.f32.mrf.mxu0 }
 0x1bf   :  { %33083 = vst [vmem:[#allocation76_spill] sm:$0xff] %v27723_v29  ;;  %3366 = vrot.lane.b32.xlu0 %v27723_v29, %s27170_s3 }
 0x1c0   :  { %v27727_v47 = vpop.f32.mrf.mxu0 }
 0x1c1   :  { %33084 = vst [vmem:[#allocation77_spill] sm:$0xff] %v27727_v47  ;;  %3289 = vrot.lane.b32.xlu1 %v27727_v47, %s27170_s3 }
 0x1c2   :  { %v27731_v14 = vpop.f32.mrf.mxu0 }
 0x1c3   :  { %33085 = vst [vmem:[#allocation78_spill] sm:$0xff] %v27731_v14  ;;  %3520 = vrot.lane.b32.xlu0 %v27731_v14, %s27170_s3 }
 0x1c4   :  { %v27775_v16 = vpop.f32.mrf.mxu0 }
 0x1c5   :  { %4090 = vrot.lane.b32.xlu1 %v27611_v56, %s27171_s15  ;;  %33086 = vst [vmem:[#allocation79_spill] sm:$0xff] %v27775_v16 }
 0x1c7   :  { %4014 = vrot.lane.b32.xlu0 %v27615_v31, %s27171_s15 }
 0x1c9   :  { %4166 = vrot.lane.b32.xlu1 %v27623_v5, %s27171_s15 }
 0x1cb   :  { %4242 = vrot.lane.b32.xlu0 %v27619_v62, %s27171_s15 }
 0x1cd   :  { %4318 = vrot.lane.b32.xlu1 %v27631_v11, %s27171_s15 }
 0x1cf   :  { %4470 = vrot.lane.b32.xlu0 %v27639_v19, %s27171_s15 }
 0x1d1   :  { %4394 = vrot.lane.b32.xlu1 %v27627_v7, %s27171_s15 }
 0x1d3   :  { %4698 = vrot.lane.b32.xlu0 %v27643_v21, %s27171_s15 }
 0x1d5   :  { %4546 = vrot.lane.b32.xlu1 %v27635_v18, %s27171_s15 }
 0x1d7   :  { %4850 = vrot.lane.b32.xlu0 %v27651_v24, %s27171_s15 }
 0x1d9   :  { %4622 = vrot.lane.b32.xlu1 %v27647_v23, %s27171_s15 }
 0x1db   :  { %5002 = vrot.lane.b32.xlu0 %v27659_v1, %s27171_s15 }
 0x1dd   :  { %4774 = vrot.lane.b32.xlu1 %v27655_v27, %s27171_s15 }
 0x1df   :  { %5154 = vrot.lane.b32.xlu0 %v27667_v33, %s27171_s15 }
 0x1e1   :  { %4926 = vrot.lane.b32.xlu1 %v27663_v28, %s27171_s15 }
 0x1e3   :  { %5306 = vrot.lane.b32.xlu0 %v27675_v37, %s27171_s15 }
 0x1e5   :  { %5078 = vrot.lane.b32.xlu1 %v27671_v36, %s27171_s15 }
 0x1e7   :  { %5686 = vrot.lane.b32.xlu0 %v27703_v57, %s27171_s15 }
 0x1e9   :  { %5230 = vrot.lane.b32.xlu1 %v27679_v40, %s27171_s15 }
 0x1eb   :  { %6218 = vrot.lane.b32.xlu0 %v27723_v29, %s27171_s15 }
 0x1ed   :  { %3443 = vrot.lane.b32.xlu1 %v27775_v16, %s27170_s3 }
 0x1ef   :  { %6370 = vrot.lane.b32.xlu0 %v27731_v14, %s27171_s15 }
 0x1f1   :  { %5382 = vrot.lane.b32.xlu1 %v27687_v43, %s27171_s15 }
 0x1f3   :  { %6526 = vrot.lane.b32.xlu0 %v27611_v56, %s27177_s16 }
 0x1f5   :  { %5458 = vrot.lane.b32.xlu1 %v27683_v41, %s27171_s15 }
 0x1f7   :  { %6524 = vrot.lane.b32.xlu0 %v27611_v56, %s27178_s17 }
 0x1f9   :  { %v1211_v0 = vpop.permute.xlu0 %1210  ;;  %5534 = vrot.lane.b32.xlu1 %v27695_v52, %s27171_s15 }
 0x1fb   :  { %6682 = vrot.lane.b32.xlu0 %v27619_v62, %s27177_s16  ;;  %v1133_v51 = vpop.permute.xlu1 %1132 }
 0x1fc   :  { %25171 = vmatpush3.xpose.msk.msra.mxu1 %vm1134_vm3, %v1133_v51 }
 0x1fd   :  { %v1365_v45 = vpop.permute.xlu0 %1364  ;;  %5610 = vrot.lane.b32.xlu1 %v27691_v50, %s27171_s15  ;;  %25175 = vmatprep.subr.mxu1 %v33087_v44 }
 0x1ff   :  { %6680 = vrot.lane.b32.xlu0 %v27619_v62, %s27178_s17  ;;  %25173 = vmatmul.mubr.msk.f32.vlgmr.msra.gmra.mxu1 %vm1134_vm3, %v27615_v31  ;;  %v1288_v58 = vpop.permute.xlu1 %1287 }
 0x200   :  { %25176 = vmatpush3.xpose.msk.msra.mxu1 %vm1134_vm3, %v1211_v0  ;;  %25177 = vmatprep.mubr.msk.f32.mxu1 %vm27176_vm2, %v33087_v44 }
 0x201   :  { %v1519_v17 = vpop.permute.xlu0 %1518  ;;  %5762 = vrot.lane.b32.xlu1 %v27699_v54, %s27171_s15  ;;  %25180 = vmatprep.subr.mxu1 %v33087_v44 }
 0x203   :  { %6838 = vrot.lane.b32.xlu0 %v27627_v7, %s27177_s16  ;;  %25178 = vmatmul.mubr.msk.f32.vlgmr.msra.gmra.mxu1 %vm1134_vm3, %v27611_v56  ;;  %v1442_v51 = vpop.permute.xlu1 %1441 }
 0x204   :  { %25181 = vmatpush3.xpose.msk.msra.mxu1 %vm1134_vm3, %v1288_v58  ;;  %25182 = vmatprep.mubr.msk.f32.mxu1 %vm27176_vm2, %v33087_v44 }
 0x205   :  { %v1673_v0 = vpop.permute.xlu0 %1672  ;;  %5838 = vrot.lane.b32.xlu1 %v27711_v59, %s27171_s15  ;;  %25185 = vmatprep.subr.mxu1 %v33087_v44 }
 0x207   :  { %6836 = vrot.lane.b32.xlu0 %v27627_v7, %s27178_s17  ;;  %25183 = vmatmul.mubr.msk.f32.vlgmr.msra.gmra.mxu1 %vm1134_vm3, %v27623_v5  ;;  %v1596_v35 = vpop.permute.xlu1 %1595 }
 0x208   :  { %25186 = vmatpush3.xpose.msk.msra.mxu1 %vm1134_vm3, %v1365_v45  ;;  %25187 = vmatprep.mubr.msk.f32.mxu1 %vm27176_vm2, %v33087_v44 }
 0x209   :  { %v1827_v58 = vpop.permute.xlu0 %1826  ;;  %5914 = vrot.lane.b32.xlu1 %v27707_v60, %s27171_s15  ;;  %25190 = vmatprep.subr.mxu1 %v33087_v44 }
 0x20b   :  { %6994 = vrot.lane.b32.xlu0 %v27635_v18, %s27177_s16  ;;  %25188 = vmatmul.mubr.msk.f32.vlgmr.msra.gmra.mxu1 %vm1134_vm3, %v27619_v62  ;;  %v1750_v30 = vpop.permute.xlu1 %1749 }
 0x20c   :  { %25191 = vmatpush3.xpose.msk.msra.mxu1 %vm1134_vm3, %v1442_v51  ;;  %25192 = vmatprep.mubr.msk.f32.mxu1 %vm27176_vm2, %v33087_v44 }
 0x20d   :  { %v1981_v45 = vpop.permute.xlu0 %1980  ;;  %5990 = vrot.lane.b32.xlu1 %v27719_v2, %s27171_s15  ;;  %25195 = vmatprep.subr.mxu1 %v33087_v44 }
 0x20f   :  { %6992 = vrot.lane.b32.xlu0 %v27635_v18, %s27178_s17  ;;  %25193 = vmatmul.mubr.msk.f32.vlgmr.msra.gmra.mxu1 %vm1134_vm3, %v27631_v11  ;;  %v1904_v13 = vpop.permute.xlu1 %1903 }
 0x210   :  { %25196 = vmatpush3.xpose.msk.msra.mxu1 %vm1134_vm3, %v1519_v17  ;;  %25197 = vmatprep.mubr.msk.f32.mxu1 %vm27176_vm2, %v33087_v44 }
 0x211   :  { %v27844_v51 = vpop.permute.xlu0 %2134  ;;  %6066 = vrot.lane.b32.xlu1 %v27715_v55, %s27171_s15  ;;  %25200 = vmatprep.subr.mxu1 %v33087_v44 }
 0x213   :  { %7150 = vrot.lane.b32.xlu0 %v27643_v21, %s27177_s16  ;;  %25198 = vmatmul.mubr.msk.f32.vlgmr.msra.gmra.mxu1 %vm1134_vm3, %v27627_v7  ;;  %v2058_v32 = vpop.permute.xlu1 %2057 }
 0x214   :  { %25201 = vmatpush3.xpose.msk.msra.mxu1 %vm1134_vm3, %v1596_v35  ;;  %25202 = vmatprep.mubr.msk.f32.mxu1 %vm27176_vm2, %v33087_v44 }
 0x215   :  { %v27856_v17 = vpop.permute.xlu0 %2288  ;;  %6142 = vrot.lane.b32.xlu1 %v27727_v47, %s27171_s15  ;;  %25205 = vmatprep.subr.mxu1 %v33087_v44 }
 0x217   :  { %25203 = vmatmul.mubr.msk.f32.vlgmr.msra.gmra.mxu1 %vm1134_vm3, %v27639_v19  ;;  %v27863_v20 = vpop.permute.xlu1 %2211 }
 0x218   :  { %25206 = vmatpush3.xpose.msk.msra.mxu1 %vm1134_vm3, %v1673_v0  ;;  %25207 = vmatprep.mubr.msk.f32.mxu1 %vm27176_vm2, %v33087_v44 }
 0x219   :  { %v2443_v35 = vpop.permute.xlu0 %2442  ;;  %6448 = vrot.lane.b32.xlu1 %v27615_v31, %s27177_s16  ;;  %25210 = vmatprep.subr.mxu1 %v33087_v44 }
 0x21a   :  { %25256 = vmatpush3.xpose.msk.msra.mxu0 %vm1134_vm3, %v2443_v35 }
 0x21b   :  { %25208 = vmatmul.mubr.msk.f32.vlgmr.msra.gmra.mxu1 %vm1134_vm3, %v27635_v18  ;;  %v27874_v6 = vpop.permute.xlu1 %2365  ;;  %25265 = vmatprep.subr.mxu0 %v33087_v44 }
 0x21c   :  { %25211 = vmatpush3.xpose.msk.msra.mxu1 %vm1134_vm3, %v1750_v30  ;;  %25212 = vmatprep.mubr.msk.f32.mxu1 %vm27176_vm2, %v33087_v44 }
 0x21d   :  { %v2597_v0 = vpop.permute.xlu0 %2596  ;;  %25258 = vmatmul.mubr.msk.f32.vlgmr.msra.gmra.mxu0 %vm1134_vm3, %v27675_v37  ;;  %6446 = vrot.lane.b32.xlu1 %v27615_v31, %s27178_s17 }
 0x21e   :  { %25266 = vmatpush3.xpose.msk.msra.mxu0 %vm1134_vm3, %v2597_v0  ;;  %25215 = vmatprep.subr.mxu1 %v33087_v44 }
 0x21f   :  { %25213 = vmatmul.mubr.msk.f32.vlgmr.msra.gmra.mxu1 %vm1134_vm3, %v27647_v23  ;;  %v27888_v35 = vpop.permute.xlu1 %2519  ;;  %25267 = vmatprep.mubr.msk.f32.mxu0 %vm27176_vm2, %v33087_v44 }
 0x220   :  { %25216 = vmatpush3.xpose.msk.msra.mxu1 %vm1134_vm3, %v1827_v58  ;;  %25275 = vmatprep.subr.mxu0 %v33087_v44 }
 0x221   :  { %v2751_v30 = vpop.permute.xlu0 %2750  ;;  %25268 = vmatmul.mubr.msk.f32.vlgmr.msra.gmra.mxu0 %vm1134_vm3, %v27683_v41  ;;  %6604 = vrot.lane.b32.xlu1 %v27623_v5, %s27177_s16 }
 0x222   :  { %25217 = vmatprep.mubr.msk.f32.mxu1 %vm27176_vm2, %v33087_v44  ;;  %25276 = vmatpush3.xpose.msk.msra.mxu0 %vm1134_vm3, %v2751_v30 }
 0x223   :  { %25218 = vmatmul.mubr.msk.f32.vlgmr.msra.gmra.mxu1 %vm1134_vm3, %v27643_v21  ;;  %25220 = vmatprep.subr.mxu1 %v33087_v44  ;;  %v27904_v58 = vpop.permute.xlu1 %2673 }
 0x224   :  { %25221 = vmatpush3.xpose.msk.msra.mxu1 %vm1134_vm3, %v1904_v13  ;;  %25277 = vmatprep.mubr.msk.f32.mxu0 %vm27176_vm2, %v33087_v44 }
 0x225   :  { %v2905_v0 = vpop.permute.xlu0 %2904  ;;  %25278 = vmatmul.mubr.msk.f32.vlgmr.msra.gmra.mxu0 %vm1134_vm3, %v27691_v50  ;;  %25285 = vmatprep.subr.mxu0 %v33087_v44 }
 0x226   :  { %6602 = vrot.lane.b32.xlu1 %v27623_v5, %s27178_s17  ;;  %25222 = vmatprep.mubr.msk.f32.mxu1 %vm27176_vm2, %v33087_v44 }
 0x227   :  { %25286 = vmatpush3.xpose.msk.msra.mxu0 %vm1134_vm3, %v2905_v0  ;;  %25223 = vmatmul.mubr.msk.f32.vlgmr.msra.gmra.mxu1 %vm1134_vm3, %v27655_v27  ;;  %v27919_v13 = vpop.permute.xlu1 %2827 }
 0x228   :  { %25225 = vmatprep.subr.mxu1 %v33087_v44  ;;  %25287 = vmatprep.mubr.msk.f32.mxu0 %vm27176_vm2, %v33087_v44 }
 0x229   :  { %25226 = vmatpush3.xpose.msk.msra.mxu1 %vm1134_vm3, %v1981_v45  ;;  %25295 = vmatprep.subr.mxu0 %v33087_v44  ;;  %v3059_v30 = vpop.permute.xlu0 %3058 }
 0x22a   :  { %25288 = vmatmul.mubr.msk.f32.vlgmr.msra.gmra.mxu0 %vm1134_vm3, %v27699_v54  ;;  %6760 = vrot.lane.b32.xlu1 %v27631_v11, %s27177_s16 }
 0x22b   :  { %25227 = vmatprep.mubr.msk.f32.mxu1 %vm27176_vm2, %v33087_v44  ;;  %25296 = vmatpush3.xpose.msk.msra.mxu0 %vm1134_vm3, %v3059_v30  ;;  %v27933_v0 = vpop.permute.xlu1 %2981 }
 0x22c   :  { %25228 = vmatmul.mubr.msk.f32.vlgmr.msra.gmra.mxu1 %vm1134_vm3, %v27651_v24  ;;  %25230 = vmatprep.subr.mxu1 %v33087_v44 }
 0x22d   :  { %25231 = vmatpush3.xpose.msk.msra.mxu1 %vm1134_vm3, %v2058_v32  ;;  %25297 = vmatprep.mubr.msk.f32.mxu0 %vm27176_vm2, %v33087_v44  ;;  %v3213_v45 = vpop.permute.xlu0 %3212 }
 0x22e   :  { %25298 = vmatmul.mubr.msk.f32.vlgmr.msra.gmra.mxu0 %vm1134_vm3, %v27707_v60  ;;  %25305 = vmatprep.subr.mxu0 %v33087_v44 }
 0x22f   :  { %6758 = vrot.lane.b32.xlu1 %v27631_v11, %s27178_s17  ;;  %25232 = vmatprep.mubr.msk.f32.mxu1 %vm27176_vm2, %v33087_v44  ;;  %v27948_v30 = vpop.permute.xlu1 %3135 }
 0x230   :  { %25306 = vmatpush3.xpose.msk.msra.mxu0 %vm1134_vm3, %v3213_v45  ;;  %25233 = vmatmul.mubr.msk.f32.vlgmr.msra.gmra.mxu1 %vm1134_vm3, %v27663_v28 }
 0x231   :  { %25235 = vmatprep.subr.mxu1 %v33087_v44  ;;  %25307 = vmatprep.mubr.msk.f32.mxu0 %vm27176_vm2, %v33087_v44  ;;  %v3367_v32 = vpop.permute.xlu0 %3366 }
 0x232   :  { %25236 = vmatpush3.xpose.msk.msra.mxu1 %vm1134_vm3, %v27844_v51  ;;  %25315 = vmatprep.subr.mxu0 %v33087_v44 }
 0x233   :  { %25308 = vmatmul.mubr.msk.f32.vlgmr.msra.gmra.mxu0 %vm1134_vm3, %v27715_v55  ;;  %6916 = vrot.lane.b32.xlu1 %v27639_v19, %s27177_s16  ;;  %v3290_v45 = vpop.permute.xlu1 %3289 }
 0x234   :  { %25237 = vmatprep.mubr.msk.f32.mxu1 %vm27176_vm2, %v33087_v44  ;;  %25316 = vmatpush3.xpose.msk.msra.mxu0 %vm1134_vm3, %v3367_v32 }
 0x235   :  { %25238 = vmatmul.mubr.msk.f32.vlgmr.msra.gmra.mxu1 %vm1134_vm3, %v27659_v1  ;;  %25240 = vmatprep.subr.mxu1 %v33087_v44  ;;  %v3521_v51 = vpop.permute.xlu0 %3520 }
 0x236   :  { %25241 = vmatpush3.xpose.msk.msra.mxu1 %vm1134_vm3, %v27863_v20  ;;  %25317 = vmatprep.mubr.msk.f32.mxu0 %vm27176_vm2, %v33087_v44 }
 0x237   :  { %25318 = vmatmul.mubr.msk.f32.vlgmr.msra.gmra.mxu0 %vm1134_vm3, %v27723_v29  ;;  %25325 = vmatprep.subr.mxu0 %v33087_v44  ;;  %v4091_v42 = vpop.permute.xlu1 %4090 }
 0x238   :  { %6914 = vrot.lane.b32.xlu1 %v27639_v19, %s27178_s17  ;;  %25242 = vmatprep.mubr.msk.f32.mxu1 %vm27176_vm2, %v33087_v44 }
 0x239   :  { %25326 = vmatpush3.xpose.msk.msra.mxu0 %vm1134_vm3, %v3521_v51  ;;  %25243 = vmatmul.mubr.msk.f32.vlgmr.msra.gmra.mxu1 %vm1134_vm3, %v27671_v36 }
 0x23a   :  { %25245 = vmatprep.subr.mxu1 %v33087_v44  ;;  %25327 = vmatprep.mubr.msk.f32.mxu0 %vm27176_vm2, %v33087_v44 }
 0x23b   :  { %25246 = vmatpush3.xpose.msk.msra.mxu1 %vm1134_vm3, %v27856_v17  ;;  %25335 = vmatprep.subr.mxu0 %v33087_v44  ;;  %v27989_v20 = vpop.permute.xlu1 %4166 }
 0x23c   :  { %25328 = vmatmul.mubr.msk.f32.vlgmr.msra.gmra.mxu0 %vm1134_vm3, %v27731_v14  ;;  %7072 = vrot.lane.b32.xlu1 %v27647_v23, %s27177_s16 }
 0x23d   :  { %25247 = vmatprep.mubr.msk.f32.mxu1 %vm27176_vm2, %v33087_v44  ;;  %25336 = vmatpush3.msra.mxu0 %v4091_v42 }
 0x23e   :  { %25248 = vmatmul.mubr.msk.f32.vlgmr.msra.gmra.mxu1 %vm1134_vm3, %v27667_v33  ;;  %25250 = vmatprep.subr.mxu1 %v33087_v44 }
 0x23f   :  { %25251 = vmatpush3.xpose.msk.msra.mxu1 %vm1134_vm3, %v27874_v6  ;;  %25252 = vmatprep.mubr.msk.f32.mxu1 %vm27176_vm2, %v33087_v44  ;;  %v28004_v17 = vpop.permute.xlu1 %4318 }
 0x240   :  { %7070 = vrot.lane.b32.xlu1 %v27647_v23, %s27178_s17  ;;  %25260 = vmatprep.subr.mxu1 %v33087_v44 }
 0x241   :  { %25337 = vmatprep.mubr.msk.f32.mxu0 %vm27176_vm2, %v33087_v44  ;;  %25345 = vmatprep.subr.mxu0 %v33087_v44 }
 0x242   :  { %25253 = vmatmul.mubr.msk.f32.vlgmr.msra.gmra.mxu1 %vm1134_vm3, %v27679_v40 }
 0x243   :  { %25261 = vmatpush3.xpose.msk.msra.mxu1 %vm1134_vm3, %v27888_v35  ;;  %25262 = vmatprep.mubr.msk.f32.mxu1 %vm27176_vm2, %v33087_v44  ;;  %v28018_v42 = vpop.permute.xlu1 %4394 }
 0x244   :  { %6294 = vrot.lane.b32.xlu1 %v27775_v16, %s27171_s15  ;;  %25270 = vmatprep.subr.mxu1 %v33087_v44 }
 0x246   :  { %25263 = vmatmul.mubr.msk.f32.vlgmr.msra.gmra.mxu1 %vm1134_vm3, %v27687_v43 }
 0x247   :  { %25271 = vmatpush3.xpose.msk.msra.mxu1 %vm1134_vm3, %v27904_v58  ;;  %25272 = vmatprep.mubr.msk.f32.mxu1 %vm27176_vm2, %v33087_v44  ;;  %v28029_v6 = vpop.permute.xlu1 %4546 }
 0x248   :  { %25280 = vmatprep.subr.mxu1 %v33087_v44 }
 0x24a   :  { %25273 = vmatmul.mubr.msk.f32.vlgmr.msra.gmra.mxu1 %vm1134_vm3, %v27695_v52 }
 0x24b   :  { %25281 = vmatpush3.xpose.msk.msra.mxu1 %vm1134_vm3, %v27919_v13  ;;  %25282 = vmatprep.mubr.msk.f32.mxu1 %vm27176_vm2, %v33087_v44  ;;  %v28038_v35 = vpop.permute.xlu1 %4622 }
 0x24c   :  { %25290 = vmatprep.subr.mxu1 %v33087_v44 }
 0x24e   :  { %25283 = vmatmul.mubr.msk.f32.vlgmr.msra.gmra.mxu1 %vm1134_vm3, %v27703_v57 }
 0x24f   :  { %25291 = vmatpush3.xpose.msk.msra.mxu1 %vm1134_vm3, %v27933_v0  ;;  %25292 = vmatprep.mubr.msk.f32.mxu1 %vm27176_vm2, %v33087_v44  ;;  %v28047_v58 = vpop.permute.xlu1 %4774 }
 0x250   :  { %25300 = vmatprep.subr.mxu1 %v33087_v44 }
 0x252   :  { %25293 = vmatmul.mubr.msk.f32.vlgmr.msra.gmra.mxu1 %vm1134_vm3, %v27711_v59 }
 0x253   :  { %25301 = vmatpush3.xpose.msk.msra.mxu1 %vm1134_vm3, %v27948_v30  ;;  %25302 = vmatprep.mubr.msk.f32.mxu1 %vm27176_vm2, %v33087_v44  ;;  %v28056_v13 = vpop.permute.xlu1 %4926 }
 0x254   :  { %33088 = vst [vmem:[#allocation80_spill] sm:$0xff] %v28056_v13  ;;  %25310 = vmatprep.subr.mxu1 %v33087_v44 }
 0x256   :  { %25303 = vmatmul.mubr.msk.f32.vlgmr.msra.gmra.mxu1 %vm1134_vm3, %v27719_v2 }
 0x257   :  { %25311 = vmatpush3.xpose.msk.msra.mxu1 %vm1134_vm3, %v3290_v45  ;;  %25312 = vmatprep.mubr.msk.f32.mxu1 %vm27176_vm2, %v33087_v44  ;;  %v28064_v0 = vpop.permute.xlu1 %5078  ;;  %v4015_v45 = vpop.permute.xlu0 %4014 }
 0x258   :  { %33089 = vst [vmem:[#allocation81_spill] sm:$0xff] %v28064_v0  ;;  %25320 = vmatprep.subr.mxu1 %v33087_v44 }
 0x25a   :  { %25313 = vmatmul.mubr.msk.f32.vlgmr.msra.gmra.mxu1 %vm1134_vm3, %v27727_v47 }
 0x25b   :  { %v28069_v30 = vpop.permute.xlu1 %5230  ;;  %25322 = vmatprep.mubr.msk.f32.mxu1 %vm27176_vm2, %v33087_v44  ;;  %v28128_v48 = vpop.permute.xlu0 %4242 }
 0x25c   :  { %33090 = vst [vmem:[#allocation82_spill] sm:$0xff] %v28069_v30 }
 0x25f   :  { %v3444_v32 = vpop.permute.xlu1 %3443 }
 0x260   :  { %25321 = vmatpush3.xpose.msk.msra.mxu1 %vm1134_vm3, %v3444_v32 }
 0x261   :  { %25330 = vmatprep.subr.mxu1 %v33087_v44 }
 0x263   :  { %25323 = vmatmul.mubr.msk.f32.vlgmr.msra.gmra.mxu1 %vm1134_vm3, %v27775_v16  ;;  %v28150_v16 = vpop.permute.xlu0 %4470 }
 0x264   :  { %25331 = vmatpush3.msra.mxu1 %v4015_v45  ;;  %25332 = vmatprep.mubr.msk.f32.mxu1 %vm27176_vm2, %v33087_v44 }
 0x265   :  { %25340 = vmatprep.subr.mxu1 %v33087_v44 }
 0x2bf   :  { %v1205_v51 = vpop.f32.mrf.mxu1 }
 0x2c0   :  { %v3596_v39 = vmul.f32 0.35355338, %v1205_v51 }
 0x2c1   :  { %v25174_v61 = vpop.f32.mrf.mxu1 }
 0x2c2   :  { %v28082_v26 = vsel %vm27238_vm0, %v3596_v39, -4.2949673e+09 }
 0x2c3   :  { %v1282_v32 = vpop.f32.mrf.mxu1  ;;  %v3662_v63 = vsel %vm1134_vm3, %v28082_v26, -inf }
 0x2c4   :  { %v3597_v53 = vmul.f32 0.35355338, %v1282_v32  ;;  %3663 = vmax.xlane.f32.xlu1 %v3662_v63 }
 0x2c5   :  { %v25179_v46 = vpop.f32.mrf.mxu1 }
 0x2c6   :  { %v28088_v45 = vsel %vm27238_vm0, %v3597_v53, -4.2949673e+09  ;;  %v28098_v53 = vpop.permute.xlu1 %5382 }
 0x2c7   :  { %v1359_v9 = vpop.f32.mrf.mxu1  ;;  %v3665_v51 = vsel %vm1134_vm3, %v28088_v45, -inf  ;;  %33091 = vst [vmem:[#allocation83_spill] sm:$0xff] %v28098_v53 }
 0x2c8   :  { %v3598_v61 = vmul.f32 0.35355338, %v1359_v9  ;;  %3666 = vmax.xlane.f32.xlu0 %v3665_v51 }
 0x2c9   :  { %v25184_v15 = vpop.f32.mrf.mxu1 }
 0x2ca   :  { %v28094_v39 = vsel %vm27238_vm0, %v3598_v61, -4.2949673e+09 }
 0x2cb   :  { %v1436_v8 = vpop.f32.mrf.mxu1  ;;  %v3668_v63 = vsel %vm1134_vm3, %v28094_v39, -inf }
 0x2cc   :  { %v3599_v46 = vmul.f32 0.35355338, %v1436_v8  ;;  %3669 = vmax.xlane.f32.xlu0 %v3668_v63 }
 0x2cd   :  { %v25189_v32 = vpop.f32.mrf.mxu1 }
 0x2ce   :  { %v28102_v25 = vsel %vm27238_vm0, %v3599_v46, -4.2949673e+09  ;;  %v28112_v32 = vpop.permute.xlu1 %5458 }
 0x2cf   :  { %v1513_v9 = vpop.f32.mrf.mxu1  ;;  %v3671_v15 = vsel %vm1134_vm3, %v28102_v25, -inf  ;;  %33092 = vst [vmem:[#allocation84_spill] sm:$0xff] %v28112_v32 }
 0x2d0   :  { %v3600_v51 = vmul.f32 0.35355338, %v1513_v9  ;;  %3672 = vmax.xlane.f32.xlu1 %v3671_v15 }
 0x2d1   :  { %v25194_v61 = vpop.f32.mrf.mxu1 }
 0x2d2   :  { %v28108_v4 = vsel %vm27238_vm0, %v3600_v51, -4.2949673e+09  ;;  %v28120_v22 = vpop.permute.xlu1 %5534 }
 0x2d3   :  { %v1590_v8 = vpop.f32.mrf.mxu1  ;;  %v3674_v63 = vsel %vm1134_vm3, %v28108_v4, -inf  ;;  %33093 = vst [vmem:[#allocation85_spill] sm:$0xff] %v28120_v22 }
 0x2d4   :  { %v3601_v34 = vmul.f32 0.35355338, %v1590_v8  ;;  %3675 = vmax.xlane.f32.xlu0 %v3674_v63 }
 0x2d5   :  { %v25199_v46 = vpop.f32.mrf.mxu1 }
 0x2d6   :  { %v28116_v38 = vsel %vm27238_vm0, %v3601_v34, -4.2949673e+09  ;;  %v28136_v23 = vpop.permute.xlu1 %5610 }
 0x2d7   :  { %v1667_v9 = vpop.f32.mrf.mxu1  ;;  %v3677_v15 = vsel %vm1134_vm3, %v28116_v38, -inf  ;;  %33094 = vst [vmem:[#allocation86_spill] sm:$0xff] %v28136_v23 }
 0x2d8   :  { %v3602_v61 = vmul.f32 0.35355338, %v1667_v9  ;;  %3678 = vmax.xlane.f32.xlu1 %v3677_v15 }
 0x2d9   :  { %v25204_v51 = vpop.f32.mrf.mxu1 }
 0x2da   :  { %v28124_v49 = vsel %vm27238_vm0, %v3602_v61, -4.2949673e+09 }
 0x2db   :  { %v1744_v8 = vpop.f32.mrf.mxu1  ;;  %v3680_v63 = vsel %vm1134_vm3, %v28124_v49, -inf }
 0x2dc   :  { %v3603_v46 = vmul.f32 0.35355338, %v1744_v8  ;;  %3681 = vmax.xlane.f32.xlu0 %v3680_v63 }
 0x2dd   :  { %v25209_v34 = vpop.f32.mrf.mxu1  ;;  %v2514_v10 = vpop.f32.mrf.mxu0 }
 0x2de   :  { %v28132_v9 = vsel %vm27238_vm0, %v3603_v46, -4.2949673e+09  ;;  %v3613_v15 = vmul.f32 0.35355338, %v2514_v10 }
 0x2df   :  { %v1821_v51 = vpop.f32.mrf.mxu1  ;;  %v25259_v12 = vpop.f32.mrf.mxu0  ;;  %v3683_v61 = vsel %vm1134_vm3, %v28132_v9, -inf }
 0x2e0   :  { %v28140_v8 = vsel %vm27238_vm0, %v3613_v15, -4.2949673e+09  ;;  %v3604_v63 = vmul.f32 0.35355338, %v1821_v51  ;;  %3684 = vmax.xlane.f32.xlu1 %v3683_v61 }
 0x2e1   :  { %v25214_v34 = vpop.f32.mrf.mxu1  ;;  %v2668_v19 = vpop.f32.mrf.mxu0  ;;  %v3713_v31 = vsel %vm1134_vm3, %v28140_v8, -inf }
 0x2e2   :  { %v28144_v46 = vsel %vm27238_vm0, %v3604_v63, -4.2949673e+09  ;;  %v3615_v10 = vmul.f32 0.35355338, %v2668_v19  ;;  %v28156_v19 = vpop.permute.xlu1 %5762 }
 0x2e3   :  { %v1898_v62 = vpop.f32.mrf.mxu1  ;;  %v25269_v12 = vpop.f32.mrf.mxu0  ;;  %v3686_v22 = vsel %vm1134_vm3, %v28144_v46, -inf  ;;  %33095 = vst [vmem:[#allocation87_spill] sm:$0xff] %v28156_v19 }
 0x2e4   :  { %v28154_v15 = vsel %vm27238_vm0, %v3615_v10, -4.2949673e+09  ;;  %v3605_v51 = vmul.f32 0.35355338, %v1898_v62  ;;  %3714 = vmax.xlane.f32.xlu1 %v3713_v31  ;;  %3687 = vmax.xlane.f32.xlu0 %v3686_v22  ;;  %v28168_v62 = vpop.permute.xlu0 %4698 }
 0x2e5   :  { %v25219_v61 = vpop.f32.mrf.mxu1  ;;  %v2822_v63 = vpop.f32.mrf.mxu0  ;;  %v3719_v53 = vsel %vm1134_vm3, %v28154_v15, -inf }
 0x2e6   :  { %v28162_v47 = vsel %vm27238_vm0, %v3605_v51, -4.2949673e+09  ;;  %v3617_v2 = vmul.f32 0.35355338, %v2822_v63 }
 0x2e7   :  { %v1975_v34 = vpop.f32.mrf.mxu1  ;;  %v25279_v12 = vpop.f32.mrf.mxu0  ;;  %v3689_v61 = vsel %vm1134_vm3, %v28162_v47, -inf }
 0x2e8   :  { %v3606_v59 = vmul.f32 0.35355338, %v1975_v34  ;;  %3720 = vmax.xlane.f32.xlu1 %v3719_v53  ;;  %v28176_v51 = vsel %vm27238_vm0, %v3617_v2, -4.2949673e+09  ;;  %v28186_v52 = vpop.permute.xlu0 %4850 }
 0x2e9   :  { %v25224_v10 = vpop.f32.mrf.mxu1  ;;  %v3725_v7 = vsel %vm1134_vm3, %v28176_v51, -inf  ;;  %33097 = vst [vmem:[#allocation89_spill] sm:$0xff] %v28186_v52 }
 0x2ea   :  { %v28166_v22 = vsel %vm27238_vm0, %v3606_v59, -4.2949673e+09  ;;  %v2976_v31 = vpop.f32.mrf.mxu0  ;;  %v28178_v59 = vpop.permute.xlu1 %5838 }
 0x2eb   :  { %v3692_v12 = vsel %vm1134_vm3, %v28166_v22, -inf  ;;  %v3619_v63 = vmul.f32 0.35355338, %v2976_v31  ;;  %33096 = vst [vmem:[#allocation88_spill] sm:$0xff] %v28178_v59 }
 0x2ec   :  { %v2052_v53 = vpop.f32.mrf.mxu1  ;;  %v25289_v34 = vpop.f32.mrf.mxu0  ;;  %3690 = vmax.xlane.f32.xlu1 %v3689_v61  ;;  %3693 = vmax.xlane.f32.xlu0 %v3692_v12 }
 0x2ed   :  { %v28184_v57 = vsel %vm27238_vm0, %v3619_v63, -4.2949673e+09  ;;  %v3607_v11 = vmul.f32 0.35355338, %v2052_v53  ;;  %v28204_v56 = vpop.permute.xlu0 %5002 }
 0x2ee   :  { %v25229_v10 = vpop.f32.mrf.mxu1  ;;  %v3130_v18 = vpop.f32.mrf.mxu0  ;;  %33099 = vst [vmem:[#allocation91_spill] sm:$0xff] %v28204_v56 }
 0x2ef   :  { %v3731_v10 = vsel %vm1134_vm3, %v28184_v57, -inf  ;;  %v28194_v59 = vpop.permute.xlu1 %5914  ;;  %v28198_v63 = vsel %vm27238_vm0, %v3607_v11, -4.2949673e+09  ;;  %v3621_v53 = vmul.f32 0.35355338, %v3130_v18 }
 0x2f0   :  { %v2129_v5 = vpop.f32.mrf.mxu1  ;;  %v25299_v2 = vpop.f32.mrf.mxu0  ;;  %3726 = vmax.xlane.f32.xlu1 %v3725_v7  ;;  %33098 = vst [vmem:[#allocation90_spill] sm:$0xff] %v28194_v59  ;;  %v3695_v19 = vsel %vm1134_vm3, %v28198_v63, -inf }
 0x2f1   :  { %v3608_v31 = vmul.f32 0.35355338, %v2129_v5  ;;  %v28208_v59 = vsel %vm27238_vm0, %v3621_v53, -4.2949673e+09 }
 0x2f2   :  { %v25234_v61 = vpop.f32.mrf.mxu1 }
 0x2f3   :  { %v28190_v12 = vsel %vm27238_vm0, %v3608_v31, -4.2949673e+09  ;;  %v3284_v34 = vpop.f32.mrf.mxu0 }
 0x2f4   :  { %v3698_v5 = vsel %vm1134_vm3, %v28190_v12, -inf  ;;  %3732 = vmax.xlane.f32.xlu1 %v3731_v10  ;;  %v3623_v11 = vmul.f32 0.35355338, %v3284_v34  ;;  %v28210_v10 = vpop.permute.xlu1 %5990 }
 0x2f5   :  { %v2206_v7 = vpop.f32.mrf.mxu1  ;;  %v25309_v2 = vpop.f32.mrf.mxu0  ;;  %3699 = vmax.xlane.f32.xlu0 %v3698_v5  ;;  %33100 = vst [vmem:[#allocation92_spill] sm:$0xff] %v28210_v10  ;;  %v3737_v5 = vsel %vm1134_vm3, %v28208_v59, -inf }
 0x2f6   :  { %v3609_v32 = vmul.f32 0.35355338, %v2206_v7 }
 0x2f7   :  { %v25239_v31 = vpop.f32.mrf.mxu1  ;;  %v3438_v61 = vpop.f32.mrf.mxu0 }
 0x2f8   :  { %3696 = vmax.xlane.f32.xlu1 %v3695_v19  ;;  %v28216_v31 = vsel %vm27238_vm0, %v3623_v11, -4.2949673e+09  ;;  %v28230_v7 = vsel %vm27238_vm0, %v3609_v32, -4.2949673e+09  ;;  %v3625_v11 = vmul.f32 0.35355338, %v3438_v61  ;;  %v28232_v14 = vpop.permute.xlu1 %6066 }
 0x2f9   :  { %v2283_v18 = vpop.f32.mrf.mxu1  ;;  %v25319_v23 = vpop.f32.mrf.mxu0  ;;  %v3743_v10 = vsel %vm1134_vm3, %v28216_v31, -inf  ;;  %33102 = vst [vmem:[#allocation94_spill] sm:$0xff] %v28232_v14 }
 0x2fa   :  { %v3610_v43 = vmul.f32 0.35355338, %v2283_v18 }
 0x2fb   :  { %v25244_v2 = vpop.f32.mrf.mxu1 }
 0x2fc   :  { %v28220_v53 = vsel %vm27238_vm0, %v3610_v43, -4.2949673e+09  ;;  %v3592_v34 = vpop.f32.mrf.mxu0  ;;  %3738 = vmax.xlane.f32.xlu1 %v3737_v5  ;;  %v28224_v2 = vpop.permute.xlu0 %5154 }
 0x2fd   :  { %v3704_v23 = vsel %vm1134_vm3, %v28220_v53, -inf  ;;  %33101 = vst [vmem:[#allocation93_spill] sm:$0xff] %v28224_v2  ;;  %v3627_v29 = vmul.f32 0.35355338, %v3592_v34 }
 0x2fe   :  { %v2360_v19 = vpop.f32.mrf.mxu1  ;;  %v25329_v18 = vpop.f32.mrf.mxu0  ;;  %3705 = vmax.xlane.f32.xlu0 %v3704_v23  ;;  %v28238_v23 = vsel %vm27238_vm0, %v3625_v11, -4.2949673e+09 }
 0x2ff   :  { %v3701_v18 = vsel %vm1134_vm3, %v28230_v7, -inf  ;;  %v3749_v11 = vsel %vm1134_vm3, %v28238_v23, -inf  ;;  %v28254_v34 = vsel %vm27238_vm0, %v3627_v29, -4.2949673e+09 }
 0x300   :  { %v25249_v43 = vpop.f32.mrf.mxu1  ;;  %3744 = vmax.xlane.f32.xlu1 %v3743_v10  ;;  %v28240_v55 = vpop.permute.xlu0 %5306 }
 0x301   :  { %33103 = vst [vmem:[#allocation95_spill] sm:$0xff] %v28240_v55  ;;  %v28248_v43 = vpop.permute.xlu1 %6142  ;;  %v3755_v55 = vsel %vm1134_vm3, %v28254_v34, -inf }
 0x302   :  { %v2437_v5 = vpop.f32.mrf.mxu1  ;;  %33104 = vst [vmem:[#allocation96_spill] sm:$0xff] %v28248_v43 }
 0x303   :  { %v3612_v30 = vmul.f32 0.35355338, %v2437_v5 }
 0x304   :  { %v25254_v2 = vpop.f32.mrf.mxu1  ;;  %3702 = vmax.xlane.f32.xlu1 %v3701_v18 }
 0x305   :  { %v28244_v32 = vsel %vm27238_vm0, %v3612_v30, -4.2949673e+09  ;;  %v3611_v2 = vmul.f32 0.35355338, %v2360_v19 }
 0x306   :  { %v2591_v61 = vpop.f32.mrf.mxu1  ;;  %v3710_v10 = vsel %vm1134_vm3, %v28244_v32, -inf }
 0x307   :  { %v3614_v5 = vmul.f32 0.35355338, %v2591_v61  ;;  %3711 = vmax.xlane.f32.xlu0 %v3710_v10  ;;  %v28262_v61 = vpop.permute.xlu0 %5686  ;;  %v28268_v29 = vsel %vm27238_vm0, %v3611_v2, -4.2949673e+09 }
 0x308   :  { %v25264_v18 = vpop.f32.mrf.mxu1  ;;  %3750 = vmax.xlane.f32.xlu1 %v3749_v11  ;;  %33105 = vst [vmem:[#allocation97_spill] sm:$0xff] %v28262_v61  ;;  %v28270_v11 = vpop.permute.xlu1 %6448  ;;  %v3707_v61 = vsel %vm1134_vm3, %v28268_v29, -inf }
 0x309   :  { %v28258_v30 = vsel %vm27238_vm0, %v3614_v5, -4.2949673e+09  ;;  %33106 = vst [vmem:[#allocation98_spill] sm:$0xff] %v28270_v11 }
 0x30a   :  { %v2745_v14 = vpop.f32.mrf.mxu1  ;;  %v3716_v43 = vsel %vm1134_vm3, %v28258_v30, -inf }
 0x30b   :  { %v3616_v10 = vmul.f32 0.35355338, %v2745_v14  ;;  %3717 = vmax.xlane.f32.xlu0 %v3716_v43  ;;  %v28280_v2 = vpop.permute.xlu0 %6218 }
 0x30c   :  { %v25274_v19 = vpop.f32.mrf.mxu1  ;;  %3756 = vmax.xlane.f32.xlu1 %v3755_v55  ;;  %33107 = vst [vmem:[#allocation99_spill] sm:$0xff] %v28280_v2  ;;  %v28288_v11 = vpop.permute.xlu1 %6446 }
 0x30d   :  { %v28274_v5 = vsel %vm27238_vm0, %v3616_v10, -4.2949673e+09  ;;  %33108 = vst [vmem:[#allocation100_spill] sm:$0xff] %v28288_v11 }
 0x30e   :  { %v2899_v18 = vpop.f32.mrf.mxu1  ;;  %v3722_v14 = vsel %vm1134_vm3, %v28274_v5, -inf }
 0x30f   :  { %v3618_v43 = vmul.f32 0.35355338, %v2899_v18  ;;  %3723 = vmax.xlane.f32.xlu0 %v3722_v14  ;;  %v28296_v2 = vpop.permute.xlu0 %6370 }
 0x310   :  { %v25284_v0 = vpop.f32.mrf.mxu1  ;;  %3708 = vmax.xlane.f32.xlu1 %v3707_v61  ;;  %33109 = vst [vmem:[#allocation101_spill] sm:$0xff] %v28296_v2  ;;  %v28298_v13 = vpop.permute.xlu1 %6604 }
 0x311   :  { %v28284_v55 = vsel %vm27238_vm0, %v3618_v43, -4.2949673e+09  ;;  %33110 = vst [vmem:[#allocation102_spill] sm:$0xff] %v28298_v13 }
 0x312   :  { %v3053_v19 = vpop.f32.mrf.mxu1  ;;  %v3728_v10 = vsel %vm1134_vm3, %v28284_v55, -inf }
 0x313   :  { %v3620_v56 = vmul.f32 0.35355338, %v3053_v19  ;;  %3729 = vmax.xlane.f32.xlu0 %v3728_v10  ;;  %v28306_v54 = vpop.permute.xlu0 %6526 }
 0x314   :  { %v25294_v18 = vpop.f32.mrf.mxu1  ;;  %33111 = vst [vmem:[#allocation103_spill] sm:$0xff] %v28306_v54 }
 0x315   :  { %v28292_v14 = vsel %vm27238_vm0, %v3620_v56, -4.2949673e+09 }
 0x316   :  { %v3207_v0 = vpop.f32.mrf.mxu1  ;;  %v3734_v61 = vsel %vm1134_vm3, %v28292_v14, -inf }
 0x317   :  { %v3622_v43 = vmul.f32 0.35355338, %v3207_v0  ;;  %3735 = vmax.xlane.f32.xlu0 %v3734_v61  ;;  %v28314_v61 = vpop.permute.xlu1 %6602 }
 0x318   :  { %v25304_v60 = vpop.f32.mrf.mxu1  ;;  %33112 = vst [vmem:[#allocation104_spill] sm:$0xff] %v28314_v61 }
 0x319   :  { %v28302_v19 = vsel %vm27238_vm0, %v3622_v43, -4.2949673e+09  ;;  %v28316_v43 = vpop.permute.xlu0 %6524 }
 0x31a   :  { %v3361_v10 = vpop.f32.mrf.mxu1  ;;  %v3740_v56 = vsel %vm1134_vm3, %v28302_v19, -inf  ;;  %33113 = vst [vmem:[#allocation105_spill] sm:$0xff] %v28316_v43 }
 0x31b   :  { %v3624_v18 = vmul.f32 0.35355338, %v3361_v10  ;;  %3741 = vmax.xlane.f32.xlu0 %v3740_v56  ;;  %v28318_v52 = vpop.permute.xlu1 %6760 }
 0x31c   :  { %v25314_v11 = vpop.f32.mrf.mxu1  ;;  %33114 = vst [vmem:[#allocation106_spill] sm:$0xff] %v28318_v52 }
 0x31d   :  { %v28310_v0 = vsel %vm27238_vm0, %v3624_v18, -4.2949673e+09  ;;  %v28326_v18 = vpop.permute.xlu0 %6682 }
 0x31e   :  { %v3746_v60 = vsel %vm1134_vm3, %v28310_v0, -inf  ;;  %33116 = vst [vmem:[#allocation108_spill] sm:$0xff] %v28326_v18 }
 0x31f   :  { %3747 = vmax.xlane.f32.xlu0 %v3746_v60  ;;  %v28328_v54 = vpop.permute.xlu1 %6758 }
 0x320   :  { %33117 = vst [vmem:[#allocation109_spill] sm:$0xff] %v28328_v54 }
 0x321   :  { %v28330_v60 = vpop.permute.xlu0 %6680 }
 0x322   :  { %33118 = vst [vmem:[#allocation110_spill] sm:$0xff] %v28330_v60 }
 0x323   :  { %v3515_v13 = vpop.f32.mrf.mxu1  ;;  %v28332_v61 = vpop.permute.xlu1 %6916 }
 0x324   :  { %v3626_v2 = vmul.f32 0.35355338, %v3515_v13  ;;  %33119 = vst [vmem:[#allocation111_spill] sm:$0xff] %v28332_v61 }
 0x325   :  { %v25324_v10 = vpop.f32.mrf.mxu1  ;;  %v28334_v13 = vpop.permute.xlu0 %6838 }
 0x326   :  { %v28322_v11 = vsel %vm27238_vm0, %v3626_v2, -4.2949673e+09  ;;  %33120 = vst [vmem:[#allocation112_spill] sm:$0xff] %v28334_v13 }
 0x327   :  { %33115 = vst [vmem:[#allocation107_spill] sm:$0xff] %v28322_v11  ;;  %v3752_v56 = vsel %vm1134_vm3, %v28322_v11, -inf  ;;  %v28336_v52 = vpop.permute.xlu1 %6914 }
 0x328   :  { %3753 = vmax.xlane.f32.xlu0 %v3752_v56  ;;  %33121 = vst [vmem:[#allocation113_spill] sm:$0xff] %v28336_v52 }
 0x329   :  { %v28338_v10 = vpop.permute.xlu0 %6836 }
 0x32a   :  { %33122 = vst [vmem:[#allocation114_spill] sm:$0xff] %v28338_v10 }
 0x32b   :  { %v28340_v2 = vpop.permute.xlu1 %7072 }
 0x32c   :  { %33123 = vst [vmem:[#allocation115_spill] sm:$0xff] %v28340_v2 }
 0x32d   :  { %v28342_v3 = vpop.permute.xlu0 %6994 }
 0x32e   :  { %33124 = vst [vmem:[#allocation116_spill] sm:$0xff] %v28342_v3 }
 0x32f   :  { %v28344_v43 = vpop.permute.xlu1 %7070 }
 0x330   :  { %33125 = vst [vmem:[#allocation117_spill] sm:$0xff] %v28344_v43 }
 0x331   :  { %v28346_v56 = vpop.permute.xlu0 %6992 }
 0x332   :  { %33126 = vst [vmem:[#allocation118_spill] sm:$0xff] %v28346_v56 }
 0x333   :  { %v28348_v18 = vpop.permute.xlu1 %6294 }
 0x334   :  { %33127 = vst [vmem:[#allocation119_spill] sm:$0xff] %v28348_v18 }
 0x335   :  { %v28350_v54 = vpop.permute.xlu0 %7150 }
 0x336   :  { %33128 = vst [vmem:[#allocation120_spill] sm:$0xff] %v28350_v54 }
 0x34d   :  { %v3664_v60 = vpop.xlane.xlu1 %3663 }
 0x34e   :  { %v3758_v61 = vsub.f32 %v28082_v26, %v3664_v60 }
 0x350   :  { %v3790_v13 = vmul.f32 1.442695, %v3758_v61 }
 0x351   :  { %v3667_v50 = vpop.xlane.xlu0 %3666 }
 0x352   :  { %26541 = vpow2.f32 %v3790_v13  ;;  %v3759_v52 = vsub.f32 %v28088_v45, %v3667_v50 }
 0x354   :  { %v3792_v10 = vmul.f32 1.442695, %v3759_v52 }
 0x355   :  { %v3670_v2 = vpop.xlane.xlu0 %3669 }
 0x356   :  { %26543 = vpow2.f32 %v3792_v10  ;;  %v3760_v3 = vsub.f32 %v28094_v39, %v3670_v2 }
 0x358   :  { %v3794_v43 = vmul.f32 1.442695, %v3760_v3 }
 0x359   :  { %v3673_v11 = vpop.xlane.xlu1 %3672 }
 0x35a   :  { %26545 = vpow2.f32 %v3794_v43  ;;  %v3761_v18 = vsub.f32 %v28102_v25, %v3673_v11 }
 0x35c   :  { %v3796_v56 = vmul.f32 1.442695, %v3761_v18 }
 0x35d   :  { %v3676_v54 = vpop.xlane.xlu0 %3675 }
 0x35e   :  { %26547 = vpow2.f32 %v3796_v56  ;;  %v3762_v26 = vsub.f32 %v28108_v4, %v3676_v54 }
 0x35f   :  { %v28357_v61 = vpop.eup %26541 }
 0x360   :  { %v3798_v60 = vmul.f32 1.442695, %v3762_v26  ;;  %v3854_v50 = vsel %vm1134_vm3, %v28357_v61, 0.0 }
 0x361   :  { %3855 = vadd.xlane.f32.xlu0 %v3854_v50  ;;  %v3679_v52 = vpop.xlane.xlu1 %3678 }
 0x362   :  { %26549 = vpow2.f32 %v3798_v60  ;;  %v3763_v3 = vsub.f32 %v28116_v38, %v3679_v52 }
 0x363   :  { %v28362_v45 = vpop.eup %26543 }
 0x364   :  { %v3800_v39 = vmul.f32 1.442695, %v3763_v3  ;;  %v3857_v25 = vsel %vm1134_vm3, %v28362_v45, 0.0 }
 0x365   :  { %v3682_v43 = vpop.xlane.xlu0 %3681  ;;  %3858 = vadd.xlane.f32.xlu1 %v3857_v25 }
 0x366   :  { %26551 = vpow2.f32 %v3800_v39  ;;  %v3764_v4 = vsub.f32 %v28124_v49, %v3682_v43 }
 0x367   :  { %v28367_v54 = vpop.eup %26545 }
 0x368   :  { %v3802_v11 = vmul.f32 1.442695, %v3764_v4  ;;  %v3860_v18 = vsel %vm1134_vm3, %v28367_v54, 0.0 }
 0x369   :  { %3861 = vadd.xlane.f32.xlu0 %v3860_v18  ;;  %v3685_v13 = vpop.xlane.xlu1 %3684 }
 0x36a   :  { %26553 = vpow2.f32 %v3802_v11  ;;  %v3765_v38 = vsub.f32 %v28132_v9, %v3685_v13 }
 0x36b   :  { %v28372_v10 = vpop.eup %26547 }
 0x36c   :  { %v3804_v2 = vmul.f32 1.442695, %v3765_v38  ;;  %v3863_v56 = vsel %vm1134_vm3, %v28372_v10, 0.0 }
 0x36d   :  { %v3688_v26 = vpop.xlane.xlu0 %3687  ;;  %3864 = vadd.xlane.f32.xlu1 %v3863_v56  ;;  %v3715_v49 = vpop.xlane.xlu1 %3714 }
 0x36e   :  { %26555 = vpow2.f32 %v3804_v2  ;;  %v3766_v60 = vsub.f32 %v28144_v46, %v3688_v26  ;;  %v3775_v50 = vsub.f32 %v28140_v8, %v3715_v49 }
 0x36f   :  { %v28378_v52 = vpop.eup %26549 }
 0x370   :  { %v3806_v3 = vmul.f32 1.442695, %v3766_v60  ;;  %v3824_v39 = vmul.f32 1.442695, %v3775_v50  ;;  %v3866_v9 = vsel %vm1134_vm3, %v28378_v52, 0.0 }
 0x371   :  { %3867 = vadd.xlane.f32.xlu0 %v3866_v9  ;;  %v3721_v25 = vpop.xlane.xlu1 %3720 }
 0x372   :  { %26557 = vpow2.f32 %v3806_v3  ;;  %v3777_v43 = vsub.f32 %v28154_v15, %v3721_v25 }
 0x373   :  { %v28383_v4 = vpop.eup %26551  ;;  %26559 = vpow2.f32 %v3824_v39 }
 0x374   :  { %v3828_v11 = vmul.f32 1.442695, %v3777_v43  ;;  %v3869_v46 = vsel %vm1134_vm3, %v28383_v4, 0.0 }
 0x375   :  { %v3694_v8 = vpop.xlane.xlu0 %3693  ;;  %3870 = vadd.xlane.f32.xlu1 %v3869_v46  ;;  %v3691_v18 = vpop.xlane.xlu1 %3690 }
 0x376   :  { %26561 = vpow2.f32 %v3828_v11  ;;  %v3767_v13 = vsub.f32 %v28162_v47, %v3691_v18  ;;  %v3768_v2 = vsub.f32 %v28166_v22, %v3694_v8 }
 0x377   :  { %v28388_v38 = vpop.eup %26553 }
 0x378   :  { %v3808_v56 = vmul.f32 1.442695, %v3767_v13  ;;  %v3872_v15 = vsel %vm1134_vm3, %v28388_v38, 0.0  ;;  %v3810_v50 = vmul.f32 1.442695, %v3768_v2 }
 0x379   :  { %3873 = vadd.xlane.f32.xlu0 %v3872_v15  ;;  %v3727_v26 = vpop.xlane.xlu1 %3726 }
 0x37a   :  { %v3779_v49 = vsub.f32 %v28176_v51, %v3727_v26  ;;  %26563 = vpow2.f32 %v3808_v56 }
 0x37b   :  { %v28394_v60 = vpop.eup %26555 }
 0x37c   :  { %v3832_v3 = vmul.f32 1.442695, %v3779_v49  ;;  %v3875_v47 = vsel %vm1134_vm3, %v28394_v60, 0.0 }
 0x37d   :  { %3876 = vadd.xlane.f32.xlu1 %v3875_v47  ;;  %v3733_v39 = vpop.xlane.xlu1 %3732 }
 0x37e   :  { %26565 = vpow2.f32 %v3832_v3  ;;  %v3781_v22 = vsub.f32 %v28184_v57, %v3733_v39  ;;  %v3700_v11 = vpop.xlane.xlu0 %3699 }
 0x37f   :  { %v28399_v9 = vpop.eup %26557  ;;  %26567 = vpow2.f32 %v3810_v50  ;;  %v3770_v57 = vsub.f32 %v28190_v12, %v3700_v11 }
 0x380   :  { %v28401_v25 = vpop.eup %26559  ;;  %v3836_v43 = vmul.f32 1.442695, %v3781_v22  ;;  %v3878_v51 = vsel %vm1134_vm3, %v28399_v9, 0.0 }
 0x381   :  { %3879 = vadd.xlane.f32.xlu0 %v3878_v51  ;;  %v3905_v46 = vsel %vm1134_vm3, %v28401_v25, 0.0  ;;  %v3697_v8 = vpop.xlane.xlu1 %3696  ;;  %v3814_v50 = vmul.f32 1.442695, %v3770_v57 }
 0x382   :  { %3906 = vadd.xlane.f32.xlu1 %v3905_v46  ;;  %v3769_v18 = vsub.f32 %v28198_v63, %v3697_v8  ;;  %26569 = vpow2.f32 %v3836_v43 }
 0x383   :  { %v28408_v13 = vpop.eup %26561 }
 0x384   :  { %v3812_v2 = vmul.f32 1.442695, %v3769_v18  ;;  %v3911_v56 = vsel %vm1134_vm3, %v28408_v13, 0.0 }
 0x385   :  { %v3739_v15 = vpop.xlane.xlu1 %3738 }
 0x386   :  { %26571 = vpow2.f32 %v3812_v2  ;;  %3912 = vadd.xlane.f32.xlu1 %v3911_v56  ;;  %v3783_v26 = vsub.f32 %v28208_v59, %v3739_v15 }
 0x387   :  { %v28414_v49 = vpop.eup %26563  ;;  %v3706_v47 = vpop.xlane.xlu0 %3705 }
 0x388   :  { %v3840_v3 = vmul.f32 1.442695, %v3783_v26  ;;  %v3881_v63 = vsel %vm1134_vm3, %v28414_v49, 0.0  ;;  %v3772_v43 = vsub.f32 %v28220_v53, %v3706_v47 }
 0x389   :  { %v3745_v39 = vpop.xlane.xlu1 %3744 }
 0x38a   :  { %26573 = vpow2.f32 %v3840_v3  ;;  %3882 = vadd.xlane.f32.xlu1 %v3881_v63  ;;  %v3785_v12 = vsub.f32 %v28216_v31, %v3745_v39  ;;  %v3818_v18 = vmul.f32 1.442695, %v3772_v43 }
 0x38b   :  { %v28419_v22 = vpop.eup %26565  ;;  %26575 = vpow2.f32 %v3814_v50 }
 0x38c   :  { %v3844_v51 = vmul.f32 1.442695, %v3785_v12  ;;  %v3917_v59 = vsel %vm1134_vm3, %v28419_v22, 0.0  ;;  %v28424_v11 = vpop.eup %26567 }
 0x38d   :  { %3918 = vadd.xlane.f32.xlu0 %v3917_v59  ;;  %v3703_v46 = vpop.xlane.xlu1 %3702  ;;  %v3884_v31 = vsel %vm1134_vm3, %v28424_v11, 0.0 }
 0x38e   :  { %v3771_v8 = vsub.f32 %v28230_v7, %v3703_v46  ;;  %26577 = vpow2.f32 %v3844_v51 }
 0x38f   :  { %v28429_v2 = vpop.eup %26569 }
 0x390   :  { %v3816_v57 = vmul.f32 1.442695, %v3771_v8  ;;  %v3923_v7 = vsel %vm1134_vm3, %v28429_v2, 0.0 }
 0x391   :  { %3885 = vadd.xlane.f32.xlu0 %v3884_v31  ;;  %v3751_v53 = vpop.xlane.xlu1 %3750 }
 0x392   :  { %26579 = vpow2.f32 %v3816_v57  ;;  %v3787_v56 = vsub.f32 %v28238_v23, %v3751_v53 }
 0x393   :  { %v28432_v15 = vpop.eup %26571  ;;  %26581 = vpow2.f32 %v3818_v18 }
 0x394   :  { %v3848_v26 = vmul.f32 1.442695, %v3787_v56  ;;  %v3887_v50 = vsel %vm1134_vm3, %v28432_v15, 0.0 }
 0x395   :  { %3924 = vadd.xlane.f32.xlu0 %v3923_v7  ;;  %3888 = vadd.xlane.f32.xlu1 %v3887_v50  ;;  %v3757_v3 = vpop.xlane.xlu1 %3756 }
 0x396   :  { %26583 = vpow2.f32 %v3848_v26  ;;  %v3789_v47 = vsub.f32 %v28254_v34, %v3757_v3 }
 0x397   :  { %v28439_v63 = vpop.eup %26573 }
 0x398   :  { %v3852_v39 = vmul.f32 1.442695, %v3789_v47  ;;  %v3929_v23 = vsel %vm1134_vm3, %v28439_v63, 0.0  ;;  %v28443_v12 = vpop.eup %26575  ;;  %v3712_v47 = vpop.xlane.xlu0 %3711 }
 0x399   :  { %3930 = vadd.xlane.f32.xlu0 %v3929_v23  ;;  %v3709_v43 = vpop.xlane.xlu1 %3708  ;;  %v3890_v46 = vsel %vm1134_vm3, %v28443_v12, 0.0 }
 0x39a   :  { %26585 = vpow2.f32 %v3852_v39  ;;  %v3773_v51 = vsub.f32 %v28268_v29, %v3709_v43  ;;  %v3774_v39 = vsub.f32 %v28244_v32, %v3712_v47 }
 0x39b   :  { %v28448_v8 = vpop.eup %26577 }
 0x39c   :  { %v3820_v59 = vmul.f32 1.442695, %v3773_v51  ;;  %v3935_v18 = vsel %vm1134_vm3, %v28448_v8, 0.0  ;;  %v3718_v23 = vpop.xlane.xlu0 %3717  ;;  %v3822_v43 = vmul.f32 1.442695, %v3774_v39 }
 0x39d   :  { %3891 = vadd.xlane.f32.xlu0 %v3890_v46  ;;  %v3776_v51 = vsub.f32 %v28258_v30, %v3718_v23 }
 0x39e   :  { %26587 = vpow2.f32 %v3820_v59 }
 0x39f   :  { %v28450_v34 = vpop.eup %26579  ;;  %26589 = vpow2.f32 %v3822_v43  ;;  %v3826_v46 = vmul.f32 1.442695, %v3776_v51 }
 0x3a0   :  { %v3893_v57 = vsel %vm1134_vm3, %v28450_v34, 0.0  ;;  %v28456_v31 = vpop.eup %26581  ;;  %v28478_v59 = vpop.xlane.xlu0 %3723 }
 0x3a1   :  { %3936 = vadd.xlane.f32.xlu0 %v3935_v18  ;;  %3894 = vadd.xlane.f32.xlu1 %v3893_v57  ;;  %v3896_v53 = vsel %vm1134_vm3, %v28456_v31, 0.0  ;;  %26591 = vpow2.f32 %v3826_v46 }
 0x3a3   :  { %v28458_v29 = vpop.eup %26583 }
 0x3a4   :  { %v3941_v56 = vsel %vm1134_vm3, %v28458_v29, 0.0  ;;  %v28480_v18 = vpop.xlane.xlu0 %3729 }
 0x3a5   :  { %3897 = vadd.xlane.f32.xlu1 %v3896_v53  ;;  %3942 = vadd.xlane.f32.xlu0 %v3941_v56 }
 0x3a7   :  { %v28464_v26 = vpop.eup %26585 }
 0x3a8   :  { %v3947_v7 = vsel %vm1134_vm3, %v28464_v26, 0.0  ;;  %v28484_v53 = vpop.xlane.xlu0 %3735 }
 0x3a9   :  { %3948 = vadd.xlane.f32.xlu0 %v3947_v7 }
 0x3ab   :  { %v28468_v50 = vpop.eup %26587 }
 0x3ac   :  { %v3899_v3 = vsel %vm1134_vm3, %v28468_v50, 0.0  ;;  %v28482_v57 = vpop.eup %26589  ;;  %v28488_v56 = vpop.xlane.xlu0 %3741 }
 0x3ad   :  { %3900 = vadd.xlane.f32.xlu0 %v3899_v3  ;;  %v3902_v32 = vsel %vm1134_vm3, %v28482_v57, 0.0 }
 0x3ae   :  { %v28490_v7 = vpop.eup %26591 }
 0x3af   :  { %v3908_v30 = vsel %vm1134_vm3, %v28490_v7, 0.0 }
 0x3b0   :  { %v28494_v3 = vpop.xlane.xlu0 %3747 }
 0x3b4   :  { %v28496_v47 = vpop.xlane.xlu0 %3753 }
 0x3b6   :  { %7228 = vrot.lane.b32.xlu1 %v27655_v27, %s27177_s16 }
 0x3c3   :  { %7148 = vrot.lane.b32.xlu0 %v27643_v21, %s27178_s17 }
 0x3da   :  { %3903 = vadd.xlane.f32.xlu1 %v3902_v32 }
 0x3e2   :  { %3909 = vadd.xlane.f32.xlu0 %v3908_v30 }
 0x3ea   :  { %v3856_v39 = vpop.xlane.xlu0 %3855 }
 0x3eb   :  { %26593 = vrcp.f32 %v3856_v39  ;;  %7226 = vrot.lane.b32.xlu1 %v27655_v27, %s27178_s17 }
 0x3ee   :  { %v3859_v23 = vpop.xlane.xlu1 %3858 }
 0x3ef   :  { %26595 = vrcp.f32 %v3859_v23  ;;  %7384 = vrot.lane.b32.xlu1 %v27663_v28, %s27177_s16 }
 0x3f2   :  { %v3862_v43 = vpop.xlane.xlu0 %3861 }
 0x3f3   :  { %26597 = vrcp.f32 %v3862_v43  ;;  %7382 = vrot.lane.b32.xlu1 %v27663_v28, %s27178_s17 }
 0x3f6   :  { %v3865_v51 = vpop.xlane.xlu1 %3864 }
 0x3f7   :  { %26599 = vrcp.f32 %v3865_v51  ;;  %7540 = vrot.lane.b32.xlu1 %v27671_v36, %s27177_s16 }
 0x3f8   :  { %v26594_v46 = vpop.eup %26593  ;;  %7306 = vrot.lane.b32.xlu0 %v27651_v24, %s27177_s16 }
 0x3f9   :  { %v3982_v32 = vmul.f32 %v26594_v46, %v28357_v61 }
 0x3fa   :  { %v3868_v30 = vpop.xlane.xlu0 %3867 }
 0x3fb   :  { %26601 = vrcp.f32 %v3868_v30  ;;  %25333 = vmatmul.mubr.msk.f32.vlgmr.msra.gmra.mxu1 %vm1134_vm3, %v3982_v32  ;;  %7538 = vrot.lane.b32.xlu1 %v27671_v36, %s27178_s17 }
 0x3fc   :  { %v26596_v39 = vpop.eup %26595  ;;  %25341 = vmatpush3.msra.mxu1 %v27989_v20  ;;  %7304 = vrot.lane.b32.xlu0 %v27651_v24, %s27178_s17 }
 0x3fd   :  { %v3983_v23 = vmul.f32 %v26596_v39, %v28362_v45  ;;  %25342 = vmatprep.mubr.msk.f32.mxu1 %vm27176_vm2, %v33087_v44  ;;  %25350 = vmatprep.subr.mxu1 %v33087_v44 }
 0x3fe   :  { %v3871_v61 = vpop.xlane.xlu1 %3870 }
 0x3ff   :  { %26603 = vrcp.f32 %v3871_v61  ;;  %7696 = vrot.lane.b32.xlu1 %v27679_v40, %s27177_s16  ;;  %25338 = vmatmul.mubr.msk.f32.vlgmr.msra.gmra.mxu0 %vm1134_vm3, %v3983_v23 }
 0x400   :  { %v26598_v43 = vpop.eup %26597  ;;  %25346 = vmatpush3.msra.mxu0 %v28128_v48  ;;  %7462 = vrot.lane.b32.xlu0 %v27659_v1, %s27177_s16 }
 0x401   :  { %v3984_v20 = vmul.f32 %v26598_v43, %v28367_v54  ;;  %25347 = vmatprep.mubr.msk.f32.mxu0 %vm27176_vm2, %v33087_v44  ;;  %25355 = vmatprep.subr.mxu0 %v33087_v44 }
 0x402   :  { %v3874_v45 = vpop.xlane.xlu0 %3873 }
 0x403   :  { %26605 = vrcp.f32 %v3874_v45  ;;  %25343 = vmatmul.mubr.msk.f32.vlgmr.msra.gmra.mxu1 %vm1134_vm3, %v3984_v20 }
 0x404   :  { %v26600_v51 = vpop.eup %26599  ;;  %25351 = vmatpush3.msra.mxu1 %v28004_v17  ;;  %7460 = vrot.lane.b32.xlu0 %v27659_v1, %s27178_s17 }
 0x405   :  { %v3985_v48 = vmul.f32 %v26600_v51, %v28372_v10  ;;  %25352 = vmatprep.mubr.msk.f32.mxu1 %vm27176_vm2, %v33087_v44  ;;  %25360 = vmatprep.subr.mxu1 %v33087_v44  ;;  %v3778_v10 = vsub.f32 %v28274_v5, %v28478_v59  ;;  %v3780_v59 = vsub.f32 %v28284_v55, %v28480_v18 }
 0x406   :  { %v3877_v54 = vpop.xlane.xlu1 %3876  ;;  %v3782_v55 = vsub.f32 %v28292_v14, %v28484_v53  ;;  %v3784_v14 = vsub.f32 %v28302_v19, %v28488_v56  ;;  %v3786_v19 = vsub.f32 %v28310_v0, %v28494_v3 }
 0x407   :  { %26607 = vrcp.f32 %v3877_v54  ;;  %25348 = vmatmul.mubr.msk.f32.vlgmr.msra.gmra.mxu0 %vm1134_vm3, %v3985_v48  ;;  %v3830_v5 = vmul.f32 1.442695, %v3778_v10  ;;  %v33131_v10 = vld [vmem:[#allocation89_spill] sm:$0xff] }
 0x408   :  { %v26602_v46 = vpop.eup %26601  ;;  %25356 = vmatpush3.msra.mxu0 %v28018_v42  ;;  %7618 = vrot.lane.b32.xlu0 %v27667_v33, %s27177_s16  ;;  %v3842_v43 = vmul.f32 1.442695, %v3784_v14 }
 0x409   :  { %v3986_v17 = vmul.f32 %v26602_v46, %v28378_v52  ;;  %25357 = vmatprep.mubr.msk.f32.mxu0 %vm27176_vm2, %v33087_v44  ;;  %25365 = vmatprep.subr.mxu0 %v33087_v44 }
 0x40a   :  { %v3880_v32 = vpop.xlane.xlu0 %3879 }
 0x40b   :  { %26609 = vrcp.f32 %v3880_v32  ;;  %v28547_v30 = vpop.xlane.xlu1 %3906  ;;  %25353 = vmatmul.mubr.msk.f32.vlgmr.msra.gmra.mxu1 %vm1134_vm3, %v3986_v17 }
 0x40c   :  { %v26604_v42 = vpop.eup %26603  ;;  %25361 = vmatpush3.msra.mxu1 %v28150_v16  ;;  %7616 = vrot.lane.b32.xlu0 %v27667_v33, %s27178_s17  ;;  %26611 = vpow2.f32 %v3830_v5  ;;  %v33132_v5 = vld [vmem:[#allocation70_spill] sm:$0xff] }
 0x40d   :  { %v3987_v52 = vmul.f32 %v26604_v42, %v28383_v4  ;;  %25362 = vmatprep.mubr.msk.f32.mxu1 %vm27176_vm2, %v33087_v44  ;;  %25370 = vmatprep.subr.mxu1 %v33087_v44  ;;  %v3834_v4 = vmul.f32 1.442695, %v3780_v59 }
 0x40f   :  { %v28559_v39 = vpop.xlane.xlu1 %3912  ;;  %25358 = vmatmul.mubr.msk.f32.vlgmr.msra.gmra.mxu0 %vm1134_vm3, %v3987_v52 }
 0x410   :  { %v26606_v23 = vpop.eup %26605  ;;  %25366 = vmatpush3.msra.mxu0 %v28029_v6  ;;  %7774 = vrot.lane.b32.xlu0 %v27675_v37, %s27177_s16 }
 0x411   :  { %v3988_v16 = vmul.f32 %v26606_v23, %v28388_v38  ;;  %25367 = vmatprep.mubr.msk.f32.mxu0 %vm27176_vm2, %v33087_v44  ;;  %25375 = vmatprep.subr.mxu0 %v33087_v44  ;;  %v3838_v38 = vmul.f32 1.442695, %v3782_v55 }
 0x413   :  { %v3883_v18 = vpop.xlane.xlu1 %3882  ;;  %25363 = vmatmul.mubr.msk.f32.vlgmr.msra.gmra.mxu1 %vm1134_vm3, %v3988_v16 }
 0x414   :  { %v26608_v61 = vpop.eup %26607  ;;  %26613 = vrcp.f32 %v3883_v18  ;;  %25371 = vmatpush3.msra.mxu1 %v28038_v35  ;;  %7772 = vrot.lane.b32.xlu0 %v27675_v37, %s27178_s17  ;;  %v33133_v18 = vld [vmem:[#allocation80_spill] sm:$0xff] }
 0x415   :  { %v3989_v6 = vmul.f32 %v26608_v61, %v28394_v60  ;;  %25372 = vmatprep.mubr.msk.f32.mxu1 %vm27176_vm2, %v33087_v44  ;;  %25380 = vmatprep.subr.mxu1 %v33087_v44  ;;  %26615 = vpow2.f32 %v3834_v4 }
 0x416   :  { %v28581_v53 = vpop.xlane.xlu0 %3918  ;;  %26617 = vpow2.f32 %v3838_v38 }
 0x417   :  { %25368 = vmatmul.mubr.msk.f32.vlgmr.msra.gmra.mxu0 %vm1134_vm3, %v3989_v6 }
 0x418   :  { %v26610_v35 = vpop.eup %26609  ;;  %25376 = vmatpush3.msra.mxu0 %v28168_v62  ;;  %7930 = vrot.lane.b32.xlu0 %v27683_v41, %s27177_s16  ;;  %v3846_v62 = vmul.f32 1.442695, %v3786_v19 }
 0x419   :  { %v3990_v60 = vmul.f32 %v26610_v35, %v28399_v9  ;;  %25377 = vmatprep.mubr.msk.f32.mxu0 %vm27176_vm2, %v33087_v44  ;;  %25385 = vmatprep.subr.mxu0 %v33087_v44  ;;  %v33129_v9 = vld [vmem:[#allocation107_spill] sm:$0xff]  ;;  %v28604_v45 = vpop.eup %26611 }
 0x41a   :  { %v3886_v56 = vpop.xlane.xlu0 %3885  ;;  %v3788_v20 = vsub.f32 %v33129_v9, %v28496_v47  ;;  %v3914_v46 = vsel %vm1134_vm3, %v28604_v45, 0.0 }
 0x41b   :  { %26619 = vrcp.f32 %v3886_v56  ;;  %25373 = vmatmul.mubr.msk.f32.vlgmr.msra.gmra.mxu1 %vm1134_vm3, %v3990_v60  ;;  %v33134_v60 = vld [vmem:[#allocation72_spill] sm:$0xff] }
 0x41c   :  { %25381 = vmatpush3.msra.mxu1 %v28047_v58  ;;  %7928 = vrot.lane.b32.xlu0 %v27683_v41, %s27178_s17  ;;  %26621 = vpow2.f32 %v3842_v43  ;;  %v33130_v58 = vld [vmem:[#allocation68_spill] sm:$0xff]  ;;  %v3850_v48 = vmul.f32 1.442695, %v3788_v20  ;;  %v33135_v43 = vld [vmem:[#allocation91_spill] sm:$0xff] }
 0x41d   :  { %25382 = vmatprep.mubr.msk.f32.mxu1 %vm27176_vm2, %v33087_v44  ;;  %25390 = vmatprep.subr.mxu1 %v33087_v44 }
 0x41e   :  { %v28602_v0 = vpop.xlane.xlu0 %3924  ;;  %v3889_v3 = vpop.xlane.xlu1 %3888 }
 0x41f   :  { %26623 = vrcp.f32 %v3889_v3 }
 0x420   :  { %8086 = vrot.lane.b32.xlu0 %v33130_v58, %s27177_s16  ;;  %26625 = vpow2.f32 %v3846_v62 }
 0x421   :  { %v26614_v51 = vpop.eup %26613  ;;  %26627 = vpow2.f32 %v3850_v48  ;;  %v33137_v48 = vld [vmem:[#allocation74_spill] sm:$0xff] }
 0x422   :  { %v28608_v54 = vpop.xlane.xlu0 %3930  ;;  %v3991_v17 = vmul.f32 %v26614_v51, %v28414_v49  ;;  %v28613_v47 = vpop.eup %26615  ;;  %v33136_v51 = vld [vmem:[#allocation81_spill] sm:$0xff] }
 0x423   :  { %3915 = vadd.xlane.f32.xlu1 %v3914_v46  ;;  %v3920_v42 = vsel %vm1134_vm3, %v28613_v47, 0.0  ;;  %v28624_v49 = vpop.eup %26617 }
 0x424   :  { %25378 = vmatmul.mubr.msk.f32.vlgmr.msra.gmra.mxu0 %vm1134_vm3, %v3991_v17  ;;  %8084 = vrot.lane.b32.xlu0 %v33130_v58, %s27178_s17  ;;  %v3926_v4 = vsel %vm1134_vm3, %v28624_v49, 0.0 }
 0x425   :  { %25386 = vmatpush3.msra.mxu0 %v33131_v10  ;;  %25387 = vmatprep.mubr.msk.f32.mxu0 %vm27176_vm2, %v33087_v44  ;;  %v33138_v10 = vld [vmem:[#allocation93_spill] sm:$0xff] }
 0x426   :  { %v3892_v32 = vpop.xlane.xlu0 %3891  ;;  %25395 = vmatprep.subr.mxu0 %v33087_v44 }
 0x427   :  { %26629 = vrcp.f32 %v3892_v32  ;;  %3921 = vadd.xlane.f32.xlu1 %v3920_v42  ;;  %v33140_v32 = vld [vmem:[#allocation82_spill] sm:$0xff] }
 0x428   :  { %v26620_v52 = vpop.eup %26619  ;;  %8242 = vrot.lane.b32.xlu0 %v33132_v5, %s27177_s16 }
 0x429   :  { %v3992_v59 = vmul.f32 %v26620_v52, %v28424_v11  ;;  %v28633_v55 = vpop.eup %26621  ;;  %v33141_v52 = vld [vmem:[#allocation95_spill] sm:$0xff] }
 0x42a   :  { %v28629_v23 = vpop.xlane.xlu0 %3936  ;;  %v3895_v16 = vpop.xlane.xlu1 %3894  ;;  %v3932_v38 = vsel %vm1134_vm3, %v28633_v55, 0.0 }
 0x42b   :  { %25383 = vmatmul.mubr.msk.f32.vlgmr.msra.gmra.mxu1 %vm1134_vm3, %v3992_v59  ;;  %3927 = vadd.xlane.f32.xlu1 %v3926_v4  ;;  %26631 = vrcp.f32 %v3895_v16  ;;  %v33144_v16 = vld [vmem:[#allocation67_spill] sm:$0xff]  ;;  %v33145_v4 = vld [vmem:[#allocation86_spill] sm:$0xff] }
 0x42c   :  { %25391 = vmatpush3.msra.mxu1 %v33133_v18  ;;  %8240 = vrot.lane.b32.xlu0 %v33132_v5, %s27178_s17  ;;  %v26624_v61 = vpop.eup %26623 }
 0x42d   :  { %25392 = vmatprep.mubr.msk.f32.mxu1 %vm27176_vm2, %v33087_v44  ;;  %25400 = vmatprep.subr.mxu1 %v33087_v44  ;;  %v3993_v14 = vmul.f32 %v26624_v61, %v28432_v15  ;;  %v28647_v35 = vpop.eup %26625  ;;  %v33147_v61 = vld [vmem:[#allocation87_spill] sm:$0xff] }
 0x42e   :  { %v28642_v11 = vpop.xlane.xlu0 %3942  ;;  %v3898_v6 = vpop.xlane.xlu1 %3897  ;;  %v3938_v56 = vsel %vm1134_vm3, %v28647_v35, 0.0 }
 0x42f   :  { %3933 = vadd.xlane.f32.xlu1 %v3932_v38  ;;  %26633 = vrcp.f32 %v3898_v6  ;;  %25388 = vmatmul.mubr.msk.f32.vlgmr.msra.gmra.mxu0 %vm1134_vm3, %v3993_v14  ;;  %v28660_v15 = vpop.eup %26627  ;;  %v33148_v6 = vld [vmem:[#allocation69_spill] sm:$0xff]  ;;  %v33150_v14 = vld [vmem:[#allocation90_spill] sm:$0xff] }
 0x430   :  { %8398 = vrot.lane.b32.xlu0 %v33134_v60, %s27177_s16  ;;  %25396 = vmatpush3.msra.mxu0 %v33135_v43  ;;  %v3944_v3 = vsel %vm1134_vm3, %v28660_v15, 0.0  ;;  %v33151_v43 = vld [vmem:[#allocation55_spill] sm:$0xff] }
 0x431   :  { %25397 = vmatprep.mubr.msk.f32.mxu0 %vm27176_vm2, %v33087_v44  ;;  %25405 = vmatprep.subr.mxu0 %v33087_v44 }
 0x432   :  { %v28655_v19 = vpop.xlane.xlu0 %3948 }
 0x433   :  { %3939 = vadd.xlane.f32.xlu1 %v3938_v56 }
 0x434   :  { %v26630_v62 = vpop.eup %26629  ;;  %8396 = vrot.lane.b32.xlu0 %v33134_v60, %s27178_s17 }
 0x435   :  { %v3994_v9 = vmul.f32 %v26630_v62, %v28443_v12  ;;  %v33153_v62 = vld [vmem:[#allocation71_spill] sm:$0xff] }
 0x436   :  { %v3901_v20 = vpop.xlane.xlu0 %3900 }
 0x437   :  { %26635 = vrcp.f32 %v3901_v20  ;;  %25393 = vmatmul.mubr.msk.f32.vlgmr.msra.gmra.mxu1 %vm1134_vm3, %v3994_v9  ;;  %3945 = vadd.xlane.f32.xlu1 %v3944_v3  ;;  %v33154_v9 = vld [vmem:[#allocation54_spill] sm:$0xff] }
 0x438   :  { %25401 = vmatpush3.msra.mxu1 %v33136_v51  ;;  %8554 = vrot.lane.b32.xlu0 %v33137_v48, %s27177_s16  ;;  %v26632_v46 = vpop.eup %26631  ;;  %26637 = vrcp.f32 %v28547_v30  ;;  %v33155_v51 = vld [vmem:[#allocation99_spill] sm:$0xff] }
 0x439   :  { %25402 = vmatprep.mubr.msk.f32.mxu1 %vm27176_vm2, %v33087_v44  ;;  %25410 = vmatprep.subr.mxu1 %v33087_v44  ;;  %v3995_v12 = vmul.f32 %v26632_v46, %v28450_v34  ;;  %26639 = vrcp.f32 %v28559_v39  ;;  %v33139_v34 = vld [vmem:[#allocation76_spill] sm:$0xff] }
 0x43a   :  { %26641 = vrcp.f32 %v28581_v53  ;;  %v33142_v53 = vld [vmem:[#allocation78_spill] sm:$0xff]  ;;  %v33156_v46 = vld [vmem:[#allocation56_spill] sm:$0xff] }
 0x43b   :  { %25398 = vmatmul.mubr.msk.f32.vlgmr.msra.gmra.mxu0 %vm1134_vm3, %v3995_v12  ;;  %26643 = vrcp.f32 %v28602_v0 }
 0x43c   :  { %8552 = vrot.lane.b32.xlu0 %v33137_v48, %s27178_s17  ;;  %v26634_v17 = vpop.eup %26633  ;;  %25406 = vmatpush3.msra.mxu0 %v33138_v10  ;;  %26645 = vrcp.f32 %v28608_v54  ;;  %v33157_v10 = vld [vmem:[#allocation101_spill] sm:$0xff] }
 0x43d   :  { %25407 = vmatprep.mubr.msk.f32.mxu0 %vm27176_vm2, %v33087_v44  ;;  %v3996_v30 = vmul.f32 %v26634_v17, %v28456_v31  ;;  %25415 = vmatprep.subr.mxu0 %v33087_v44  ;;  %26647 = vrcp.f32 %v28629_v23  ;;  %v33146_v23 = vld [vmem:[#allocation50_spill] sm:$0xff] }
 0x43e   :  { %26649 = vrcp.f32 %v28642_v11  ;;  %v33149_v11 = vld [vmem:[#allocation53_spill] sm:$0xff] }
 0x43f   :  { %25403 = vmatmul.mubr.msk.f32.vlgmr.msra.gmra.mxu1 %vm1134_vm3, %v3996_v30  ;;  %26651 = vrcp.f32 %v28655_v19  ;;  %v33158_v30 = vld [vmem:[#allocation73_spill] sm:$0xff] }
 0x440   :  { %8710 = vrot.lane.b32.xlu0 %v33139_v34, %s27177_s16  ;;  %25411 = vmatpush3.msra.mxu1 %v33140_v32  ;;  %v7149_v32 = vpop.permute.xlu0 %7148 }
 0x441   :  { %25412 = vmatprep.mubr.msk.f32.mxu1 %vm27176_vm2, %v33087_v44  ;;  %25420 = vmatprep.subr.mxu1 %v33087_v44 }
 0x444   :  { %v26636_v39 = vpop.eup %26635  ;;  %8708 = vrot.lane.b32.xlu0 %v33139_v34, %s27178_s17 }
 0x445   :  { %v3997_v31 = vmul.f32 %v26636_v39, %v28468_v50  ;;  %v26638_v42 = vpop.eup %26637  ;;  %v33143_v50 = vld [vmem:[#allocation84_spill] sm:$0xff]  ;;  %v33159_v39 = vld [vmem:[#allocation103_spill] sm:$0xff] }
 0x446   :  { %v3999_v0 = vmul.f32 %v26638_v42, %v28401_v25  ;;  %v26640_v59 = vpop.eup %26639  ;;  %v33161_v42 = vld [vmem:[#allocation108_spill] sm:$0xff] }
 0x447   :  { %25408 = vmatmul.mubr.msk.f32.vlgmr.msra.gmra.mxu0 %vm1134_vm3, %v3997_v31  ;;  %v4001_v25 = vmul.f32 %v26640_v59, %v28408_v13  ;;  %v26642_v54 = vpop.eup %26641  ;;  %v33160_v31 = vld [vmem:[#allocation105_spill] sm:$0xff]  ;;  %v33163_v59 = vld [vmem:[#allocation110_spill] sm:$0xff] }
 0x448   :  { %25416 = vmatpush3.msra.mxu0 %v33141_v52  ;;  %7694 = vrot.lane.b32.xlu1 %v27679_v40, %s27178_s17  ;;  %v4003_v13 = vmul.f32 %v26642_v54, %v28419_v22  ;;  %v26644_v18 = vpop.eup %26643  ;;  %v33162_v52 = vld [vmem:[#allocation75_spill] sm:$0xff] }
 0x449   :  { %8866 = vrot.lane.b32.xlu0 %v33142_v53, %s27177_s16  ;;  %25417 = vmatprep.mubr.msk.f32.mxu0 %vm27176_vm2, %v33087_v44  ;;  %v4005_v22 = vmul.f32 %v26644_v18, %v28429_v2  ;;  %v26646_v38 = vpop.eup %26645  ;;  %v33152_v2 = vld [vmem:[#allocation94_spill] sm:$0xff]  ;;  %v33166_v18 = vld [vmem:[#allocation116_spill] sm:$0xff] }
 0x44a   :  { %25425 = vmatprep.subr.mxu0 %v33087_v44  ;;  %v4007_v19 = vmul.f32 %v26646_v38, %v28439_v63  ;;  %v26648_v56 = vpop.eup %26647  ;;  %v28761_v63 = vpop.permute.xlu1 %7228  ;;  %v33169_v38 = vld [vmem:[#allocation118_spill] sm:$0xff] }
 0x44b   :  { %25418 = vmatmul.mubr.msk.f32.vlgmr.msra.gmra.mxu0 %vm1134_vm3, %v3999_v0  ;;  %v4009_v20 = vmul.f32 %v26648_v56, %v28448_v8  ;;  %v26650_v3 = vpop.eup %26649 }
 0x44c   :  { %25426 = vmatpush3.msra.mxu0 %v33143_v50  ;;  %7852 = vrot.lane.b32.xlu1 %v33144_v16, %s27177_s16  ;;  %v4011_v8 = vmul.f32 %v26650_v3, %v28458_v29  ;;  %v26652_v12 = vpop.eup %26651  ;;  %v33164_v50 = vld [vmem:[#allocation112_spill] sm:$0xff]  ;;  %v33172_v3 = vld [vmem:[#allocation85_spill] sm:$0xff] }
 0x44d   :  { %8864 = vrot.lane.b32.xlu0 %v33142_v53, %s27178_s17  ;;  %25427 = vmatprep.mubr.msk.f32.mxu0 %vm27176_vm2, %v33087_v44  ;;  %v4013_v29 = vmul.f32 %v26652_v12, %v28464_v26 }
 0x44e   :  { %25435 = vmatprep.subr.mxu0 %v33087_v44 }
 0x44f   :  { %25428 = vmatmul.mubr.msk.f32.vlgmr.msra.gmra.mxu0 %vm1134_vm3, %v4001_v25 }
 0x450   :  { %25436 = vmatpush3.msra.mxu0 %v33145_v4  ;;  %7850 = vrot.lane.b32.xlu1 %v33144_v16, %s27178_s17 }
 0x451   :  { %9434 = vrot.lane.b32.xlu0 %v33146_v23, %s27179_s18  ;;  %25437 = vmatprep.mubr.msk.f32.mxu0 %vm27176_vm2, %v33087_v44 }
 0x452   :  { %25445 = vmatprep.subr.mxu0 %v33087_v44 }
 0x453   :  { %25438 = vmatmul.mubr.msk.f32.vlgmr.msra.gmra.mxu0 %vm1134_vm3, %v4003_v13  ;;  %v33165_v13 = vld [vmem:[#allocation114_spill] sm:$0xff] }
 0x454   :  { %25446 = vmatpush3.msra.mxu0 %v33147_v61  ;;  %8008 = vrot.lane.b32.xlu1 %v33148_v6, %s27177_s16  ;;  %v33167_v61 = vld [vmem:[#allocation77_spill] sm:$0xff] }
 0x455   :  { %9510 = vrot.lane.b32.xlu0 %v33149_v11, %s27179_s18  ;;  %25447 = vmatprep.mubr.msk.f32.mxu0 %vm27176_vm2, %v33087_v44 }
 0x456   :  { %25455 = vmatprep.subr.mxu0 %v33087_v44 }
 0x457   :  { %25448 = vmatmul.mubr.msk.f32.vlgmr.msra.gmra.mxu0 %vm1134_vm3, %v4005_v22  ;;  %v33168_v22 = vld [vmem:[#allocation83_spill] sm:$0xff] }
 0x458   :  { %25456 = vmatpush3.msra.mxu0 %v33150_v14  ;;  %8006 = vrot.lane.b32.xlu1 %v33148_v6, %s27178_s17  ;;  %v33170_v14 = vld [vmem:[#allocation120_spill] sm:$0xff] }
 0x459   :  { %9662 = vrot.lane.b32.xlu0 %v33151_v43, %s27179_s18  ;;  %25457 = vmatprep.mubr.msk.f32.mxu0 %vm27176_vm2, %v33087_v44 }
 0x45a   :  { %25465 = vmatprep.subr.mxu0 %v33087_v44 }
 0x45b   :  { %25458 = vmatmul.mubr.msk.f32.vlgmr.msra.gmra.mxu0 %vm1134_vm3, %v4007_v19 }
 0x45c   :  { %25466 = vmatpush3.msra.mxu0 %v33152_v2  ;;  %8164 = vrot.lane.b32.xlu1 %v33153_v62, %s27177_s16 }
 0x45d   :  { %9738 = vrot.lane.b32.xlu0 %v33154_v9, %s27179_s18  ;;  %25467 = vmatprep.mubr.msk.f32.mxu0 %vm27176_vm2, %v33087_v44 }
 0x45e   :  { %25475 = vmatprep.subr.mxu0 %v33087_v44 }
 0x45f   :  { %25468 = vmatmul.mubr.msk.f32.vlgmr.msra.gmra.mxu0 %vm1134_vm3, %v4009_v20  ;;  %v33171_v20 = vld [vmem:[#allocation79_spill] sm:$0xff] }
 0x460   :  { %25476 = vmatpush3.msra.mxu0 %v33155_v51  ;;  %8162 = vrot.lane.b32.xlu1 %v33153_v62, %s27178_s17 }
 0x461   :  { %9890 = vrot.lane.b32.xlu0 %v33156_v46, %s27179_s18  ;;  %25477 = vmatprep.mubr.msk.f32.mxu0 %vm27176_vm2, %v33087_v44 }
 0x462   :  { %25485 = vmatprep.subr.mxu0 %v33087_v44 }
 0x463   :  { %25478 = vmatmul.mubr.msk.f32.vlgmr.msra.gmra.mxu0 %vm1134_vm3, %v4011_v8  ;;  %v3904_v17 = vpop.xlane.xlu1 %3903  ;;  %v33173_v8 = vld [vmem:[#allocation51_spill] sm:$0xff] }
 0x464   :  { %25486 = vmatpush3.msra.mxu0 %v33157_v10  ;;  %26653 = vrcp.f32 %v3904_v17  ;;  %8320 = vrot.lane.b32.xlu1 %v33158_v30, %s27177_s16  ;;  %v33174_v17 = vld [vmem:[#allocation52_spill] sm:$0xff] }
 0x465   :  { %10042 = vrot.lane.b32.xlu0 %v27643_v21, %s27179_s18  ;;  %25487 = vmatprep.mubr.msk.f32.mxu0 %vm27176_vm2, %v33087_v44 }
 0x466   :  { %25495 = vmatprep.subr.mxu0 %v33087_v44 }
 0x467   :  { %25488 = vmatmul.mubr.msk.f32.vlgmr.msra.gmra.mxu0 %vm1134_vm3, %v4013_v29  ;;  %v28884_v10 = vpop.permute.xlu1 %7226 }
 0x468   :  { %25496 = vmatpush3.xpose.msk.msra.mxu0 %vm1134_vm3, %v33159_v39  ;;  %8318 = vrot.lane.b32.xlu1 %v33158_v30, %s27178_s17 }
 0x469   :  { %10194 = vrot.lane.b32.xlu0 %v27651_v24, %s27179_s18  ;;  %25497 = vmatprep.mubr.msk.f32.mxu0 %vm27176_vm2, %v33087_v44 }
 0x46a   :  { %25505 = vmatprep.subr.mxu0 %v33087_v44 }
 0x46b   :  { %v3910_v26 = vpop.xlane.xlu0 %3909  ;;  %25498 = vmatmul.mubr.msk.f32.vlgmr.msra.gmra.mxu0 %vm1134_vm3, %v33160_v31  ;;  %v33176_v31 = vld [vmem:[#allocation59_spill] sm:$0xff] }
 0x46c   :  { %26655 = vrcp.f32 %v3910_v26  ;;  %25506 = vmatpush3.xpose.msk.msra.mxu0 %vm1134_vm3, %v33161_v42  ;;  %8476 = vrot.lane.b32.xlu1 %v33162_v52, %s27177_s16  ;;  %v28894_v26 = vpop.permute.xlu1 %7384 }
 0x46d   :  { %10346 = vrot.lane.b32.xlu0 %v27659_v1, %s27179_s18  ;;  %25507 = vmatprep.mubr.msk.f32.mxu0 %vm27176_vm2, %v33087_v44 }
 0x46e   :  { %25515 = vmatprep.subr.mxu0 %v33087_v44 }
 0x46f   :  { %v7307_v0 = vpop.permute.xlu0 %7306  ;;  %25508 = vmatmul.mubr.msk.f32.vlgmr.msra.gmra.mxu0 %vm1134_vm3, %v33163_v59 }
 0x470   :  { %25516 = vmatpush3.xpose.msk.msra.mxu0 %vm1134_vm3, %v33164_v50  ;;  %8474 = vrot.lane.b32.xlu1 %v33162_v52, %s27178_s17 }
 0x471   :  { %v26654_v25 = vpop.eup %26653  ;;  %10498 = vrot.lane.b32.xlu0 %v27667_v33, %s27179_s18  ;;  %25517 = vmatprep.mubr.msk.f32.mxu0 %vm27176_vm2, %v33087_v44 }
 0x472   :  { %25525 = vmatprep.subr.mxu0 %v33087_v44  ;;  %v3998_v54 = vmul.f32 %v26654_v25, %v28482_v57 }
 0x473   :  { %v7305_v4 = vpop.permute.xlu0 %7304  ;;  %25518 = vmatmul.mubr.msk.f32.vlgmr.msra.gmra.mxu0 %vm1134_vm3, %v33165_v13 }
 0x474   :  { %25526 = vmatpush3.xpose.msk.msra.mxu0 %vm1134_vm3, %v33166_v18  ;;  %8632 = vrot.lane.b32.xlu1 %v33167_v61, %s27177_s16 }
 0x475   :  { %10650 = vrot.lane.b32.xlu0 %v27675_v37, %s27179_s18  ;;  %25413 = vmatmul.mubr.msk.f32.vlgmr.msra.gmra.mxu1 %vm1134_vm3, %v3998_v54 }
 0x476   :  { %25421 = vmatpush3.msra.mxu1 %v33168_v22  ;;  %25527 = vmatprep.mubr.msk.f32.mxu0 %vm27176_vm2, %v33087_v44 }
 0x477   :  { %25535 = vmatprep.subr.mxu0 %v33087_v44  ;;  %v7463_v57 = vpop.permute.xlu0 %7462  ;;  %25528 = vmatmul.mubr.msk.f32.vlgmr.msra.gmra.mxu0 %vm1134_vm3, %v33169_v38 }
 0x478   :  { %25536 = vmatpush3.xpose.msk.msra.mxu0 %vm1134_vm3, %v33170_v14  ;;  %8630 = vrot.lane.b32.xlu1 %v33167_v61, %s27178_s17 }
 0x479   :  { %v26656_v19 = vpop.eup %26655  ;;  %10878 = vrot.lane.b32.xlu0 %v33148_v6, %s27179_s18  ;;  %25537 = vmatprep.mubr.msk.f32.mxu0 %vm27176_vm2, %v33087_v44 }
 0x47a   :  { %25545 = vmatprep.subr.mxu0 %v33087_v44  ;;  %25422 = vmatprep.mubr.msk.f32.mxu1 %vm27176_vm2, %v33087_v44  ;;  %v4000_v56 = vmul.f32 %v26656_v19, %v28490_v7 }
 0x47b   :  { %v7461_v2 = vpop.permute.xlu0 %7460  ;;  %25430 = vmatprep.subr.mxu1 %v33087_v44  ;;  %25538 = vmatmul.mubr.msk.f32.vlgmr.msra.gmra.mxu0 %vm1134_vm3, %v7149_v32  ;;  %v33175_v32 = vld [vmem:[#allocation57_spill] sm:$0xff] }
 0x47c   :  { %25546 = vmatpush3.xpose.msk.msra.mxu0 %vm1134_vm3, %v7307_v0  ;;  %8788 = vrot.lane.b32.xlu1 %v33171_v20, %s27177_s16  ;;  %v28909_v0 = vpop.permute.xlu1 %7382 }
 0x47d   :  { %11410 = vrot.lane.b32.xlu0 %v33137_v48, %s27179_s18  ;;  %25423 = vmatmul.mubr.msk.f32.vlgmr.msra.gmra.mxu1 %vm1134_vm3, %v4000_v56 }
 0x47e   :  { %25431 = vmatpush3.msra.mxu1 %v33172_v3  ;;  %25547 = vmatprep.mubr.msk.f32.mxu0 %vm27176_vm2, %v33087_v44 }
 0x47f   :  { %25555 = vmatprep.subr.mxu0 %v33087_v44  ;;  %v7619_v7 = vpop.permute.xlu0 %7618  ;;  %25548 = vmatmul.mubr.msk.f32.vlgmr.msra.gmra.mxu0 %vm1134_vm3, %v7305_v4 }
 0x480   :  { %25556 = vmatpush3.xpose.msk.msra.mxu0 %vm1134_vm3, %v7463_v57  ;;  %8786 = vrot.lane.b32.xlu1 %v33171_v20, %s27178_s17  ;;  %v28917_v25 = vpop.permute.xlu1 %7540 }
 0x481   :  { %11562 = vrot.lane.b32.xlu0 %v33139_v34, %s27179_s18  ;;  %25557 = vmatprep.mubr.msk.f32.mxu0 %vm27176_vm2, %v33087_v44 }
 0x482   :  { %25565 = vmatprep.subr.mxu0 %v33087_v44  ;;  %25432 = vmatprep.mubr.msk.f32.mxu1 %vm27176_vm2, %v33087_v44 }
 0x483   :  { %v7617_v51 = vpop.permute.xlu0 %7616  ;;  %25558 = vmatmul.mubr.msk.f32.vlgmr.msra.gmra.mxu0 %vm1134_vm3, %v7461_v2  ;;  %25440 = vmatprep.subr.mxu1 %v33087_v44 }
 0x484   :  { %25566 = vmatpush3.xpose.msk.msra.mxu0 %vm1134_vm3, %v7619_v7  ;;  %9358 = vrot.lane.b32.xlu1 %v33173_v8, %s27179_s18  ;;  %v28932_v4 = vpop.permute.xlu1 %7538 }
 0x485   :  { %11714 = vrot.lane.b32.xlu0 %v33142_v53, %s27179_s18  ;;  %25567 = vmatprep.mubr.msk.f32.mxu0 %vm27176_vm2, %v33087_v44 }
 0x486   :  { %25575 = vmatprep.subr.mxu0 %v33087_v44 }
 0x487   :  { %v7775_v12 = vpop.permute.xlu0 %7774  ;;  %25568 = vmatmul.mubr.msk.f32.vlgmr.msra.gmra.mxu0 %vm1134_vm3, %v7617_v51 }
 0x488   :  { %9586 = vrot.lane.b32.xlu1 %v33174_v17, %s27179_s18  ;;  %25576 = vmatpush3.xpose.msk.msra.mxu0 %vm1134_vm3, %v7775_v12  ;;  %v28941_v22 = vpop.permute.xlu1 %7696 }
 0x489   :  { %11870 = vrot.lane.b32.xlu0 %v33146_v23, %s27180_s19  ;;  %25577 = vmatprep.mubr.msk.f32.mxu0 %vm27176_vm2, %v33087_v44 }
 0x48a   :  { %25585 = vmatprep.subr.mxu0 %v33087_v44 }
 0x48b   :  { %v7773_v29 = vpop.permute.xlu0 %7772 }
 0x48c   :  { %9814 = vrot.lane.b32.xlu1 %v33175_v32, %s27179_s18  ;;  %25578 = vmatmul.mubr.msk.f32.vlgmr.msra.gmra.mxu0 %vm1134_vm3, %v7773_v29 }
 0x48d   :  { %11868 = vrot.lane.b32.xlu0 %v33146_v23, %s27181_s20  ;;  %25587 = vmatprep.mubr.msk.f32.mxu0 %vm27176_vm2, %v33087_v44 }
 0x48f   :  { %v7931_v39 = vpop.permute.xlu0 %7930 }
 0x490   :  { %9966 = vrot.lane.b32.xlu1 %v33176_v31, %s27179_s18  ;;  %25586 = vmatpush3.xpose.msk.msra.mxu0 %vm1134_vm3, %v7931_v39 }
 0x491   :  { %12026 = vrot.lane.b32.xlu0 %v33174_v17, %s27180_s19  ;;  %25595 = vmatprep.subr.mxu0 %v33087_v44 }
 0x493   :  { %v7929_v42 = vpop.permute.xlu0 %7928 }
 0x494   :  { %10118 = vrot.lane.b32.xlu1 %v27655_v27, %s27179_s18  ;;  %25588 = vmatmul.mubr.msk.f32.vlgmr.msra.gmra.mxu0 %vm1134_vm3, %v7929_v42 }
 0x495   :  { %12024 = vrot.lane.b32.xlu0 %v33174_v17, %s27181_s20  ;;  %25597 = vmatprep.mubr.msk.f32.mxu0 %vm27176_vm2, %v33087_v44 }
 0x497   :  { %v8087_v59 = vpop.permute.xlu0 %8086 }
 0x498   :  { %10270 = vrot.lane.b32.xlu1 %v27663_v28, %s27179_s18  ;;  %25596 = vmatpush3.xpose.msk.msra.mxu0 %vm1134_vm3, %v8087_v59 }
 0x499   :  { %12182 = vrot.lane.b32.xlu0 %v33154_v9, %s27180_s19  ;;  %25605 = vmatprep.subr.mxu0 %v33087_v44 }
 0x49b   :  { %v8085_v50 = vpop.permute.xlu0 %8084 }
 0x49c   :  { %10422 = vrot.lane.b32.xlu1 %v27671_v36, %s27179_s18  ;;  %25598 = vmatmul.mubr.msk.f32.vlgmr.msra.gmra.mxu0 %vm1134_vm3, %v8085_v50 }
 0x49d   :  { %12180 = vrot.lane.b32.xlu0 %v33154_v9, %s27181_s20  ;;  %25607 = vmatprep.mubr.msk.f32.mxu0 %vm27176_vm2, %v33087_v44 }
 0x49f   :  { %v8243_v54 = vpop.permute.xlu0 %8242 }
 0x4a0   :  { %10574 = vrot.lane.b32.xlu1 %v27679_v40, %s27179_s18  ;;  %25606 = vmatpush3.xpose.msk.msra.mxu0 %vm1134_vm3, %v8243_v54  ;;  %v33178_v54 = vld [vmem:[#allocation97_spill] sm:$0xff] }
 0x4a1   :  { %12338 = vrot.lane.b32.xlu0 %v33156_v46, %s27180_s19  ;;  %25615 = vmatprep.subr.mxu0 %v33087_v44 }
 0x4a3   :  { %v8241_v13 = vpop.permute.xlu0 %8240 }
 0x4a4   :  { %10726 = vrot.lane.b32.xlu1 %v33144_v16, %s27179_s18  ;;  %25608 = vmatmul.mubr.msk.f32.vlgmr.msra.gmra.mxu0 %vm1134_vm3, %v8241_v13 }
 0x4a5   :  { %12336 = vrot.lane.b32.xlu0 %v33156_v46, %s27181_s20  ;;  %25617 = vmatprep.mubr.msk.f32.mxu0 %vm27176_vm2, %v33087_v44 }
 0x4a7   :  { %v8399_v18 = vpop.permute.xlu0 %8398 }
 0x4a8   :  { %10802 = vrot.lane.b32.xlu1 %v27683_v41, %s27179_s18  ;;  %25616 = vmatpush3.xpose.msk.msra.mxu0 %vm1134_vm3, %v8399_v18 }
 0x4a9   :  { %12494 = vrot.lane.b32.xlu0 %v27643_v21, %s27180_s19  ;;  %25625 = vmatprep.subr.mxu0 %v33087_v44 }
 0x4ab   :  { %v8397_v57 = vpop.permute.xlu0 %8396 }
 0x4ac   :  { %10954 = vrot.lane.b32.xlu1 %v33130_v58, %s27179_s18  ;;  %25618 = vmatmul.mubr.msk.f32.vlgmr.msra.gmra.mxu0 %vm1134_vm3, %v8397_v57  ;;  %v3916_v38 = vpop.xlane.xlu1 %3915 }
 0x4ad   :  { %12492 = vrot.lane.b32.xlu0 %v27643_v21, %s27181_s20  ;;  %26657 = vrcp.f32 %v3916_v38  ;;  %25627 = vmatprep.mubr.msk.f32.mxu0 %vm27176_vm2, %v33087_v44 }
 0x4af   :  { %v8555_v14 = vpop.permute.xlu0 %8554 }
 0x4b0   :  { %11030 = vrot.lane.b32.xlu1 %v33153_v62, %s27179_s18  ;;  %25626 = vmatpush3.xpose.msk.msra.mxu0 %vm1134_vm3, %v8555_v14  ;;  %v3922_v19 = vpop.xlane.xlu1 %3921 }
 0x4b1   :  { %12650 = vrot.lane.b32.xlu0 %v27651_v24, %s27180_s19  ;;  %26659 = vrcp.f32 %v3922_v19  ;;  %25635 = vmatprep.subr.mxu0 %v33087_v44  ;;  %v33180_v19 = vld [vmem:[#allocation88_spill] sm:$0xff] }
 0x4b3   :  { %v8553_v56 = vpop.permute.xlu0 %8552 }
 0x4b4   :  { %11106 = vrot.lane.b32.xlu1 %v33132_v5, %s27179_s18  ;;  %25628 = vmatmul.mubr.msk.f32.vlgmr.msra.gmra.mxu0 %vm1134_vm3, %v8553_v56  ;;  %v3928_v2 = vpop.xlane.xlu1 %3927 }
 0x4b5   :  { %12648 = vrot.lane.b32.xlu0 %v27651_v24, %s27181_s20  ;;  %26661 = vrcp.f32 %v3928_v2  ;;  %25637 = vmatprep.mubr.msk.f32.mxu0 %vm27176_vm2, %v33087_v44 }
 0x4b7   :  { %v8711_v3 = vpop.permute.xlu0 %8710 }
 0x4b8   :  { %11182 = vrot.lane.b32.xlu1 %v33158_v30, %s27179_s18  ;;  %25636 = vmatpush3.xpose.msk.msra.mxu0 %vm1134_vm3, %v8711_v3  ;;  %v3934_v7 = vpop.xlane.xlu1 %3933 }
 0x4b9   :  { %12806 = vrot.lane.b32.xlu0 %v27659_v1, %s27180_s19  ;;  %26663 = vrcp.f32 %v3934_v7  ;;  %25645 = vmatprep.subr.mxu0 %v33087_v44 }
 0x4ba   :  { %v26658_v51 = vpop.eup %26657 }
 0x4bb   :  { %v28975_v12 = vpop.f32.mrf.mxu1  ;;  %v8709_v29 = vpop.permute.xlu0 %8708  ;;  %v4002_v39 = vmul.f32 %v26658_v51, %v28604_v45 }
 0x4bc   :  { %33177 = vst [vmem:[#allocation107_spill] sm:$0xff] %v28975_v12  ;;  %11258 = vrot.lane.b32.xlu1 %v33134_v60, %s27179_s18  ;;  %25638 = vmatmul.mubr.msk.f32.vlgmr.msra.gmra.mxu0 %vm1134_vm3, %v8709_v29  ;;  %v3940_v42 = vpop.xlane.xlu1 %3939  ;;  %v33182_v29 = vld [vmem:[#allocation92_spill] sm:$0xff] }
 0x4bd   :  { %26665 = vrcp.f32 %v3940_v42  ;;  %v25334_v59 = vpop.f32.mrf.mxu1  ;;  %25433 = vmatmul.mubr.msk.f32.vlgmr.msra.gmra.mxu1 %vm1134_vm3, %v4002_v39  ;;  %25647 = vmatprep.mubr.msk.f32.mxu0 %vm27176_vm2, %v33087_v44 }
 0x4be   :  { %v26660_v50 = vpop.eup %26659  ;;  %25441 = vmatpush3.msra.mxu1 %v33178_v54  ;;  %25442 = vmatprep.mubr.msk.f32.mxu1 %vm27176_vm2, %v33087_v44 }
 0x4bf   :  { %v8867_v45 = vpop.permute.xlu0 %8866  ;;  %v28987_v13 = vpop.f32.mrf.mxu0  ;;  %25450 = vmatprep.subr.mxu1 %v33087_v44  ;;  %v4004_v18 = vmul.f32 %v26660_v50, %v28613_v47 }
 0x4c0   :  { %33179 = vst [vmem:[#allocation89_spill] sm:$0xff] %v28987_v13  ;;  %11334 = vrot.lane.b32.xlu1 %v33162_v52, %s27179_s18  ;;  %25646 = vmatpush3.xpose.msk.msra.mxu0 %vm1134_vm3, %v8867_v45  ;;  %v3946_v57 = vpop.xlane.xlu1 %3945  ;;  %v33184_v45 = vld [vmem:[#allocation96_spill] sm:$0xff] }
 0x4c1   :  { %26667 = vrcp.f32 %v3946_v57  ;;  %v25339_v38 = vpop.f32.mrf.mxu0  ;;  %25443 = vmatmul.mubr.msk.f32.vlgmr.msra.gmra.mxu1 %vm1134_vm3, %v4004_v18  ;;  %25655 = vmatprep.subr.mxu0 %v33087_v44 }
 0x4c2   :  { %v26662_v14 = vpop.eup %26661  ;;  %25451 = vmatpush3.msra.mxu1 %v33180_v19  ;;  %25452 = vmatprep.mubr.msk.f32.mxu1 %vm27176_vm2, %v33087_v44  ;;  %v33186_v19 = vld [vmem:[#allocation119_spill] sm:$0xff] }
 0x4c3   :  { %v28999_v56 = vpop.f32.mrf.mxu1  ;;  %v8865_v47 = vpop.permute.xlu0 %8864  ;;  %25460 = vmatprep.subr.mxu1 %v33087_v44  ;;  %v4006_v2 = vmul.f32 %v26662_v14, %v28624_v49 }
 0x4c4   :  { %33181 = vst [vmem:[#allocation80_spill] sm:$0xff] %v28999_v56  ;;  %11486 = vrot.lane.b32.xlu1 %v33167_v61, %s27179_s18  ;;  %25648 = vmatmul.mubr.msk.f32.vlgmr.msra.gmra.mxu0 %vm1134_vm3, %v8865_v47  ;;  %v29006_v3 = vpop.permute.xlu1 %7694 }
 0x4c5   :  { %v25344_v7 = vpop.f32.mrf.mxu1  ;;  %25453 = vmatmul.mubr.msk.f32.vlgmr.msra.gmra.mxu1 %vm1134_vm3, %v4006_v2  ;;  %25657 = vmatprep.mubr.msk.f32.mxu0 %vm27176_vm2, %v33087_v44 }
 0x4c6   :  { %v26664_v51 = vpop.eup %26663  ;;  %25461 = vmatpush3.msra.mxu1 %v33182_v29  ;;  %25462 = vmatprep.mubr.msk.f32.mxu1 %vm27176_vm2, %v33087_v44 }
 0x4c7   :  { %v9435_v49 = vpop.permute.xlu0 %9434  ;;  %v29014_v39 = vpop.f32.mrf.mxu0  ;;  %25470 = vmatprep.subr.mxu1 %v33087_v44  ;;  %v4008_v42 = vmul.f32 %v26664_v51, %v28633_v55  ;;  %v33188_v51 = vld [vmem:[#allocation98_spill] sm:$0xff] }
 0x4c8   :  { %33183 = vst [vmem:[#allocation91_spill] sm:$0xff] %v29014_v39  ;;  %11638 = vrot.lane.b32.xlu1 %v33171_v20, %s27179_s18  ;;  %25656 = vmatpush3.msra.mxu0 %v9435_v49  ;;  %v29020_v59 = vpop.permute.xlu1 %7852 }
 0x4c9   :  { %v25349_v50 = vpop.f32.mrf.mxu0  ;;  %25463 = vmatmul.mubr.msk.f32.vlgmr.msra.gmra.mxu1 %vm1134_vm3, %v4008_v42  ;;  %25665 = vmatprep.subr.mxu0 %v33087_v44  ;;  %v33190_v42 = vld [vmem:[#allocation100_spill] sm:$0xff] }
 0x4ca   :  { %v26666_v54 = vpop.eup %26665  ;;  %25471 = vmatpush3.msra.mxu1 %v33184_v45  ;;  %25472 = vmatprep.mubr.msk.f32.mxu1 %vm27176_vm2, %v33087_v44  ;;  %v33191_v50 = vld [vmem:[#allocation102_spill] sm:$0xff] }
 0x4cb   :  { %v29027_v18 = vpop.f32.mrf.mxu1  ;;  %25480 = vmatprep.subr.mxu1 %v33087_v44  ;;  %v4010_v55 = vmul.f32 %v26666_v54, %v28647_v35 }
 0x4cc   :  { %33185 = vst [vmem:[#allocation81_spill] sm:$0xff] %v29027_v18  ;;  %11792 = vrot.lane.b32.xlu1 %v33173_v8, %s27180_s19  ;;  %v29033_v57 = vpop.permute.xlu1 %7850 }
 0x4cd   :  { %v25354_v38 = vpop.f32.mrf.mxu1  ;;  %25473 = vmatmul.mubr.msk.f32.vlgmr.msra.gmra.mxu1 %vm1134_vm3, %v4010_v55 }
 0x4ce   :  { %v26668_v14 = vpop.eup %26667  ;;  %25481 = vmatpush3.msra.mxu1 %v33186_v19  ;;  %25482 = vmatprep.mubr.msk.f32.mxu1 %vm27176_vm2, %v33087_v44  ;;  %v33193_v38 = vld [vmem:[#allocation104_spill] sm:$0xff] }
 0x4cf   :  { %v29039_v47 = vpop.f32.mrf.mxu0  ;;  %25490 = vmatprep.subr.mxu1 %v33087_v44  ;;  %v4012_v35 = vmul.f32 %v26668_v14, %v28660_v15  ;;  %v33194_v14 = vld [vmem:[#allocation106_spill] sm:$0xff] }
 0x4d0   :  { %33187 = vst [vmem:[#allocation93_spill] sm:$0xff] %v29039_v47  ;;  %11790 = vrot.lane.b32.xlu1 %v33173_v8, %s27181_s20  ;;  %v29045_v2 = vpop.permute.xlu1 %8008 }
 0x4d1   :  { %v25359_v7 = vpop.f32.mrf.mxu0  ;;  %25483 = vmatmul.mubr.msk.f32.vlgmr.msra.gmra.mxu1 %vm1134_vm3, %v4012_v35 }
 0x4d2   :  { %25491 = vmatpush3.xpose.msk.msra.mxu1 %vm1134_vm3, %v33188_v51  ;;  %25492 = vmatprep.mubr.msk.f32.mxu1 %vm27176_vm2, %v33087_v44  ;;  %v33196_v51 = vld [vmem:[#allocation109_spill] sm:$0xff] }
 0x4d3   :  { %v29052_v29 = vpop.f32.mrf.mxu1  ;;  %25500 = vmatprep.subr.mxu1 %v33087_v44 }
 0x4d4   :  { %33189 = vst [vmem:[#allocation82_spill] sm:$0xff] %v29052_v29  ;;  %11948 = vrot.lane.b32.xlu1 %v33149_v11, %s27180_s19  ;;  %v29057_v15 = vpop.permute.xlu1 %8006 }
 0x4d5   :  { %v25364_v49 = vpop.f32.mrf.mxu1  ;;  %25493 = vmatmul.mubr.msk.f32.vlgmr.msra.gmra.mxu1 %vm1134_vm3, %v33190_v42 }
 0x4d6   :  { %25501 = vmatpush3.xpose.msk.msra.mxu1 %vm1134_vm3, %v33191_v50  ;;  %25502 = vmatprep.mubr.msk.f32.mxu1 %vm27176_vm2, %v33087_v44  ;;  %v33197_v49 = vld [vmem:[#allocation111_spill] sm:$0xff]  ;;  %v33198_v50 = vld [vmem:[#allocation113_spill] sm:$0xff] }
 0x4d7   :  { %v29065_v54 = vpop.f32.mrf.mxu0  ;;  %25510 = vmatprep.subr.mxu1 %v33087_v44 }
 0x4d8   :  { %33192 = vst [vmem:[#allocation95_spill] sm:$0xff] %v29065_v54  ;;  %11946 = vrot.lane.b32.xlu1 %v33149_v11, %s27181_s20  ;;  %v29070_v45 = vpop.permute.xlu1 %8164 }
 0x4d9   :  { %v25369_v55 = vpop.f32.mrf.mxu0  ;;  %25503 = vmatmul.mubr.msk.f32.vlgmr.msra.gmra.mxu1 %vm1134_vm3, %v33193_v38 }
 0x4da   :  { %25511 = vmatpush3.xpose.msk.msra.mxu1 %vm1134_vm3, %v33194_v14  ;;  %25512 = vmatprep.mubr.msk.f32.mxu1 %vm27176_vm2, %v33087_v44  ;;  %v33199_v55 = vld [vmem:[#allocation115_spill] sm:$0xff]  ;;  %v33201_v14 = vld [vmem:[#allocation117_spill] sm:$0xff] }
 0x4db   :  { %v29078_v19 = vpop.f32.mrf.mxu1  ;;  %25520 = vmatprep.subr.mxu1 %v33087_v44 }
 0x4dc   :  { %33195 = vst [vmem:[#allocation84_spill] sm:$0xff] %v29078_v19  ;;  %12104 = vrot.lane.b32.xlu1 %v33151_v43, %s27180_s19  ;;  %v29083_v35 = vpop.permute.xlu1 %8162 }
 0x4dd   :  { %v25374_v7 = vpop.f32.mrf.mxu1  ;;  %25513 = vmatmul.mubr.msk.f32.vlgmr.msra.gmra.mxu1 %vm1134_vm3, %v33196_v51 }
 0x4de   :  { %25521 = vmatpush3.xpose.msk.msra.mxu1 %vm1134_vm3, %v33197_v49  ;;  %25522 = vmatprep.mubr.msk.f32.mxu1 %vm27176_vm2, %v33087_v44 }
 0x4df   :  { %25530 = vmatprep.subr.mxu1 %v33087_v44 }
 0x4e0   :  { %12102 = vrot.lane.b32.xlu1 %v33151_v43, %s27181_s20  ;;  %v8321_v42 = vpop.permute.xlu1 %8320 }
 0x4e1   :  { %25523 = vmatmul.mubr.msk.f32.vlgmr.msra.gmra.mxu1 %vm1134_vm3, %v33198_v50 }
 0x4e2   :  { %25531 = vmatpush3.xpose.msk.msra.mxu1 %vm1134_vm3, %v33199_v55  ;;  %25532 = vmatprep.mubr.msk.f32.mxu1 %vm27176_vm2, %v33087_v44 }
 0x4e3   :  { %25540 = vmatprep.subr.mxu1 %v33087_v44 }
 0x4e4   :  { %v29101_v38 = vpop.f32.mrf.mxu0  ;;  %12260 = vrot.lane.b32.xlu1 %v33175_v32, %s27180_s19  ;;  %v8319_v51 = vpop.permute.xlu1 %8318 }
 0x4e5   :  { %33200 = vst [vmem:[#allocation67_spill] sm:$0xff] %v29101_v38  ;;  %25533 = vmatmul.mubr.msk.f32.vlgmr.msra.gmra.mxu1 %vm1134_vm3, %v33201_v14 }
 0x4e6   :  { %v25379_v7 = vpop.f32.mrf.mxu0  ;;  %25541 = vmatpush3.xpose.msk.msra.mxu1 %vm1134_vm3, %v28761_v63  ;;  %25542 = vmatprep.mubr.msk.f32.mxu1 %vm27176_vm2, %v33087_v44 }
 0x4e7   :  { %25550 = vmatprep.subr.mxu1 %v33087_v44 }
 0x4e8   :  { %12258 = vrot.lane.b32.xlu1 %v33175_v32, %s27181_s20  ;;  %v8477_v63 = vpop.permute.xlu1 %8476 }
 0x4e9   :  { %25543 = vmatmul.mubr.msk.f32.vlgmr.msra.gmra.mxu1 %vm1134_vm3, %v28884_v10 }
 0x4ea   :  { %25551 = vmatpush3.xpose.msk.msra.mxu1 %vm1134_vm3, %v28894_v26  ;;  %25552 = vmatprep.mubr.msk.f32.mxu1 %vm27176_vm2, %v33087_v44 }
 0x4eb   :  { %v29120_v49 = vpop.f32.mrf.mxu1  ;;  %25560 = vmatprep.subr.mxu1 %v33087_v44 }
 0x4ec   :  { %33202 = vst [vmem:[#allocation86_spill] sm:$0xff] %v29120_v49  ;;  %12416 = vrot.lane.b32.xlu1 %v33176_v31, %s27180_s19 }
 0x4ed   :  { %v25384_v50 = vpop.f32.mrf.mxu1  ;;  %25553 = vmatmul.mubr.msk.f32.vlgmr.msra.gmra.mxu1 %vm1134_vm3, %v28909_v0  ;;  %v8475_v0 = vpop.permute.xlu1 %8474 }
 0x4ee   :  { %25561 = vmatpush3.xpose.msk.msra.mxu1 %vm1134_vm3, %v28917_v25  ;;  %25562 = vmatprep.mubr.msk.f32.mxu1 %vm27176_vm2, %v33087_v44 }
 0x4ef   :  { %25570 = vmatprep.subr.mxu1 %v33087_v44  ;;  %v29132_v10 = vpop.f32.mrf.mxu0 }
 0x4f0   :  { %33203 = vst [vmem:[#allocation87_spill] sm:$0xff] %v29132_v10  ;;  %12414 = vrot.lane.b32.xlu1 %v33176_v31, %s27181_s20 }
 0x4f1   :  { %25563 = vmatmul.mubr.msk.f32.vlgmr.msra.gmra.mxu1 %vm1134_vm3, %v28932_v4  ;;  %v25389_v26 = vpop.f32.mrf.mxu0  ;;  %v8633_v4 = vpop.permute.xlu1 %8632 }
 0x4f2   :  { %25571 = vmatpush3.xpose.msk.msra.mxu1 %vm1134_vm3, %v28941_v22  ;;  %25572 = vmatprep.mubr.msk.f32.mxu1 %vm27176_vm2, %v33087_v44 }
 0x4f3   :  { %25580 = vmatprep.subr.mxu1 %v33087_v44 }
 0x4f4   :  { %12572 = vrot.lane.b32.xlu1 %v27655_v27, %s27180_s19 }
 0x4f5   :  { %25573 = vmatmul.mubr.msk.f32.vlgmr.msra.gmra.mxu1 %vm1134_vm3, %v29006_v3 }
 0x4f6   :  { %25581 = vmatpush3.xpose.msk.msra.mxu1 %vm1134_vm3, %v29020_v59  ;;  %25582 = vmatprep.mubr.msk.f32.mxu1 %vm27176_vm2, %v33087_v44 }
 0x4f7   :  { %v29151_v25 = vpop.f32.mrf.mxu1  ;;  %25590 = vmatprep.subr.mxu1 %v33087_v44 }
 0x4f8   :  { %33204 = vst [vmem:[#allocation90_spill] sm:$0xff] %v29151_v25  ;;  %12570 = vrot.lane.b32.xlu1 %v27655_v27, %s27181_s20 }
 0x4f9   :  { %v25394_v22 = vpop.f32.mrf.mxu1  ;;  %25583 = vmatmul.mubr.msk.f32.vlgmr.msra.gmra.mxu1 %vm1134_vm3, %v29033_v57  ;;  %v8631_v57 = vpop.permute.xlu1 %8630 }
 0x4fa   :  { %25591 = vmatpush3.xpose.msk.msra.mxu1 %vm1134_vm3, %v29045_v2  ;;  %25592 = vmatprep.mubr.msk.f32.mxu1 %vm27176_vm2, %v33087_v44 }
 0x4fb   :  { %25600 = vmatprep.subr.mxu1 %v33087_v44  ;;  %v29163_v3 = vpop.f32.mrf.mxu0 }
 0x4fc   :  { %33205 = vst [vmem:[#allocation94_spill] sm:$0xff] %v29163_v3  ;;  %12728 = vrot.lane.b32.xlu1 %v27663_v28, %s27180_s19 }
 0x4fd   :  { %25593 = vmatmul.mubr.msk.f32.vlgmr.msra.gmra.mxu1 %vm1134_vm3, %v29057_v15  ;;  %v25399_v59 = vpop.f32.mrf.mxu0  ;;  %v8789_v15 = vpop.permute.xlu1 %8788 }
 0x4fe   :  { %25601 = vmatpush3.xpose.msk.msra.mxu1 %vm1134_vm3, %v29070_v45  ;;  %25602 = vmatprep.mubr.msk.f32.mxu1 %vm27176_vm2, %v33087_v44 }
 0x4ff   :  { %25610 = vmatprep.subr.mxu1 %v33087_v44  ;;  %v29174_v2 = vpop.f32.mrf.mxu1 }
 0x500   :  { %33206 = vst [vmem:[#allocation99_spill] sm:$0xff] %v29174_v2 }
 0x501   :  { %25603 = vmatmul.mubr.msk.f32.vlgmr.msra.gmra.mxu1 %vm1134_vm3, %v29083_v35  ;;  %v25404_v55 = vpop.f32.mrf.mxu1 }
 0x502   :  { %25611 = vmatpush3.xpose.msk.msra.mxu1 %vm1134_vm3, %v8321_v42  ;;  %25612 = vmatprep.mubr.msk.f32.mxu1 %vm27176_vm2, %v33087_v44  ;;  %v8787_v42 = vpop.permute.xlu1 %8786 }
 0x503   :  { %25620 = vmatprep.subr.mxu1 %v33087_v44 }
 0x505   :  { %25613 = vmatmul.mubr.msk.f32.vlgmr.msra.gmra.mxu1 %vm1134_vm3, %v8319_v51 }
 0x506   :  { %25621 = vmatpush3.xpose.msk.msra.mxu1 %vm1134_vm3, %v8477_v63  ;;  %25622 = vmatprep.mubr.msk.f32.mxu1 %vm27176_vm2, %v33087_v44  ;;  %v9359_v63 = vpop.permute.xlu1 %9358 }
 0x507   :  { %v29186_v45 = vpop.f32.mrf.mxu0  ;;  %25630 = vmatprep.subr.mxu1 %v33087_v44 }
 0x508   :  { %33207 = vst [vmem:[#allocation101_spill] sm:$0xff] %v29186_v45 }
 0x509   :  { %v25409_v35 = vpop.f32.mrf.mxu0  ;;  %25623 = vmatmul.mubr.msk.f32.vlgmr.msra.gmra.mxu1 %vm1134_vm3, %v8475_v0 }
 0x50a   :  { %25631 = vmatpush3.xpose.msk.msra.mxu1 %vm1134_vm3, %v8633_v4  ;;  %25632 = vmatprep.mubr.msk.f32.mxu1 %vm27176_vm2, %v33087_v44 }
 0x50b   :  { %v29193_v14 = vpop.f32.mrf.mxu0  ;;  %25640 = vmatprep.subr.mxu1 %v33087_v44 }
 0x50c   :  { %33208 = vst [vmem:[#allocation103_spill] sm:$0xff] %v29193_v14 }
 0x50d   :  { %v25419_v7 = vpop.f32.mrf.mxu0  ;;  %25633 = vmatmul.mubr.msk.f32.vlgmr.msra.gmra.mxu1 %vm1134_vm3, %v8631_v57 }
 0x50e   :  { %25641 = vmatpush3.xpose.msk.msra.mxu1 %vm1134_vm3, %v8789_v15  ;;  %25642 = vmatprep.mubr.msk.f32.mxu1 %vm27176_vm2, %v33087_v44 }
 0x50f   :  { %v29200_v51 = vpop.f32.mrf.mxu0  ;;  %25650 = vmatprep.subr.mxu1 %v33087_v44 }
 0x510   :  { %33209 = vst [vmem:[#allocation105_spill] sm:$0xff] %v29200_v51 }
 0x511   :  { %v25429_v50 = vpop.f32.mrf.mxu0  ;;  %25643 = vmatmul.mubr.msk.f32.vlgmr.msra.gmra.mxu1 %vm1134_vm3, %v8787_v42 }
 0x512   :  { %25651 = vmatpush3.msra.mxu1 %v9359_v63  ;;  %25652 = vmatprep.mubr.msk.f32.mxu1 %vm27176_vm2, %v33087_v44  ;;  %v29219_v63 = vpop.permute.xlu0 %9510 }
 0x513   :  { %v29206_v26 = vpop.f32.mrf.mxu0  ;;  %25660 = vmatprep.subr.mxu1 %v33087_v44 }
 0x514   :  { %33210 = vst [vmem:[#allocation108_spill] sm:$0xff] %v29206_v26 }
 0x515   :  { %v25439_v0 = vpop.f32.mrf.mxu0 }
 0x516   :  { %v29221_v10 = vpop.permute.xlu0 %9662 }
 0x517   :  { %v29209_v4 = vpop.f32.mrf.mxu0 }
 0x518   :  { %33211 = vst [vmem:[#allocation110_spill] sm:$0xff] %v29209_v4 }
 0x519   :  { %v25449_v22 = vpop.f32.mrf.mxu0 }
 0x51b   :  { %v29211_v59 = vpop.f32.mrf.mxu0 }
 0x51c   :  { %33212 = vst [vmem:[#allocation112_spill] sm:$0xff] %v29211_v59 }
 0x51d   :  { %v25459_v57 = vpop.f32.mrf.mxu0 }
 0x51f   :  { %v29213_v55 = vpop.f32.mrf.mxu0 }
 0x520   :  { %33213 = vst [vmem:[#allocation114_spill] sm:$0xff] %v29213_v55 }
 0x521   :  { %v25469_v15 = vpop.f32.mrf.mxu0 }
 0x523   :  { %v29215_v35 = vpop.f32.mrf.mxu0 }
 0x524   :  { %33214 = vst [vmem:[#allocation116_spill] sm:$0xff] %v29215_v35  ;;  %v29233_v35 = vpop.permute.xlu0 %9738 }
 0x525   :  { %v25479_v42 = vpop.f32.mrf.mxu0 }
 0x527   :  { %v29217_v7 = vpop.f32.mrf.mxu0 }
 0x528   :  { %33215 = vst [vmem:[#allocation83_spill] sm:$0xff] %v29217_v7 }
 0x529   :  { %v25489_v50 = vpop.f32.mrf.mxu0 }
 0x52b   :  { %v6598_v3 = vpop.f32.mrf.mxu0 }
 0x52c   :  { %v8943_v25 = vmul.f32 0.35355338, %v6598_v3 }
 0x52d   :  { %v25499_v0 = vpop.f32.mrf.mxu0 }
 0x52e   :  { %v29225_v59 = vsel %vm27238_vm0, %v8943_v25, -4.2949673e+09  ;;  %v29239_v25 = vpop.permute.xlu0 %9890 }
 0x52f   :  { %v29227_v57 = vpop.f32.mrf.mxu0  ;;  %v9009_v15 = vsel %vm1134_vm3, %v29225_v59, -inf  ;;  %33218 = vst [vmem:[#allocation120_spill] sm:$0xff] %v29239_v25 }
 0x530   :  { %9010 = vmax.xlane.f32.xlu0 %v9009_v15 }
 0x531   :  { %v25509_v42 = vpop.f32.mrf.mxu0 }
 0x532   :  { %v29247_v19 = vpop.permute.xlu0 %10042 }
 0x533   :  { %v29231_v7 = vpop.f32.mrf.mxu0  ;;  %33220 = vst [vmem:[#allocation97_spill] sm:$0xff] %v29247_v19 }
 0x535   :  { %v29235_v50 = vpop.f32.mrf.mxu1  ;;  %v25519_v3 = vpop.f32.mrf.mxu0 }
 0x536   :  { %33217 = vst [vmem:[#allocation118_spill] sm:$0xff] %v29235_v50 }
 0x537   :  { %v25414_v0 = vpop.f32.mrf.mxu1  ;;  %v29237_v55 = vpop.f32.mrf.mxu0 }
 0x538   :  { %v29251_v0 = vpop.permute.xlu0 %10194 }
 0x539   :  { %v25529_v4 = vpop.f32.mrf.mxu0  ;;  %33221 = vst [vmem:[#allocation88_spill] sm:$0xff] %v29251_v0 }
 0x53b   :  { %v29241_v26 = vpop.f32.mrf.mxu0 }
 0x53c   :  { %v29255_v14 = vpop.permute.xlu0 %10346 }
 0x53d   :  { %v29243_v49 = vpop.f32.mrf.mxu1  ;;  %v25539_v38 = vpop.f32.mrf.mxu0  ;;  %33222 = vst [vmem:[#allocation92_spill] sm:$0xff] %v29255_v14 }
 0x53e   :  { %33219 = vst [vmem:[#allocation85_spill] sm:$0xff] %v29243_v49 }
 0x53f   :  { %v25424_v15 = vpop.f32.mrf.mxu1  ;;  %v29245_v42 = vpop.f32.mrf.mxu0 }
 0x540   :  { %v29259_v38 = vpop.permute.xlu0 %10498 }
 0x541   :  { %v25549_v51 = vpop.f32.mrf.mxu0  ;;  %33223 = vst [vmem:[#allocation96_spill] sm:$0xff] %v29259_v38 }
 0x543   :  { %v29249_v54 = vpop.f32.mrf.mxu0 }
 0x544   :  { %v29263_v50 = vpop.permute.xlu0 %10650 }
 0x545   :  { %v25559_v3 = vpop.f32.mrf.mxu0  ;;  %33224 = vst [vmem:[#allocation119_spill] sm:$0xff] %v29263_v50 }
 0x547   :  { %v29253_v29 = vpop.f32.mrf.mxu0 }
 0x548   :  { %v29267_v3 = vpop.permute.xlu0 %10878 }
 0x549   :  { %v25569_v4 = vpop.f32.mrf.mxu0  ;;  %33225 = vst [vmem:[#allocation98_spill] sm:$0xff] %v29267_v3 }
 0x54c   :  { %v29257_v47 = vpop.f32.mrf.mxu0  ;;  %v29269_v2 = vpop.permute.xlu0 %11410 }
 0x54d   :  { %33226 = vst [vmem:[#allocation100_spill] sm:$0xff] %v29269_v2 }
 0x54e   :  { %v25579_v49 = vpop.f32.mrf.mxu0 }
 0x550   :  { %v29273_v39 = vpop.permute.xlu0 %11562 }
 0x551   :  { %33227 = vst [vmem:[#allocation102_spill] sm:$0xff] %v29273_v39 }
 0x554   :  { %v29261_v15 = vpop.f32.mrf.mxu0  ;;  %v29277_v12 = vpop.permute.xlu0 %11714 }
 0x555   :  { %33228 = vst [vmem:[#allocation104_spill] sm:$0xff] %v29277_v12 }
 0x556   :  { %v25589_v18 = vpop.f32.mrf.mxu0 }
 0x557   :  { %v29279_v18 = vpop.permute.xlu1 %9586 }
 0x558   :  { %v29283_v50 = vpop.permute.xlu0 %11870 }
 0x559   :  { %33229 = vst [vmem:[#allocation106_spill] sm:$0xff] %v29283_v50 }
 0x55c   :  { %v29265_v51 = vpop.f32.mrf.mxu0  ;;  %v29287_v2 = vpop.permute.xlu0 %11868 }
 0x55d   :  { %33231 = vst [vmem:[#allocation111_spill] sm:$0xff] %v29287_v2 }
 0x55e   :  { %v25599_v45 = vpop.f32.mrf.mxu0 }
 0x55f   :  { %v29285_v45 = vpop.permute.xlu1 %9814 }
 0x560   :  { %33230 = vst [vmem:[#allocation109_spill] sm:$0xff] %v29285_v45  ;;  %v29297_v9 = vpop.permute.xlu0 %12026 }
 0x561   :  { %33235 = vst [vmem:[#allocation121_spill] sm:$0xff] %v29297_v9 }
 0x564   :  { %v29271_v4 = vpop.f32.mrf.mxu0  ;;  %v29305_v45 = vpop.permute.xlu0 %12024 }
 0x565   :  { %33238 = vst [vmem:[#allocation124_spill] sm:$0xff] %v29305_v45 }
 0x566   :  { %v25609_v56 = vpop.f32.mrf.mxu0 }
 0x567   :  { %v29291_v56 = vpop.permute.xlu1 %9966 }
 0x568   :  { %33232 = vst [vmem:[#allocation113_spill] sm:$0xff] %v29291_v56 }
 0x56b   :  { %v29299_v43 = vpop.permute.xlu1 %10118 }
 0x56c   :  { %v29275_v49 = vpop.f32.mrf.mxu0  ;;  %33236 = vst [vmem:[#allocation122_spill] sm:$0xff] %v29299_v43 }
 0x56e   :  { %v25619_v13 = vpop.f32.mrf.mxu0 }
 0x56f   :  { %v29307_v56 = vpop.permute.xlu1 %10270 }
 0x570   :  { %33239 = vst [vmem:[#allocation125_spill] sm:$0xff] %v29307_v56 }
 0x573   :  { %v29315_v9 = vpop.permute.xlu1 %10422 }
 0x574   :  { %v29281_v24 = vpop.f32.mrf.mxu0  ;;  %33243 = vst [vmem:[#allocation129_spill] sm:$0xff] %v29315_v9 }
 0x576   :  { %v25629_v3 = vpop.f32.mrf.mxu0 }
 0x57c   :  { %v29289_v21 = vpop.f32.mrf.mxu0 }
 0x57d   :  { %v29293_v39 = vpop.f32.mrf.mxu1 }
 0x57e   :  { %33233 = vst [vmem:[#allocation115_spill] sm:$0xff] %v29293_v39  ;;  %v25639_v13 = vpop.f32.mrf.mxu0 }
 0x57f   :  { %v25434_v46 = vpop.f32.mrf.mxu1 }
 0x581   :  { %v29295_v12 = vpop.f32.mrf.mxu1 }
 0x582   :  { %33234 = vst [vmem:[#allocation117_spill] sm:$0xff] %v29295_v12  ;;  %v29313_v12 = vpop.permute.xlu0 %12182 }
 0x583   :  { %v25444_v50 = vpop.f32.mrf.mxu1  ;;  %33242 = vst [vmem:[#allocation128_spill] sm:$0xff] %v29313_v12 }
 0x584   :  { %v29301_v3 = vpop.f32.mrf.mxu0 }
 0x585   :  { %v29303_v11 = vpop.f32.mrf.mxu1 }
 0x586   :  { %33237 = vst [vmem:[#allocation123_spill] sm:$0xff] %v29303_v11  ;;  %v25649_v2 = vpop.f32.mrf.mxu0  ;;  %v29319_v11 = vpop.permute.xlu0 %12180 }
 0x587   :  { %v25454_v27 = vpop.f32.mrf.mxu1  ;;  %33245 = vst [vmem:[#allocation131_spill] sm:$0xff] %v29319_v11 }
 0x588   :  { %v29321_v27 = vpop.permute.xlu1 %10574 }
 0x589   :  { %v29309_v39 = vpop.f32.mrf.mxu1  ;;  %33246 = vst [vmem:[#allocation132_spill] sm:$0xff] %v29321_v27 }
 0x58a   :  { %33240 = vst [vmem:[#allocation126_spill] sm:$0xff] %v29309_v39  ;;  %v29329_v12 = vpop.permute.xlu0 %12338 }
 0x58b   :  { %v25464_v46 = vpop.f32.mrf.mxu1  ;;  %33247 = vst [vmem:[#allocation133_spill] sm:$0xff] %v29329_v12 }
 0x58d   :  { %v29311_v13 = vpop.f32.mrf.mxu1 }
 0x58e   :  { %33241 = vst [vmem:[#allocation127_spill] sm:$0xff] %v29311_v13 }
 0x58f   :  { %v25474_v50 = vpop.f32.mrf.mxu1 }
 0x590   :  { %v8945_v50 = vmul.f32 0.35355338, %v29227_v57  ;;  %v8947_v57 = vmul.f32 0.35355338, %v29231_v7 }
 0x591   :  { %v29317_v43 = vpop.f32.mrf.mxu1 }
 0x592   :  { %33244 = vst [vmem:[#allocation130_spill] sm:$0xff] %v29317_v43  ;;  %v29332_v43 = vpop.permute.xlu1 %10726  ;;  %v29344_v27 = vsel %vm27238_vm0, %v8945_v50, -4.2949673e+09  ;;  %v8949_v50 = vmul.f32 0.35355338, %v29237_v55 }
 0x593   :  { %v25484_v23 = vpop.f32.mrf.mxu1  ;;  %33248 = vst [vmem:[#allocation134_spill] sm:$0xff] %v29332_v43  ;;  %v29357_v43 = vsel %vm27238_vm0, %v8947_v57, -4.2949673e+09 }
 0x595   :  { %v6520_v2 = vpop.f32.mrf.mxu1 }
 0x596   :  { %v8942_v45 = vmul.f32 0.35355338, %v6520_v2 }
 0x597   :  { %v25494_v56 = vpop.f32.mrf.mxu1 }
 0x598   :  { %v29325_v46 = vsel %vm27238_vm0, %v8942_v45, -4.2949673e+09 }
 0x599   :  { %v6676_v13 = vpop.f32.mrf.mxu1  ;;  %v9006_v39 = vsel %vm1134_vm3, %v29325_v46, -inf }
 0x59a   :  { %v8944_v23 = vmul.f32 0.35355338, %v6676_v13  ;;  %9007 = vmax.xlane.f32.xlu1 %v9006_v39  ;;  %v29347_v13 = vpop.permute.xlu0 %12336 }
 0x59b   :  { %v25504_v11 = vpop.f32.mrf.mxu1  ;;  %33249 = vst [vmem:[#allocation135_spill] sm:$0xff] %v29347_v13  ;;  %v29368_v13 = vsel %vm27238_vm0, %v8949_v50, -4.2949673e+09 }
 0x59c   :  { %v29336_v56 = vsel %vm27238_vm0, %v8944_v23, -4.2949673e+09  ;;  %v29349_v11 = vpop.permute.xlu1 %10802  ;;  %v9015_v23 = vsel %vm1134_vm3, %v29344_v27, -inf }
 0x59d   :  { %v29338_v2 = vpop.f32.mrf.mxu1  ;;  %v9012_v45 = vsel %vm1134_vm3, %v29336_v56, -inf  ;;  %33250 = vst [vmem:[#allocation136_spill] sm:$0xff] %v29349_v11  ;;  %v8951_v11 = vmul.f32 0.35355338, %v29241_v26 }
 0x59e   :  { %9013 = vmax.xlane.f32.xlu0 %v9012_v45  ;;  %v9021_v45 = vsel %vm1134_vm3, %v29357_v43, -inf }
 0x59f   :  { %v25514_v39 = vpop.f32.mrf.mxu1 }
 0x5a0   :  { %v29364_v39 = vpop.permute.xlu0 %12494  ;;  %v29371_v57 = vpop.permute.xlu1 %10954 }
 0x5a1   :  { %v29351_v12 = vpop.f32.mrf.mxu1  ;;  %33251 = vst [vmem:[#allocation137_spill] sm:$0xff] %v29364_v39  ;;  %33252 = vst [vmem:[#allocation138_spill] sm:$0xff] %v29371_v57  ;;  %v8953_v39 = vmul.f32 0.35355338, %v29245_v42  ;;  %v8955_v42 = vmul.f32 0.35355338, %v29249_v54 }
 0x5a2   :  { %9016 = vmax.xlane.f32.xlu0 %v9015_v23  ;;  %v29379_v23 = vsel %vm27238_vm0, %v8951_v11, -4.2949673e+09 }
 0x5a3   :  { %v25524_v9 = vpop.f32.mrf.mxu1  ;;  %v9033_v57 = vsel %vm1134_vm3, %v29379_v23, -inf  ;;  %v29394_v11 = vsel %vm27238_vm0, %v8953_v39, -4.2949673e+09 }
 0x5a4   :  { %v9027_v9 = vsel %vm1134_vm3, %v29368_v13, -inf  ;;  %v29384_v50 = vpop.permute.xlu0 %12492 }
 0x5a5   :  { %v29360_v7 = vpop.f32.mrf.mxu1  ;;  %33253 = vst [vmem:[#allocation139_spill] sm:$0xff] %v29384_v50 }
 0x5a6   :  { %9022 = vmax.xlane.f32.xlu0 %v9021_v45  ;;  %v29386_v45 = vpop.permute.xlu1 %11030 }
 0x5a7   :  { %v25534_v31 = vpop.f32.mrf.mxu1  ;;  %33254 = vst [vmem:[#allocation140_spill] sm:$0xff] %v29386_v45  ;;  %v29405_v45 = vsel %vm27238_vm0, %v8955_v42, -4.2949673e+09 }
 0x5a8   :  { %v29401_v50 = vpop.permute.xlu0 %12650 }
 0x5a9   :  { %v29373_v55 = vpop.f32.mrf.mxu1  ;;  %33255 = vst [vmem:[#allocation141_spill] sm:$0xff] %v29401_v50  ;;  %v8959_v50 = vmul.f32 0.35355338, %v29257_v47 }
 0x5aa   :  { %9028 = vmax.xlane.f32.xlu0 %v9027_v9  ;;  %v29408_v39 = vpop.permute.xlu1 %11106 }
 0x5ab   :  { %12726 = vrot.lane.b32.xlu1 %v27663_v28, %s27181_s20  ;;  %v25544_v26 = vpop.f32.mrf.mxu1  ;;  %v8957_v28 = vmul.f32 0.35355338, %v29253_v29  ;;  %33256 = vst [vmem:[#allocation142_spill] sm:$0xff] %v29408_v39  ;;  %v29429_v39 = vsel %vm27238_vm0, %v8959_v50, -4.2949673e+09 }
 0x5ac   :  { %v9039_v26 = vsel %vm1134_vm3, %v29394_v11, -inf  ;;  %v29419_v17 = vpop.permute.xlu0 %12648 }
 0x5ad   :  { %v29388_v31 = vpop.f32.mrf.mxu1  ;;  %33257 = vst [vmem:[#allocation143_spill] sm:$0xff] %v29419_v17 }
 0x5ae   :  { %9034 = vmax.xlane.f32.xlu0 %v9033_v57  ;;  %v9045_v57 = vsel %vm1134_vm3, %v29405_v45, -inf  ;;  %v29421_v29 = vpop.permute.xlu1 %11182 }
 0x5af   :  { %v25554_v9 = vpop.f32.mrf.mxu1  ;;  %33258 = vst [vmem:[#allocation144_spill] sm:$0xff] %v29421_v29  ;;  %v8963_v29 = vmul.f32 0.35355338, %v29265_v51 }
 0x5b0   :  { %v29416_v9 = vsel %vm27238_vm0, %v8957_v28, -4.2949673e+09  ;;  %v8961_v28 = vmul.f32 0.35355338, %v29261_v15 }
 0x5b1   :  { %v29397_v32 = vpop.f32.mrf.mxu1 }
 0x5b2   :  { %9040 = vmax.xlane.f32.xlu0 %v9039_v26  ;;  %v29440_v17 = vsel %vm27238_vm0, %v8961_v28, -4.2949673e+09  ;;  %v29443_v50 = vpop.permute.xlu1 %11258 }
 0x5b3   :  { %v25564_v53 = vpop.f32.mrf.mxu1  ;;  %33260 = vst [vmem:[#allocation146_spill] sm:$0xff] %v29443_v50 }
 0x5b4   :  { %v9051_v53 = vsel %vm1134_vm3, %v29416_v9, -inf }
 0x5b5   :  { %v29410_v54 = vpop.f32.mrf.mxu1 }
 0x5b6   :  { %9046 = vmax.xlane.f32.xlu0 %v9045_v57  ;;  %v9057_v57 = vsel %vm1134_vm3, %v29429_v39, -inf  ;;  %v29454_v48 = vpop.permute.xlu1 %11334  ;;  %v8958_v14 = vmul.f32 0.35355338, %v29410_v54 }
 0x5b7   :  { %v25574_v42 = vpop.f32.mrf.mxu1  ;;  %33261 = vst [vmem:[#allocation147_spill] sm:$0xff] %v29454_v48  ;;  %v8969_v48 = vmul.f32 0.35355338, %v29281_v24  ;;  %v8971_v24 = vmul.f32 0.35355338, %v29289_v21 }
 0x5b8   :  { %v29436_v42 = vpop.permute.xlu0 %12806 }
 0x5b9   :  { %v29423_v26 = vpop.f32.mrf.mxu1  ;;  %33259 = vst [vmem:[#allocation145_spill] sm:$0xff] %v29436_v42  ;;  %v8965_v42 = vmul.f32 0.35355338, %v29271_v4  ;;  %v8946_v4 = vmul.f32 0.35355338, %v29338_v2  ;;  %v29507_v21 = vsel %vm27238_vm0, %v8971_v24, -4.2949673e+09 }
 0x5ba   :  { %9052 = vmax.xlane.f32.xlu0 %v9051_v53  ;;  %v29451_v53 = vsel %vm27238_vm0, %v8963_v29, -4.2949673e+09  ;;  %v8967_v29 = vmul.f32 0.35355338, %v29275_v49  ;;  %v8948_v2 = vmul.f32 0.35355338, %v29351_v12 }
 0x5bb   :  { %v25584_v8 = vpop.f32.mrf.mxu1  ;;  %v29463_v50 = vsel %vm27238_vm0, %v8965_v42, -4.2949673e+09  ;;  %v29476_v42 = vpop.permute.xlu1 %11486  ;;  %v29480_v49 = vsel %vm27238_vm0, %v8946_v4, -4.2949673e+09 }
 0x5bc   :  { %v9063_v8 = vsel %vm1134_vm3, %v29440_v17, -inf  ;;  %v9011_v20 = vpop.xlane.xlu0 %9010  ;;  %33262 = vst [vmem:[#allocation148_spill] sm:$0xff] %v29476_v42  ;;  %v9018_v4 = vsel %vm1134_vm3, %v29480_v49, -inf  ;;  %v29496_v12 = vsel %vm27238_vm0, %v8948_v2, -4.2949673e+09 }
 0x5bd   :  { %v29432_v47 = vpop.f32.mrf.mxu1  ;;  %v9103_v51 = vsub.f32 %v29225_v59, %v9011_v20  ;;  %v9075_v20 = vsel %vm1134_vm3, %v29463_v50, -inf  ;;  %v29473_v59 = vsel %vm27238_vm0, %v8967_v29, -4.2949673e+09  ;;  %v29489_v29 = vsel %vm27238_vm0, %v8969_v48, -4.2949673e+09 }
 0x5be   :  { %9058 = vmax.xlane.f32.xlu0 %v9057_v57  ;;  %v9087_v48 = vsel %vm1134_vm3, %v29489_v29, -inf  ;;  %v9024_v2 = vsel %vm1134_vm3, %v29496_v12, -inf  ;;  %v8962_v54 = vmul.f32 0.35355338, %v29432_v47 }
 0x5bf   :  { %v25594_v34 = vpop.f32.mrf.mxu1 }
 0x5c0   :  { %v9069_v34 = vsel %vm1134_vm3, %v29451_v53, -inf }
 0x5c1   :  { %v29445_v15 = vpop.f32.mrf.mxu1 }
 0x5c2   :  { %9064 = vmax.xlane.f32.xlu0 %v9063_v8 }
 0x5c3   :  { %v25604_v28 = vpop.f32.mrf.mxu1 }
 0x5c4   :  { %v9136_v28 = vmul.f32 1.442695, %v9103_v51 }
 0x5c5   :  { %v29457_v57 = vpop.f32.mrf.mxu1 }
 0x5c6   :  { %9070 = vmax.xlane.f32.xlu0 %v9069_v34  ;;  %26669 = vpow2.f32 %v9136_v28  ;;  %v8950_v28 = vmul.f32 0.35355338, %v29360_v7 }
 0x5c7   :  { %v25614_v8 = vpop.f32.mrf.mxu1 }
 0x5c8   :  { %v9081_v8 = vsel %vm1134_vm3, %v29473_v59, -inf  ;;  %v29514_v7 = vsel %vm27238_vm0, %v8950_v28, -4.2949673e+09 }
 0x5c9   :  { %v29467_v38 = vpop.f32.mrf.mxu1 }
 0x5ca   :  { %9076 = vmax.xlane.f32.xlu0 %v9075_v20 }
 0x5cb   :  { %v25624_v51 = vpop.f32.mrf.mxu1 }
 0x5cc   :  { %v29499_v51 = vpop.permute.xlu1 %11638 }
 0x5cd   :  { %v29483_v34 = vpop.f32.mrf.mxu1  ;;  %33263 = vst [vmem:[#allocation149_spill] sm:$0xff] %v29499_v51  ;;  %v9093_v51 = vsel %vm1134_vm3, %v29507_v21, -inf }
 0x5ce   :  { %9082 = vmax.xlane.f32.xlu0 %v9081_v8  ;;  %v8973_v8 = vmul.f32 0.35355338, %v29301_v3  ;;  %v9030_v3 = vsel %vm1134_vm3, %v29514_v7, -inf }
 0x5cf   :  { %9019 = vmax.xlane.f32.xlu1 %v9018_v4  ;;  %v25634_v20 = vpop.f32.mrf.mxu1  ;;  %v8952_v4 = vmul.f32 0.35355338, %v29373_v55  ;;  %v8954_v55 = vmul.f32 0.35355338, %v29388_v31 }
 0x5d0   :  { %v29521_v24 = vsel %vm27238_vm0, %v8973_v8, -4.2949673e+09 }
 0x5d1   :  { %v29501_v42 = vpop.f32.mrf.mxu1  ;;  %v29529_v28 = vsel %vm27238_vm0, %v8952_v4, -4.2949673e+09  ;;  %v29540_v8 = vsel %vm27238_vm0, %v8954_v55, -4.2949673e+09 }
 0x5d2   :  { %9088 = vmax.xlane.f32.xlu0 %v9087_v48  ;;  %v29525_v48 = vpop.permute.xlu1 %11792 }
 0x5d3   :  { %9025 = vmax.xlane.f32.xlu1 %v9024_v2  ;;  %v25644_v20 = vpop.f32.mrf.mxu1  ;;  %33264 = vst [vmem:[#allocation150_spill] sm:$0xff] %v29525_v48  ;;  %v9099_v2 = vsel %vm1134_vm3, %v29521_v24, -inf  ;;  %v8956_v48 = vmul.f32 0.35355338, %v29397_v32 }
 0x5d4   :  { %v29534_v20 = vpop.eup %26669 }
 0x5d5   :  { %v9201_v31 = vsel %vm1134_vm3, %v29534_v20, 0.0 }
 0x5d6   :  { %9094 = vmax.xlane.f32.xlu0 %v9093_v51  ;;  %v9036_v51 = vsel %vm1134_vm3, %v29529_v28, -inf  ;;  %v29543_v4 = vpop.permute.xlu1 %11790 }
 0x5d7   :  { %9031 = vmax.xlane.f32.xlu1 %v9030_v3  ;;  %33265 = vst [vmem:[#allocation151_spill] sm:$0xff] %v29543_v4  ;;  %v9042_v3 = vsel %vm1134_vm3, %v29540_v8, -inf }
 0x5da   :  { %9100 = vmax.xlane.f32.xlu0 %v9099_v2  ;;  %v29551_v2 = vsel %vm27238_vm0, %v8956_v48, -4.2949673e+09  ;;  %v29556_v55 = vpop.permute.xlu1 %11948 }
 0x5db   :  { %9037 = vmax.xlane.f32.xlu1 %v9036_v51  ;;  %v9048_v32 = vsel %vm1134_vm3, %v29551_v2, -inf  ;;  %33266 = vst [vmem:[#allocation152_spill] sm:$0xff] %v29556_v55  ;;  %v29560_v51 = vsel %vm27238_vm0, %v8958_v14, -4.2949673e+09  ;;  %v29576_v14 = vsel %vm27238_vm0, %v8962_v54, -4.2949673e+09 }
 0x5dc   :  { %v9054_v4 = vsel %vm1134_vm3, %v29560_v51, -inf }
 0x5de   :  { %9202 = vadd.xlane.f32.xlu0 %v9201_v31  ;;  %v8960_v31 = vmul.f32 0.35355338, %v29423_v26  ;;  %v8964_v26 = vmul.f32 0.35355338, %v29445_v15  ;;  %v8968_v15 = vmul.f32 0.35355338, %v29467_v38 }
 0x5df   :  { %9043 = vmax.xlane.f32.xlu1 %v9042_v3  ;;  %v29570_v3 = vpop.permute.xlu1 %11946 }
 0x5e0   :  { %v29567_v48 = vsel %vm27238_vm0, %v8960_v31, -4.2949673e+09  ;;  %33267 = vst [vmem:[#allocation153_spill] sm:$0xff] %v29570_v3  ;;  %v29585_v47 = vsel %vm27238_vm0, %v8964_v26, -4.2949673e+09  ;;  %v29601_v26 = vsel %vm27238_vm0, %v8968_v15, -4.2949673e+09 }
 0x5e1   :  { %v9060_v55 = vsel %vm1134_vm3, %v29567_v48, -inf  ;;  %v9072_v3 = vsel %vm1134_vm3, %v29585_v47, -inf }
 0x5e3   :  { %9049 = vmax.xlane.f32.xlu1 %v9048_v32  ;;  %v9066_v32 = vsel %vm1134_vm3, %v29576_v14, -inf  ;;  %v29581_v31 = vpop.permute.xlu1 %12104 }
 0x5e4   :  { %33268 = vst [vmem:[#allocation154_spill] sm:$0xff] %v29581_v31 }
 0x5e7   :  { %9055 = vmax.xlane.f32.xlu1 %v9054_v4  ;;  %v8966_v4 = vmul.f32 0.35355338, %v29457_v57  ;;  %v8970_v57 = vmul.f32 0.35355338, %v29483_v34 }
 0x5e9   :  { %v29592_v54 = vsel %vm27238_vm0, %v8966_v4, -4.2949673e+09  ;;  %v29610_v38 = vsel %vm27238_vm0, %v8970_v57, -4.2949673e+09 }
 0x5ea   :  { %v9078_v31 = vsel %vm1134_vm3, %v29592_v54, -inf }
 0x5eb   :  { %9061 = vmax.xlane.f32.xlu1 %v9060_v55  ;;  %v29595_v55 = vpop.permute.xlu1 %12102 }
 0x5ec   :  { %33269 = vst [vmem:[#allocation155_spill] sm:$0xff] %v29595_v55  ;;  %v9090_v55 = vsel %vm1134_vm3, %v29610_v38, -inf }
 0x5ef   :  { %9067 = vmax.xlane.f32.xlu1 %v9066_v32  ;;  %v9084_v32 = vsel %vm1134_vm3, %v29601_v26, -inf  ;;  %v29606_v4 = vpop.permute.xlu1 %12260 }
 0x5f0   :  { %33270 = vst [vmem:[#allocation156_spill] sm:$0xff] %v29606_v4 }
 0x5f3   :  { %9073 = vmax.xlane.f32.xlu1 %v9072_v3  ;;  %v8972_v3 = vmul.f32 0.35355338, %v29501_v42  ;;  %v29619_v34 = vpop.permute.xlu1 %12258 }
 0x5f4   :  { %33271 = vst [vmem:[#allocation157_spill] sm:$0xff] %v29619_v34 }
 0x5f5   :  { %v29617_v15 = vsel %vm27238_vm0, %v8972_v3, -4.2949673e+09 }
 0x5f7   :  { %9079 = vmax.xlane.f32.xlu1 %v9078_v31  ;;  %v9096_v31 = vsel %vm1134_vm3, %v29617_v15, -inf  ;;  %v29623_v4 = vpop.permute.xlu1 %12416 }
 0x5f8   :  { %33272 = vst [vmem:[#allocation158_spill] sm:$0xff] %v29623_v4 }
 0x5fb   :  { %9085 = vmax.xlane.f32.xlu1 %v9084_v32  ;;  %v29625_v57 = vpop.permute.xlu1 %12414 }
 0x5fc   :  { %33273 = vst [vmem:[#allocation159_spill] sm:$0xff] %v29625_v57 }
 0x5ff   :  { %9091 = vmax.xlane.f32.xlu1 %v9090_v55  ;;  %v29627_v42 = vpop.permute.xlu1 %12572 }
 0x600   :  { %33274 = vst [vmem:[#allocation160_spill] sm:$0xff] %v29627_v42 }
 0x603   :  { %9097 = vmax.xlane.f32.xlu1 %v9096_v31  ;;  %v29629_v32 = vpop.permute.xlu1 %12570 }
 0x604   :  { %33275 = vst [vmem:[#allocation161_spill] sm:$0xff] %v29629_v32 }
 0x607   :  { %v29631_v61 = vpop.permute.xlu1 %12728 }
 0x608   :  { %33276 = vst [vmem:[#allocation162_spill] sm:$0xff] %v29631_v61 }
 0x623   :  { %v9008_v22 = vpop.xlane.xlu1 %9007 }
 0x624   :  { %v9102_v3 = vsub.f32 %v29325_v46, %v9008_v22 }
 0x626   :  { %v9134_v55 = vmul.f32 1.442695, %v9102_v3 }
 0x627   :  { %v9014_v60 = vpop.xlane.xlu0 %9013 }
 0x628   :  { %26671 = vpow2.f32 %v9134_v55  ;;  %v9104_v34 = vsub.f32 %v29336_v56, %v9014_v60 }
 0x62a   :  { %v9138_v0 = vmul.f32 1.442695, %v9104_v34 }
 0x62b   :  { %v9017_v31 = vpop.xlane.xlu0 %9016 }
 0x62c   :  { %26673 = vpow2.f32 %v9138_v0  ;;  %v9105_v4 = vsub.f32 %v29344_v27, %v9017_v31 }
 0x62e   :  { %v9140_v57 = vmul.f32 1.442695, %v9105_v4 }
 0x62f   :  { %v9023_v19 = vpop.xlane.xlu0 %9022 }
 0x630   :  { %26675 = vpow2.f32 %v9140_v57  ;;  %v9107_v32 = vsub.f32 %v29357_v43, %v9023_v19 }
 0x632   :  { %v9144_v42 = vmul.f32 1.442695, %v9107_v32 }
 0x633   :  { %v9029_v61 = vpop.xlane.xlu0 %9028 }
 0x634   :  { %26677 = vpow2.f32 %v9144_v42  ;;  %v9109_v22 = vsub.f32 %v29368_v13, %v9029_v61 }
 0x635   :  { %v29638_v46 = vpop.eup %26671 }
 0x636   :  { %v9148_v3 = vmul.f32 1.442695, %v9109_v22  ;;  %v9198_v60 = vsel %vm1134_vm3, %v29638_v46, 0.0 }
 0x637   :  { %v9035_v56 = vpop.xlane.xlu0 %9034  ;;  %9199 = vadd.xlane.f32.xlu1 %v9198_v60 }
 0x638   :  { %26679 = vpow2.f32 %v9148_v3  ;;  %v9111_v0 = vsub.f32 %v29379_v23, %v9035_v56 }
 0x639   :  { %v29643_v27 = vpop.eup %26673 }
 0x63a   :  { %v9152_v4 = vmul.f32 1.442695, %v9111_v0  ;;  %v9204_v43 = vsel %vm1134_vm3, %v29643_v27, 0.0 }
 0x63b   :  { %v9041_v19 = vpop.xlane.xlu0 %9040  ;;  %9205 = vadd.xlane.f32.xlu1 %v9204_v43 }
 0x63c   :  { %26681 = vpow2.f32 %v9152_v4  ;;  %v9113_v61 = vsub.f32 %v29394_v11, %v9041_v19 }
 0x63d   :  { %v29648_v13 = vpop.eup %26675 }
 0x63e   :  { %v9156_v34 = vmul.f32 1.442695, %v9113_v61  ;;  %v9207_v57 = vsel %vm1134_vm3, %v29648_v13, 0.0 }
 0x63f   :  { %9208 = vadd.xlane.f32.xlu0 %v9207_v57  ;;  %v9047_v42 = vpop.xlane.xlu0 %9046 }
 0x640   :  { %26683 = vpow2.f32 %v9156_v34  ;;  %v9115_v23 = vsub.f32 %v29405_v45, %v9047_v42  ;;  %v29679_v42 = vpop.permute.xlu1 %12726 }
 0x641   :  { %v29653_v32 = vpop.eup %26677  ;;  %33281 = vst [vmem:[#allocation167_spill] sm:$0xff] %v29679_v42 }
 0x642   :  { %v9160_v55 = vmul.f32 1.442695, %v9115_v23  ;;  %v9213_v31 = vsel %vm1134_vm3, %v29653_v32, 0.0 }
 0x643   :  { %9214 = vadd.xlane.f32.xlu0 %v9213_v31  ;;  %v9053_v22 = vpop.xlane.xlu0 %9052 }
 0x644   :  { %26685 = vpow2.f32 %v9160_v55 }
 0x645   :  { %v29657_v11 = vpop.eup %26679 }
 0x646   :  { %33277 = vst [vmem:[#allocation163_spill] sm:$0xff] %v29657_v11  ;;  %v9219_v3 = vsel %vm1134_vm3, %v29657_v11, 0.0 }
 0x647   :  { %9220 = vadd.xlane.f32.xlu0 %v9219_v3  ;;  %v9059_v60 = vpop.xlane.xlu0 %9058 }
 0x649   :  { %v29661_v56 = vpop.eup %26681 }
 0x64a   :  { %33278 = vst [vmem:[#allocation164_spill] sm:$0xff] %v29661_v56  ;;  %v9225_v45 = vsel %vm1134_vm3, %v29661_v56, 0.0 }
 0x64b   :  { %9226 = vadd.xlane.f32.xlu0 %v9225_v45  ;;  %v29665_v0 = vpop.xlane.xlu0 %9064 }
 0x64d   :  { %v29667_v4 = vpop.eup %26683 }
 0x64e   :  { %33279 = vst [vmem:[#allocation165_spill] sm:$0xff] %v29667_v4  ;;  %v9231_v43 = vsel %vm1134_vm3, %v29667_v4, 0.0 }
 0x64f   :  { %9232 = vadd.xlane.f32.xlu0 %v9231_v43  ;;  %v29671_v19 = vpop.xlane.xlu0 %9070 }
 0x651   :  { %v29673_v61 = vpop.eup %26685 }
 0x652   :  { %33280 = vst [vmem:[#allocation166_spill] sm:$0xff] %v29673_v61  ;;  %v9237_v34 = vsel %vm1134_vm3, %v29673_v61, 0.0 }
 0x653   :  { %9238 = vadd.xlane.f32.xlu0 %v9237_v34  ;;  %v29677_v57 = vpop.xlane.xlu0 %9076 }
 0x657   :  { %v29681_v23 = vpop.xlane.xlu0 %9082 }
 0x658   :  { %v9020_v55 = vpop.xlane.xlu1 %9019 }
 0x659   :  { %v9106_v31 = vsub.f32 %v29480_v49, %v9020_v55  ;;  %v9117_v55 = vsub.f32 %v29416_v9, %v9053_v22 }
 0x65b   :  { %v9142_v3 = vmul.f32 1.442695, %v9106_v31  ;;  %v29684_v45 = vpop.xlane.xlu0 %9088 }
 0x65c   :  { %v9026_v43 = vpop.xlane.xlu1 %9025 }
 0x65d   :  { %26687 = vpow2.f32 %v9142_v3  ;;  %v9108_v4 = vsub.f32 %v29496_v12, %v9026_v43 }
 0x65f   :  { %v9146_v56 = vmul.f32 1.442695, %v9108_v4  ;;  %v29687_v52 = vpop.xlane.xlu0 %9094 }
 0x660   :  { %v9032_v34 = vpop.xlane.xlu1 %9031 }
 0x661   :  { %26689 = vpow2.f32 %v9146_v56  ;;  %v9110_v61 = vsub.f32 %v29514_v7, %v9032_v34  ;;  %v9164_v56 = vmul.f32 1.442695, %v9117_v55 }
 0x663   :  { %v9150_v42 = vmul.f32 1.442695, %v9110_v61  ;;  %v29690_v11 = vpop.xlane.xlu0 %9100 }
 0x664   :  { %v9038_v5 = vpop.xlane.xlu1 %9037 }
 0x665   :  { %26691 = vpow2.f32 %v9150_v42  ;;  %v9112_v49 = vsub.f32 %v29529_v28, %v9038_v5  ;;  %v9119_v28 = vsub.f32 %v29429_v39, %v9059_v60 }
 0x667   :  { %v9154_v31 = vmul.f32 1.442695, %v9112_v49  ;;  %v9203_v3 = vpop.xlane.xlu0 %9202  ;;  %v9168_v49 = vmul.f32 1.442695, %v9119_v28  ;;  %v9125_v28 = vsub.f32 %v29463_v50, %v29677_v57 }
 0x668   :  { %v9044_v25 = vpop.xlane.xlu1 %9043 }
 0x669   :  { %26693 = vpow2.f32 %v9154_v31  ;;  %v9114_v12 = vsub.f32 %v29540_v8, %v9044_v25 }
 0x66a   :  { %v29695_v4 = vpop.eup %26687  ;;  %26695 = vrcp.f32 %v9203_v3 }
 0x66b   :  { %v9158_v7 = vmul.f32 1.442695, %v9114_v12  ;;  %v9210_v61 = vsel %vm1134_vm3, %v29695_v4, 0.0 }
 0x66c   :  { %9211 = vadd.xlane.f32.xlu1 %v9210_v61  ;;  %v9050_v42 = vpop.xlane.xlu1 %9049 }
 0x66d   :  { %26697 = vpow2.f32 %v9158_v7  ;;  %v9116_v5 = vsub.f32 %v29551_v2, %v9050_v42  ;;  %v9121_v2 = vsub.f32 %v29440_v17, %v29665_v0 }
 0x66e   :  { %v29700_v9 = vpop.eup %26689  ;;  %26699 = vpow2.f32 %v9164_v56 }
 0x66f   :  { %v9162_v22 = vmul.f32 1.442695, %v9116_v5  ;;  %v9216_v25 = vsel %vm1134_vm3, %v29700_v9, 0.0  ;;  %v9172_v12 = vmul.f32 1.442695, %v9121_v2 }
 0x670   :  { %9217 = vadd.xlane.f32.xlu1 %v9216_v25  ;;  %v9056_v8 = vpop.xlane.xlu1 %9055 }
 0x671   :  { %26701 = vpow2.f32 %v9162_v22  ;;  %v9118_v43 = vsub.f32 %v29560_v51, %v9056_v8  ;;  %v9123_v51 = vsub.f32 %v29451_v53, %v29671_v19  ;;  %v9127_v22 = vsub.f32 %v29473_v59, %v29681_v23 }
 0x672   :  { %v29706_v34 = vpop.eup %26691 }
 0x673   :  { %v9166_v55 = vmul.f32 1.442695, %v9118_v43  ;;  %v9222_v39 = vsel %vm1134_vm3, %v29706_v34, 0.0  ;;  %v9176_v5 = vmul.f32 1.442695, %v9123_v51 }
 0x674   :  { %9223 = vadd.xlane.f32.xlu1 %v9222_v39  ;;  %v9062_v60 = vpop.xlane.xlu1 %9061  ;;  %v9184_v59 = vmul.f32 1.442695, %v9127_v22 }
 0x675   :  { %26703 = vpow2.f32 %v9166_v55  ;;  %v9120_v31 = vsub.f32 %v29567_v48, %v9062_v60  ;;  %v9129_v55 = vsub.f32 %v29489_v29, %v29684_v45  ;;  %v9131_v45 = vsub.f32 %v29507_v21, %v29687_v52 }
 0x676   :  { %v29713_v3 = vpop.eup %26693  ;;  %26705 = vpow2.f32 %v9168_v49  ;;  %v9133_v52 = vsub.f32 %v29521_v24, %v29690_v11 }
 0x677   :  { %v26696_v56 = vpop.eup %26695  ;;  %v9170_v7 = vmul.f32 1.442695, %v9120_v31  ;;  %v9228_v17 = vsel %vm1134_vm3, %v29713_v3, 0.0 }
 0x678   :  { %v9327_v0 = vmul.f32 %v26696_v56, %v29534_v20  ;;  %9229 = vadd.xlane.f32.xlu1 %v9228_v17  ;;  %v9068_v61 = vpop.xlane.xlu1 %9067 }
 0x679   :  { %26707 = vpow2.f32 %v9170_v7  ;;  %v9122_v42 = vsub.f32 %v29576_v14, %v9068_v61 }
 0x67a   :  { %v29721_v48 = vpop.eup %26697  ;;  %26709 = vpow2.f32 %v9172_v12  ;;  %25658 = vmatmul.mubr.msk.f32.vlgmr.msra.gmra.mxu0 %vm1134_vm3, %v9327_v0 }
 0x67b   :  { %25666 = vmatpush3.msra.mxu0 %v29279_v18  ;;  %v9174_v53 = vmul.f32 1.442695, %v9122_v42  ;;  %v9234_v20 = vsel %vm1134_vm3, %v29721_v48, 0.0  ;;  %25667 = vmatprep.mubr.msk.f32.mxu0 %vm27176_vm2, %v33087_v44  ;;  %v29731_v19 = vpop.eup %26699  ;;  %v9180_v18 = vmul.f32 1.442695, %v9125_v28 }
 0x67c   :  { %9235 = vadd.xlane.f32.xlu1 %v9234_v20  ;;  %v9074_v14 = vpop.xlane.xlu1 %9073  ;;  %25675 = vmatprep.subr.mxu0 %v33087_v44  ;;  %v9243_v8 = vsel %vm1134_vm3, %v29731_v19, 0.0  ;;  %v9192_v28 = vmul.f32 1.442695, %v9131_v45 }
 0x67d   :  { %26711 = vpow2.f32 %v9174_v53  ;;  %v9124_v50 = vsub.f32 %v29585_v47, %v9074_v14 }
 0x67e   :  { %v29735_v57 = vpop.eup %26701  ;;  %26713 = vpow2.f32 %v9176_v5 }
 0x67f   :  { %v9178_v25 = vmul.f32 1.442695, %v9124_v50  ;;  %v9240_v43 = vsel %vm1134_vm3, %v29735_v57, 0.0 }
 0x680   :  { %9244 = vadd.xlane.f32.xlu1 %v9243_v8  ;;  %9241 = vadd.xlane.f32.xlu0 %v9240_v43  ;;  %v9080_v49 = vpop.xlane.xlu1 %9079 }
 0x681   :  { %26715 = vpow2.f32 %v9178_v25  ;;  %v9126_v47 = vsub.f32 %v29592_v54, %v9080_v49  ;;  %v9188_v54 = vmul.f32 1.442695, %v9129_v55 }
 0x682   :  { %v29744_v2 = vpop.eup %26703  ;;  %26717 = vpow2.f32 %v9180_v18  ;;  %v9196_v18 = vmul.f32 1.442695, %v9133_v52 }
 0x683   :  { %v29748_v39 = vpop.eup %26705  ;;  %v9182_v23 = vmul.f32 1.442695, %v9126_v47  ;;  %v9246_v60 = vsel %vm1134_vm3, %v29744_v2, 0.0 }
 0x684   :  { %9247 = vadd.xlane.f32.xlu0 %v9246_v60  ;;  %v9086_v31 = vpop.xlane.xlu1 %9085  ;;  %v9249_v56 = vsel %vm1134_vm3, %v29748_v39, 0.0 }
 0x685   :  { %26719 = vpow2.f32 %v9182_v23  ;;  %v9128_v12 = vsub.f32 %v29601_v26, %v9086_v31 }
 0x686   :  { %v29753_v51 = vpop.eup %26707  ;;  %26721 = vpow2.f32 %v9184_v59 }
 0x687   :  { %v29757_v29 = vpop.eup %26709  ;;  %v9186_v7 = vmul.f32 1.442695, %v9128_v12  ;;  %v9252_v17 = vsel %vm1134_vm3, %v29753_v51, 0.0 }
 0x688   :  { %9250 = vadd.xlane.f32.xlu0 %v9249_v56  ;;  %9253 = vadd.xlane.f32.xlu1 %v9252_v17  ;;  %v9092_v0 = vpop.xlane.xlu1 %9091  ;;  %v9255_v42 = vsel %vm1134_vm3, %v29757_v29, 0.0 }
 0x689   :  { %26723 = vpow2.f32 %v9186_v7  ;;  %v9130_v26 = vsub.f32 %v29610_v38, %v9092_v0 }
 0x68a   :  { %v29764_v61 = vpop.eup %26711  ;;  %26725 = vpow2.f32 %v9188_v54 }
 0x68b   :  { %v29768_v5 = vpop.eup %26713  ;;  %v9190_v21 = vmul.f32 1.442695, %v9130_v26  ;;  %v9258_v53 = vsel %vm1134_vm3, %v29764_v61, 0.0 }
 0x68c   :  { %9256 = vadd.xlane.f32.xlu0 %v9255_v42  ;;  %9259 = vadd.xlane.f32.xlu1 %v9258_v53  ;;  %v9098_v20 = vpop.xlane.xlu1 %9097  ;;  %v9261_v50 = vsel %vm1134_vm3, %v29768_v5, 0.0 }
 0x68d   :  { %26727 = vpow2.f32 %v9190_v21  ;;  %v9132_v38 = vsub.f32 %v29617_v15, %v9098_v20 }
 0x68e   :  { %v29775_v14 = vpop.eup %26715  ;;  %26729 = vpow2.f32 %v9192_v28 }
 0x68f   :  { %v9194_v22 = vmul.f32 1.442695, %v9132_v38  ;;  %v9264_v24 = vsel %vm1134_vm3, %v29775_v14, 0.0  ;;  %v29781_v11 = vpop.eup %26717 }
 0x690   :  { %9262 = vadd.xlane.f32.xlu0 %v9261_v50  ;;  %9265 = vadd.xlane.f32.xlu1 %v9264_v24  ;;  %v9267_v15 = vsel %vm1134_vm3, %v29781_v11, 0.0  ;;  %v33282_v24 = vld [vmem:[#allocation120_spill] sm:$0xff] }
 0x691   :  { %26731 = vpow2.f32 %v9194_v22 }
 0x692   :  { %v29783_v25 = vpop.eup %26719  ;;  %26733 = vpow2.f32 %v9196_v18 }
 0x693   :  { %v9270_v8 = vsel %vm1134_vm3, %v29783_v25, 0.0  ;;  %v29789_v43 = vpop.eup %26721 }
 0x694   :  { %9268 = vadd.xlane.f32.xlu0 %v9267_v15  ;;  %9271 = vadd.xlane.f32.xlu1 %v9270_v8  ;;  %v9273_v55 = vsel %vm1134_vm3, %v29789_v43, 0.0  ;;  %v33284_v15 = vld [vmem:[#allocation163_spill] sm:$0xff] }
 0x695   :  { %v33285_v8 = vld [vmem:[#allocation75_spill] sm:$0xff] }
 0x696   :  { %v29791_v49 = vpop.eup %26723 }
 0x697   :  { %v29793_v47 = vpop.eup %26725  ;;  %v9276_v59 = vsel %vm1134_vm3, %v29791_v49, 0.0 }
 0x698   :  { %9274 = vadd.xlane.f32.xlu0 %v9273_v55  ;;  %9277 = vadd.xlane.f32.xlu1 %v9276_v59  ;;  %v9279_v60 = vsel %vm1134_vm3, %v29793_v47, 0.0  ;;  %v33286_v59 = vld [vmem:[#allocation97_spill] sm:$0xff] }
 0x69a   :  { %v29799_v23 = vpop.eup %26727 }
 0x69b   :  { %v9282_v31 = vsel %vm1134_vm3, %v29799_v23, 0.0  ;;  %v29805_v12 = vpop.eup %26729 }
 0x69c   :  { %9280 = vadd.xlane.f32.xlu0 %v9279_v60  ;;  %9283 = vadd.xlane.f32.xlu1 %v9282_v31  ;;  %v9285_v56 = vsel %vm1134_vm3, %v29805_v12, 0.0  ;;  %v33287_v60 = vld [vmem:[#allocation164_spill] sm:$0xff] }
 0x69e   :  { %v29807_v54 = vpop.eup %26731 }
 0x69f   :  { %v9288_v45 = vsel %vm1134_vm3, %v29807_v54, 0.0  ;;  %v29813_v7 = vpop.eup %26733 }
 0x6a0   :  { %9286 = vadd.xlane.f32.xlu0 %v9285_v56  ;;  %9289 = vadd.xlane.f32.xlu1 %v9288_v45  ;;  %v9291_v17 = vsel %vm1134_vm3, %v29813_v7, 0.0  ;;  %v33288_v45 = vld [vmem:[#allocation88_spill] sm:$0xff] }
 0x6a4   :  { %9292 = vadd.xlane.f32.xlu0 %v9291_v17  ;;  %v33289_v17 = vld [vmem:[#allocation72_spill] sm:$0xff] }
 0x6b1   :  { %12884 = vrot.lane.b32.xlu1 %v27671_v36, %s27180_s19 }
 0x6b5   :  { %12882 = vrot.lane.b32.xlu1 %v27671_v36, %s27181_s20 }
 0x6b9   :  { %13040 = vrot.lane.b32.xlu1 %v27679_v40, %s27180_s19 }
 0x6ba   :  { %12804 = vrot.lane.b32.xlu0 %v27659_v1, %s27181_s20 }
 0x6bd   :  { %13038 = vrot.lane.b32.xlu1 %v27679_v40, %s27181_s20 }
 0x6be   :  { %12962 = vrot.lane.b32.xlu0 %v27667_v33, %s27180_s19 }
 0x6c0   :  { %v9200_v0 = vpop.xlane.xlu1 %9199 }
 0x6c1   :  { %26735 = vrcp.f32 %v9200_v0  ;;  %13196 = vrot.lane.b32.xlu1 %v33144_v16, %s27180_s19  ;;  %v33290_v0 = vld [vmem:[#allocation165_spill] sm:$0xff] }
 0x6c2   :  { %12960 = vrot.lane.b32.xlu0 %v27667_v33, %s27181_s20 }
 0x6c4   :  { %v9206_v26 = vpop.xlane.xlu1 %9205 }
 0x6c5   :  { %26737 = vrcp.f32 %v9206_v26  ;;  %13194 = vrot.lane.b32.xlu1 %v33144_v16, %s27181_s20 }
 0x6c6   :  { %13118 = vrot.lane.b32.xlu0 %v27675_v37, %s27180_s19 }
 0x6c8   :  { %v9209_v42 = vpop.xlane.xlu0 %9208 }
 0x6c9   :  { %26739 = vrcp.f32 %v9209_v42  ;;  %13352 = vrot.lane.b32.xlu1 %v33148_v6, %s27180_s19  ;;  %v33291_v42 = vld [vmem:[#allocation77_spill] sm:$0xff] }
 0x6ca   :  { %13116 = vrot.lane.b32.xlu0 %v27675_v37, %s27181_s20 }
 0x6cc   :  { %v9215_v28 = vpop.xlane.xlu0 %9214 }
 0x6cd   :  { %26741 = vrcp.f32 %v9215_v28  ;;  %13350 = vrot.lane.b32.xlu1 %v33148_v6, %s27181_s20 }
 0x6ce   :  { %v26736_v52 = vpop.eup %26735  ;;  %13274 = vrot.lane.b32.xlu0 %v27683_v41, %s27180_s19 }
 0x6cf   :  { %v9326_v21 = vmul.f32 %v26736_v52, %v29638_v46  ;;  %v33292_v52 = vld [vmem:[#allocation92_spill] sm:$0xff] }
 0x6d0   :  { %v9221_v53 = vpop.xlane.xlu0 %9220 }
 0x6d1   :  { %26743 = vrcp.f32 %v9221_v53  ;;  %13508 = vrot.lane.b32.xlu1 %v33153_v62, %s27180_s19  ;;  %25653 = vmatmul.mubr.msk.f32.vlgmr.msra.gmra.mxu1 %vm1134_vm3, %v9326_v21  ;;  %v33293_v21 = vld [vmem:[#allocation166_spill] sm:$0xff] }
 0x6d2   :  { %v26738_v20 = vpop.eup %26737  ;;  %25661 = vmatpush3.msra.mxu1 %v29219_v63  ;;  %13272 = vrot.lane.b32.xlu0 %v27683_v41, %s27181_s20 }
 0x6d3   :  { %v9328_v38 = vmul.f32 %v26738_v20, %v29643_v27  ;;  %25662 = vmatprep.mubr.msk.f32.mxu1 %vm27176_vm2, %v33087_v44  ;;  %25670 = vmatprep.subr.mxu1 %v33087_v44  ;;  %v33294_v20 = vld [vmem:[#allocation96_spill] sm:$0xff] }
 0x6d4   :  { %v9227_v46 = vpop.xlane.xlu0 %9226 }
 0x6d5   :  { %26745 = vrcp.f32 %v9227_v46  ;;  %13506 = vrot.lane.b32.xlu1 %v33153_v62, %s27181_s20  ;;  %25663 = vmatmul.mubr.msk.f32.vlgmr.msra.gmra.mxu1 %vm1134_vm3, %v9328_v38  ;;  %v33295_v38 = vld [vmem:[#allocation74_spill] sm:$0xff]  ;;  %v33296_v46 = vld [vmem:[#allocation79_spill] sm:$0xff] }
 0x6d6   :  { %v26740_v50 = vpop.eup %26739  ;;  %25671 = vmatpush3.msra.mxu1 %v29221_v10  ;;  %13430 = vrot.lane.b32.xlu0 %v33130_v58, %s27180_s19 }
 0x6d7   :  { %v9329_v63 = vmul.f32 %v26740_v50, %v29648_v13  ;;  %25672 = vmatprep.mubr.msk.f32.mxu1 %vm27176_vm2, %v33087_v44  ;;  %25680 = vmatprep.subr.mxu1 %v33087_v44 }
 0x6d8   :  { %v9233_v27 = vpop.xlane.xlu0 %9232 }
 0x6d9   :  { %26747 = vrcp.f32 %v9233_v27  ;;  %25668 = vmatmul.mubr.msk.f32.vlgmr.msra.gmra.mxu0 %vm1134_vm3, %v9329_v63  ;;  %13664 = vrot.lane.b32.xlu1 %v33158_v30, %s27180_s19  ;;  %v33297_v63 = vld [vmem:[#allocation76_spill] sm:$0xff]  ;;  %v33298_v27 = vld [vmem:[#allocation51_spill] sm:$0xff] }
 0x6da   :  { %v26742_v18 = vpop.eup %26741  ;;  %25676 = vmatpush3.msra.mxu0 %v29233_v35  ;;  %13428 = vrot.lane.b32.xlu0 %v33130_v58, %s27181_s20  ;;  %v33283_v35 = vld [vmem:[#allocation70_spill] sm:$0xff] }
 0x6db   :  { %v9331_v10 = vmul.f32 %v26742_v18, %v29653_v32  ;;  %25677 = vmatprep.mubr.msk.f32.mxu0 %vm27176_vm2, %v33087_v44  ;;  %25685 = vmatprep.subr.mxu0 %v33087_v44 }
 0x6dc   :  { %v9239_v13 = vpop.xlane.xlu0 %9238 }
 0x6dd   :  { %26749 = vrcp.f32 %v9239_v13  ;;  %25678 = vmatmul.mubr.msk.f32.vlgmr.msra.gmra.mxu0 %vm1134_vm3, %v9331_v10  ;;  %13662 = vrot.lane.b32.xlu1 %v33158_v30, %s27181_s20  ;;  %v33299_v10 = vld [vmem:[#allocation52_spill] sm:$0xff] }
 0x6de   :  { %v26744_v22 = vpop.eup %26743  ;;  %25686 = vmatpush3.msra.mxu0 %v33282_v24  ;;  %13586 = vrot.lane.b32.xlu0 %v33283_v35, %s27180_s19  ;;  %v33301_v24 = vld [vmem:[#allocation57_spill] sm:$0xff] }
 0x6df   :  { %v9333_v32 = vmul.f32 %v26744_v22, %v33284_v15  ;;  %25687 = vmatprep.mubr.msk.f32.mxu0 %vm27176_vm2, %v33087_v44  ;;  %25695 = vmatprep.subr.mxu0 %v33087_v44  ;;  %v33300_v22 = vld [vmem:[#allocation78_spill] sm:$0xff] }
 0x6e1   :  { %25688 = vmatmul.mubr.msk.f32.vlgmr.msra.gmra.mxu0 %vm1134_vm3, %v9333_v32  ;;  %13820 = vrot.lane.b32.xlu1 %v33285_v8, %s27180_s19 }
 0x6e2   :  { %v26746_v55 = vpop.eup %26745  ;;  %25696 = vmatpush3.msra.mxu0 %v33286_v59  ;;  %13584 = vrot.lane.b32.xlu0 %v33283_v35, %s27181_s20  ;;  %v33302_v59 = vld [vmem:[#allocation59_spill] sm:$0xff] }
 0x6e3   :  { %v9335_v31 = vmul.f32 %v26746_v55, %v33287_v60  ;;  %25697 = vmatprep.mubr.msk.f32.mxu0 %vm27176_vm2, %v33087_v44  ;;  %25705 = vmatprep.subr.mxu0 %v33087_v44 }
 0x6e5   :  { %25698 = vmatmul.mubr.msk.f32.vlgmr.msra.gmra.mxu0 %vm1134_vm3, %v9335_v31  ;;  %13818 = vrot.lane.b32.xlu1 %v33285_v8, %s27181_s20  ;;  %v33303_v31 = vld [vmem:[#allocation50_spill] sm:$0xff] }
 0x6e6   :  { %v26748_v56 = vpop.eup %26747  ;;  %25706 = vmatpush3.msra.mxu0 %v33288_v45  ;;  %13742 = vrot.lane.b32.xlu0 %v33289_v17, %s27180_s19  ;;  %v33304_v45 = vld [vmem:[#allocation109_spill] sm:$0xff] }
 0x6e7   :  { %v9337_v26 = vmul.f32 %v26748_v56, %v33290_v0  ;;  %25707 = vmatprep.mubr.msk.f32.mxu0 %vm27176_vm2, %v33087_v44  ;;  %25715 = vmatprep.subr.mxu0 %v33087_v44 }
 0x6e9   :  { %25708 = vmatmul.mubr.msk.f32.vlgmr.msra.gmra.mxu0 %vm1134_vm3, %v9337_v26  ;;  %13976 = vrot.lane.b32.xlu1 %v33291_v42, %s27180_s19  ;;  %v33305_v26 = vld [vmem:[#allocation61_spill] sm:$0xff] }
 0x6ea   :  { %v26750_v28 = vpop.eup %26749  ;;  %25716 = vmatpush3.msra.mxu0 %v33292_v52  ;;  %13740 = vrot.lane.b32.xlu0 %v33289_v17, %s27181_s20  ;;  %v33306_v52 = vld [vmem:[#allocation53_spill] sm:$0xff] }
 0x6eb   :  { %v9339_v53 = vmul.f32 %v26750_v28, %v33293_v21  ;;  %25717 = vmatprep.mubr.msk.f32.mxu0 %vm27176_vm2, %v33087_v44  ;;  %25725 = vmatprep.subr.mxu0 %v33087_v44 }
 0x6ed   :  { %25718 = vmatmul.mubr.msk.f32.vlgmr.msra.gmra.mxu0 %vm1134_vm3, %v9339_v53  ;;  %13974 = vrot.lane.b32.xlu1 %v33291_v42, %s27181_s20  ;;  %v33307_v53 = vld [vmem:[#allocation113_spill] sm:$0xff] }
 0x6ee   :  { %25726 = vmatpush3.msra.mxu0 %v33294_v20  ;;  %13898 = vrot.lane.b32.xlu0 %v33295_v38, %s27180_s19 }
 0x6ef   :  { %25727 = vmatprep.mubr.msk.f32.mxu0 %vm27176_vm2, %v33087_v44  ;;  %25735 = vmatprep.subr.mxu0 %v33087_v44 }
 0x6f1   :  { %14132 = vrot.lane.b32.xlu1 %v33296_v46, %s27180_s19 }
 0x6f2   :  { %13896 = vrot.lane.b32.xlu0 %v33295_v38, %s27181_s20 }
 0x6f5   :  { %14130 = vrot.lane.b32.xlu1 %v33296_v46, %s27181_s20  ;;  %v9212_v50 = vpop.xlane.xlu1 %9211 }
 0x6f6   :  { %26751 = vrcp.f32 %v9212_v50  ;;  %14054 = vrot.lane.b32.xlu0 %v33297_v63, %s27180_s19  ;;  %v33308_v50 = vld [vmem:[#allocation63_spill] sm:$0xff] }
 0x6f9   :  { %14702 = vrot.lane.b32.xlu1 %v33298_v27, %s27182_s21  ;;  %v9218_v18 = vpop.xlane.xlu1 %9217 }
 0x6fa   :  { %26753 = vrcp.f32 %v9218_v18  ;;  %14052 = vrot.lane.b32.xlu0 %v33297_v63, %s27181_s20  ;;  %v33309_v18 = vld [vmem:[#allocation55_spill] sm:$0xff] }
 0x6fd   :  { %14930 = vrot.lane.b32.xlu1 %v33299_v10, %s27182_s21  ;;  %v9224_v13 = vpop.xlane.xlu1 %9223 }
 0x6fe   :  { %26755 = vrcp.f32 %v9224_v13  ;;  %14210 = vrot.lane.b32.xlu0 %v33300_v22, %s27180_s19 }
 0x701   :  { %15158 = vrot.lane.b32.xlu1 %v33301_v24, %s27182_s21  ;;  %v9230_v15 = vpop.xlane.xlu1 %9229 }
 0x702   :  { %26757 = vrcp.f32 %v9230_v15  ;;  %14208 = vrot.lane.b32.xlu0 %v33300_v22, %s27181_s20  ;;  %v33310_v15 = vld [vmem:[#allocation122_spill] sm:$0xff] }
 0x703   :  { %v26752_v32 = vpop.eup %26751 }
 0x704   :  { %v9330_v55 = vmul.f32 %v26752_v32, %v29695_v4 }
 0x705   :  { %15310 = vrot.lane.b32.xlu1 %v33302_v59, %s27182_s21  ;;  %v9236_v60 = vpop.xlane.xlu1 %9235 }
 0x706   :  { %26759 = vrcp.f32 %v9236_v60  ;;  %14778 = vrot.lane.b32.xlu0 %v33303_v31, %s27182_s21  ;;  %25673 = vmatmul.mubr.msk.f32.vlgmr.msra.gmra.mxu1 %vm1134_vm3, %v9330_v55  ;;  %v33311_v60 = vld [vmem:[#allocation54_spill] sm:$0xff] }
 0x707   :  { %v26754_v56 = vpop.eup %26753  ;;  %25681 = vmatpush3.msra.mxu1 %v33304_v45  ;;  %25682 = vmatprep.mubr.msk.f32.mxu1 %vm27176_vm2, %v33087_v44  ;;  %v33312_v45 = vld [vmem:[#allocation125_spill] sm:$0xff] }
 0x708   :  { %v9332_v0 = vmul.f32 %v26754_v56, %v29700_v9  ;;  %25690 = vmatprep.subr.mxu1 %v33087_v44 }
 0x709   :  { %v9242_v4 = vpop.xlane.xlu0 %9241  ;;  %15462 = vrot.lane.b32.xlu1 %v33305_v26, %s27182_s21  ;;  %v9245_v28 = vpop.xlane.xlu1 %9244 }
 0x70a   :  { %26761 = vrcp.f32 %v9242_v4  ;;  %14854 = vrot.lane.b32.xlu0 %v33306_v52, %s27182_s21  ;;  %25683 = vmatmul.mubr.msk.f32.vlgmr.msra.gmra.mxu1 %vm1134_vm3, %v9332_v0 }
 0x70b   :  { %v26756_v21 = vpop.eup %26755  ;;  %26763 = vrcp.f32 %v9245_v28  ;;  %25691 = vmatpush3.msra.mxu1 %v33307_v53  ;;  %25692 = vmatprep.mubr.msk.f32.mxu1 %vm27176_vm2, %v33087_v44  ;;  %v33313_v28 = vld [vmem:[#allocation56_spill] sm:$0xff]  ;;  %v33314_v53 = vld [vmem:[#allocation129_spill] sm:$0xff] }
 0x70c   :  { %v9334_v9 = vmul.f32 %v26756_v21, %v29706_v34  ;;  %25700 = vmatprep.subr.mxu1 %v33087_v44 }
 0x70d   :  { %v9248_v20 = vpop.xlane.xlu0 %9247  ;;  %15614 = vrot.lane.b32.xlu1 %v33308_v50, %s27182_s21 }
 0x70e   :  { %26765 = vrcp.f32 %v9248_v20  ;;  %15006 = vrot.lane.b32.xlu0 %v33309_v18, %s27182_s21  ;;  %25693 = vmatmul.mubr.msk.f32.vlgmr.msra.gmra.mxu1 %vm1134_vm3, %v9334_v9 }
 0x70f   :  { %v26758_v13 = vpop.eup %26757  ;;  %25701 = vmatpush3.msra.mxu1 %v33310_v15  ;;  %25702 = vmatprep.mubr.msk.f32.mxu1 %vm27176_vm2, %v33087_v44 }
 0x710   :  { %v9336_v34 = vmul.f32 %v26758_v13, %v29713_v3  ;;  %25710 = vmatprep.subr.mxu1 %v33087_v44 }
 0x711   :  { %v9251_v32 = vpop.xlane.xlu0 %9250  ;;  %15766 = vrot.lane.b32.xlu1 %v27671_v36, %s27182_s21  ;;  %v9254_v55 = vpop.xlane.xlu1 %9253 }
 0x712   :  { %26767 = vrcp.f32 %v9251_v32  ;;  %15082 = vrot.lane.b32.xlu0 %v33311_v60, %s27182_s21  ;;  %25703 = vmatmul.mubr.msk.f32.vlgmr.msra.gmra.mxu1 %vm1134_vm3, %v9336_v34  ;;  %v33315_v34 = vld [vmem:[#allocation58_spill] sm:$0xff] }
 0x713   :  { %v26760_v56 = vpop.eup %26759  ;;  %26769 = vrcp.f32 %v9254_v55  ;;  %25711 = vmatpush3.msra.mxu1 %v33312_v45  ;;  %25712 = vmatprep.mubr.msk.f32.mxu1 %vm27176_vm2, %v33087_v44  ;;  %v33316_v55 = vld [vmem:[#allocation132_spill] sm:$0xff] }
 0x714   :  { %v9338_v3 = vmul.f32 %v26760_v56, %v29721_v48  ;;  %25720 = vmatprep.subr.mxu1 %v33087_v44  ;;  %v33317_v56 = vld [vmem:[#allocation119_spill] sm:$0xff] }
 0x715   :  { %v9257_v0 = vpop.xlane.xlu0 %9256  ;;  %v9260_v4 = vpop.xlane.xlu1 %9259 }
 0x716   :  { %26771 = vrcp.f32 %v9257_v0  ;;  %15234 = vrot.lane.b32.xlu0 %v33313_v28, %s27182_s21  ;;  %25713 = vmatmul.mubr.msk.f32.vlgmr.msra.gmra.mxu1 %vm1134_vm3, %v9338_v3  ;;  %v33318_v3 = vld [vmem:[#allocation60_spill] sm:$0xff] }
 0x717   :  { %v26762_v21 = vpop.eup %26761  ;;  %26773 = vrcp.f32 %v9260_v4  ;;  %25721 = vmatpush3.msra.mxu1 %v33314_v53  ;;  %25722 = vmatprep.mubr.msk.f32.mxu1 %vm27176_vm2, %v33087_v44 }
 0x718   :  { %v26764_v9 = vpop.eup %26763  ;;  %v9340_v48 = vmul.f32 %v26762_v21, %v29735_v57  ;;  %25730 = vmatprep.subr.mxu1 %v33087_v44 }
 0x719   :  { %v9341_v20 = vmul.f32 %v26764_v9, %v29731_v19  ;;  %v9263_v13 = vpop.xlane.xlu0 %9262  ;;  %v9266_v15 = vpop.xlane.xlu1 %9265 }
 0x71a   :  { %26775 = vrcp.f32 %v9263_v13  ;;  %15386 = vrot.lane.b32.xlu0 %v33315_v34, %s27182_s21  ;;  %25723 = vmatmul.mubr.msk.f32.vlgmr.msra.gmra.mxu1 %vm1134_vm3, %v9340_v48  ;;  %v33320_v13 = vld [vmem:[#allocation136_spill] sm:$0xff] }
 0x71b   :  { %v26766_v32 = vpop.eup %26765  ;;  %26777 = vrcp.f32 %v9266_v15  ;;  %25728 = vmatmul.mubr.msk.f32.vlgmr.msra.gmra.mxu0 %vm1134_vm3, %v9341_v20  ;;  %25731 = vmatpush3.msra.mxu1 %v33316_v55 }
 0x71c   :  { %v9342_v57 = vmul.f32 %v26766_v32, %v29744_v2  ;;  %25736 = vmatpush3.msra.mxu0 %v33317_v56  ;;  %25732 = vmatprep.mubr.msk.f32.mxu1 %vm27176_vm2, %v33087_v44  ;;  %v33319_v2 = vld [vmem:[#allocation134_spill] sm:$0xff] }
 0x71d   :  { %v9269_v19 = vpop.xlane.xlu0 %9268  ;;  %25740 = vmatprep.subr.mxu1 %v33087_v44  ;;  %v9272_v45 = vpop.xlane.xlu1 %9271  ;;  %25737 = vmatprep.mubr.msk.f32.mxu0 %vm27176_vm2, %v33087_v44  ;;  %v33321_v32 = vld [vmem:[#allocation98_spill] sm:$0xff] }
 0x71e   :  { %26779 = vrcp.f32 %v9269_v19  ;;  %15538 = vrot.lane.b32.xlu0 %v33318_v3, %s27182_s21  ;;  %25733 = vmatmul.mubr.msk.f32.vlgmr.msra.gmra.mxu1 %vm1134_vm3, %v9342_v57  ;;  %v33322_v19 = vld [vmem:[#allocation138_spill] sm:$0xff] }
 0x71f   :  { %v26768_v0 = vpop.eup %26767  ;;  %26781 = vrcp.f32 %v9272_v45  ;;  %25741 = vmatpush3.msra.mxu1 %v33319_v2  ;;  %25742 = vmatprep.mubr.msk.f32.mxu1 %vm27176_vm2, %v33087_v44  ;;  %v33323_v45 = vld [vmem:[#allocation140_spill] sm:$0xff] }
 0x720   :  { %v26770_v4 = vpop.eup %26769  ;;  %v9343_v21 = vmul.f32 %v26768_v0, %v29748_v39  ;;  %25745 = vmatprep.subr.mxu0 %v33087_v44  ;;  %25750 = vmatprep.subr.mxu1 %v33087_v44 }
 0x721   :  { %v9344_v53 = vmul.f32 %v26770_v4, %v29753_v51  ;;  %v9275_v9 = vpop.xlane.xlu0 %9274  ;;  %v9278_v48 = vpop.xlane.xlu1 %9277 }
 0x722   :  { %26783 = vrcp.f32 %v9275_v9  ;;  %15690 = vrot.lane.b32.xlu0 %v27659_v1, %s27182_s21  ;;  %25738 = vmatmul.mubr.msk.f32.vlgmr.msra.gmra.mxu0 %vm1134_vm3, %v9343_v21  ;;  %v33325_v9 = vld [vmem:[#allocation144_spill] sm:$0xff] }
 0x723   :  { %v26772_v20 = vpop.eup %26771  ;;  %26785 = vrcp.f32 %v9278_v48  ;;  %25743 = vmatmul.mubr.msk.f32.vlgmr.msra.gmra.mxu1 %vm1134_vm3, %v9344_v53  ;;  %25746 = vmatpush3.msra.mxu0 %v33320_v13  ;;  %v33324_v53 = vld [vmem:[#allocation142_spill] sm:$0xff] }
 0x724   :  { %v26774_v39 = vpop.eup %26773  ;;  %v9345_v15 = vmul.f32 %v26772_v20, %v29757_v29  ;;  %25751 = vmatpush3.msra.mxu1 %v33321_v32  ;;  %25747 = vmatprep.mubr.msk.f32.mxu0 %vm27176_vm2, %v33087_v44  ;;  %v33327_v32 = vld [vmem:[#allocation147_spill] sm:$0xff] }
 0x725   :  { %v9346_v51 = vmul.f32 %v26774_v39, %v29764_v61  ;;  %v9281_v55 = vpop.xlane.xlu0 %9280  ;;  %25752 = vmatprep.mubr.msk.f32.mxu1 %vm27176_vm2, %v33087_v44  ;;  %25755 = vmatprep.subr.mxu0 %v33087_v44  ;;  %v9284_v57 = vpop.xlane.xlu1 %9283 }
 0x726   :  { %26787 = vrcp.f32 %v9281_v55  ;;  %25760 = vmatprep.subr.mxu1 %v33087_v44  ;;  %15842 = vrot.lane.b32.xlu0 %v27667_v33, %s27182_s21 }
 0x727   :  { %v26776_v29 = vpop.eup %26775  ;;  %26789 = vrcp.f32 %v9284_v57  ;;  %25748 = vmatmul.mubr.msk.f32.vlgmr.msra.gmra.mxu0 %vm1134_vm3, %v9345_v15  ;;  %25753 = vmatmul.mubr.msk.f32.vlgmr.msra.gmra.mxu1 %vm1134_vm3, %v9346_v51  ;;  %v33326_v15 = vld [vmem:[#allocation146_spill] sm:$0xff] }
 0x728   :  { %v26778_v61 = vpop.eup %26777  ;;  %v9347_v56 = vmul.f32 %v26776_v29, %v29768_v5  ;;  %25756 = vmatpush3.msra.mxu0 %v33322_v19  ;;  %25761 = vmatpush3.msra.mxu1 %v33323_v45 }
 0x729   :  { %v9348_v0 = vmul.f32 %v26778_v61, %v29775_v14  ;;  %v9287_v2 = vpop.xlane.xlu0 %9286  ;;  %25757 = vmatprep.mubr.msk.f32.mxu0 %vm27176_vm2, %v33087_v44  ;;  %25762 = vmatprep.mubr.msk.f32.mxu1 %vm27176_vm2, %v33087_v44  ;;  %v9290_v4 = vpop.xlane.xlu1 %9289  ;;  %v33328_v61 = vld [vmem:[#allocation100_spill] sm:$0xff] }
 0x72a   :  { %26791 = vrcp.f32 %v9287_v2  ;;  %25765 = vmatprep.subr.mxu0 %v33087_v44  ;;  %25770 = vmatprep.subr.mxu1 %v33087_v44 }
 0x72b   :  { %v26780_v5 = vpop.eup %26779  ;;  %26793 = vrcp.f32 %v9290_v4  ;;  %25758 = vmatmul.mubr.msk.f32.vlgmr.msra.gmra.mxu0 %vm1134_vm3, %v9347_v56  ;;  %25763 = vmatmul.mubr.msk.f32.vlgmr.msra.gmra.mxu1 %vm1134_vm3, %v9348_v0  ;;  %v33329_v56 = vld [vmem:[#allocation148_spill] sm:$0xff]  ;;  %v33330_v4 = vld [vmem:[#allocation102_spill] sm:$0xff] }
 0x72c   :  { %v26782_v14 = vpop.eup %26781  ;;  %v9349_v21 = vmul.f32 %v26780_v5, %v29781_v11  ;;  %25766 = vmatpush3.msra.mxu0 %v33324_v53  ;;  %25771 = vmatpush3.msra.mxu1 %v33325_v9  ;;  %v33331_v5 = vld [vmem:[#allocation149_spill] sm:$0xff] }
 0x72d   :  { %v9350_v48 = vmul.f32 %v26782_v14, %v29783_v25  ;;  %v9293_v20 = vpop.xlane.xlu0 %9292  ;;  %25767 = vmatprep.mubr.msk.f32.mxu0 %vm27176_vm2, %v33087_v44  ;;  %25772 = vmatprep.mubr.msk.f32.mxu1 %vm27176_vm2, %v33087_v44  ;;  %v30055_v13 = vpop.permute.xlu1 %12884 }
 0x72e   :  { %26795 = vrcp.f32 %v9293_v20  ;;  %25775 = vmatprep.subr.mxu0 %v33087_v44  ;;  %25780 = vmatprep.subr.mxu1 %v33087_v44  ;;  %v33333_v20 = vld [vmem:[#allocation104_spill] sm:$0xff] }
 0x72f   :  { %v26784_v11 = vpop.eup %26783  ;;  %25768 = vmatmul.mubr.msk.f32.vlgmr.msra.gmra.mxu0 %vm1134_vm3, %v9349_v21  ;;  %25773 = vmatmul.mubr.msk.f32.vlgmr.msra.gmra.mxu1 %vm1134_vm3, %v9350_v48 }
 0x730   :  { %v26786_v25 = vpop.eup %26785  ;;  %v9351_v39 = vmul.f32 %v26784_v11, %v29789_v43  ;;  %25776 = vmatpush3.msra.mxu0 %v33326_v15  ;;  %25781 = vmatpush3.msra.mxu1 %v33327_v32  ;;  %v33334_v11 = vld [vmem:[#allocation150_spill] sm:$0xff]  ;;  %v33337_v32 = vld [vmem:[#allocation152_spill] sm:$0xff] }
 0x731   :  { %v9352_v51 = vmul.f32 %v26786_v25, %v29791_v49  ;;  %v30065_v55 = vpop.permute.xlu0 %12804  ;;  %25777 = vmatprep.mubr.msk.f32.mxu0 %vm27176_vm2, %v33087_v44  ;;  %25782 = vmatprep.mubr.msk.f32.mxu1 %vm27176_vm2, %v33087_v44  ;;  %v30071_v57 = vpop.permute.xlu1 %12882  ;;  %v33336_v15 = vld [vmem:[#allocation106_spill] sm:$0xff] }
 0x732   :  { %25785 = vmatprep.subr.mxu0 %v33087_v44  ;;  %25790 = vmatprep.subr.mxu1 %v33087_v44 }
 0x733   :  { %v26788_v43 = vpop.eup %26787  ;;  %25778 = vmatmul.mubr.msk.f32.vlgmr.msra.gmra.mxu0 %vm1134_vm3, %v9351_v39  ;;  %25783 = vmatmul.mubr.msk.f32.vlgmr.msra.gmra.mxu1 %vm1134_vm3, %v9352_v51 }
 0x734   :  { %v26790_v49 = vpop.eup %26789  ;;  %v9353_v29 = vmul.f32 %v26788_v43, %v29793_v47  ;;  %25786 = vmatpush3.msra.mxu0 %v33328_v61  ;;  %25791 = vmatpush3.msra.mxu1 %v33329_v56  ;;  %v33340_v61 = vld [vmem:[#allocation121_spill] sm:$0xff]  ;;  %v33341_v56 = vld [vmem:[#allocation154_spill] sm:$0xff] }
 0x735   :  { %v9354_v19 = vmul.f32 %v26790_v49, %v29799_v23  ;;  %v30081_v45 = vpop.permute.xlu0 %12962  ;;  %25787 = vmatprep.mubr.msk.f32.mxu0 %vm27176_vm2, %v33087_v44  ;;  %25792 = vmatprep.mubr.msk.f32.mxu1 %vm27176_vm2, %v33087_v44  ;;  %v30087_v0 = vpop.permute.xlu1 %13040  ;;  %v33338_v49 = vld [vmem:[#allocation111_spill] sm:$0xff] }
 0x736   :  { %25795 = vmatprep.subr.mxu0 %v33087_v44  ;;  %25800 = vmatprep.subr.mxu1 %v33087_v44 }
 0x737   :  { %v26792_v47 = vpop.eup %26791  ;;  %25788 = vmatmul.mubr.msk.f32.vlgmr.msra.gmra.mxu0 %vm1134_vm3, %v9353_v29  ;;  %25793 = vmatmul.mubr.msk.f32.vlgmr.msra.gmra.mxu1 %vm1134_vm3, %v9354_v19  ;;  %v33339_v29 = vld [vmem:[#allocation153_spill] sm:$0xff] }
 0x738   :  { %v26794_v23 = vpop.eup %26793  ;;  %v9355_v2 = vmul.f32 %v26792_v47, %v29805_v12  ;;  %25796 = vmatpush3.msra.mxu0 %v33330_v4  ;;  %25801 = vmatpush3.msra.mxu1 %v33331_v5  ;;  %v33344_v4 = vld [vmem:[#allocation128_spill] sm:$0xff] }
 0x739   :  { %v9356_v14 = vmul.f32 %v26794_v23, %v29807_v54  ;;  %v30097_v21 = vpop.permute.xlu0 %12960  ;;  %25797 = vmatprep.mubr.msk.f32.mxu0 %vm27176_vm2, %v33087_v44  ;;  %25802 = vmatprep.mubr.msk.f32.mxu1 %vm27176_vm2, %v33087_v44  ;;  %v30103_v53 = vpop.permute.xlu1 %13038  ;;  %v33342_v23 = vld [vmem:[#allocation124_spill] sm:$0xff] }
 0x73a   :  { %v30105_v9 = vpop.f32.mrf.mxu0  ;;  %25805 = vmatprep.subr.mxu0 %v33087_v44  ;;  %25810 = vmatprep.subr.mxu1 %v33087_v44  ;;  %v33345_v5 = vld [vmem:[#allocation156_spill] sm:$0xff] }
 0x73b   :  { %33332 = vst [vmem:[#allocation120_spill] sm:$0xff] %v30105_v9  ;;  %v26796_v12 = vpop.eup %26795  ;;  %25798 = vmatmul.mubr.msk.f32.vlgmr.msra.gmra.mxu0 %vm1134_vm3, %v9355_v2  ;;  %25803 = vmatmul.mubr.msk.f32.vlgmr.msra.gmra.mxu1 %vm1134_vm3, %v9356_v14  ;;  %v33343_v2 = vld [vmem:[#allocation155_spill] sm:$0xff] }
 0x73c   :  { %v9357_v54 = vmul.f32 %v26796_v12, %v29813_v7  ;;  %v25659_v48 = vpop.f32.mrf.mxu0  ;;  %25806 = vmatpush3.msra.mxu0 %v33333_v20  ;;  %25811 = vmatpush3.xpose.msk.msra.mxu1 %vm1134_vm3, %v33334_v11  ;;  %v33335_v7 = vld [vmem:[#allocation151_spill] sm:$0xff]  ;;  %v33348_v20 = vld [vmem:[#allocation133_spill] sm:$0xff]  ;;  %v33349_v11 = vld [vmem:[#allocation158_spill] sm:$0xff] }
 0x73d   :  { %v30115_v25 = vpop.permute.xlu0 %13118  ;;  %25807 = vmatprep.mubr.msk.f32.mxu0 %vm27176_vm2, %v33087_v44  ;;  %25812 = vmatprep.mubr.msk.f32.mxu1 %vm27176_vm2, %v33087_v44  ;;  %v30121_v39 = vpop.permute.xlu1 %13196  ;;  %v33347_v48 = vld [vmem:[#allocation157_spill] sm:$0xff] }
 0x73e   :  { %25815 = vmatprep.subr.mxu0 %v33087_v44  ;;  %25820 = vmatprep.subr.mxu1 %v33087_v44 }
 0x73f   :  { %25808 = vmatmul.mubr.msk.f32.vlgmr.msra.gmra.mxu0 %vm1134_vm3, %v9357_v54  ;;  %25813 = vmatmul.mubr.msk.f32.vlgmr.msra.gmra.mxu1 %vm1134_vm3, %v33335_v7  ;;  %v33346_v54 = vld [vmem:[#allocation131_spill] sm:$0xff] }
 0x740   :  { %25816 = vmatpush3.xpose.msk.msra.mxu0 %vm1134_vm3, %v33336_v15  ;;  %25821 = vmatpush3.xpose.msk.msra.mxu1 %vm1134_vm3, %v33337_v32  ;;  %v33350_v32 = vld [vmem:[#allocation135_spill] sm:$0xff] }
 0x741   :  { %v30132_v51 = vpop.permute.xlu0 %13116  ;;  %25817 = vmatprep.mubr.msk.f32.mxu0 %vm27176_vm2, %v33087_v44  ;;  %25822 = vmatprep.mubr.msk.f32.mxu1 %vm27176_vm2, %v33087_v44  ;;  %v30138_v43 = vpop.permute.xlu1 %13194 }
 0x742   :  { %25825 = vmatprep.subr.mxu0 %v33087_v44  ;;  %25830 = vmatprep.subr.mxu1 %v33087_v44 }
 0x743   :  { %25818 = vmatmul.mubr.msk.f32.vlgmr.msra.gmra.mxu0 %vm1134_vm3, %v33338_v49  ;;  %25823 = vmatmul.mubr.msk.f32.vlgmr.msra.gmra.mxu1 %vm1134_vm3, %v33339_v29  ;;  %v33351_v49 = vld [vmem:[#allocation159_spill] sm:$0xff]  ;;  %v33352_v29 = vld [vmem:[#allocation137_spill] sm:$0xff] }
 0x744   :  { %25826 = vmatpush3.xpose.msk.msra.mxu0 %vm1134_vm3, %v33340_v61  ;;  %25831 = vmatpush3.xpose.msk.msra.mxu1 %vm1134_vm3, %v33341_v56  ;;  %v33353_v61 = vld [vmem:[#allocation160_spill] sm:$0xff] }
 0x745   :  { %v30150_v19 = vpop.permute.xlu0 %13274  ;;  %25827 = vmatprep.mubr.msk.f32.mxu0 %vm27176_vm2, %v33087_v44  ;;  %25832 = vmatprep.mubr.msk.f32.mxu1 %vm27176_vm2, %v33087_v44  ;;  %v30156_v47 = vpop.permute.xlu1 %13352 }
 0x746   :  { %25835 = vmatprep.subr.mxu0 %v33087_v44  ;;  %25840 = vmatprep.subr.mxu1 %v33087_v44 }
 0x747   :  { %25828 = vmatmul.mubr.msk.f32.vlgmr.msra.gmra.mxu0 %vm1134_vm3, %v33342_v23  ;;  %25833 = vmatmul.mubr.msk.f32.vlgmr.msra.gmra.mxu1 %vm1134_vm3, %v33343_v2  ;;  %v33354_v2 = vld [vmem:[#allocation139_spill] sm:$0xff] }
 0x748   :  { %25836 = vmatpush3.xpose.msk.msra.mxu0 %vm1134_vm3, %v33344_v4  ;;  %25841 = vmatpush3.xpose.msk.msra.mxu1 %vm1134_vm3, %v33345_v5  ;;  %v33355_v4 = vld [vmem:[#allocation161_spill] sm:$0xff] }
 0x749   :  { %v30168_v14 = vpop.permute.xlu0 %13272  ;;  %25837 = vmatprep.mubr.msk.f32.mxu0 %vm27176_vm2, %v33087_v44  ;;  %25842 = vmatprep.mubr.msk.f32.mxu1 %vm27176_vm2, %v33087_v44  ;;  %v30174_v12 = vpop.permute.xlu1 %13350  ;;  %v33356_v5 = vld [vmem:[#allocation141_spill] sm:$0xff] }
 0x74a   :  { %25845 = vmatprep.subr.mxu0 %v33087_v44  ;;  %25850 = vmatprep.subr.mxu1 %v33087_v44 }
 0x74b   :  { %25838 = vmatmul.mubr.msk.f32.vlgmr.msra.gmra.mxu0 %vm1134_vm3, %v33346_v54  ;;  %25843 = vmatmul.mubr.msk.f32.vlgmr.msra.gmra.mxu1 %vm1134_vm3, %v33347_v48  ;;  %v33357_v54 = vld [vmem:[#allocation162_spill] sm:$0xff] }
 0x74c   :  { %25846 = vmatpush3.xpose.msk.msra.mxu0 %vm1134_vm3, %v33348_v20  ;;  %25851 = vmatpush3.xpose.msk.msra.mxu1 %vm1134_vm3, %v33349_v11  ;;  %v33358_v11 = vld [vmem:[#allocation143_spill] sm:$0xff] }
 0x74d   :  { %v30186_v7 = vpop.permute.xlu0 %13430  ;;  %25847 = vmatprep.mubr.msk.f32.mxu0 %vm27176_vm2, %v33087_v44  ;;  %25852 = vmatprep.mubr.msk.f32.mxu1 %vm27176_vm2, %v33087_v44  ;;  %v30192_v15 = vpop.permute.xlu1 %13508 }
 0x74e   :  { %25855 = vmatprep.subr.mxu0 %v33087_v44  ;;  %25860 = vmatprep.subr.mxu1 %v33087_v44 }
 0x74f   :  { %25848 = vmatmul.mubr.msk.f32.vlgmr.msra.gmra.mxu0 %vm1134_vm3, %v33350_v32  ;;  %25853 = vmatmul.mubr.msk.f32.vlgmr.msra.gmra.mxu1 %vm1134_vm3, %v33351_v49  ;;  %v33359_v32 = vld [vmem:[#allocation167_spill] sm:$0xff]  ;;  %v33360_v49 = vld [vmem:[#allocation145_spill] sm:$0xff] }
 0x750   :  { %25856 = vmatpush3.xpose.msk.msra.mxu0 %vm1134_vm3, %v33352_v29  ;;  %25861 = vmatpush3.xpose.msk.msra.mxu1 %vm1134_vm3, %v33353_v61 }
 0x751   :  { %v30204_v56 = vpop.permute.xlu0 %13428  ;;  %25857 = vmatprep.mubr.msk.f32.mxu0 %vm27176_vm2, %v33087_v44  ;;  %25862 = vmatprep.mubr.msk.f32.mxu1 %vm27176_vm2, %v33087_v44  ;;  %v30210_v23 = vpop.permute.xlu1 %13506 }
 0x752   :  { %25865 = vmatprep.subr.mxu0 %v33087_v44  ;;  %25870 = vmatprep.subr.mxu1 %v33087_v44 }
 0x753   :  { %25858 = vmatmul.mubr.msk.f32.vlgmr.msra.gmra.mxu0 %vm1134_vm3, %v33354_v2  ;;  %25863 = vmatmul.mubr.msk.f32.vlgmr.msra.gmra.mxu1 %vm1134_vm3, %v33355_v4 }
 0x754   :  { %25866 = vmatpush3.xpose.msk.msra.mxu0 %vm1134_vm3, %v33356_v5  ;;  %25871 = vmatpush3.xpose.msk.msra.mxu1 %vm1134_vm3, %v33357_v54 }
 0x755   :  { %v13587_v48 = vpop.permute.xlu0 %13586  ;;  %25867 = vmatprep.mubr.msk.f32.mxu0 %vm27176_vm2, %v33087_v44  ;;  %25872 = vmatprep.mubr.msk.f32.mxu1 %vm27176_vm2, %v33087_v44  ;;  %v13665_v20 = vpop.permute.xlu1 %13664 }
 0x756   :  { %25875 = vmatprep.subr.mxu0 %v33087_v44  ;;  %25880 = vmatprep.subr.mxu1 %v33087_v44 }
 0x757   :  { %25868 = vmatmul.mubr.msk.f32.vlgmr.msra.gmra.mxu0 %vm1134_vm3, %v33358_v11  ;;  %25873 = vmatmul.mubr.msk.f32.vlgmr.msra.gmra.mxu1 %vm1134_vm3, %v33359_v32 }
 0x758   :  { %25876 = vmatpush3.xpose.msk.msra.mxu0 %vm1134_vm3, %v33360_v49  ;;  %25881 = vmatpush3.xpose.msk.msra.mxu1 %vm1134_vm3, %v30055_v13 }
 0x759   :  { %v13585_v29 = vpop.permute.xlu0 %13584  ;;  %25877 = vmatprep.mubr.msk.f32.mxu0 %vm27176_vm2, %v33087_v44  ;;  %25882 = vmatprep.mubr.msk.f32.mxu1 %vm27176_vm2, %v33087_v44  ;;  %v13663_v61 = vpop.permute.xlu1 %13662 }
 0x75a   :  { %25885 = vmatprep.subr.mxu0 %v33087_v44  ;;  %25890 = vmatprep.subr.mxu1 %v33087_v44 }
 0x75b   :  { %25878 = vmatmul.mubr.msk.f32.vlgmr.msra.gmra.mxu0 %vm1134_vm3, %v30065_v55  ;;  %25883 = vmatmul.mubr.msk.f32.vlgmr.msra.gmra.mxu1 %vm1134_vm3, %v30071_v57 }
 0x75c   :  { %25886 = vmatpush3.xpose.msk.msra.mxu0 %vm1134_vm3, %v30081_v45  ;;  %25891 = vmatpush3.xpose.msk.msra.mxu1 %vm1134_vm3, %v30087_v0 }
 0x75d   :  { %v13743_v13 = vpop.permute.xlu0 %13742  ;;  %25887 = vmatprep.mubr.msk.f32.mxu0 %vm27176_vm2, %v33087_v44  ;;  %25892 = vmatprep.mubr.msk.f32.mxu1 %vm27176_vm2, %v33087_v44  ;;  %v13821_v2 = vpop.permute.xlu1 %13820 }
 0x75e   :  { %25895 = vmatprep.subr.mxu0 %v33087_v44  ;;  %25900 = vmatprep.subr.mxu1 %v33087_v44 }
 0x75f   :  { %25888 = vmatmul.mubr.msk.f32.vlgmr.msra.gmra.mxu0 %vm1134_vm3, %v30097_v21  ;;  %25893 = vmatmul.mubr.msk.f32.vlgmr.msra.gmra.mxu1 %vm1134_vm3, %v30103_v53 }
 0x760   :  { %25896 = vmatpush3.xpose.msk.msra.mxu0 %vm1134_vm3, %v30115_v25  ;;  %25901 = vmatpush3.xpose.msk.msra.mxu1 %vm1134_vm3, %v30121_v39 }
 0x761   :  { %v13741_v55 = vpop.permute.xlu0 %13740  ;;  %25897 = vmatprep.mubr.msk.f32.mxu0 %vm27176_vm2, %v33087_v44  ;;  %25902 = vmatprep.mubr.msk.f32.mxu1 %vm27176_vm2, %v33087_v44  ;;  %v13819_v57 = vpop.permute.xlu1 %13818 }
 0x762   :  { %25905 = vmatprep.subr.mxu0 %v33087_v44  ;;  %25910 = vmatprep.subr.mxu1 %v33087_v44 }
 0x763   :  { %25898 = vmatmul.mubr.msk.f32.vlgmr.msra.gmra.mxu0 %vm1134_vm3, %v30132_v51  ;;  %25903 = vmatmul.mubr.msk.f32.vlgmr.msra.gmra.mxu1 %vm1134_vm3, %v30138_v43 }
 0x764   :  { %25906 = vmatpush3.xpose.msk.msra.mxu0 %vm1134_vm3, %v30150_v19  ;;  %25911 = vmatpush3.xpose.msk.msra.mxu1 %vm1134_vm3, %v30156_v47 }
 0x765   :  { %v13899_v45 = vpop.permute.xlu0 %13898  ;;  %25907 = vmatprep.mubr.msk.f32.mxu0 %vm27176_vm2, %v33087_v44  ;;  %25912 = vmatprep.mubr.msk.f32.mxu1 %vm27176_vm2, %v33087_v44  ;;  %v13977_v0 = vpop.permute.xlu1 %13976 }
 0x766   :  { %25915 = vmatprep.subr.mxu0 %v33087_v44  ;;  %25920 = vmatprep.subr.mxu1 %v33087_v44 }
 0x767   :  { %25908 = vmatmul.mubr.msk.f32.vlgmr.msra.gmra.mxu0 %vm1134_vm3, %v30168_v14  ;;  %25913 = vmatmul.mubr.msk.f32.vlgmr.msra.gmra.mxu1 %vm1134_vm3, %v30174_v12 }
 0x768   :  { %25916 = vmatpush3.xpose.msk.msra.mxu0 %vm1134_vm3, %v30186_v7  ;;  %25921 = vmatpush3.xpose.msk.msra.mxu1 %vm1134_vm3, %v30192_v15 }
 0x769   :  { %v13897_v21 = vpop.permute.xlu0 %13896  ;;  %25917 = vmatprep.mubr.msk.f32.mxu0 %vm27176_vm2, %v33087_v44  ;;  %25922 = vmatprep.mubr.msk.f32.mxu1 %vm27176_vm2, %v33087_v44  ;;  %v13975_v53 = vpop.permute.xlu1 %13974 }
 0x76a   :  { %25925 = vmatprep.subr.mxu0 %v33087_v44  ;;  %25930 = vmatprep.subr.mxu1 %v33087_v44 }
 0x76b   :  { %25918 = vmatmul.mubr.msk.f32.vlgmr.msra.gmra.mxu0 %vm1134_vm3, %v30204_v56  ;;  %25923 = vmatmul.mubr.msk.f32.vlgmr.msra.gmra.mxu1 %vm1134_vm3, %v30210_v23 }
 0x76c   :  { %25926 = vmatpush3.xpose.msk.msra.mxu0 %vm1134_vm3, %v13587_v48  ;;  %25931 = vmatpush3.xpose.msk.msra.mxu1 %vm1134_vm3, %v13665_v20 }
 0x76d   :  { %v14055_v25 = vpop.permute.xlu0 %14054  ;;  %25927 = vmatprep.mubr.msk.f32.mxu0 %vm27176_vm2, %v33087_v44  ;;  %25932 = vmatprep.mubr.msk.f32.mxu1 %vm27176_vm2, %v33087_v44  ;;  %v14133_v39 = vpop.permute.xlu1 %14132 }
 0x76e   :  { %25935 = vmatprep.subr.mxu0 %v33087_v44  ;;  %25940 = vmatprep.subr.mxu1 %v33087_v44 }
 0x76f   :  { %25928 = vmatmul.mubr.msk.f32.vlgmr.msra.gmra.mxu0 %vm1134_vm3, %v13585_v29  ;;  %25933 = vmatmul.mubr.msk.f32.vlgmr.msra.gmra.mxu1 %vm1134_vm3, %v13663_v61 }
 0x770   :  { %25936 = vmatpush3.xpose.msk.msra.mxu0 %vm1134_vm3, %v13743_v13  ;;  %25941 = vmatpush3.xpose.msk.msra.mxu1 %vm1134_vm3, %v13821_v2 }
 0x771   :  { %v14053_v51 = vpop.permute.xlu0 %14052  ;;  %25937 = vmatprep.mubr.msk.f32.mxu0 %vm27176_vm2, %v33087_v44  ;;  %25942 = vmatprep.mubr.msk.f32.mxu1 %vm27176_vm2, %v33087_v44  ;;  %v14131_v43 = vpop.permute.xlu1 %14130 }
 0x772   :  { %25945 = vmatprep.subr.mxu0 %v33087_v44  ;;  %25950 = vmatprep.subr.mxu1 %v33087_v44 }
 0x773   :  { %25938 = vmatmul.mubr.msk.f32.vlgmr.msra.gmra.mxu0 %vm1134_vm3, %v13741_v55  ;;  %25943 = vmatmul.mubr.msk.f32.vlgmr.msra.gmra.mxu1 %vm1134_vm3, %v13819_v57 }
 0x774   :  { %25946 = vmatpush3.xpose.msk.msra.mxu0 %vm1134_vm3, %v13899_v45  ;;  %25951 = vmatpush3.xpose.msk.msra.mxu1 %vm1134_vm3, %v13977_v0 }
 0x775   :  { %v14211_v19 = vpop.permute.xlu0 %14210  ;;  %25947 = vmatprep.mubr.msk.f32.mxu0 %vm27176_vm2, %v33087_v44  ;;  %25952 = vmatprep.mubr.msk.f32.mxu1 %vm27176_vm2, %v33087_v44  ;;  %v14703_v14 = vpop.permute.xlu1 %14702 }
 0x776   :  { %25955 = vmatprep.subr.mxu0 %v33087_v44  ;;  %25960 = vmatprep.subr.mxu1 %v33087_v44 }
 0x777   :  { %25948 = vmatmul.mubr.msk.f32.vlgmr.msra.gmra.mxu0 %vm1134_vm3, %v13897_v21  ;;  %25953 = vmatmul.mubr.msk.f32.vlgmr.msra.gmra.mxu1 %vm1134_vm3, %v13975_v53 }
 0x778   :  { %25956 = vmatpush3.xpose.msk.msra.mxu0 %vm1134_vm3, %v14055_v25  ;;  %25961 = vmatpush3.xpose.msk.msra.mxu1 %vm1134_vm3, %v14133_v39 }
 0x779   :  { %v14209_v47 = vpop.permute.xlu0 %14208  ;;  %25957 = vmatprep.mubr.msk.f32.mxu0 %vm27176_vm2, %v33087_v44  ;;  %25962 = vmatprep.mubr.msk.f32.mxu1 %vm27176_vm2, %v33087_v44 }
 0x77a   :  { %25965 = vmatprep.subr.mxu0 %v33087_v44  ;;  %25970 = vmatprep.subr.mxu1 %v33087_v44 }
 0x77b   :  { %25958 = vmatmul.mubr.msk.f32.vlgmr.msra.gmra.mxu0 %vm1134_vm3, %v14053_v51  ;;  %25963 = vmatmul.mubr.msk.f32.vlgmr.msra.gmra.mxu1 %vm1134_vm3, %v14131_v43 }
 0x77c   :  { %25966 = vmatpush3.xpose.msk.msra.mxu0 %vm1134_vm3, %v14211_v19  ;;  %25971 = vmatpush3.msra.mxu1 %v14703_v14 }
 0x77d   :  { %v14779_v12 = vpop.permute.xlu0 %14778  ;;  %25967 = vmatprep.mubr.msk.f32.mxu0 %vm27176_vm2, %v33087_v44  ;;  %25975 = vmatprep.subr.mxu0 %v33087_v44 }
 0x77e   :  { %25972 = vmatprep.mubr.msk.f32.mxu1 %vm27176_vm2, %v33087_v44  ;;  %25980 = vmatprep.subr.mxu1 %v33087_v44 }
 0x77f   :  { %25968 = vmatmul.mubr.msk.f32.vlgmr.msra.gmra.mxu0 %vm1134_vm3, %v14209_v47 }
 0x780   :  { %25976 = vmatpush3.msra.mxu0 %v14779_v12  ;;  %25977 = vmatprep.mubr.msk.f32.mxu0 %vm27176_vm2, %v33087_v44 }
 0x781   :  { %25985 = vmatprep.subr.mxu0 %v33087_v44 }
 0x791   :  { %v30353_v7 = vpop.f32.mrf.mxu1 }
 0x792   :  { %33361 = vst [vmem:[#allocation163_spill] sm:$0xff] %v30353_v7 }
 0x793   :  { %v25654_v15 = vpop.f32.mrf.mxu1 }
 0x795   :  { %v30355_v56 = vpop.f32.mrf.mxu1 }
 0x796   :  { %33362 = vst [vmem:[#allocation97_spill] sm:$0xff] %v30355_v56 }
 0x797   :  { %v25664_v23 = vpop.f32.mrf.mxu1 }
 0x799   :  { %v30357_v4 = vpop.f32.mrf.mxu0 }
 0x79a   :  { %33363 = vst [vmem:[#allocation164_spill] sm:$0xff] %v30357_v4 }
 0x79b   :  { %v25669_v5 = vpop.f32.mrf.mxu0 }
 0x79d   :  { %v30359_v54 = vpop.f32.mrf.mxu0 }
 0x79e   :  { %33364 = vst [vmem:[#allocation88_spill] sm:$0xff] %v30359_v54 }
 0x79f   :  { %v25679_v48 = vpop.f32.mrf.mxu0 }
 0x7a1   :  { %v30361_v20 = vpop.f32.mrf.mxu0 }
 0x7a2   :  { %33365 = vst [vmem:[#allocation165_spill] sm:$0xff] %v30361_v20 }
 0x7a3   :  { %v25689_v11 = vpop.f32.mrf.mxu0 }
 0x7a5   :  { %v30363_v32 = vpop.f32.mrf.mxu0 }
 0x7a6   :  { %33366 = vst [vmem:[#allocation92_spill] sm:$0xff] %v30363_v32 }
 0x7a7   :  { %v25699_v49 = vpop.f32.mrf.mxu0 }
 0x7a9   :  { %v30365_v29 = vpop.f32.mrf.mxu0 }
 0x7aa   :  { %33367 = vst [vmem:[#allocation166_spill] sm:$0xff] %v30365_v29 }
 0x7ab   :  { %v25709_v61 = vpop.f32.mrf.mxu0 }
 0x7ad   :  { %v30367_v13 = vpop.f32.mrf.mxu0 }
 0x7ae   :  { %33368 = vst [vmem:[#allocation96_spill] sm:$0xff] %v30367_v13 }
 0x7af   :  { %v25719_v2 = vpop.f32.mrf.mxu0 }
 0x7c6   :  { %v30369_v55 = vpop.f32.mrf.mxu1 }
 0x7c7   :  { %33369 = vst [vmem:[#allocation50_spill] sm:$0xff] %v30369_v55 }
 0x7c8   :  { %v25674_v57 = vpop.f32.mrf.mxu1 }
 0x7ca   :  { %v30371_v45 = vpop.f32.mrf.mxu1 }
 0x7cb   :  { %33370 = vst [vmem:[#allocation109_spill] sm:$0xff] %v30371_v45 }
 0x7cc   :  { %v25684_v0 = vpop.f32.mrf.mxu1 }
 0x7ce   :  { %v30373_v21 = vpop.f32.mrf.mxu1 }
 0x7cf   :  { %33371 = vst [vmem:[#allocation113_spill] sm:$0xff] %v30373_v21 }
 0x7d0   :  { %v25694_v53 = vpop.f32.mrf.mxu1 }
 0x7d2   :  { %v30375_v25 = vpop.f32.mrf.mxu1 }
 0x7d3   :  { %33372 = vst [vmem:[#allocation122_spill] sm:$0xff] %v30375_v25 }
 0x7d4   :  { %v25704_v39 = vpop.f32.mrf.mxu1 }
 0x7d6   :  { %v30377_v51 = vpop.f32.mrf.mxu1 }
 0x7d7   :  { %33373 = vst [vmem:[#allocation125_spill] sm:$0xff] %v30377_v51 }
 0x7d8   :  { %v25714_v43 = vpop.f32.mrf.mxu1 }
 0x7da   :  { %v30379_v19 = vpop.f32.mrf.mxu1 }
 0x7db   :  { %33374 = vst [vmem:[#allocation129_spill] sm:$0xff] %v30379_v19  ;;  %v30381_v47 = vpop.f32.mrf.mxu0 }
 0x7dc   :  { %33375 = vst [vmem:[#allocation132_spill] sm:$0xff] %v30381_v47  ;;  %v25724_v14 = vpop.f32.mrf.mxu1 }
 0x7dd   :  { %v25729_v12 = vpop.f32.mrf.mxu0 }
 0x7de   :  { %v30383_v15 = vpop.f32.mrf.mxu1 }
 0x7df   :  { %33376 = vst [vmem:[#allocation119_spill] sm:$0xff] %v30383_v15 }
 0x7e0   :  { %v25734_v23 = vpop.f32.mrf.mxu1 }
 0x7e2   :  { %v30385_v5 = vpop.f32.mrf.mxu0 }
 0x7e3   :  { %33377 = vst [vmem:[#allocation134_spill] sm:$0xff] %v30385_v5  ;;  %v30387_v48 = vpop.f32.mrf.mxu1 }
 0x7e4   :  { %33378 = vst [vmem:[#allocation136_spill] sm:$0xff] %v30387_v48  ;;  %v25739_v11 = vpop.f32.mrf.mxu0 }
 0x7e5   :  { %v25744_v49 = vpop.f32.mrf.mxu1 }
 0x7e7   :  { %v30389_v61 = vpop.f32.mrf.mxu0  ;;  %v30391_v2 = vpop.f32.mrf.mxu1 }
 0x7e8   :  { %33379 = vst [vmem:[#allocation98_spill] sm:$0xff] %v30389_v61  ;;  %33380 = vst [vmem:[#allocation138_spill] sm:$0xff] %v30391_v2 }
 0x7e9   :  { %v25749_v57 = vpop.f32.mrf.mxu0  ;;  %v25754_v0 = vpop.f32.mrf.mxu1 }
 0x7eb   :  { %v30393_v53 = vpop.f32.mrf.mxu0  ;;  %v30395_v39 = vpop.f32.mrf.mxu1 }
 0x7ec   :  { %33381 = vst [vmem:[#allocation140_spill] sm:$0xff] %v30393_v53  ;;  %33382 = vst [vmem:[#allocation142_spill] sm:$0xff] %v30395_v39 }
 0x7ed   :  { %v25759_v43 = vpop.f32.mrf.mxu0  ;;  %v25764_v14 = vpop.f32.mrf.mxu1 }
 0x7ef   :  { %v30397_v12 = vpop.f32.mrf.mxu0  ;;  %v30399_v23 = vpop.f32.mrf.mxu1 }
 0x7f0   :  { %33383 = vst [vmem:[#allocation144_spill] sm:$0xff] %v30397_v12  ;;  %33384 = vst [vmem:[#allocation146_spill] sm:$0xff] %v30399_v23 }
 0x7f1   :  { %v25769_v13 = vpop.f32.mrf.mxu0  ;;  %v25774_v51 = vpop.f32.mrf.mxu1 }
 0x7f3   :  { %v30401_v11 = vpop.f32.mrf.mxu0  ;;  %v30403_v49 = vpop.f32.mrf.mxu1 }
 0x7f4   :  { %33385 = vst [vmem:[#allocation147_spill] sm:$0xff] %v30401_v11  ;;  %33386 = vst [vmem:[#allocation100_spill] sm:$0xff] %v30403_v49 }
 0x7f5   :  { %v25779_v29 = vpop.f32.mrf.mxu0  ;;  %v25784_v25 = vpop.f32.mrf.mxu1 }
 0x7f7   :  { %v30405_v57 = vpop.f32.mrf.mxu0  ;;  %v30407_v0 = vpop.f32.mrf.mxu1 }
 0x7f8   :  { %33387 = vst [vmem:[#allocation148_spill] sm:$0xff] %v30405_v57  ;;  %33388 = vst [vmem:[#allocation102_spill] sm:$0xff] %v30407_v0 }
 0x7f9   :  { %v25789_v32 = vpop.f32.mrf.mxu0  ;;  %v25794_v21 = vpop.f32.mrf.mxu1 }
 0x7fb   :  { %v30409_v43 = vpop.f32.mrf.mxu0  ;;  %v30411_v14 = vpop.f32.mrf.mxu1 }
 0x7fc   :  { %33389 = vst [vmem:[#allocation149_spill] sm:$0xff] %v30409_v43  ;;  %33390 = vst [vmem:[#allocation104_spill] sm:$0xff] %v30411_v14 }
 0x7fd   :  { %v25799_v12 = vpop.f32.mrf.mxu0  ;;  %v25804_v23 = vpop.f32.mrf.mxu1 }
 0x7ff   :  { %v30413_v13 = vpop.f32.mrf.mxu0  ;;  %v11864_v51 = vpop.f32.mrf.mxu1 }
 0x800   :  { %33391 = vst [vmem:[#allocation150_spill] sm:$0xff] %v30413_v13  ;;  %v14286_v11 = vmul.f32 0.35355338, %v11864_v51 }
 0x801   :  { %v25809_v20 = vpop.f32.mrf.mxu0  ;;  %v25814_v49 = vpop.f32.mrf.mxu1 }
 0x802   :  { %v30417_v25 = vsel %vm27238_vm0, %v14286_v11, -4.2949673e+09 }
 0x803   :  { %v11942_v57 = vpop.f32.mrf.mxu0  ;;  %v12020_v0 = vpop.f32.mrf.mxu1  ;;  %v14350_v32 = vsel %vm1134_vm3, %v30417_v25, -inf }
 0x804   :  { %v14287_v21 = vmul.f32 0.35355338, %v11942_v57  ;;  %v14288_v43 = vmul.f32 0.35355338, %v12020_v0  ;;  %14351 = vmax.xlane.f32.xlu1 %v14350_v32 }
 0x805   :  { %v25819_v12 = vpop.f32.mrf.mxu0  ;;  %v25824_v23 = vpop.f32.mrf.mxu1 }
 0x806   :  { %v30423_v13 = vsel %vm27238_vm0, %v14287_v21, -4.2949673e+09  ;;  %v30429_v51 = vsel %vm27238_vm0, %v14288_v43, -4.2949673e+09 }
 0x807   :  { %v12098_v20 = vpop.f32.mrf.mxu0  ;;  %v12176_v49 = vpop.f32.mrf.mxu1  ;;  %v14353_v11 = vsel %vm1134_vm3, %v30423_v13, -inf  ;;  %v14356_v23 = vsel %vm1134_vm3, %v30429_v51, -inf }
 0x808   :  { %v14289_v14 = vmul.f32 0.35355338, %v12098_v20  ;;  %v14290_v45 = vmul.f32 0.35355338, %v12176_v49  ;;  %14354 = vmax.xlane.f32.xlu0 %v14353_v11 }
 0x809   :  { %v25829_v57 = vpop.f32.mrf.mxu0  ;;  %v25834_v0 = vpop.f32.mrf.mxu1 }
 0x80a   :  { %v30433_v32 = vsel %vm27238_vm0, %v14290_v45, -4.2949673e+09  ;;  %v30441_v43 = vsel %vm27238_vm0, %v14289_v14, -4.2949673e+09 }
 0x80b   :  { %v12254_v21 = vpop.f32.mrf.mxu0  ;;  %v12332_v12 = vpop.f32.mrf.mxu1  ;;  %v14362_v54 = vsel %vm1134_vm3, %v30433_v32, -inf  ;;  %v14359_v39 = vsel %vm1134_vm3, %v30441_v43, -inf }
 0x80c   :  { %v14291_v20 = vmul.f32 0.35355338, %v12254_v21  ;;  %v14292_v49 = vmul.f32 0.35355338, %v12332_v12  ;;  %14357 = vmax.xlane.f32.xlu0 %v14356_v23  ;;  %14363 = vmax.xlane.f32.xlu1 %v14362_v54 }
 0x80d   :  { %v25839_v11 = vpop.f32.mrf.mxu0  ;;  %v25844_v57 = vpop.f32.mrf.mxu1 }
 0x80e   :  { %v30445_v45 = vsel %vm27238_vm0, %v14292_v49, -4.2949673e+09  ;;  %v30453_v14 = vsel %vm27238_vm0, %v14291_v20, -4.2949673e+09 }
 0x80f   :  { %v12410_v0 = vpop.f32.mrf.mxu0  ;;  %v12488_v55 = vpop.f32.mrf.mxu1  ;;  %v14368_v53 = vsel %vm1134_vm3, %v30445_v45, -inf  ;;  %v14365_v2 = vsel %vm1134_vm3, %v30453_v14, -inf }
 0x810   :  { %v14293_v21 = vmul.f32 0.35355338, %v12410_v0  ;;  %v14294_v54 = vmul.f32 0.35355338, %v12488_v55  ;;  %14360 = vmax.xlane.f32.xlu0 %v14359_v39  ;;  %14369 = vmax.xlane.f32.xlu1 %v14368_v53 }
 0x811   :  { %v25849_v12 = vpop.f32.mrf.mxu0  ;;  %v25854_v23 = vpop.f32.mrf.mxu1 }
 0x812   :  { %v30457_v49 = vsel %vm27238_vm0, %v14294_v54, -4.2949673e+09  ;;  %v30465_v20 = vsel %vm27238_vm0, %v14293_v21, -4.2949673e+09 }
 0x813   :  { %v12566_v11 = vpop.f32.mrf.mxu0  ;;  %v12644_v57 = vpop.f32.mrf.mxu1  ;;  %v14374_v4 = vsel %vm1134_vm3, %v30457_v49, -inf  ;;  %v14371_v61 = vsel %vm1134_vm3, %v30465_v20, -inf }
 0x814   :  { %v14295_v55 = vmul.f32 0.35355338, %v12566_v11  ;;  %v14296_v53 = vmul.f32 0.35355338, %v12644_v57  ;;  %14366 = vmax.xlane.f32.xlu0 %v14365_v2  ;;  %14375 = vmax.xlane.f32.xlu1 %v14374_v4 }
 0x815   :  { %v25859_v39 = vpop.f32.mrf.mxu0  ;;  %v25864_v0 = vpop.f32.mrf.mxu1 }
 0x816   :  { %v30469_v54 = vsel %vm27238_vm0, %v14296_v53, -4.2949673e+09  ;;  %v30477_v21 = vsel %vm27238_vm0, %v14295_v55, -4.2949673e+09 }
 0x817   :  { %v12722_v12 = vpop.f32.mrf.mxu0  ;;  %v12800_v23 = vpop.f32.mrf.mxu1  ;;  %v14380_v56 = vsel %vm1134_vm3, %v30469_v54, -inf  ;;  %v14377_v48 = vsel %vm1134_vm3, %v30477_v21, -inf }
 0x818   :  { %v14297_v2 = vmul.f32 0.35355338, %v12722_v12  ;;  %v14298_v4 = vmul.f32 0.35355338, %v12800_v23  ;;  %14372 = vmax.xlane.f32.xlu0 %v14371_v61  ;;  %14381 = vmax.xlane.f32.xlu1 %v14380_v56 }
 0x819   :  { %v25869_v11 = vpop.f32.mrf.mxu0  ;;  %v25874_v57 = vpop.f32.mrf.mxu1 }
 0x81a   :  { %v30481_v53 = vsel %vm27238_vm0, %v14298_v4, -4.2949673e+09  ;;  %v30489_v55 = vsel %vm27238_vm0, %v14297_v2, -4.2949673e+09 }
 0x81b   :  { %v12878_v39 = vpop.f32.mrf.mxu0  ;;  %v12956_v0 = vpop.f32.mrf.mxu1  ;;  %v14386_v5 = vsel %vm1134_vm3, %v30481_v53, -inf  ;;  %v14383_v47 = vsel %vm1134_vm3, %v30489_v55, -inf }
 0x81c   :  { %v14299_v61 = vmul.f32 0.35355338, %v12878_v39  ;;  %v14300_v56 = vmul.f32 0.35355338, %v12956_v0  ;;  %14378 = vmax.xlane.f32.xlu0 %v14377_v48  ;;  %14387 = vmax.xlane.f32.xlu1 %v14386_v5 }
 0x81d   :  { %v25879_v12 = vpop.f32.mrf.mxu0  ;;  %v25884_v23 = vpop.f32.mrf.mxu1 }
 0x81e   :  { %v30493_v4 = vsel %vm27238_vm0, %v14300_v56, -4.2949673e+09  ;;  %v30501_v2 = vsel %vm27238_vm0, %v14299_v61, -4.2949673e+09 }
 0x81f   :  { %v13034_v11 = vpop.f32.mrf.mxu0  ;;  %v13112_v57 = vpop.f32.mrf.mxu1  ;;  %v14392_v9 = vsel %vm1134_vm3, %v30493_v4, -inf  ;;  %v14389_v7 = vsel %vm1134_vm3, %v30501_v2, -inf }
 0x820   :  { %v14301_v48 = vmul.f32 0.35355338, %v13034_v11  ;;  %v14302_v5 = vmul.f32 0.35355338, %v13112_v57  ;;  %14384 = vmax.xlane.f32.xlu0 %v14383_v47  ;;  %14393 = vmax.xlane.f32.xlu1 %v14392_v9 }
 0x821   :  { %v25889_v39 = vpop.f32.mrf.mxu0  ;;  %v25894_v0 = vpop.f32.mrf.mxu1 }
 0x822   :  { %v30505_v56 = vsel %vm27238_vm0, %v14302_v5, -4.2949673e+09  ;;  %v30513_v61 = vsel %vm27238_vm0, %v14301_v48, -4.2949673e+09 }
 0x823   :  { %v13190_v12 = vpop.f32.mrf.mxu0  ;;  %v13268_v23 = vpop.f32.mrf.mxu1  ;;  %v14398_v15 = vsel %vm1134_vm3, %v30505_v56, -inf  ;;  %v14395_v19 = vsel %vm1134_vm3, %v30513_v61, -inf }
 0x824   :  { %v14303_v47 = vmul.f32 0.35355338, %v13190_v12  ;;  %v14304_v9 = vmul.f32 0.35355338, %v13268_v23  ;;  %14390 = vmax.xlane.f32.xlu0 %v14389_v7  ;;  %14399 = vmax.xlane.f32.xlu1 %v14398_v15 }
 0x825   :  { %v25899_v11 = vpop.f32.mrf.mxu0  ;;  %v25904_v57 = vpop.f32.mrf.mxu1 }
 0x826   :  { %v30517_v5 = vsel %vm27238_vm0, %v14304_v9, -4.2949673e+09  ;;  %v30525_v48 = vsel %vm27238_vm0, %v14303_v47, -4.2949673e+09 }
 0x827   :  { %v13346_v39 = vpop.f32.mrf.mxu0  ;;  %v13424_v0 = vpop.f32.mrf.mxu1  ;;  %v14404_v36 = vsel %vm1134_vm3, %v30517_v5, -inf  ;;  %v14401_v50 = vsel %vm1134_vm3, %v30525_v48, -inf }
 0x828   :  { %v14305_v7 = vmul.f32 0.35355338, %v13346_v39  ;;  %v14306_v15 = vmul.f32 0.35355338, %v13424_v0  ;;  %14396 = vmax.xlane.f32.xlu0 %v14395_v19  ;;  %14405 = vmax.xlane.f32.xlu1 %v14404_v36 }
 0x829   :  { %v25909_v12 = vpop.f32.mrf.mxu0  ;;  %v25914_v23 = vpop.f32.mrf.mxu1 }
 0x82a   :  { %v30529_v9 = vsel %vm27238_vm0, %v14306_v15, -4.2949673e+09  ;;  %v30537_v47 = vsel %vm27238_vm0, %v14305_v7, -4.2949673e+09 }
 0x82b   :  { %v13502_v11 = vpop.f32.mrf.mxu0  ;;  %v13580_v57 = vpop.f32.mrf.mxu1  ;;  %v14410_v33 = vsel %vm1134_vm3, %v30529_v9, -inf  ;;  %v14407_v26 = vsel %vm1134_vm3, %v30537_v47, -inf }
 0x82c   :  { %v14307_v19 = vmul.f32 0.35355338, %v13502_v11  ;;  %v14308_v36 = vmul.f32 0.35355338, %v13580_v57  ;;  %14402 = vmax.xlane.f32.xlu0 %v14401_v50  ;;  %14411 = vmax.xlane.f32.xlu1 %v14410_v33 }
 0x82d   :  { %v25919_v39 = vpop.f32.mrf.mxu0  ;;  %v25924_v0 = vpop.f32.mrf.mxu1 }
 0x82e   :  { %v30541_v15 = vsel %vm27238_vm0, %v14308_v36, -4.2949673e+09  ;;  %v30549_v7 = vsel %vm27238_vm0, %v14307_v19, -4.2949673e+09 }
 0x82f   :  { %v13658_v12 = vpop.f32.mrf.mxu0  ;;  %v13736_v23 = vpop.f32.mrf.mxu1  ;;  %v14416_v1 = vsel %vm1134_vm3, %v30541_v15, -inf  ;;  %v14413_v59 = vsel %vm1134_vm3, %v30549_v7, -inf }
 0x830   :  { %v14309_v50 = vmul.f32 0.35355338, %v13658_v12  ;;  %v14310_v33 = vmul.f32 0.35355338, %v13736_v23  ;;  %14408 = vmax.xlane.f32.xlu0 %v14407_v26  ;;  %14417 = vmax.xlane.f32.xlu1 %v14416_v1 }
 0x831   :  { %v25929_v11 = vpop.f32.mrf.mxu0  ;;  %v25934_v57 = vpop.f32.mrf.mxu1 }
 0x832   :  { %v30553_v36 = vsel %vm27238_vm0, %v14310_v33, -4.2949673e+09  ;;  %v30561_v19 = vsel %vm27238_vm0, %v14309_v50, -4.2949673e+09 }
 0x833   :  { %v13814_v39 = vpop.f32.mrf.mxu0  ;;  %v13892_v0 = vpop.f32.mrf.mxu1  ;;  %v14422_v3 = vsel %vm1134_vm3, %v30553_v36, -inf  ;;  %v14419_v24 = vsel %vm1134_vm3, %v30561_v19, -inf }
 0x834   :  { %v14311_v26 = vmul.f32 0.35355338, %v13814_v39  ;;  %v14312_v1 = vmul.f32 0.35355338, %v13892_v0  ;;  %14414 = vmax.xlane.f32.xlu0 %v14413_v59  ;;  %14423 = vmax.xlane.f32.xlu1 %v14422_v3 }
 0x835   :  { %v25939_v12 = vpop.f32.mrf.mxu0  ;;  %v25944_v23 = vpop.f32.mrf.mxu1 }
 0x836   :  { %v30565_v33 = vsel %vm27238_vm0, %v14312_v1, -4.2949673e+09  ;;  %v30573_v50 = vsel %vm27238_vm0, %v14311_v26, -4.2949673e+09 }
 0x837   :  { %v13970_v11 = vpop.f32.mrf.mxu0  ;;  %v14048_v57 = vpop.f32.mrf.mxu1  ;;  %v14428_v34 = vsel %vm1134_vm3, %v30565_v33, -inf  ;;  %v14425_v18 = vsel %vm1134_vm3, %v30573_v50, -inf }
 0x838   :  { %v14313_v59 = vmul.f32 0.35355338, %v13970_v11  ;;  %v14314_v3 = vmul.f32 0.35355338, %v14048_v57  ;;  %14420 = vmax.xlane.f32.xlu0 %v14419_v24  ;;  %14429 = vmax.xlane.f32.xlu1 %v14428_v34 }
 0x839   :  { %v25949_v39 = vpop.f32.mrf.mxu0  ;;  %v25954_v0 = vpop.f32.mrf.mxu1 }
 0x83a   :  { %v30577_v1 = vsel %vm27238_vm0, %v14314_v3, -4.2949673e+09  ;;  %v30585_v26 = vsel %vm27238_vm0, %v14313_v59, -4.2949673e+09 }
 0x83b   :  { %v14126_v12 = vpop.f32.mrf.mxu0  ;;  %v14204_v23 = vpop.f32.mrf.mxu1  ;;  %v14434_v28 = vsel %vm1134_vm3, %v30577_v1, -inf  ;;  %v14431_v0 = vsel %vm1134_vm3, %v30585_v26, -inf }
 0x83c   :  { %v14315_v24 = vmul.f32 0.35355338, %v14126_v12  ;;  %v14316_v34 = vmul.f32 0.35355338, %v14204_v23  ;;  %14426 = vmax.xlane.f32.xlu0 %v14425_v18  ;;  %14435 = vmax.xlane.f32.xlu1 %v14434_v28 }
 0x83d   :  { %v25959_v11 = vpop.f32.mrf.mxu0  ;;  %v25964_v57 = vpop.f32.mrf.mxu1 }
 0x83e   :  { %v30589_v3 = vsel %vm27238_vm0, %v14316_v34, -4.2949673e+09  ;;  %v30597_v59 = vsel %vm27238_vm0, %v14315_v24, -4.2949673e+09  ;;  %v30607_v11 = vpop.permute.xlu0 %14854  ;;  %v30611_v57 = vpop.permute.xlu1 %14930 }
 0x83f   :  { %v14282_v39 = vpop.f32.mrf.mxu0  ;;  %v14440_v52 = vsel %vm1134_vm3, %v30589_v3, -inf  ;;  %v14437_v28 = vsel %vm1134_vm3, %v30597_v59, -inf }
 0x840   :  { %v14317_v12 = vmul.f32 0.35355338, %v14282_v39  ;;  %14432 = vmax.xlane.f32.xlu0 %v14431_v0  ;;  %14441 = vmax.xlane.f32.xlu1 %v14440_v52 }
 0x841   :  { %v25969_v18 = vpop.f32.mrf.mxu0 }
 0x842   :  { %v30603_v23 = vsel %vm27238_vm0, %v14317_v12, -4.2949673e+09  ;;  %v30609_v24 = vpop.permute.xlu0 %15006  ;;  %v30615_v39 = vpop.permute.xlu1 %15158 }
 0x843   :  { %v14443_v34 = vsel %vm1134_vm3, %v30603_v23, -inf  ;;  %33393 = vst [vmem:[#allocation151_spill] sm:$0xff] %v30609_v24  ;;  %33395 = vst [vmem:[#allocation152_spill] sm:$0xff] %v30615_v39 }
 0x844   :  { %14438 = vmax.xlane.f32.xlu0 %v14437_v28 }
 0x846   :  { %v30613_v52 = vpop.permute.xlu0 %15082  ;;  %v30619_v18 = vpop.permute.xlu1 %15310 }
 0x847   :  { %33394 = vst [vmem:[#allocation106_spill] sm:$0xff] %v30613_v52  ;;  %33397 = vst [vmem:[#allocation153_spill] sm:$0xff] %v30619_v18 }
 0x848   :  { %14444 = vmax.xlane.f32.xlu0 %v14443_v34 }
 0x84a   :  { %v30617_v0 = vpop.permute.xlu0 %15234  ;;  %v30623_v28 = vpop.permute.xlu1 %15462 }
 0x84b   :  { %33396 = vst [vmem:[#allocation111_spill] sm:$0xff] %v30617_v0  ;;  %33399 = vst [vmem:[#allocation154_spill] sm:$0xff] %v30623_v28 }
 0x84e   :  { %v30621_v12 = vpop.permute.xlu0 %15386  ;;  %v30627_v34 = vpop.permute.xlu1 %15614 }
 0x84f   :  { %33398 = vst [vmem:[#allocation121_spill] sm:$0xff] %v30621_v12  ;;  %33401 = vst [vmem:[#allocation155_spill] sm:$0xff] %v30627_v34 }
 0x852   :  { %v30625_v29 = vpop.permute.xlu0 %15538  ;;  %v30631_v27 = vpop.permute.xlu1 %15766 }
 0x853   :  { %33400 = vst [vmem:[#allocation124_spill] sm:$0xff] %v30625_v29  ;;  %33403 = vst [vmem:[#allocation156_spill] sm:$0xff] %v30631_v27 }
 0x856   :  { %v30629_v60 = vpop.permute.xlu0 %15690 }
 0x857   :  { %33402 = vst [vmem:[#allocation128_spill] sm:$0xff] %v30629_v60 }
 0x85a   :  { %v30633_v10 = vpop.permute.xlu0 %15842 }
 0x85b   :  { %33404 = vst [vmem:[#allocation131_spill] sm:$0xff] %v30633_v10 }
 0x88d   :  { %v14352_v52 = vpop.xlane.xlu1 %14351 }
 0x88e   :  { %v14446_v39 = vsub.f32 %v30417_v25, %v14352_v52 }
 0x890   :  { %v14478_v0 = vmul.f32 1.442695, %v14446_v39 }
 0x891   :  { %v14355_v46 = vpop.xlane.xlu0 %14354 }
 0x892   :  { %26797 = vpow2.f32 %v14478_v0  ;;  %v14447_v12 = vsub.f32 %v30423_v13, %v14355_v46 }
 0x894   :  { %v14480_v18 = vmul.f32 1.442695, %v14447_v12 }
 0x895   :  { %v14358_v28 = vpop.xlane.xlu0 %14357  ;;  %v14364_v24 = vpop.xlane.xlu1 %14363 }
 0x896   :  { %26799 = vpow2.f32 %v14480_v18  ;;  %v14448_v34 = vsub.f32 %v30429_v51, %v14358_v28  ;;  %v14450_v60 = vsub.f32 %v30433_v32, %v14364_v24 }
 0x898   :  { %v14482_v29 = vmul.f32 1.442695, %v14448_v34  ;;  %v14486_v27 = vmul.f32 1.442695, %v14450_v60 }
 0x899   :  { %v14361_v42 = vpop.xlane.xlu0 %14360  ;;  %v14370_v10 = vpop.xlane.xlu1 %14369 }
 0x89a   :  { %26801 = vpow2.f32 %v14482_v29  ;;  %v14449_v25 = vsub.f32 %v30441_v43, %v14361_v42  ;;  %v14452_v52 = vsub.f32 %v30445_v45, %v14370_v10 }
 0x89b   :  { %26803 = vpow2.f32 %v14486_v27 }
 0x89c   :  { %v14484_v39 = vmul.f32 1.442695, %v14449_v25  ;;  %v14490_v46 = vmul.f32 1.442695, %v14452_v52 }
 0x89d   :  { %v14367_v13 = vpop.xlane.xlu0 %14366  ;;  %v14376_v0 = vpop.xlane.xlu1 %14375 }
 0x89e   :  { %26805 = vpow2.f32 %v14484_v39  ;;  %v14451_v18 = vsub.f32 %v30453_v14, %v14367_v13  ;;  %v14454_v51 = vsub.f32 %v30457_v49, %v14376_v0 }
 0x89f   :  { %v30643_v32 = vpop.eup %26797  ;;  %26807 = vpow2.f32 %v14490_v46 }
 0x8a0   :  { %v14488_v60 = vmul.f32 1.442695, %v14451_v18  ;;  %v14494_v24 = vmul.f32 1.442695, %v14454_v51  ;;  %v14542_v42 = vsel %vm1134_vm3, %v30643_v32, 0.0 }
 0x8a1   :  { %v14373_v29 = vpop.xlane.xlu0 %14372  ;;  %14543 = vadd.xlane.f32.xlu1 %v14542_v42  ;;  %v14382_v27 = vpop.xlane.xlu1 %14381 }
 0x8a2   :  { %26809 = vpow2.f32 %v14488_v60  ;;  %v14453_v10 = vsub.f32 %v30465_v20, %v14373_v29  ;;  %v14456_v43 = vsub.f32 %v30469_v54, %v14382_v27 }
 0x8a3   :  { %v30649_v45 = vpop.eup %26799  ;;  %26811 = vpow2.f32 %v14494_v24 }
 0x8a4   :  { %v14492_v14 = vmul.f32 1.442695, %v14453_v10  ;;  %v14498_v49 = vmul.f32 1.442695, %v14456_v43  ;;  %v14545_v12 = vsel %vm1134_vm3, %v30649_v45, 0.0 }
 0x8a5   :  { %14546 = vadd.xlane.f32.xlu0 %v14545_v12  ;;  %v14379_v28 = vpop.xlane.xlu0 %14378  ;;  %v14388_v34 = vpop.xlane.xlu1 %14387 }
 0x8a6   :  { %26813 = vpow2.f32 %v14492_v14  ;;  %v14455_v25 = vsub.f32 %v30477_v21, %v14379_v28  ;;  %v14458_v52 = vsub.f32 %v30481_v53, %v14388_v34 }
 0x8a7   :  { %v30655_v39 = vpop.eup %26801  ;;  %26815 = vpow2.f32 %v14498_v49 }
 0x8a8   :  { %v14496_v20 = vmul.f32 1.442695, %v14455_v25  ;;  %v14502_v54 = vmul.f32 1.442695, %v14458_v52  ;;  %v14548_v46 = vsel %vm1134_vm3, %v30655_v39, 0.0  ;;  %v30659_v13 = vpop.eup %26803 }
 0x8a9   :  { %v14385_v0 = vpop.xlane.xlu0 %14384  ;;  %14549 = vadd.xlane.f32.xlu1 %v14548_v46  ;;  %v14394_v18 = vpop.xlane.xlu1 %14393  ;;  %v14554_v42 = vsel %vm1134_vm3, %v30659_v13, 0.0 }
 0x8aa   :  { %26817 = vpow2.f32 %v14496_v20  ;;  %v14457_v51 = vsub.f32 %v30489_v55, %v14385_v0  ;;  %v14460_v21 = vsub.f32 %v30493_v4, %v14394_v18 }
 0x8ab   :  { %v30662_v60 = vpop.eup %26805  ;;  %26819 = vpow2.f32 %v14502_v54 }
 0x8ac   :  { %v14500_v53 = vmul.f32 1.442695, %v14457_v51  ;;  %v14551_v24 = vsel %vm1134_vm3, %v30662_v60, 0.0  ;;  %v30669_v29 = vpop.eup %26807  ;;  %v14506_v14 = vmul.f32 1.442695, %v14460_v21 }
 0x8ad   :  { %14552 = vadd.xlane.f32.xlu0 %v14551_v24  ;;  %v14391_v27 = vpop.xlane.xlu0 %14390  ;;  %14555 = vadd.xlane.f32.xlu1 %v14554_v42  ;;  %v14400_v10 = vpop.xlane.xlu1 %14399  ;;  %v14560_v28 = vsel %vm1134_vm3, %v30669_v29, 0.0 }
 0x8ae   :  { %26821 = vpow2.f32 %v14500_v53  ;;  %v14459_v55 = vsub.f32 %v30501_v2, %v14391_v27  ;;  %v14462_v4 = vsub.f32 %v30505_v56, %v14400_v10 }
 0x8af   :  { %v30672_v43 = vpop.eup %26809 }
 0x8b0   :  { %v14504_v49 = vmul.f32 1.442695, %v14459_v55  ;;  %v14557_v12 = vsel %vm1134_vm3, %v30672_v43, 0.0  ;;  %v30679_v34 = vpop.eup %26811  ;;  %v14510_v56 = vmul.f32 1.442695, %v14462_v4 }
 0x8b1   :  { %14558 = vadd.xlane.f32.xlu0 %v14557_v12  ;;  %v14397_v25 = vpop.xlane.xlu0 %14396  ;;  %14561 = vadd.xlane.f32.xlu1 %v14560_v28  ;;  %v14406_v52 = vpop.xlane.xlu1 %14405  ;;  %v14566_v21 = vsel %vm1134_vm3, %v30679_v34, 0.0 }
 0x8b2   :  { %26823 = vpow2.f32 %v14504_v49  ;;  %v14461_v2 = vsub.f32 %v30513_v61, %v14397_v25  ;;  %v14464_v20 = vsub.f32 %v30517_v5, %v14406_v52 }
 0x8b3   :  { %v30683_v54 = vpop.eup %26813  ;;  %26825 = vpow2.f32 %v14506_v14 }
 0x8b4   :  { %v30685_v46 = vpop.eup %26815  ;;  %v14508_v0 = vmul.f32 1.442695, %v14461_v2  ;;  %v14514_v18 = vmul.f32 1.442695, %v14464_v20  ;;  %v14563_v51 = vsel %vm1134_vm3, %v30683_v54, 0.0 }
 0x8b5   :  { %14564 = vadd.xlane.f32.xlu0 %v14563_v51  ;;  %v14403_v53 = vpop.xlane.xlu0 %14402  ;;  %14567 = vadd.xlane.f32.xlu1 %v14566_v21  ;;  %v14412_v61 = vpop.xlane.xlu1 %14411  ;;  %v14572_v27 = vsel %vm1134_vm3, %v30685_v46, 0.0 }
 0x8b6   :  { %26827 = vpow2.f32 %v14508_v0  ;;  %v14463_v5 = vsub.f32 %v30525_v48, %v14403_v53  ;;  %v14466_v24 = vsub.f32 %v30529_v9, %v14412_v61 }
 0x8b7   :  { %v30693_v42 = vpop.eup %26817  ;;  %26829 = vpow2.f32 %v14510_v56 }
 0x8b8   :  { %v30697_v10 = vpop.eup %26819  ;;  %26831 = vpow2.f32 %v14514_v18  ;;  %v14512_v55 = vmul.f32 1.442695, %v14463_v5  ;;  %v14518_v14 = vmul.f32 1.442695, %v14466_v24  ;;  %v14569_v4 = vsel %vm1134_vm3, %v30693_v42, 0.0 }
 0x8b9   :  { %14570 = vadd.xlane.f32.xlu0 %v14569_v4  ;;  %v14409_v49 = vpop.xlane.xlu0 %14408  ;;  %14573 = vadd.xlane.f32.xlu1 %v14572_v27  ;;  %v14418_v48 = vpop.xlane.xlu1 %14417  ;;  %v14578_v25 = vsel %vm1134_vm3, %v30697_v10, 0.0 }
 0x8ba   :  { %v14465_v9 = vsub.f32 %v30537_v47, %v14409_v49  ;;  %v14468_v12 = vsub.f32 %v30541_v15, %v14418_v48  ;;  %26833 = vpow2.f32 %v14512_v55 }
 0x8bb   :  { %v30703_v28 = vpop.eup %26821  ;;  %26835 = vpow2.f32 %v14518_v14 }
 0x8bc   :  { %v14516_v52 = vmul.f32 1.442695, %v14465_v9  ;;  %v14522_v2 = vmul.f32 1.442695, %v14468_v12  ;;  %v14575_v20 = vsel %vm1134_vm3, %v30703_v28, 0.0 }
 0x8bd   :  { %14576 = vadd.xlane.f32.xlu0 %v14575_v20  ;;  %v14415_v56 = vpop.xlane.xlu0 %14414  ;;  %14579 = vadd.xlane.f32.xlu1 %v14578_v25  ;;  %v14424_v0 = vpop.xlane.xlu1 %14423 }
 0x8be   :  { %v14467_v47 = vsub.f32 %v30549_v7, %v14415_v56  ;;  %v14470_v15 = vsub.f32 %v30553_v36, %v14424_v0  ;;  %26837 = vpow2.f32 %v14516_v52 }
 0x8bf   :  { %v30711_v18 = vpop.eup %26823  ;;  %26839 = vpow2.f32 %v14522_v2 }
 0x8c0   :  { %v30713_v51 = vpop.eup %26825  ;;  %v14520_v21 = vmul.f32 1.442695, %v14467_v47  ;;  %v14526_v53 = vmul.f32 1.442695, %v14470_v15  ;;  %v14581_v61 = vsel %vm1134_vm3, %v30711_v18, 0.0 }
 0x8c1   :  { %14582 = vadd.xlane.f32.xlu0 %v14581_v61  ;;  %v14421_v5 = vpop.xlane.xlu0 %14420  ;;  %v14430_v24 = vpop.xlane.xlu1 %14429  ;;  %v14584_v36 = vsel %vm1134_vm3, %v30713_v51, 0.0 }
 0x8c2   :  { %v14469_v27 = vsub.f32 %v30561_v19, %v14421_v5  ;;  %v14472_v7 = vsub.f32 %v30565_v33, %v14430_v24  ;;  %26841 = vpow2.f32 %v14520_v21 }
 0x8c3   :  { %v30719_v55 = vpop.eup %26827  ;;  %26843 = vpow2.f32 %v14526_v53 }
 0x8c4   :  { %v30723_v14 = vpop.eup %26829  ;;  %v14524_v4 = vmul.f32 1.442695, %v14469_v27  ;;  %v14530_v49 = vmul.f32 1.442695, %v14472_v7  ;;  %v14587_v48 = vsel %vm1134_vm3, %v30719_v55, 0.0 }
 0x8c5   :  { %v30727_v9 = vpop.eup %26831  ;;  %v14427_v12 = vpop.xlane.xlu0 %14426  ;;  %14588 = vadd.xlane.f32.xlu1 %v14587_v48  ;;  %14585 = vadd.xlane.f32.xlu0 %v14584_v36  ;;  %v14590_v52 = vsel %vm1134_vm3, %v30723_v14, 0.0 }
 0x8c6   :  { %v14436_v19 = vpop.xlane.xlu1 %14435  ;;  %v14471_v33 = vsub.f32 %v30573_v50, %v14427_v12  ;;  %26845 = vpow2.f32 %v14524_v4  ;;  %v14596_v0 = vsel %vm1134_vm3, %v30727_v9, 0.0 }
 0x8c7   :  { %v14474_v25 = vsub.f32 %v30577_v1, %v14436_v19  ;;  %v30733_v2 = vpop.eup %26833  ;;  %26847 = vpow2.f32 %v14530_v49 }
 0x8c8   :  { %v14528_v20 = vmul.f32 1.442695, %v14471_v33  ;;  %v30737_v47 = vpop.eup %26835  ;;  %v14593_v53 = vsel %vm1134_vm3, %v30733_v2, 0.0 }
 0x8c9   :  { %v14534_v56 = vmul.f32 1.442695, %v14474_v25  ;;  %v14433_v15 = vpop.xlane.xlu0 %14432  ;;  %14591 = vadd.xlane.f32.xlu0 %v14590_v52  ;;  %14597 = vadd.xlane.f32.xlu1 %v14596_v0  ;;  %v14602_v61 = vsel %vm1134_vm3, %v30737_v47, 0.0 }
 0x8ca   :  { %v14473_v50 = vsub.f32 %v30585_v26, %v14433_v15  ;;  %26849 = vpow2.f32 %v14528_v20 }
 0x8cb   :  { %v30740_v1 = vpop.eup %26837  ;;  %26851 = vpow2.f32 %v14534_v56 }
 0x8cc   :  { %v14532_v21 = vmul.f32 1.442695, %v14473_v50  ;;  %v30746_v5 = vpop.eup %26839  ;;  %v14599_v36 = vsel %vm1134_vm3, %v30740_v1, 0.0 }
 0x8cd   :  { %v14439_v24 = vpop.xlane.xlu0 %14438  ;;  %14594 = vadd.xlane.f32.xlu0 %v14593_v53  ;;  %14603 = vadd.xlane.f32.xlu1 %v14602_v61  ;;  %v14608_v4 = vsel %vm1134_vm3, %v30746_v5, 0.0  ;;  %v14442_v61 = vpop.xlane.xlu1 %14441 }
 0x8ce   :  { %v14475_v27 = vsub.f32 %v30597_v59, %v14439_v24  ;;  %26853 = vpow2.f32 %v14532_v21  ;;  %v14476_v24 = vsub.f32 %v30589_v3, %v14442_v61 }
 0x8cf   :  { %v30749_v7 = vpop.eup %26841 }
 0x8d0   :  { %v14536_v26 = vmul.f32 1.442695, %v14475_v27  ;;  %v30755_v49 = vpop.eup %26843  ;;  %v14605_v59 = vsel %vm1134_vm3, %v30749_v7, 0.0  ;;  %v14538_v27 = vmul.f32 1.442695, %v14476_v24 }
 0x8d1   :  { %14600 = vadd.xlane.f32.xlu0 %v14599_v36  ;;  %14609 = vadd.xlane.f32.xlu1 %v14608_v4  ;;  %v14614_v12 = vsel %vm1134_vm3, %v30755_v49, 0.0 }
 0x8d2   :  { %26855 = vpow2.f32 %v14536_v26  ;;  %v14445_v26 = vpop.xlane.xlu0 %14444 }
 0x8d3   :  { %v30757_v48 = vpop.eup %26845  ;;  %26857 = vpow2.f32 %v14538_v27  ;;  %v14477_v36 = vsub.f32 %v30603_v23, %v14445_v26 }
 0x8d4   :  { %v30763_v19 = vpop.eup %26847  ;;  %v14611_v25 = vsel %vm1134_vm3, %v30757_v48, 0.0 }
 0x8d5   :  { %14606 = vadd.xlane.f32.xlu0 %v14605_v59  ;;  %14615 = vadd.xlane.f32.xlu1 %v14614_v12  ;;  %v14620_v52 = vsel %vm1134_vm3, %v30763_v19, 0.0  ;;  %v14540_v4 = vmul.f32 1.442695, %v14477_v36 }
 0x8d7   :  { %v30765_v33 = vpop.eup %26849  ;;  %26859 = vpow2.f32 %v14540_v4 }
 0x8d8   :  { %v30771_v20 = vpop.eup %26851  ;;  %v14617_v56 = vsel %vm1134_vm3, %v30765_v33, 0.0 }
 0x8d9   :  { %14612 = vadd.xlane.f32.xlu0 %v14611_v25  ;;  %14621 = vadd.xlane.f32.xlu1 %v14620_v52  ;;  %v14626_v0 = vsel %vm1134_vm3, %v30771_v20, 0.0 }
 0x8db   :  { %v30777_v15 = vpop.eup %26853 }
 0x8dc   :  { %v14623_v50 = vsel %vm1134_vm3, %v30777_v15, 0.0 }
 0x8dd   :  { %14618 = vadd.xlane.f32.xlu0 %v14617_v56  ;;  %14627 = vadd.xlane.f32.xlu1 %v14626_v0 }
 0x8df   :  { %v30781_v21 = vpop.eup %26855 }
 0x8e0   :  { %v14629_v53 = vsel %vm1134_vm3, %v30781_v21, 0.0  ;;  %v30791_v59 = vpop.eup %26857 }
 0x8e1   :  { %14624 = vadd.xlane.f32.xlu0 %v14623_v50  ;;  %v14632_v12 = vsel %vm1134_vm3, %v30791_v59, 0.0 }
 0x8e4   :  { %v30795_v25 = vpop.eup %26859 }
 0x8e5   :  { %14630 = vadd.xlane.f32.xlu0 %v14629_v53  ;;  %v14635_v3 = vsel %vm1134_vm3, %v30795_v25, 0.0 }
 0x8ee   :  { %15918 = vrot.lane.b32.xlu1 %v27679_v40, %s27182_s21 }
 0x8fb   :  { %15994 = vrot.lane.b32.xlu0 %v27675_v37, %s27182_s21 }
 0x912   :  { %14633 = vadd.xlane.f32.xlu1 %v14632_v12 }
 0x91a   :  { %14636 = vadd.xlane.f32.xlu0 %v14635_v3 }
 0x923   :  { %16070 = vrot.lane.b32.xlu1 %v33144_v16, %s27182_s21 }
 0x927   :  { %16146 = vrot.lane.b32.xlu1 %v27683_v41, %s27182_s21 }
 0x92a   :  { %v14544_v23 = vpop.xlane.xlu1 %14543 }
 0x92b   :  { %26861 = vrcp.f32 %v14544_v23  ;;  %16298 = vrot.lane.b32.xlu1 %v33130_v58, %s27182_s21  ;;  %v33405_v23 = vld [vmem:[#allocation77_spill] sm:$0xff] }
 0x92e   :  { %v14547_v52 = vpop.xlane.xlu0 %14546 }
 0x92f   :  { %26863 = vrcp.f32 %v14547_v52  ;;  %16374 = vrot.lane.b32.xlu1 %v33153_v62, %s27182_s21  ;;  %v33406_v52 = vld [vmem:[#allocation151_spill] sm:$0xff] }
 0x930   :  { %16222 = vrot.lane.b32.xlu0 %v33148_v6, %s27182_s21 }
 0x932   :  { %v14550_v56 = vpop.xlane.xlu1 %14549 }
 0x933   :  { %26865 = vrcp.f32 %v14550_v56  ;;  %16450 = vrot.lane.b32.xlu1 %v33283_v35, %s27182_s21 }
 0x934   :  { %16754 = vrot.lane.b32.xlu0 %v33295_v38, %s27182_s21 }
 0x936   :  { %v14553_v0 = vpop.xlane.xlu0 %14552  ;;  %v14556_v50 = vpop.xlane.xlu1 %14555 }
 0x937   :  { %26867 = vrcp.f32 %v14553_v0  ;;  %16526 = vrot.lane.b32.xlu1 %v33158_v30, %s27182_s21 }
 0x938   :  { %v26862_v53 = vpop.eup %26861  ;;  %26869 = vrcp.f32 %v14556_v50  ;;  %16906 = vrot.lane.b32.xlu0 %v33297_v63, %s27182_s21 }
 0x939   :  { %v14670_v61 = vmul.f32 %v26862_v53, %v30643_v32 }
 0x93a   :  { %v14559_v24 = vpop.xlane.xlu0 %14558  ;;  %v14562_v27 = vpop.xlane.xlu1 %14561 }
 0x93b   :  { %26871 = vrcp.f32 %v14559_v24  ;;  %16602 = vrot.lane.b32.xlu1 %v33289_v17, %s27182_s21  ;;  %25973 = vmatmul.mubr.msk.f32.vlgmr.msra.gmra.mxu1 %vm1134_vm3, %v14670_v61  ;;  %v33407_v61 = vld [vmem:[#allocation79_spill] sm:$0xff] }
 0x93c   :  { %v26864_v26 = vpop.eup %26863  ;;  %26873 = vrcp.f32 %v14562_v27  ;;  %25981 = vmatpush3.msra.mxu1 %v30607_v11  ;;  %17058 = vrot.lane.b32.xlu0 %v33300_v22, %s27182_s21  ;;  %v33408_v27 = vld [vmem:[#allocation106_spill] sm:$0xff] }
 0x93d   :  { %v14671_v36 = vmul.f32 %v26864_v26, %v30649_v45  ;;  %25982 = vmatprep.mubr.msk.f32.mxu1 %vm27176_vm2, %v33087_v44  ;;  %25990 = vmatprep.subr.mxu1 %v33087_v44 }
 0x93e   :  { %v14565_v32 = vpop.xlane.xlu0 %14564  ;;  %v14568_v4 = vpop.xlane.xlu1 %14567 }
 0x93f   :  { %26875 = vrcp.f32 %v14565_v32  ;;  %25978 = vmatmul.mubr.msk.f32.vlgmr.msra.gmra.mxu0 %vm1134_vm3, %v14671_v36  ;;  %16678 = vrot.lane.b32.xlu1 %v33285_v8, %s27182_s21  ;;  %v33409_v36 = vld [vmem:[#allocation152_spill] sm:$0xff] }
 0x940   :  { %v26866_v12 = vpop.eup %26865  ;;  %26877 = vrcp.f32 %v14568_v4  ;;  %25986 = vmatpush3.msra.mxu0 %v30611_v57  ;;  %17214 = vrot.lane.b32.xlu0 %v33303_v31, %s27183_s22 }
 0x941   :  { %v14672_v11 = vmul.f32 %v26866_v12, %v30655_v39  ;;  %25987 = vmatprep.mubr.msk.f32.mxu0 %vm27176_vm2, %v33087_v44  ;;  %25995 = vmatprep.subr.mxu0 %v33087_v44  ;;  %v33411_v12 = vld [vmem:[#allocation51_spill] sm:$0xff] }
 0x942   :  { %v14571_v45 = vpop.xlane.xlu0 %14570  ;;  %v14574_v3 = vpop.xlane.xlu1 %14573 }
 0x943   :  { %26879 = vrcp.f32 %v14571_v45  ;;  %16830 = vrot.lane.b32.xlu1 %v33405_v23, %s27182_s21  ;;  %25983 = vmatmul.mubr.msk.f32.vlgmr.msra.gmra.mxu1 %vm1134_vm3, %v14672_v11  ;;  %v33412_v45 = vld [vmem:[#allocation111_spill] sm:$0xff] }
 0x944   :  { %v26868_v57 = vpop.eup %26867  ;;  %26881 = vrcp.f32 %v14574_v3  ;;  %25991 = vmatpush3.msra.mxu1 %v33406_v52  ;;  %17212 = vrot.lane.b32.xlu0 %v33303_v31, %s27184_s23 }
 0x945   :  { %v26870_v39 = vpop.eup %26869  ;;  %v14673_v56 = vmul.f32 %v26868_v57, %v30662_v60  ;;  %25992 = vmatprep.mubr.msk.f32.mxu1 %vm27176_vm2, %v33087_v44  ;;  %26000 = vmatprep.subr.mxu1 %v33087_v44  ;;  %v33413_v57 = vld [vmem:[#allocation153_spill] sm:$0xff] }
 0x946   :  { %v14674_v0 = vmul.f32 %v26870_v39, %v30659_v13  ;;  %v14577_v50 = vpop.xlane.xlu0 %14576  ;;  %v14580_v53 = vpop.xlane.xlu1 %14579  ;;  %v33410_v13 = vld [vmem:[#allocation52_spill] sm:$0xff] }
 0x947   :  { %26883 = vrcp.f32 %v14577_v50  ;;  %25988 = vmatmul.mubr.msk.f32.vlgmr.msra.gmra.mxu0 %vm1134_vm3, %v14673_v56  ;;  %16982 = vrot.lane.b32.xlu1 %v33407_v61, %s27182_s21 }
 0x948   :  { %v26872_v24 = vpop.eup %26871  ;;  %26885 = vrcp.f32 %v14580_v53  ;;  %25996 = vmatpush3.msra.mxu0 %v33408_v27  ;;  %25993 = vmatmul.mubr.msk.f32.vlgmr.msra.gmra.mxu1 %vm1134_vm3, %v14674_v0  ;;  %v33414_v0 = vld [vmem:[#allocation121_spill] sm:$0xff]  ;;  %v33415_v27 = vld [vmem:[#allocation154_spill] sm:$0xff] }
 0x949   :  { %v26874_v60 = vpop.eup %26873  ;;  %v14675_v26 = vmul.f32 %v26872_v24, %v30672_v43  ;;  %26001 = vmatpush3.msra.mxu1 %v33409_v36  ;;  %17370 = vrot.lane.b32.xlu0 %v33410_v13, %s27183_s22 }
 0x94a   :  { %v14676_v32 = vmul.f32 %v26874_v60, %v30669_v29  ;;  %v14583_v4 = vpop.xlane.xlu0 %14582  ;;  %25997 = vmatprep.mubr.msk.f32.mxu0 %vm27176_vm2, %v33087_v44  ;;  %26002 = vmatprep.mubr.msk.f32.mxu1 %vm27176_vm2, %v33087_v44  ;;  %v33416_v60 = vld [vmem:[#allocation54_spill] sm:$0xff] }
 0x94b   :  { %26887 = vrcp.f32 %v14583_v4  ;;  %26005 = vmatprep.subr.mxu0 %v33087_v44  ;;  %26010 = vmatprep.subr.mxu1 %v33087_v44 }
 0x94c   :  { %v26876_v43 = vpop.eup %26875  ;;  %25998 = vmatmul.mubr.msk.f32.vlgmr.msra.gmra.mxu0 %vm1134_vm3, %v14675_v26  ;;  %17136 = vrot.lane.b32.xlu1 %v33411_v12, %s27183_s22 }
 0x94d   :  { %v26878_v11 = vpop.eup %26877  ;;  %v14677_v29 = vmul.f32 %v26876_v43, %v30683_v54  ;;  %26006 = vmatpush3.msra.mxu0 %v33412_v45  ;;  %26003 = vmatmul.mubr.msk.f32.vlgmr.msra.gmra.mxu1 %vm1134_vm3, %v14676_v32  ;;  %v33418_v43 = vld [vmem:[#allocation124_spill] sm:$0xff]  ;;  %v33419_v45 = vld [vmem:[#allocation155_spill] sm:$0xff] }
 0x94e   :  { %v14678_v3 = vmul.f32 %v26878_v11, %v30679_v34  ;;  %26011 = vmatpush3.msra.mxu1 %v33413_v57  ;;  %17368 = vrot.lane.b32.xlu0 %v33410_v13, %s27184_s23  ;;  %v14586_v52 = vpop.xlane.xlu0 %14585  ;;  %v14589_v39 = vpop.xlane.xlu1 %14588 }
 0x94f   :  { %26007 = vmatprep.mubr.msk.f32.mxu0 %vm27176_vm2, %v33087_v44  ;;  %26015 = vmatprep.subr.mxu0 %v33087_v44  ;;  %26889 = vrcp.f32 %v14586_v52  ;;  %v33420_v52 = vld [vmem:[#allocation128_spill] sm:$0xff] }
 0x950   :  { %v26880_v54 = vpop.eup %26879  ;;  %26012 = vmatprep.mubr.msk.f32.mxu1 %vm27176_vm2, %v33087_v44  ;;  %26020 = vmatprep.subr.mxu1 %v33087_v44  ;;  %26891 = vrcp.f32 %v14589_v39 }
 0x951   :  { %v26882_v34 = vpop.eup %26881  ;;  %26008 = vmatmul.mubr.msk.f32.vlgmr.msra.gmra.mxu0 %vm1134_vm3, %v14677_v29  ;;  %17134 = vrot.lane.b32.xlu1 %v33411_v12, %s27184_s23  ;;  %v14679_v56 = vmul.f32 %v26880_v54, %v30693_v42  ;;  %v33421_v54 = vld [vmem:[#allocation156_spill] sm:$0xff] }
 0x952   :  { %26016 = vmatpush3.msra.mxu0 %v33414_v0  ;;  %26013 = vmatmul.mubr.msk.f32.vlgmr.msra.gmra.mxu1 %vm1134_vm3, %v14678_v3  ;;  %v14592_v50 = vpop.xlane.xlu0 %14591  ;;  %v30887_v53 = vpop.xlane.xlu1 %14597  ;;  %v14680_v24 = vmul.f32 %v26882_v34, %v30685_v46  ;;  %v33417_v46 = vld [vmem:[#allocation53_spill] sm:$0xff]  ;;  %v33422_v34 = vld [vmem:[#allocation56_spill] sm:$0xff] }
 0x953   :  { %26021 = vmatpush3.msra.mxu1 %v33415_v27  ;;  %17526 = vrot.lane.b32.xlu0 %v33416_v60, %s27183_s22  ;;  %26893 = vrcp.f32 %v14592_v50  ;;  %v33424_v27 = vld [vmem:[#allocation131_spill] sm:$0xff] }
 0x954   :  { %v26884_v26 = vpop.eup %26883  ;;  %26017 = vmatprep.mubr.msk.f32.mxu0 %vm27176_vm2, %v33087_v44  ;;  %26025 = vmatprep.subr.mxu0 %v33087_v44 }
 0x955   :  { %v26886_v42 = vpop.eup %26885  ;;  %26022 = vmatprep.mubr.msk.f32.mxu1 %vm27176_vm2, %v33087_v44  ;;  %26030 = vmatprep.subr.mxu1 %v33087_v44  ;;  %v14681_v4 = vmul.f32 %v26884_v26, %v30703_v28  ;;  %v33425_v26 = vld [vmem:[#allocation58_spill] sm:$0xff] }
 0x956   :  { %26018 = vmatmul.mubr.msk.f32.vlgmr.msra.gmra.mxu0 %vm1134_vm3, %v14679_v56  ;;  %17292 = vrot.lane.b32.xlu1 %v33417_v46, %s27183_s22  ;;  %v14595_v36 = vpop.xlane.xlu0 %14594  ;;  %v30902_v32 = vpop.xlane.xlu1 %14603  ;;  %v14682_v29 = vmul.f32 %v26886_v42, %v30697_v10 }
 0x957   :  { %26026 = vmatpush3.msra.mxu0 %v33418_v43  ;;  %26023 = vmatmul.mubr.msk.f32.vlgmr.msra.gmra.mxu1 %vm1134_vm3, %v14680_v24  ;;  %v33423_v24 = vld [vmem:[#allocation55_spill] sm:$0xff]  ;;  %26895 = vrcp.f32 %v14595_v36  ;;  %v33426_v43 = vld [vmem:[#allocation57_spill] sm:$0xff] }
 0x958   :  { %v26888_v11 = vpop.eup %26887  ;;  %26031 = vmatpush3.msra.mxu1 %v33419_v45  ;;  %17524 = vrot.lane.b32.xlu0 %v33416_v60, %s27184_s23  ;;  %26897 = vrcp.f32 %v30887_v53 }
 0x959   :  { %26027 = vmatprep.mubr.msk.f32.mxu0 %vm27176_vm2, %v33087_v44  ;;  %26035 = vmatprep.subr.mxu0 %v33087_v44  ;;  %v14683_v10 = vmul.f32 %v26888_v11, %v30711_v18 }
 0x95a   :  { %26032 = vmatprep.mubr.msk.f32.mxu1 %vm27176_vm2, %v33087_v44  ;;  %26040 = vmatprep.subr.mxu1 %v33087_v44  ;;  %v30917_v28 = vpop.xlane.xlu0 %14600  ;;  %v30919_v3 = vpop.xlane.xlu1 %14609 }
 0x95b   :  { %26028 = vmatmul.mubr.msk.f32.vlgmr.msra.gmra.mxu0 %vm1134_vm3, %v14681_v4  ;;  %17290 = vrot.lane.b32.xlu1 %v33417_v46, %s27184_s23  ;;  %26899 = vrcp.f32 %v30917_v28 }
 0x95c   :  { %v26890_v57 = vpop.eup %26889  ;;  %26036 = vmatpush3.msra.mxu0 %v33420_v52  ;;  %26033 = vmatmul.mubr.msk.f32.vlgmr.msra.gmra.mxu1 %vm1134_vm3, %v14682_v29  ;;  %v33428_v52 = vld [vmem:[#allocation59_spill] sm:$0xff]  ;;  %26901 = vrcp.f32 %v30902_v32 }
 0x95d   :  { %v26892_v39 = vpop.eup %26891  ;;  %26041 = vmatpush3.msra.mxu1 %v33421_v54  ;;  %17682 = vrot.lane.b32.xlu0 %v33422_v34, %s27183_s22  ;;  %v14684_v56 = vmul.f32 %v26890_v57, %v30713_v51 }
 0x95e   :  { %26037 = vmatprep.mubr.msk.f32.mxu0 %vm27176_vm2, %v33087_v44  ;;  %26045 = vmatprep.subr.mxu0 %v33087_v44  ;;  %v30934_v18 = vpop.xlane.xlu0 %14606  ;;  %v30936_v0 = vpop.xlane.xlu1 %14615  ;;  %v14685_v50 = vmul.f32 %v26892_v39, %v30719_v55 }
 0x95f   :  { %26038 = vmatmul.mubr.msk.f32.vlgmr.msra.gmra.mxu0 %vm1134_vm3, %v14683_v10  ;;  %17448 = vrot.lane.b32.xlu1 %v33423_v24, %s27183_s22  ;;  %v33427_v10 = vld [vmem:[#allocation60_spill] sm:$0xff]  ;;  %26903 = vrcp.f32 %v30934_v18 }
 0x960   :  { %26046 = vmatpush3.msra.mxu0 %v33424_v27  ;;  %26047 = vmatprep.mubr.msk.f32.mxu0 %vm27176_vm2, %v33087_v44  ;;  %v26894_v4 = vpop.eup %26893  ;;  %v33432_v27 = vld [vmem:[#allocation63_spill] sm:$0xff]  ;;  %26905 = vrcp.f32 %v30919_v3 }
 0x961   :  { %17680 = vrot.lane.b32.xlu0 %v33422_v34, %s27184_s23  ;;  %26042 = vmatprep.mubr.msk.f32.mxu1 %vm27176_vm2, %v33087_v44  ;;  %v14686_v11 = vmul.f32 %v26894_v4, %v30723_v14  ;;  %v33433_v4 = vld [vmem:[#allocation65_spill] sm:$0xff] }
 0x962   :  { %26043 = vmatmul.mubr.msk.f32.vlgmr.msra.gmra.mxu1 %vm1134_vm3, %v14684_v56  ;;  %v30950_v51 = vpop.xlane.xlu0 %14612  ;;  %v30952_v55 = vpop.xlane.xlu1 %14621  ;;  %26050 = vmatprep.subr.mxu1 %v33087_v44  ;;  %v33429_v56 = vld [vmem:[#allocation62_spill] sm:$0xff] }
 0x963   :  { %17446 = vrot.lane.b32.xlu1 %v33423_v24, %s27184_s23  ;;  %26048 = vmatmul.mubr.msk.f32.vlgmr.msra.gmra.mxu0 %vm1134_vm3, %v14685_v50  ;;  %v33430_v50 = vld [vmem:[#allocation61_spill] sm:$0xff]  ;;  %26907 = vrcp.f32 %v30950_v51 }
 0x964   :  { %26052 = vmatprep.mubr.msk.f32.mxu1 %vm27176_vm2, %v33087_v44  ;;  %26055 = vmatprep.subr.mxu0 %v33087_v44  ;;  %v26896_v14 = vpop.eup %26895  ;;  %26909 = vrcp.f32 %v30936_v0 }
 0x965   :  { %17838 = vrot.lane.b32.xlu0 %v33425_v26, %s27183_s22  ;;  %26057 = vmatprep.mubr.msk.f32.mxu0 %vm27176_vm2, %v33087_v44  ;;  %v14687_v39 = vmul.f32 %v26896_v14, %v30733_v2  ;;  %v33431_v2 = vld [vmem:[#allocation64_spill] sm:$0xff]  ;;  %v26898_v28 = vpop.eup %26897 }
 0x966   :  { %v30965_v42 = vpop.xlane.xlu0 %14618  ;;  %v30967_v36 = vpop.xlane.xlu1 %14627  ;;  %v14688_v32 = vmul.f32 %v26898_v28, %v30727_v9 }
 0x967   :  { %17604 = vrot.lane.b32.xlu1 %v33426_v43, %s27183_s22  ;;  %26911 = vrcp.f32 %v30965_v42 }
 0x968   :  { %26913 = vrcp.f32 %v30952_v55 }
 0x969   :  { %17836 = vrot.lane.b32.xlu0 %v33425_v26, %s27184_s23 }
 0x96a   :  { %v30974_v29 = vpop.xlane.xlu0 %14624  ;;  %v15919_v45 = vpop.permute.xlu1 %15918 }
 0x96b   :  { %17602 = vrot.lane.b32.xlu1 %v33426_v43, %s27184_s23  ;;  %26051 = vmatpush3.msra.mxu1 %v15919_v45  ;;  %26915 = vrcp.f32 %v30974_v29 }
 0x96c   :  { %26053 = vmatmul.mubr.msk.f32.vlgmr.msra.gmra.mxu1 %vm1134_vm3, %v14686_v11  ;;  %26060 = vmatprep.subr.mxu1 %v33087_v44  ;;  %v26900_v11 = vpop.eup %26899  ;;  %26917 = vrcp.f32 %v30967_v36 }
 0x96d   :  { %17994 = vrot.lane.b32.xlu0 %v33427_v10, %s27183_s22  ;;  %26062 = vmatprep.mubr.msk.f32.mxu1 %vm27176_vm2, %v33087_v44  ;;  %v14689_v9 = vmul.f32 %v26900_v11, %v30740_v1  ;;  %v26902_v45 = vpop.eup %26901 }
 0x96e   :  { %v30984_v57 = vpop.xlane.xlu0 %14630  ;;  %v26904_v14 = vpop.eup %26903  ;;  %v14690_v1 = vmul.f32 %v26902_v45, %v30737_v47 }
 0x96f   :  { %17760 = vrot.lane.b32.xlu1 %v33428_v52, %s27183_s22  ;;  %v14691_v28 = vmul.f32 %v26904_v14, %v30749_v7  ;;  %26919 = vrcp.f32 %v30984_v57 }
 0x971   :  { %17992 = vrot.lane.b32.xlu0 %v33427_v10, %s27184_s23 }
 0x972   :  { %v15995_v54 = vpop.permute.xlu0 %15994 }
 0x973   :  { %17758 = vrot.lane.b32.xlu1 %v33428_v52, %s27184_s23  ;;  %26056 = vmatpush3.msra.mxu0 %v15995_v54  ;;  %v26906_v54 = vpop.eup %26905 }
 0x974   :  { %26058 = vmatmul.mubr.msk.f32.vlgmr.msra.gmra.mxu0 %vm1134_vm3, %v14687_v39  ;;  %26065 = vmatprep.subr.mxu0 %v33087_v44  ;;  %v14692_v47 = vmul.f32 %v26906_v54, %v30746_v5 }
 0x975   :  { %18150 = vrot.lane.b32.xlu0 %v33429_v56, %s27183_s22  ;;  %26067 = vmatprep.mubr.msk.f32.mxu0 %vm27176_vm2, %v33087_v44 }
 0x977   :  { %17916 = vrot.lane.b32.xlu1 %v33430_v50, %s27183_s22 }
 0x979   :  { %18148 = vrot.lane.b32.xlu0 %v33429_v56, %s27184_s23 }
 0x97b   :  { %17914 = vrot.lane.b32.xlu1 %v33430_v50, %s27184_s23 }
 0x97d   :  { %18306 = vrot.lane.b32.xlu0 %v33431_v2, %s27183_s22 }
 0x97f   :  { %18072 = vrot.lane.b32.xlu1 %v33432_v27, %s27183_s22 }
 0x981   :  { %18304 = vrot.lane.b32.xlu0 %v33431_v2, %s27184_s23 }
 0x983   :  { %18070 = vrot.lane.b32.xlu1 %v33432_v27, %s27184_s23 }
 0x985   :  { %18462 = vrot.lane.b32.xlu0 %v27675_v37, %s27183_s22 }
 0x987   :  { %18228 = vrot.lane.b32.xlu1 %v33433_v4, %s27183_s22 }
 0x989   :  { %18460 = vrot.lane.b32.xlu0 %v27675_v37, %s27184_s23 }
 0x98b   :  { %18226 = vrot.lane.b32.xlu1 %v33433_v4, %s27184_s23 }
 0x98d   :  { %18618 = vrot.lane.b32.xlu0 %v27683_v41, %s27183_s22 }
 0x98f   :  { %18384 = vrot.lane.b32.xlu1 %v27679_v40, %s27183_s22 }
 0x991   :  { %18616 = vrot.lane.b32.xlu0 %v27683_v41, %s27184_s23 }
 0x993   :  { %18382 = vrot.lane.b32.xlu1 %v27679_v40, %s27184_s23 }
 0x995   :  { %18774 = vrot.lane.b32.xlu0 %v33130_v58, %s27183_s22 }
 0x997   :  { %18540 = vrot.lane.b32.xlu1 %v33144_v16, %s27183_s22 }
 0x999   :  { %18772 = vrot.lane.b32.xlu0 %v33130_v58, %s27184_s23 }
 0x99b   :  { %18538 = vrot.lane.b32.xlu1 %v33144_v16, %s27184_s23  ;;  %v31042_v53 = vpop.xlane.xlu1 %14633 }
 0x99c   :  { %26921 = vrcp.f32 %v31042_v53 }
 0x99d   :  { %18930 = vrot.lane.b32.xlu0 %v33283_v35, %s27183_s22 }
 0x99f   :  { %18696 = vrot.lane.b32.xlu1 %v33148_v6, %s27183_s22  ;;  %v16071_v18 = vpop.permute.xlu1 %16070 }
 0x9a0   :  { %26061 = vmatpush3.msra.mxu1 %v16071_v18 }
 0x9a1   :  { %18928 = vrot.lane.b32.xlu0 %v33283_v35, %s27184_s23  ;;  %26063 = vmatmul.mubr.msk.f32.vlgmr.msra.gmra.mxu1 %vm1134_vm3, %v14688_v32  ;;  %v26908_v32 = vpop.eup %26907 }
 0x9a2   :  { %26070 = vmatprep.subr.mxu1 %v33087_v44  ;;  %26072 = vmatprep.mubr.msk.f32.mxu1 %vm27176_vm2, %v33087_v44  ;;  %v14693_v5 = vmul.f32 %v26908_v32, %v30757_v48  ;;  %v26910_v18 = vpop.eup %26909 }
 0x9a3   :  { %18694 = vrot.lane.b32.xlu1 %v33148_v6, %s27184_s23  ;;  %v14637_v3 = vpop.xlane.xlu0 %14636  ;;  %v16147_v51 = vpop.permute.xlu1 %16146  ;;  %v14694_v48 = vmul.f32 %v26910_v18, %v30755_v49 }
 0x9a4   :  { %26066 = vmatpush3.msra.mxu0 %v16147_v51  ;;  %26923 = vrcp.f32 %v14637_v3 }
 0x9a5   :  { %19086 = vrot.lane.b32.xlu0 %v33289_v17, %s27183_s22  ;;  %26068 = vmatmul.mubr.msk.f32.vlgmr.msra.gmra.mxu0 %vm1134_vm3, %v14689_v9  ;;  %v26912_v9 = vpop.eup %26911 }
 0x9a6   :  { %26075 = vmatprep.subr.mxu0 %v33087_v44  ;;  %26077 = vmatprep.mubr.msk.f32.mxu0 %vm27176_vm2, %v33087_v44  ;;  %v14695_v49 = vmul.f32 %v26912_v9, %v30765_v33  ;;  %v26914_v45 = vpop.eup %26913 }
 0x9a7   :  { %18852 = vrot.lane.b32.xlu1 %v33153_v62, %s27183_s22  ;;  %v16223_v0 = vpop.permute.xlu0 %16222  ;;  %v16299_v39 = vpop.permute.xlu1 %16298  ;;  %v14696_v33 = vmul.f32 %v26914_v45, %v30763_v19 }
 0x9a8   :  { %26071 = vmatpush3.msra.mxu1 %v16223_v0  ;;  %26076 = vmatpush3.msra.mxu0 %v16299_v39  ;;  %v26916_v53 = vpop.eup %26915 }
 0x9a9   :  { %19084 = vrot.lane.b32.xlu0 %v33289_v17, %s27184_s23  ;;  %26073 = vmatmul.mubr.msk.f32.vlgmr.msra.gmra.mxu1 %vm1134_vm3, %v14690_v1  ;;  %v14697_v1 = vmul.f32 %v26916_v53, %v30777_v15  ;;  %v26918_v0 = vpop.eup %26917 }
 0x9aa   :  { %26078 = vmatmul.mubr.msk.f32.vlgmr.msra.gmra.mxu0 %vm1134_vm3, %v14691_v28  ;;  %26080 = vmatprep.subr.mxu1 %v33087_v44  ;;  %v26920_v39 = vpop.eup %26919  ;;  %v14698_v54 = vmul.f32 %v26918_v0, %v30771_v20 }
 0x9ab   :  { %18850 = vrot.lane.b32.xlu1 %v33153_v62, %s27184_s23  ;;  %v16755_v42 = vpop.permute.xlu0 %16754  ;;  %v16375_v7 = vpop.permute.xlu1 %16374  ;;  %26082 = vmatprep.mubr.msk.f32.mxu1 %vm27176_vm2, %v33087_v44  ;;  %v14699_v28 = vmul.f32 %v26920_v39, %v30781_v21 }
 0x9ac   :  { %26081 = vmatpush3.msra.mxu1 %v16375_v7  ;;  %26085 = vmatprep.subr.mxu0 %v33087_v44 }
 0x9ad   :  { %19242 = vrot.lane.b32.xlu0 %v33295_v38, %s27183_s22  ;;  %26083 = vmatmul.mubr.msk.f32.vlgmr.msra.gmra.mxu1 %vm1134_vm3, %v14692_v47  ;;  %v26922_v47 = vpop.eup %26921 }
 0x9ae   :  { %26087 = vmatprep.mubr.msk.f32.mxu0 %vm27176_vm2, %v33087_v44  ;;  %26090 = vmatprep.subr.mxu1 %v33087_v44  ;;  %v14700_v21 = vmul.f32 %v26922_v47, %v30791_v59 }
 0x9af   :  { %19008 = vrot.lane.b32.xlu1 %v33158_v30, %s27183_s22  ;;  %v16907_v55 = vpop.permute.xlu0 %16906  ;;  %v16451_v29 = vpop.permute.xlu1 %16450  ;;  %26092 = vmatprep.mubr.msk.f32.mxu1 %vm27176_vm2, %v33087_v44 }
 0x9b0   :  { %26086 = vmatpush3.msra.mxu0 %v16451_v29 }
 0x9b1   :  { %19240 = vrot.lane.b32.xlu0 %v33295_v38, %s27184_s23  ;;  %26088 = vmatmul.mubr.msk.f32.vlgmr.msra.gmra.mxu0 %vm1134_vm3, %v14693_v5 }
 0x9b2   :  { %26095 = vmatprep.subr.mxu0 %v33087_v44  ;;  %26097 = vmatprep.mubr.msk.f32.mxu0 %vm27176_vm2, %v33087_v44 }
 0x9b3   :  { %19006 = vrot.lane.b32.xlu1 %v33158_v30, %s27184_s23  ;;  %v17059_v11 = vpop.permute.xlu0 %17058  ;;  %v16527_v36 = vpop.permute.xlu1 %16526 }
 0x9b4   :  { %26091 = vmatpush3.msra.mxu1 %v16527_v36 }
 0x9b5   :  { %19398 = vrot.lane.b32.xlu0 %v33297_v63, %s27183_s22  ;;  %26093 = vmatmul.mubr.msk.f32.vlgmr.msra.gmra.mxu1 %vm1134_vm3, %v14694_v48 }
 0x9b6   :  { %26100 = vmatprep.subr.mxu1 %v33087_v44  ;;  %26102 = vmatprep.mubr.msk.f32.mxu1 %vm27176_vm2, %v33087_v44 }
 0x9b7   :  { %19164 = vrot.lane.b32.xlu1 %v33285_v8, %s27183_s22  ;;  %v17215_v57 = vpop.permute.xlu0 %17214  ;;  %v16603_v51 = vpop.permute.xlu1 %16602 }
 0x9b8   :  { %26096 = vmatpush3.msra.mxu0 %v16603_v51 }
 0x9b9   :  { %19396 = vrot.lane.b32.xlu0 %v33297_v63, %s27184_s23  ;;  %26098 = vmatmul.mubr.msk.f32.vlgmr.msra.gmra.mxu0 %vm1134_vm3, %v14695_v49 }
 0x9ba   :  { %26105 = vmatprep.subr.mxu0 %v33087_v44  ;;  %26107 = vmatprep.mubr.msk.f32.mxu0 %vm27176_vm2, %v33087_v44 }
 0x9bb   :  { %19162 = vrot.lane.b32.xlu1 %v33285_v8, %s27184_s23  ;;  %26106 = vmatpush3.msra.mxu0 %v16755_v42  ;;  %v17213_v3 = vpop.permute.xlu0 %17212  ;;  %v16679_v14 = vpop.permute.xlu1 %16678 }
 0x9bc   :  { %26101 = vmatpush3.msra.mxu1 %v16679_v14  ;;  %26115 = vmatprep.subr.mxu0 %v33087_v44  ;;  %v26924_v42 = vpop.eup %26923 }
 0x9bd   :  { %19554 = vrot.lane.b32.xlu0 %v33300_v22, %s27183_s22  ;;  %26103 = vmatmul.mubr.msk.f32.vlgmr.msra.gmra.mxu1 %vm1134_vm3, %v14696_v33  ;;  %v14701_v32 = vmul.f32 %v26924_v42, %v30795_v25 }
 0x9be   :  { %26108 = vmatmul.mubr.msk.f32.vlgmr.msra.gmra.mxu0 %vm1134_vm3, %v14697_v1  ;;  %26110 = vmatprep.subr.mxu1 %v33087_v44 }
 0x9bf   :  { %19320 = vrot.lane.b32.xlu1 %v33405_v23, %s27183_s22  ;;  %26116 = vmatpush3.msra.mxu0 %v16907_v55  ;;  %v17371_v19 = vpop.permute.xlu0 %17370  ;;  %v16831_v15 = vpop.permute.xlu1 %16830 }
 0x9c0   :  { %26111 = vmatpush3.msra.mxu1 %v16831_v15  ;;  %26112 = vmatprep.mubr.msk.f32.mxu1 %vm27176_vm2, %v33087_v44 }
 0x9c1   :  { %19552 = vrot.lane.b32.xlu0 %v33300_v22, %s27184_s23  ;;  %26117 = vmatprep.mubr.msk.f32.mxu0 %vm27176_vm2, %v33087_v44 }
 0x9c2   :  { %26125 = vmatprep.subr.mxu0 %v33087_v44  ;;  %26113 = vmatmul.mubr.msk.f32.vlgmr.msra.gmra.mxu1 %vm1134_vm3, %v14698_v54 }
 0x9c3   :  { %19318 = vrot.lane.b32.xlu1 %v33405_v23, %s27184_s23  ;;  %26118 = vmatmul.mubr.msk.f32.vlgmr.msra.gmra.mxu0 %vm1134_vm3, %v14699_v28  ;;  %v17369_v20 = vpop.permute.xlu0 %17368  ;;  %v16983_v7 = vpop.permute.xlu1 %16982 }
 0x9c4   :  { %26126 = vmatpush3.msra.mxu0 %v17059_v11  ;;  %26120 = vmatprep.subr.mxu1 %v33087_v44 }
 0x9c5   :  { %20122 = vrot.lane.b32.xlu0 %v33303_v31, %s27185_s24  ;;  %26121 = vmatpush3.msra.mxu1 %v16983_v7 }
 0x9c6   :  { %26122 = vmatprep.mubr.msk.f32.mxu1 %vm27176_vm2, %v33087_v44  ;;  %26127 = vmatprep.mubr.msk.f32.mxu0 %vm27176_vm2, %v33087_v44 }
 0x9c7   :  { %19476 = vrot.lane.b32.xlu1 %v33407_v61, %s27183_s22  ;;  %26135 = vmatprep.subr.mxu0 %v33087_v44  ;;  %v17527_v5 = vpop.permute.xlu0 %17526  ;;  %v17137_v55 = vpop.permute.xlu1 %17136 }
 0x9c8   :  { %26123 = vmatmul.mubr.msk.f32.vlgmr.msra.gmra.mxu1 %vm1134_vm3, %v14700_v21  ;;  %26128 = vmatmul.mubr.msk.f32.vlgmr.msra.gmra.mxu0 %vm1134_vm3, %v14701_v32 }
 0x9c9   :  { %20198 = vrot.lane.b32.xlu0 %v33417_v46, %s27185_s24  ;;  %26136 = vmatpush3.xpose.msk.msra.mxu0 %vm1134_vm3, %v17215_v57 }
 0x9ca   :  { %26130 = vmatprep.subr.mxu1 %v33087_v44  ;;  %26137 = vmatprep.mubr.msk.f32.mxu0 %vm27176_vm2, %v33087_v44 }
 0x9cb   :  { %19474 = vrot.lane.b32.xlu1 %v33407_v61, %s27184_s23  ;;  %26131 = vmatpush3.xpose.msk.msra.mxu1 %vm1134_vm3, %v17137_v55  ;;  %v17525_v31 = vpop.permute.xlu0 %17524  ;;  %v17135_v59 = vpop.permute.xlu1 %17134 }
 0x9cc   :  { %26145 = vmatprep.subr.mxu0 %v33087_v44  ;;  %26138 = vmatmul.mubr.msk.f32.vlgmr.msra.gmra.mxu0 %vm1134_vm3, %v17213_v3 }
 0x9cd   :  { %20350 = vrot.lane.b32.xlu0 %v33423_v24, %s27185_s24  ;;  %26146 = vmatpush3.xpose.msk.msra.mxu0 %vm1134_vm3, %v17371_v19 }
 0x9ce   :  { %26132 = vmatprep.mubr.msk.f32.mxu1 %vm27176_vm2, %v33087_v44  ;;  %26147 = vmatprep.mubr.msk.f32.mxu0 %vm27176_vm2, %v33087_v44 }
 0x9cf   :  { %20046 = vrot.lane.b32.xlu1 %v33411_v12, %s27185_s24  ;;  %26133 = vmatmul.mubr.msk.f32.vlgmr.msra.gmra.mxu1 %vm1134_vm3, %v17135_v59  ;;  %v17683_v25 = vpop.permute.xlu0 %17682  ;;  %v17293_v46 = vpop.permute.xlu1 %17292 }
 0x9d0   :  { %26155 = vmatprep.subr.mxu0 %v33087_v44  ;;  %26148 = vmatmul.mubr.msk.f32.vlgmr.msra.gmra.mxu0 %vm1134_vm3, %v17369_v20 }
 0x9d1   :  { %20426 = vrot.lane.b32.xlu0 %v33416_v60, %s27185_s24  ;;  %26156 = vmatpush3.xpose.msk.msra.mxu0 %vm1134_vm3, %v17527_v5 }
 0x9d2   :  { %26140 = vmatprep.subr.mxu1 %v33087_v44  ;;  %26157 = vmatprep.mubr.msk.f32.mxu0 %vm27176_vm2, %v33087_v44 }
 0x9d3   :  { %20274 = vrot.lane.b32.xlu1 %v33410_v13, %s27185_s24  ;;  %26141 = vmatpush3.xpose.msk.msra.mxu1 %vm1134_vm3, %v17293_v46  ;;  %v17681_v12 = vpop.permute.xlu0 %17680  ;;  %v17291_v24 = vpop.permute.xlu1 %17290 }
 0x9d4   :  { %26165 = vmatprep.subr.mxu0 %v33087_v44  ;;  %26158 = vmatmul.mubr.msk.f32.vlgmr.msra.gmra.mxu0 %vm1134_vm3, %v17525_v31 }
 0x9d5   :  { %20578 = vrot.lane.b32.xlu0 %v33422_v34, %s27185_s24  ;;  %26166 = vmatpush3.xpose.msk.msra.mxu0 %vm1134_vm3, %v17683_v25 }
 0x9d6   :  { %26142 = vmatprep.mubr.msk.f32.mxu1 %vm27176_vm2, %v33087_v44  ;;  %26167 = vmatprep.mubr.msk.f32.mxu0 %vm27176_vm2, %v33087_v44 }
 0x9d7   :  { %20502 = vrot.lane.b32.xlu1 %v33426_v43, %s27185_s24  ;;  %26143 = vmatmul.mubr.msk.f32.vlgmr.msra.gmra.mxu1 %vm1134_vm3, %v17291_v24  ;;  %v17839_v13 = vpop.permute.xlu0 %17838  ;;  %v17449_v60 = vpop.permute.xlu1 %17448 }
 0x9d8   :  { %26168 = vmatmul.mubr.msk.f32.vlgmr.msra.gmra.mxu0 %vm1134_vm3, %v17681_v12  ;;  %26150 = vmatprep.subr.mxu1 %v33087_v44 }
 0x9d9   :  { %26175 = vmatprep.subr.mxu0 %v33087_v44  ;;  %26151 = vmatpush3.xpose.msk.msra.mxu1 %vm1134_vm3, %v17449_v60 }
 0x9da   :  { %26176 = vmatpush3.xpose.msk.msra.mxu0 %vm1134_vm3, %v17839_v13  ;;  %26152 = vmatprep.mubr.msk.f32.mxu1 %vm27176_vm2, %v33087_v44 }
 0x9db   :  { %20654 = vrot.lane.b32.xlu1 %v33428_v52, %s27185_s24  ;;  %v17837_v34 = vpop.permute.xlu0 %17836  ;;  %26177 = vmatprep.mubr.msk.f32.mxu0 %vm27176_vm2, %v33087_v44  ;;  %v17447_v43 = vpop.permute.xlu1 %17446 }
 0x9dc   :  { %26153 = vmatmul.mubr.msk.f32.vlgmr.msra.gmra.mxu1 %vm1134_vm3, %v17447_v43  ;;  %26160 = vmatprep.subr.mxu1 %v33087_v44 }
 0x9dd   :  { %26178 = vmatmul.mubr.msk.f32.vlgmr.msra.gmra.mxu0 %vm1134_vm3, %v17837_v34  ;;  %26185 = vmatprep.subr.mxu0 %v33087_v44 }
 0x9de   :  { %26162 = vmatprep.mubr.msk.f32.mxu1 %vm27176_vm2, %v33087_v44  ;;  %26187 = vmatprep.mubr.msk.f32.mxu0 %vm27176_vm2, %v33087_v44 }
 0x9df   :  { %v17995_v52 = vpop.permute.xlu0 %17994  ;;  %v17605_v29 = vpop.permute.xlu1 %17604 }
 0x9e0   :  { %26161 = vmatpush3.xpose.msk.msra.mxu1 %vm1134_vm3, %v17605_v29  ;;  %26186 = vmatpush3.xpose.msk.msra.mxu0 %vm1134_vm3, %v17995_v52 }
 0x9e1   :  { %26170 = vmatprep.subr.mxu1 %v33087_v44  ;;  %26195 = vmatprep.subr.mxu0 %v33087_v44 }
 0x9e3   :  { %v17993_v18 = vpop.permute.xlu0 %17992  ;;  %v17603_v48 = vpop.permute.xlu1 %17602 }
 0x9e4   :  { %26163 = vmatmul.mubr.msk.f32.vlgmr.msra.gmra.mxu1 %vm1134_vm3, %v17603_v48  ;;  %26188 = vmatmul.mubr.msk.f32.vlgmr.msra.gmra.mxu0 %vm1134_vm3, %v17993_v18 }
 0x9e5   :  { %26172 = vmatprep.mubr.msk.f32.mxu1 %vm27176_vm2, %v33087_v44  ;;  %26197 = vmatprep.mubr.msk.f32.mxu0 %vm27176_vm2, %v33087_v44 }
 0x9e7   :  { %v18151_v11 = vpop.permute.xlu0 %18150  ;;  %v17761_v36 = vpop.permute.xlu1 %17760 }
 0x9e8   :  { %26171 = vmatpush3.xpose.msk.msra.mxu1 %vm1134_vm3, %v17761_v36  ;;  %26196 = vmatpush3.xpose.msk.msra.mxu0 %vm1134_vm3, %v18151_v11 }
 0x9e9   :  { %26180 = vmatprep.subr.mxu1 %v33087_v44  ;;  %26205 = vmatprep.subr.mxu0 %v33087_v44 }
 0x9eb   :  { %v18149_v9 = vpop.permute.xlu0 %18148  ;;  %v17759_v49 = vpop.permute.xlu1 %17758 }
 0x9ec   :  { %26173 = vmatmul.mubr.msk.f32.vlgmr.msra.gmra.mxu1 %vm1134_vm3, %v17759_v49  ;;  %26198 = vmatmul.mubr.msk.f32.vlgmr.msra.gmra.mxu0 %vm1134_vm3, %v18149_v9 }
 0x9ed   :  { %26182 = vmatprep.mubr.msk.f32.mxu1 %vm27176_vm2, %v33087_v44  ;;  %26207 = vmatprep.mubr.msk.f32.mxu0 %vm27176_vm2, %v33087_v44 }
 0x9ef   :  { %v18307_v57 = vpop.permute.xlu0 %18306  ;;  %v17917_v51 = vpop.permute.xlu1 %17916 }
 0x9f0   :  { %26181 = vmatpush3.xpose.msk.msra.mxu1 %vm1134_vm3, %v17917_v51  ;;  %26206 = vmatpush3.xpose.msk.msra.mxu0 %vm1134_vm3, %v18307_v57 }
 0x9f1   :  { %26190 = vmatprep.subr.mxu1 %v33087_v44  ;;  %26215 = vmatprep.subr.mxu0 %v33087_v44 }
 0x9f3   :  { %v18305_v45 = vpop.permute.xlu0 %18304  ;;  %v17915_v53 = vpop.permute.xlu1 %17914 }
 0x9f4   :  { %26183 = vmatmul.mubr.msk.f32.vlgmr.msra.gmra.mxu1 %vm1134_vm3, %v17915_v53  ;;  %26208 = vmatmul.mubr.msk.f32.vlgmr.msra.gmra.mxu0 %vm1134_vm3, %v18305_v45 }
 0x9f5   :  { %26192 = vmatprep.mubr.msk.f32.mxu1 %vm27176_vm2, %v33087_v44  ;;  %26217 = vmatprep.mubr.msk.f32.mxu0 %vm27176_vm2, %v33087_v44 }
 0x9f7   :  { %v18463_v33 = vpop.permute.xlu0 %18462  ;;  %v18073_v3 = vpop.permute.xlu1 %18072 }
 0x9f8   :  { %26191 = vmatpush3.xpose.msk.msra.mxu1 %vm1134_vm3, %v18073_v3  ;;  %26216 = vmatpush3.xpose.msk.msra.mxu0 %vm1134_vm3, %v18463_v33 }
 0x9f9   :  { %26200 = vmatprep.subr.mxu1 %v33087_v44  ;;  %26225 = vmatprep.subr.mxu0 %v33087_v44 }
 0x9fb   :  { %v18461_v14 = vpop.permute.xlu0 %18460  ;;  %v31258_v1 = vpop.f32.mrf.mxu1 }
 0x9fc   :  { %33434 = vst [vmem:[#allocation157_spill] sm:$0xff] %v31258_v1  ;;  %v18071_v0 = vpop.permute.xlu1 %18070  ;;  %26218 = vmatmul.mubr.msk.f32.vlgmr.msra.gmra.mxu0 %vm1134_vm3, %v18461_v14 }
 0x9fd   :  { %26193 = vmatmul.mubr.msk.f32.vlgmr.msra.gmra.mxu1 %vm1134_vm3, %v18071_v0  ;;  %v25974_v39 = vpop.f32.mrf.mxu1  ;;  %26227 = vmatprep.mubr.msk.f32.mxu0 %vm27176_vm2, %v33087_v44 }
 0x9fe   :  { %26202 = vmatprep.mubr.msk.f32.mxu1 %vm27176_vm2, %v33087_v44 }
 0x9ff   :  { %v31266_v19 = vpop.f32.mrf.mxu0  ;;  %v18619_v15 = vpop.permute.xlu0 %18618 }
 0xa00   :  { %33435 = vst [vmem:[#allocation133_spill] sm:$0xff] %v31266_v19  ;;  %v18229_v54 = vpop.permute.xlu1 %18228  ;;  %26226 = vmatpush3.xpose.msk.msra.mxu0 %vm1134_vm3, %v18619_v15 }
 0xa01   :  { %26201 = vmatpush3.xpose.msk.msra.mxu1 %vm1134_vm3, %v18229_v54  ;;  %v25979_v28 = vpop.f32.mrf.mxu0  ;;  %26235 = vmatprep.subr.mxu0 %v33087_v44 }
 0xa02   :  { %26210 = vmatprep.subr.mxu1 %v33087_v44 }
 0xa03   :  { %v18617_v47 = vpop.permute.xlu0 %18616  ;;  %v31272_v42 = vpop.f32.mrf.mxu1 }
 0xa04   :  { %33436 = vst [vmem:[#allocation158_spill] sm:$0xff] %v31272_v42  ;;  %v18227_v20 = vpop.permute.xlu1 %18226  ;;  %26228 = vmatmul.mubr.msk.f32.vlgmr.msra.gmra.mxu0 %vm1134_vm3, %v18617_v47 }
 0xa05   :  { %26203 = vmatmul.mubr.msk.f32.vlgmr.msra.gmra.mxu1 %vm1134_vm3, %v18227_v20  ;;  %v25984_v7 = vpop.f32.mrf.mxu1  ;;  %26237 = vmatprep.mubr.msk.f32.mxu0 %vm27176_vm2, %v33087_v44 }
 0xa06   :  { %26212 = vmatprep.mubr.msk.f32.mxu1 %vm27176_vm2, %v33087_v44 }
 0xa07   :  { %v31280_v21 = vpop.f32.mrf.mxu0  ;;  %v18775_v32 = vpop.permute.xlu0 %18774 }
 0xa08   :  { %33437 = vst [vmem:[#allocation135_spill] sm:$0xff] %v31280_v21  ;;  %v31282_v5 = vpop.f32.mrf.mxu1  ;;  %v18385_v55 = vpop.permute.xlu1 %18384  ;;  %26236 = vmatpush3.xpose.msk.msra.mxu0 %vm1134_vm3, %v18775_v32 }
 0xa09   :  { %33438 = vst [vmem:[#allocation159_spill] sm:$0xff] %v31282_v5  ;;  %26211 = vmatpush3.xpose.msk.msra.mxu1 %vm1134_vm3, %v18385_v55  ;;  %v25989_v31 = vpop.f32.mrf.mxu0  ;;  %26245 = vmatprep.subr.mxu0 %v33087_v44 }
 0xa0a   :  { %v25994_v59 = vpop.f32.mrf.mxu1  ;;  %26220 = vmatprep.subr.mxu1 %v33087_v44 }
 0xa0b   :  { %v18773_v25 = vpop.permute.xlu0 %18772 }
 0xa0c   :  { %v31288_v46 = vpop.f32.mrf.mxu0  ;;  %v18383_v12 = vpop.permute.xlu1 %18382  ;;  %26238 = vmatmul.mubr.msk.f32.vlgmr.msra.gmra.mxu0 %vm1134_vm3, %v18773_v25 }
 0xa0d   :  { %33439 = vst [vmem:[#allocation137_spill] sm:$0xff] %v31288_v46  ;;  %v31291_v24 = vpop.f32.mrf.mxu1  ;;  %26213 = vmatmul.mubr.msk.f32.vlgmr.msra.gmra.mxu1 %vm1134_vm3, %v18383_v12  ;;  %26247 = vmatprep.mubr.msk.f32.mxu0 %vm27176_vm2, %v33087_v44 }
 0xa0e   :  { %33440 = vst [vmem:[#allocation160_spill] sm:$0xff] %v31291_v24  ;;  %v25999_v13 = vpop.f32.mrf.mxu0  ;;  %26222 = vmatprep.mubr.msk.f32.mxu1 %vm27176_vm2, %v33087_v44 }
 0xa0f   :  { %v26004_v60 = vpop.f32.mrf.mxu1  ;;  %v18931_v34 = vpop.permute.xlu0 %18930 }
 0xa10   :  { %v18541_v43 = vpop.permute.xlu1 %18540  ;;  %26246 = vmatpush3.xpose.msk.msra.mxu0 %vm1134_vm3, %v18931_v34 }
 0xa11   :  { %v31299_v52 = vpop.f32.mrf.mxu0  ;;  %26221 = vmatpush3.xpose.msk.msra.mxu1 %vm1134_vm3, %v18541_v43  ;;  %26255 = vmatprep.subr.mxu0 %v33087_v44 }
 0xa12   :  { %33441 = vst [vmem:[#allocation139_spill] sm:$0xff] %v31299_v52  ;;  %v31303_v29 = vpop.f32.mrf.mxu1  ;;  %26230 = vmatprep.subr.mxu1 %v33087_v44 }
 0xa13   :  { %33442 = vst [vmem:[#allocation161_spill] sm:$0xff] %v31303_v29  ;;  %v26009_v18 = vpop.f32.mrf.mxu0  ;;  %v18929_v48 = vpop.permute.xlu0 %18928 }
 0xa14   :  { %v26014_v11 = vpop.f32.mrf.mxu1  ;;  %v18539_v36 = vpop.permute.xlu1 %18538  ;;  %26248 = vmatmul.mubr.msk.f32.vlgmr.msra.gmra.mxu0 %vm1134_vm3, %v18929_v48 }
 0xa15   :  { %26223 = vmatmul.mubr.msk.f32.vlgmr.msra.gmra.mxu1 %vm1134_vm3, %v18539_v36  ;;  %26257 = vmatprep.mubr.msk.f32.mxu0 %vm27176_vm2, %v33087_v44 }
 0xa16   :  { %v31310_v9 = vpop.f32.mrf.mxu0  ;;  %26232 = vmatprep.mubr.msk.f32.mxu1 %vm27176_vm2, %v33087_v44 }
 0xa17   :  { %33443 = vst [vmem:[#allocation141_spill] sm:$0xff] %v31310_v9  ;;  %v31314_v49 = vpop.f32.mrf.mxu1  ;;  %v19087_v57 = vpop.permute.xlu0 %19086 }
 0xa18   :  { %33444 = vst [vmem:[#allocation162_spill] sm:$0xff] %v31314_v49  ;;  %v26019_v51 = vpop.f32.mrf.mxu0  ;;  %v18697_v45 = vpop.permute.xlu1 %18696  ;;  %26256 = vmatpush3.xpose.msk.msra.mxu0 %vm1134_vm3, %v19087_v57 }
 0xa19   :  { %v26024_v53 = vpop.f32.mrf.mxu1  ;;  %26231 = vmatpush3.xpose.msk.msra.mxu1 %vm1134_vm3, %v18697_v45  ;;  %26265 = vmatprep.subr.mxu0 %v33087_v44 }
 0xa1a   :  { %26240 = vmatprep.subr.mxu1 %v33087_v44 }
 0xa1b   :  { %v31320_v33 = vpop.f32.mrf.mxu0  ;;  %v19085_v3 = vpop.permute.xlu0 %19084 }
 0xa1c   :  { %33445 = vst [vmem:[#allocation143_spill] sm:$0xff] %v31320_v33  ;;  %v31322_v14 = vpop.f32.mrf.mxu1  ;;  %v18695_v0 = vpop.permute.xlu1 %18694  ;;  %26258 = vmatmul.mubr.msk.f32.vlgmr.msra.gmra.mxu0 %vm1134_vm3, %v19085_v3 }
 0xa1d   :  { %33446 = vst [vmem:[#allocation167_spill] sm:$0xff] %v31322_v14  ;;  %v26029_v39 = vpop.f32.mrf.mxu0  ;;  %26233 = vmatmul.mubr.msk.f32.vlgmr.msra.gmra.mxu1 %vm1134_vm3, %v18695_v0  ;;  %26267 = vmatprep.mubr.msk.f32.mxu0 %vm27176_vm2, %v33087_v44 }
 0xa1e   :  { %v26034_v15 = vpop.f32.mrf.mxu1  ;;  %26242 = vmatprep.mubr.msk.f32.mxu1 %vm27176_vm2, %v33087_v44 }
 0xa1f   :  { %v31330_v54 = vpop.f32.mrf.mxu0  ;;  %v19243_v28 = vpop.permute.xlu0 %19242 }
 0xa20   :  { %33447 = vst [vmem:[#allocation145_spill] sm:$0xff] %v31330_v54  ;;  %v18853_v47 = vpop.permute.xlu1 %18852  ;;  %26266 = vmatpush3.xpose.msk.msra.mxu0 %vm1134_vm3, %v19243_v28 }
 0xa21   :  { %v26039_v20 = vpop.f32.mrf.mxu0  ;;  %26241 = vmatpush3.xpose.msk.msra.mxu1 %vm1134_vm3, %v18853_v47  ;;  %26275 = vmatprep.subr.mxu0 %v33087_v44 }
 0xa22   :  { %v31335_v7 = vpop.f32.mrf.mxu1  ;;  %26250 = vmatprep.subr.mxu1 %v33087_v44 }
 0xa23   :  { %33448 = vst [vmem:[#allocation151_spill] sm:$0xff] %v31335_v7  ;;  %v31338_v32 = vpop.f32.mrf.mxu0  ;;  %v19241_v55 = vpop.permute.xlu0 %19240 }
 0xa24   :  { %33449 = vst [vmem:[#allocation106_spill] sm:$0xff] %v31338_v32  ;;  %v26044_v31 = vpop.f32.mrf.mxu1  ;;  %v18851_v59 = vpop.permute.xlu1 %18850  ;;  %26268 = vmatmul.mubr.msk.f32.vlgmr.msra.gmra.mxu0 %vm1134_vm3, %v19241_v55 }
 0xa25   :  { %v26049_v25 = vpop.f32.mrf.mxu0  ;;  %26243 = vmatmul.mubr.msk.f32.vlgmr.msra.gmra.mxu1 %vm1134_vm3, %v18851_v59  ;;  %26277 = vmatprep.mubr.msk.f32.mxu0 %vm27176_vm2, %v33087_v44 }
 0xa26   :  { %26252 = vmatprep.mubr.msk.f32.mxu1 %vm27176_vm2, %v33087_v44 }
 0xa27   :  { %v19399_v12 = vpop.permute.xlu0 %19398 }
 0xa28   :  { %v19009_v13 = vpop.permute.xlu1 %19008  ;;  %26276 = vmatpush3.xpose.msk.msra.mxu0 %vm1134_vm3, %v19399_v12 }
 0xa29   :  { %26251 = vmatpush3.xpose.msk.msra.mxu1 %vm1134_vm3, %v19009_v13  ;;  %26285 = vmatprep.subr.mxu0 %v33087_v44 }
 0xa2a   :  { %26260 = vmatprep.subr.mxu1 %v33087_v44 }
 0xa2b   :  { %v19397_v60 = vpop.permute.xlu0 %19396 }
 0xa2c   :  { %v19007_v34 = vpop.permute.xlu1 %19006  ;;  %v31350_v43 = vpop.f32.mrf.mxu1  ;;  %26278 = vmatmul.mubr.msk.f32.vlgmr.msra.gmra.mxu0 %vm1134_vm3, %v19397_v60 }
 0xa2d   :  { %33450 = vst [vmem:[#allocation152_spill] sm:$0xff] %v31350_v43  ;;  %26253 = vmatmul.mubr.msk.f32.vlgmr.msra.gmra.mxu1 %vm1134_vm3, %v19007_v34  ;;  %26287 = vmatprep.mubr.msk.f32.mxu0 %vm27176_vm2, %v33087_v44 }
 0xa2e   :  { %v26054_v18 = vpop.f32.mrf.mxu1  ;;  %26262 = vmatprep.mubr.msk.f32.mxu1 %vm27176_vm2, %v33087_v44 }
 0xa2f   :  { %v19555_v48 = vpop.permute.xlu0 %19554 }
 0xa30   :  { %v19165_v11 = vpop.permute.xlu1 %19164  ;;  %26286 = vmatpush3.xpose.msk.msra.mxu0 %vm1134_vm3, %v19555_v48 }
 0xa31   :  { %26261 = vmatpush3.xpose.msk.msra.mxu1 %vm1134_vm3, %v19165_v11  ;;  %26295 = vmatprep.subr.mxu0 %v33087_v44 }
 0xa32   :  { %26270 = vmatprep.subr.mxu1 %v33087_v44 }
 0xa33   :  { %v19553_v36 = vpop.permute.xlu0 %19552 }
 0xa34   :  { %v19163_v57 = vpop.permute.xlu1 %19162  ;;  %v31362_v51 = vpop.f32.mrf.mxu0  ;;  %26288 = vmatmul.mubr.msk.f32.vlgmr.msra.gmra.mxu0 %vm1134_vm3, %v19553_v36 }
 0xa35   :  { %33451 = vst [vmem:[#allocation52_spill] sm:$0xff] %v31362_v51  ;;  %26263 = vmatmul.mubr.msk.f32.vlgmr.msra.gmra.mxu1 %vm1134_vm3, %v19163_v57  ;;  %26297 = vmatprep.mubr.msk.f32.mxu0 %vm27176_vm2, %v33087_v44 }
 0xa36   :  { %v26059_v45 = vpop.f32.mrf.mxu0  ;;  %26272 = vmatprep.mubr.msk.f32.mxu1 %vm27176_vm2, %v33087_v44 }
 0xa37   :  { %v20123_v53 = vpop.permute.xlu0 %20122 }
 0xa38   :  { %v19321_v3 = vpop.permute.xlu1 %19320  ;;  %26296 = vmatpush3.msra.mxu0 %v20123_v53 }
 0xa39   :  { %26271 = vmatpush3.xpose.msk.msra.mxu1 %vm1134_vm3, %v19321_v3  ;;  %26305 = vmatprep.subr.mxu0 %v33087_v44 }
 0xa3a   :  { %26280 = vmatprep.subr.mxu1 %v33087_v44 }
 0xa3c   :  { %v19319_v0 = vpop.permute.xlu1 %19318 }
 0xa3d   :  { %26273 = vmatmul.mubr.msk.f32.vlgmr.msra.gmra.mxu1 %vm1134_vm3, %v19319_v0 }
 0xa3e   :  { %26282 = vmatprep.mubr.msk.f32.mxu1 %vm27176_vm2, %v33087_v44 }
 0xa40   :  { %v19477_v39 = vpop.permute.xlu1 %19476 }
 0xa41   :  { %26281 = vmatpush3.xpose.msk.msra.mxu1 %vm1134_vm3, %v19477_v39 }
 0xa42   :  { %26290 = vmatprep.subr.mxu1 %v33087_v44 }
 0xa44   :  { %v19475_v15 = vpop.permute.xlu1 %19474 }
 0xa45   :  { %26283 = vmatmul.mubr.msk.f32.vlgmr.msra.gmra.mxu1 %vm1134_vm3, %v19475_v15 }
 0xa46   :  { %26292 = vmatprep.mubr.msk.f32.mxu1 %vm27176_vm2, %v33087_v44 }
 0xa48   :  { %v20047_v28 = vpop.permute.xlu1 %20046 }
 0xa49   :  { %26291 = vmatpush3.msra.mxu1 %v20047_v28 }
 0xa4a   :  { %26300 = vmatprep.subr.mxu1 %v33087_v44 }
 0xa61   :  { %v31382_v47 = vpop.f32.mrf.mxu1 }
 0xa62   :  { %33452 = vst [vmem:[#allocation51_spill] sm:$0xff] %v31382_v47 }
 0xa63   :  { %v26064_v20 = vpop.f32.mrf.mxu1 }
 0xa65   :  { %v31384_v55 = vpop.f32.mrf.mxu0 }
 0xa66   :  { %33453 = vst [vmem:[#allocation111_spill] sm:$0xff] %v31384_v55 }
 0xa67   :  { %v26069_v31 = vpop.f32.mrf.mxu0 }
 0xa69   :  { %v31386_v59 = vpop.f32.mrf.mxu1 }
 0xa6a   :  { %33454 = vst [vmem:[#allocation153_spill] sm:$0xff] %v31386_v59  ;;  %v31388_v25 = vpop.f32.mrf.mxu0 }
 0xa6b   :  { %33455 = vst [vmem:[#allocation121_spill] sm:$0xff] %v31388_v25  ;;  %v26074_v12 = vpop.f32.mrf.mxu1 }
 0xa6c   :  { %v26079_v13 = vpop.f32.mrf.mxu0 }
 0xa6d   :  { %v31390_v60 = vpop.f32.mrf.mxu1 }
 0xa6e   :  { %33456 = vst [vmem:[#allocation154_spill] sm:$0xff] %v31390_v60 }
 0xa6f   :  { %v26084_v34 = vpop.f32.mrf.mxu1 }
 0xa71   :  { %v31392_v18 = vpop.f32.mrf.mxu0 }
 0xa72   :  { %33457 = vst [vmem:[#allocation54_spill] sm:$0xff] %v31392_v18 }
 0xa73   :  { %v26089_v48 = vpop.f32.mrf.mxu0 }
 0xa75   :  { %v31394_v11 = vpop.f32.mrf.mxu1 }
 0xa76   :  { %33458 = vst [vmem:[#allocation53_spill] sm:$0xff] %v31394_v11 }
 0xa77   :  { %v26094_v36 = vpop.f32.mrf.mxu1 }
 0xa79   :  { %v31396_v57 = vpop.f32.mrf.mxu0 }
 0xa7a   :  { %33459 = vst [vmem:[#allocation124_spill] sm:$0xff] %v31396_v57 }
 0xa7b   :  { %v26099_v45 = vpop.f32.mrf.mxu0 }
 0xa7d   :  { %v31398_v53 = vpop.f32.mrf.mxu1 }
 0xa7e   :  { %33460 = vst [vmem:[#allocation155_spill] sm:$0xff] %v31398_v53  ;;  %v31400_v3 = vpop.f32.mrf.mxu0 }
 0xa7f   :  { %33461 = vst [vmem:[#allocation128_spill] sm:$0xff] %v31400_v3  ;;  %v26104_v0 = vpop.f32.mrf.mxu1 }
 0xa80   :  { %v26109_v39 = vpop.f32.mrf.mxu0 }
 0xa82   :  { %v31402_v15 = vpop.f32.mrf.mxu1 }
 0xa83   :  { %33462 = vst [vmem:[#allocation156_spill] sm:$0xff] %v31402_v15  ;;  %v31404_v28 = vpop.f32.mrf.mxu0 }
 0xa84   :  { %33463 = vst [vmem:[#allocation56_spill] sm:$0xff] %v31404_v28  ;;  %v26114_v20 = vpop.f32.mrf.mxu1 }
 0xa85   :  { %v26119_v31 = vpop.f32.mrf.mxu0 }
 0xa88   :  { %v31406_v12 = vpop.f32.mrf.mxu1  ;;  %v31408_v13 = vpop.f32.mrf.mxu0 }
 0xa89   :  { %33464 = vst [vmem:[#allocation55_spill] sm:$0xff] %v31406_v12  ;;  %33465 = vst [vmem:[#allocation131_spill] sm:$0xff] %v31408_v13 }
 0xa8a   :  { %v26124_v34 = vpop.f32.mrf.mxu1  ;;  %v26129_v48 = vpop.f32.mrf.mxu0 }
 0xa8c   :  { %v17286_v36 = vpop.f32.mrf.mxu0 }
 0xa8d   :  { %v19631_v45 = vmul.f32 0.35355338, %v17286_v36 }
 0xa8e   :  { %v26139_v57 = vpop.f32.mrf.mxu0 }
 0xa8f   :  { %v31412_v3 = vsel %vm27238_vm0, %v19631_v45, -4.2949673e+09  ;;  %v17208_v0 = vpop.f32.mrf.mxu1 }
 0xa90   :  { %v19630_v39 = vmul.f32 0.35355338, %v17208_v0  ;;  %v17442_v15 = vpop.f32.mrf.mxu0  ;;  %v19697_v20 = vsel %vm1134_vm3, %v31412_v3, -inf }
 0xa91   :  { %19698 = vmax.xlane.f32.xlu0 %v19697_v20  ;;  %v26134_v31 = vpop.f32.mrf.mxu1  ;;  %v19633_v12 = vmul.f32 0.35355338, %v17442_v15 }
 0xa92   :  { %v31418_v13 = vsel %vm27238_vm0, %v19630_v39, -4.2949673e+09  ;;  %v26149_v34 = vpop.f32.mrf.mxu0 }
 0xa93   :  { %v19694_v57 = vsel %vm1134_vm3, %v31418_v13, -inf  ;;  %v31430_v34 = vsel %vm27238_vm0, %v19633_v12, -4.2949673e+09 }
 0xa94   :  { %v17598_v48 = vpop.f32.mrf.mxu0  ;;  %19695 = vmax.xlane.f32.xlu1 %v19694_v57 }
 0xa95   :  { %v19635_v54 = vmul.f32 0.35355338, %v17598_v48 }
 0xa96   :  { %v26159_v36 = vpop.f32.mrf.mxu0 }
 0xa97   :  { %v17364_v45 = vpop.f32.mrf.mxu1  ;;  %v31440_v14 = vsel %vm27238_vm0, %v19635_v54, -4.2949673e+09 }
 0xa98   :  { %v19632_v0 = vmul.f32 0.35355338, %v17364_v45  ;;  %v17754_v28 = vpop.f32.mrf.mxu0 }
 0xa99   :  { %v26144_v11 = vpop.f32.mrf.mxu1  ;;  %v19637_v12 = vmul.f32 0.35355338, %v17754_v28 }
 0xa9a   :  { %v31424_v20 = vsel %vm27238_vm0, %v19632_v0, -4.2949673e+09  ;;  %v26169_v31 = vpop.f32.mrf.mxu0  ;;  %v19703_v0 = vsel %vm1134_vm3, %v31430_v34, -inf }
 0xa9b   :  { %v19700_v39 = vsel %vm1134_vm3, %v31424_v20, -inf }
 0xa9c   :  { %19701 = vmax.xlane.f32.xlu0 %v19700_v39  ;;  %v17520_v57 = vpop.f32.mrf.mxu1  ;;  %v19709_v39 = vsel %vm1134_vm3, %v31440_v14, -inf }
 0xa9d   :  { %v19634_v36 = vmul.f32 0.35355338, %v17520_v57  ;;  %v17910_v15 = vpop.f32.mrf.mxu0  ;;  %v31448_v57 = vsel %vm27238_vm0, %v19637_v12, -4.2949673e+09 }
 0xa9e   :  { %v26154_v45 = vpop.f32.mrf.mxu1 }
 0xa9f   :  { %v31434_v11 = vsel %vm27238_vm0, %v19634_v36, -4.2949673e+09  ;;  %v26179_v31 = vpop.f32.mrf.mxu0  ;;  %v19639_v36 = vmul.f32 0.35355338, %v17910_v15 }
 0xaa0   :  { %19704 = vmax.xlane.f32.xlu0 %v19703_v0  ;;  %v19706_v48 = vsel %vm1134_vm3, %v31434_v11, -inf  ;;  %v19715_v0 = vsel %vm1134_vm3, %v31448_v57, -inf }
 0xaa1   :  { %19707 = vmax.xlane.f32.xlu1 %v19706_v48  ;;  %v31458_v48 = vsel %vm27238_vm0, %v19639_v36, -4.2949673e+09 }
 0xaa4   :  { %19710 = vmax.xlane.f32.xlu0 %v19709_v39  ;;  %v17676_v45 = vpop.f32.mrf.mxu1  ;;  %v18066_v31 = vpop.f32.mrf.mxu0 }
 0xaa5   :  { %v19636_v18 = vmul.f32 0.35355338, %v17676_v45  ;;  %v19641_v12 = vmul.f32 0.35355338, %v18066_v31 }
 0xaa6   :  { %v26164_v54 = vpop.f32.mrf.mxu1  ;;  %v26189_v60 = vpop.f32.mrf.mxu0 }
 0xaa7   :  { %v31452_v28 = vsel %vm27238_vm0, %v19636_v18, -4.2949673e+09  ;;  %v19721_v60 = vsel %vm1134_vm3, %v31458_v48, -inf  ;;  %v31466_v18 = vsel %vm27238_vm0, %v19641_v12, -4.2949673e+09 }
 0xaa8   :  { %19716 = vmax.xlane.f32.xlu0 %v19715_v0  ;;  %v19712_v15 = vsel %vm1134_vm3, %v31452_v28, -inf }
 0xaa9   :  { %19713 = vmax.xlane.f32.xlu1 %v19712_v15  ;;  %v19727_v15 = vsel %vm1134_vm3, %v31466_v18, -inf }
 0xaac   :  { %19722 = vmax.xlane.f32.xlu0 %v19721_v60  ;;  %v17832_v39 = vpop.f32.mrf.mxu1  ;;  %v18222_v45 = vpop.f32.mrf.mxu0 }
 0xaad   :  { %v19638_v54 = vmul.f32 0.35355338, %v17832_v39  ;;  %v19643_v33 = vmul.f32 0.35355338, %v18222_v45 }
 0xaae   :  { %v26174_v36 = vpop.f32.mrf.mxu1  ;;  %v26199_v49 = vpop.f32.mrf.mxu0 }
 0xaaf   :  { %v31470_v31 = vsel %vm27238_vm0, %v19638_v54, -4.2949673e+09  ;;  %v31474_v0 = vsel %vm27238_vm0, %v19643_v33, -4.2949673e+09 }
 0xab0   :  { %19728 = vmax.xlane.f32.xlu0 %v19727_v15  ;;  %v19718_v12 = vsel %vm1134_vm3, %v31470_v31, -inf  ;;  %v19733_v60 = vsel %vm1134_vm3, %v31474_v0, -inf }
 0xab1   :  { %19719 = vmax.xlane.f32.xlu1 %v19718_v12 }
 0xab4   :  { %19734 = vmax.xlane.f32.xlu0 %v19733_v60  ;;  %v17988_v49 = vpop.f32.mrf.mxu1  ;;  %v18378_v39 = vpop.f32.mrf.mxu0 }
 0xab5   :  { %v19640_v45 = vmul.f32 0.35355338, %v17988_v49  ;;  %v19645_v54 = vmul.f32 0.35355338, %v18378_v39 }
 0xab6   :  { %v26184_v36 = vpop.f32.mrf.mxu1  ;;  %v26209_v9 = vpop.f32.mrf.mxu0 }
 0xab7   :  { %v31484_v33 = vsel %vm27238_vm0, %v19640_v45, -4.2949673e+09  ;;  %v31488_v15 = vsel %vm27238_vm0, %v19645_v54, -4.2949673e+09 }
 0xab8   :  { %v19739_v29 = vsel %vm1134_vm3, %v31488_v15, -inf  ;;  %v19724_v12 = vsel %vm1134_vm3, %v31484_v33, -inf }
 0xab9   :  { %19740 = vmax.xlane.f32.xlu0 %v19739_v29  ;;  %19725 = vmax.xlane.f32.xlu1 %v19724_v12 }
 0xabc   :  { %v18534_v60 = vpop.f32.mrf.mxu0 }
 0xabd   :  { %v18144_v49 = vpop.f32.mrf.mxu1  ;;  %v19647_v39 = vmul.f32 0.35355338, %v18534_v60 }
 0xabe   :  { %v19642_v9 = vmul.f32 0.35355338, %v18144_v49  ;;  %v26219_v36 = vpop.f32.mrf.mxu0 }
 0xabf   :  { %v31496_v45 = vsel %vm27238_vm0, %v19647_v39, -4.2949673e+09  ;;  %v26194_v52 = vpop.f32.mrf.mxu1 }
 0xac0   :  { %v31500_v54 = vsel %vm27238_vm0, %v19642_v9, -4.2949673e+09  ;;  %v19745_v24 = vsel %vm1134_vm3, %v31496_v45, -inf }
 0xac1   :  { %19746 = vmax.xlane.f32.xlu0 %v19745_v24  ;;  %v19730_v29 = vsel %vm1134_vm3, %v31500_v54, -inf }
 0xac2   :  { %19731 = vmax.xlane.f32.xlu1 %v19730_v29 }
 0xac4   :  { %v18690_v12 = vpop.f32.mrf.mxu0 }
 0xac5   :  { %v18300_v60 = vpop.f32.mrf.mxu1  ;;  %v19649_v49 = vmul.f32 0.35355338, %v18690_v12 }
 0xac6   :  { %v19644_v36 = vmul.f32 0.35355338, %v18300_v60  ;;  %v26229_v46 = vpop.f32.mrf.mxu0 }
 0xac7   :  { %v31508_v52 = vsel %vm27238_vm0, %v19649_v49, -4.2949673e+09  ;;  %v26204_v39 = vpop.f32.mrf.mxu1 }
 0xac8   :  { %v31512_v9 = vsel %vm27238_vm0, %v19644_v36, -4.2949673e+09  ;;  %v19751_v24 = vsel %vm1134_vm3, %v31508_v52, -inf }
 0xac9   :  { %19752 = vmax.xlane.f32.xlu0 %v19751_v24  ;;  %v19736_v29 = vsel %vm1134_vm3, %v31512_v9, -inf }
 0xaca   :  { %19737 = vmax.xlane.f32.xlu1 %v19736_v29 }
 0xacc   :  { %v18846_v12 = vpop.f32.mrf.mxu0 }
 0xacd   :  { %v18456_v60 = vpop.f32.mrf.mxu1  ;;  %v19651_v46 = vmul.f32 0.35355338, %v18846_v12 }
 0xace   :  { %v19646_v5 = vmul.f32 0.35355338, %v18456_v60  ;;  %v26239_v25 = vpop.f32.mrf.mxu0 }
 0xacf   :  { %v31520_v49 = vsel %vm27238_vm0, %v19651_v46, -4.2949673e+09  ;;  %v26214_v39 = vpop.f32.mrf.mxu1 }
 0xad0   :  { %v31524_v36 = vsel %vm27238_vm0, %v19646_v5, -4.2949673e+09  ;;  %v19757_v24 = vsel %vm1134_vm3, %v31520_v49, -inf }
 0xad1   :  { %19758 = vmax.xlane.f32.xlu0 %v19757_v24  ;;  %v19742_v29 = vsel %vm1134_vm3, %v31524_v36, -inf }
 0xad2   :  { %19743 = vmax.xlane.f32.xlu1 %v19742_v29 }
 0xad4   :  { %v19002_v12 = vpop.f32.mrf.mxu0 }
 0xad5   :  { %v18612_v60 = vpop.f32.mrf.mxu1  ;;  %v19653_v25 = vmul.f32 0.35355338, %v19002_v12 }
 0xad6   :  { %v19648_v59 = vmul.f32 0.35355338, %v18612_v60  ;;  %v26249_v21 = vpop.f32.mrf.mxu0 }
 0xad7   :  { %v31532_v46 = vsel %vm27238_vm0, %v19653_v25, -4.2949673e+09  ;;  %v26224_v39 = vpop.f32.mrf.mxu1 }
 0xad8   :  { %v31536_v5 = vsel %vm27238_vm0, %v19648_v59, -4.2949673e+09  ;;  %v19763_v24 = vsel %vm1134_vm3, %v31532_v46, -inf }
 0xad9   :  { %19764 = vmax.xlane.f32.xlu0 %v19763_v24  ;;  %v19748_v29 = vsel %vm1134_vm3, %v31536_v5, -inf }
 0xada   :  { %19749 = vmax.xlane.f32.xlu1 %v19748_v29 }
 0xadc   :  { %v19158_v12 = vpop.f32.mrf.mxu0 }
 0xadd   :  { %v18768_v60 = vpop.f32.mrf.mxu1  ;;  %v19655_v21 = vmul.f32 0.35355338, %v19158_v12 }
 0xade   :  { %v19650_v55 = vmul.f32 0.35355338, %v18768_v60  ;;  %v26259_v42 = vpop.f32.mrf.mxu0 }
 0xadf   :  { %v31544_v25 = vsel %vm27238_vm0, %v19655_v21, -4.2949673e+09  ;;  %v26234_v39 = vpop.f32.mrf.mxu1 }
 0xae0   :  { %v31548_v59 = vsel %vm27238_vm0, %v19650_v55, -4.2949673e+09  ;;  %v19769_v24 = vsel %vm1134_vm3, %v31544_v25, -inf }
 0xae1   :  { %19770 = vmax.xlane.f32.xlu0 %v19769_v24  ;;  %v19754_v29 = vsel %vm1134_vm3, %v31548_v59, -inf }
 0xae2   :  { %19755 = vmax.xlane.f32.xlu1 %v19754_v29 }
 0xae4   :  { %v19314_v12 = vpop.f32.mrf.mxu0 }
 0xae5   :  { %v18924_v60 = vpop.f32.mrf.mxu1  ;;  %v19657_v42 = vmul.f32 0.35355338, %v19314_v12 }
 0xae6   :  { %v19652_v47 = vmul.f32 0.35355338, %v18924_v60  ;;  %v26269_v51 = vpop.f32.mrf.mxu0 }
 0xae7   :  { %v31556_v21 = vsel %vm27238_vm0, %v19657_v42, -4.2949673e+09  ;;  %v26244_v39 = vpop.f32.mrf.mxu1 }
 0xae8   :  { %v31560_v55 = vsel %vm27238_vm0, %v19652_v47, -4.2949673e+09  ;;  %v19775_v24 = vsel %vm1134_vm3, %v31556_v21, -inf }
 0xae9   :  { %19776 = vmax.xlane.f32.xlu0 %v19775_v24  ;;  %v19760_v29 = vsel %vm1134_vm3, %v31560_v55, -inf }
 0xaea   :  { %19761 = vmax.xlane.f32.xlu1 %v19760_v29 }
 0xaec   :  { %v19470_v12 = vpop.f32.mrf.mxu0 }
 0xaed   :  { %v19080_v60 = vpop.f32.mrf.mxu1  ;;  %v19659_v51 = vmul.f32 0.35355338, %v19470_v12 }
 0xaee   :  { %v19654_v19 = vmul.f32 0.35355338, %v19080_v60  ;;  %v26279_v32 = vpop.f32.mrf.mxu0 }
 0xaef   :  { %v31568_v42 = vsel %vm27238_vm0, %v19659_v51, -4.2949673e+09  ;;  %v26254_v39 = vpop.f32.mrf.mxu1 }
 0xaf0   :  { %v31572_v47 = vsel %vm27238_vm0, %v19654_v19, -4.2949673e+09  ;;  %v19781_v24 = vsel %vm1134_vm3, %v31568_v42, -inf }
 0xaf1   :  { %19782 = vmax.xlane.f32.xlu0 %v19781_v24  ;;  %v19766_v29 = vsel %vm1134_vm3, %v31572_v47, -inf }
 0xaf2   :  { %19767 = vmax.xlane.f32.xlu1 %v19766_v29 }
 0xaf4   :  { %v19626_v12 = vpop.f32.mrf.mxu0 }
 0xaf5   :  { %v19236_v60 = vpop.f32.mrf.mxu1  ;;  %v19661_v32 = vmul.f32 0.35355338, %v19626_v12 }
 0xaf6   :  { %v19656_v1 = vmul.f32 0.35355338, %v19236_v60  ;;  %v26289_v22 = vpop.f32.mrf.mxu0 }
 0xaf7   :  { %v31580_v51 = vsel %vm27238_vm0, %v19661_v32, -4.2949673e+09  ;;  %v26264_v39 = vpop.f32.mrf.mxu1 }
 0xaf8   :  { %v31584_v19 = vsel %vm27238_vm0, %v19656_v1, -4.2949673e+09  ;;  %v19787_v24 = vsel %vm1134_vm3, %v31580_v51, -inf  ;;  %v31596_v1 = vpop.permute.xlu0 %20198 }
 0xaf9   :  { %19788 = vmax.xlane.f32.xlu0 %v19787_v24  ;;  %v19772_v29 = vsel %vm1134_vm3, %v31584_v19, -inf }
 0xafa   :  { %19773 = vmax.xlane.f32.xlu1 %v19772_v29 }
 0xafd   :  { %v19392_v12 = vpop.f32.mrf.mxu1 }
 0xafe   :  { %v19658_v60 = vmul.f32 0.35355338, %v19392_v12  ;;  %v31604_v12 = vpop.permute.xlu0 %20350 }
 0xaff   :  { %v26274_v22 = vpop.f32.mrf.mxu1 }
 0xb00   :  { %v31592_v32 = vsel %vm27238_vm0, %v19658_v60, -4.2949673e+09  ;;  %v31606_v60 = vpop.permute.xlu1 %20274 }
 0xb01   :  { %v19778_v39 = vsel %vm1134_vm3, %v31592_v32, -inf }
 0xb02   :  { %19779 = vmax.xlane.f32.xlu1 %v19778_v39  ;;  %v31608_v22 = vpop.permute.xlu0 %20426 }
 0xb04   :  { %v31610_v39 = vpop.permute.xlu1 %20502 }
 0xb05   :  { %v19548_v63 = vpop.f32.mrf.mxu1 }
 0xb06   :  { %v19660_v43 = vmul.f32 0.35355338, %v19548_v63  ;;  %v31612_v6 = vpop.permute.xlu0 %20578 }
 0xb07   :  { %v26284_v24 = vpop.f32.mrf.mxu1 }
 0xb08   :  { %v31600_v38 = vsel %vm27238_vm0, %v19660_v43, -4.2949673e+09  ;;  %v31614_v63 = vpop.permute.xlu1 %20654 }
 0xb09   :  { %v19784_v29 = vsel %vm1134_vm3, %v31600_v38, -inf }
 0xb0a   :  { %19785 = vmax.xlane.f32.xlu1 %v19784_v29 }
 0xb1a   :  { %v19699_v24 = vpop.xlane.xlu0 %19698 }
 0xb1b   :  { %v19791_v43 = vsub.f32 %v31412_v3, %v19699_v24 }
 0xb1d   :  { %v19824_v53 = vmul.f32 1.442695, %v19791_v43  ;;  %v19696_v7 = vpop.xlane.xlu1 %19695 }
 0xb1e   :  { %v19790_v61 = vsub.f32 %v31418_v13, %v19696_v7 }
 0xb1f   :  { %26925 = vpow2.f32 %v19824_v53 }
 0xb20   :  { %v19822_v23 = vmul.f32 1.442695, %v19790_v61 }
 0xb22   :  { %26927 = vpow2.f32 %v19822_v23 }
 0xb25   :  { %v19702_v29 = vpop.xlane.xlu0 %19701 }
 0xb26   :  { %v19792_v8 = vsub.f32 %v31424_v20, %v19702_v29 }
 0xb28   :  { %v19826_v17 = vmul.f32 1.442695, %v19792_v8 }
 0xb29   :  { %v19705_v30 = vpop.xlane.xlu0 %19704 }
 0xb2a   :  { %26929 = vpow2.f32 %v19826_v17  ;;  %v19793_v35 = vsub.f32 %v31430_v34, %v19705_v30  ;;  %v19708_v62 = vpop.xlane.xlu1 %19707 }
 0xb2b   :  { %v19794_v58 = vsub.f32 %v31434_v11, %v19708_v62 }
 0xb2c   :  { %v31621_v41 = vpop.eup %26925  ;;  %v19828_v3 = vmul.f32 1.442695, %v19793_v35 }
 0xb2d   :  { %v19711_v24 = vpop.xlane.xlu0 %19710  ;;  %v19830_v43 = vmul.f32 1.442695, %v19794_v58  ;;  %v19889_v61 = vsel %vm1134_vm3, %v31621_v41, 0.0 }
 0xb2e   :  { %26931 = vpow2.f32 %v19828_v3  ;;  %v19795_v23 = vsub.f32 %v31440_v14, %v19711_v24  ;;  %19890 = vadd.xlane.f32.xlu0 %v19889_v61 }
 0xb2f   :  { %v31626_v8 = vpop.eup %26927  ;;  %26933 = vpow2.f32 %v19830_v43 }
 0xb30   :  { %v19832_v17 = vmul.f32 1.442695, %v19795_v23  ;;  %v19886_v30 = vsel %vm1134_vm3, %v31626_v8, 0.0 }
 0xb31   :  { %v19717_v62 = vpop.xlane.xlu0 %19716  ;;  %19887 = vadd.xlane.f32.xlu1 %v19886_v30 }
 0xb32   :  { %26935 = vpow2.f32 %v19832_v17  ;;  %v19797_v35 = vsub.f32 %v31448_v57, %v19717_v62  ;;  %v19714_v58 = vpop.xlane.xlu1 %19713 }
 0xb33   :  { %v19796_v7 = vsub.f32 %v31452_v28, %v19714_v58 }
 0xb34   :  { %v19836_v13 = vmul.f32 1.442695, %v19797_v35 }
 0xb35   :  { %v19723_v20 = vpop.xlane.xlu0 %19722  ;;  %v19834_v34 = vmul.f32 1.442695, %v19796_v7 }
 0xb36   :  { %26937 = vpow2.f32 %v19836_v13  ;;  %v19799_v14 = vsub.f32 %v31458_v48, %v19723_v20 }
 0xb37   :  { %v31633_v11 = vpop.eup %26929  ;;  %26939 = vpow2.f32 %v19834_v34 }
 0xb38   :  { %v19840_v53 = vmul.f32 1.442695, %v19799_v14  ;;  %v19892_v29 = vsel %vm1134_vm3, %v31633_v11, 0.0 }
 0xb39   :  { %v19729_v3 = vpop.xlane.xlu0 %19728  ;;  %19893 = vadd.xlane.f32.xlu1 %v19892_v29 }
 0xb3a   :  { %26941 = vpow2.f32 %v19840_v53  ;;  %v19801_v57 = vsub.f32 %v31466_v18, %v19729_v3  ;;  %v19720_v24 = vpop.xlane.xlu1 %19719 }
 0xb3b   :  { %v31638_v28 = vpop.eup %26931  ;;  %v19798_v43 = vsub.f32 %v31470_v31, %v19720_v24 }
 0xb3c   :  { %v31641_v61 = vpop.eup %26933  ;;  %v19844_v48 = vmul.f32 1.442695, %v19801_v57  ;;  %v19895_v23 = vsel %vm1134_vm3, %v31638_v28, 0.0 }
 0xb3d   :  { %19896 = vadd.xlane.f32.xlu0 %v19895_v23  ;;  %v19735_v17 = vpop.xlane.xlu0 %19734  ;;  %v19838_v30 = vmul.f32 1.442695, %v19798_v43  ;;  %v19898_v62 = vsel %vm1134_vm3, %v31641_v61, 0.0 }
 0xb3e   :  { %26943 = vpow2.f32 %v19844_v48  ;;  %v19803_v18 = vsub.f32 %v31474_v0, %v19735_v17  ;;  %19899 = vadd.xlane.f32.xlu1 %v19898_v62 }
 0xb3f   :  { %v31648_v35 = vpop.eup %26935  ;;  %26945 = vpow2.f32 %v19838_v30 }
 0xb40   :  { %v19848_v31 = vmul.f32 1.442695, %v19803_v18  ;;  %v19901_v58 = vsel %vm1134_vm3, %v31648_v35, 0.0 }
 0xb41   :  { %19902 = vadd.xlane.f32.xlu0 %v19901_v58 }
 0xb42   :  { %26947 = vpow2.f32 %v19848_v31  ;;  %v19726_v7 = vpop.xlane.xlu1 %19725  ;;  %v19741_v3 = vpop.xlane.xlu0 %19740 }
 0xb43   :  { %v31652_v13 = vpop.eup %26937  ;;  %v19800_v20 = vsub.f32 %v31484_v33, %v19726_v7  ;;  %v19805_v33 = vsub.f32 %v31488_v15, %v19741_v3 }
 0xb44   :  { %v31655_v34 = vpop.eup %26939  ;;  %v19907_v0 = vsel %vm1134_vm3, %v31652_v13, 0.0 }
 0xb45   :  { %19908 = vadd.xlane.f32.xlu0 %v19907_v0  ;;  %v19842_v14 = vmul.f32 1.442695, %v19800_v20  ;;  %v19904_v53 = vsel %vm1134_vm3, %v31655_v34, 0.0  ;;  %v19852_v62 = vmul.f32 1.442695, %v19805_v33 }
 0xb46   :  { %19905 = vadd.xlane.f32.xlu1 %v19904_v53 }
 0xb47   :  { %v31661_v29 = vpop.eup %26941  ;;  %26949 = vpow2.f32 %v19842_v14 }
 0xb48   :  { %v19913_v57 = vsel %vm1134_vm3, %v31661_v29, 0.0 }
 0xb49   :  { %19914 = vadd.xlane.f32.xlu0 %v19913_v57 }
 0xb4a   :  { %v19747_v14 = vpop.xlane.xlu0 %19746 }
 0xb4b   :  { %v31666_v24 = vpop.eup %26943  ;;  %v19732_v43 = vpop.xlane.xlu1 %19731  ;;  %v19807_v53 = vsub.f32 %v31496_v45, %v19747_v14 }
 0xb4c   :  { %v31668_v48 = vpop.eup %26945  ;;  %v19919_v23 = vsel %vm1134_vm3, %v31666_v24, 0.0  ;;  %v19802_v17 = vsub.f32 %v31500_v54, %v19732_v43 }
 0xb4d   :  { %19920 = vadd.xlane.f32.xlu0 %v19919_v23  ;;  %v19910_v30 = vsel %vm1134_vm3, %v31668_v48, 0.0  ;;  %v19856_v23 = vmul.f32 1.442695, %v19807_v53 }
 0xb4e   :  { %v19846_v18 = vmul.f32 1.442695, %v19802_v17  ;;  %19911 = vadd.xlane.f32.xlu1 %v19910_v30 }
 0xb4f   :  { %v31675_v31 = vpop.eup %26947 }
 0xb50   :  { %26951 = vpow2.f32 %v19846_v18  ;;  %v19925_v15 = vsel %vm1134_vm3, %v31675_v31, 0.0 }
 0xb51   :  { %19926 = vadd.xlane.f32.xlu0 %v19925_v15  ;;  %26953 = vpow2.f32 %v19852_v62 }
 0xb52   :  { %v19753_v3 = vpop.xlane.xlu0 %19752 }
 0xb53   :  { %v19738_v58 = vpop.xlane.xlu1 %19737 }
 0xb54   :  { %v19804_v7 = vsub.f32 %v31512_v9, %v19738_v58  ;;  %v31680_v20 = vpop.eup %26949  ;;  %v19809_v9 = vsub.f32 %v31508_v52, %v19753_v3 }
 0xb55   :  { %v19916_v0 = vsel %vm1134_vm3, %v31680_v20, 0.0 }
 0xb56   :  { %v19850_v54 = vmul.f32 1.442695, %v19804_v7  ;;  %19917 = vadd.xlane.f32.xlu1 %v19916_v0  ;;  %v19860_v45 = vmul.f32 1.442695, %v19809_v9 }
 0xb58   :  { %26955 = vpow2.f32 %v19850_v54 }
 0xb5a   :  { %v19759_v18 = vpop.xlane.xlu0 %19758 }
 0xb5b   :  { %v19744_v57 = vpop.xlane.xlu1 %19743  ;;  %v19811_v15 = vsub.f32 %v31520_v49, %v19759_v18 }
 0xb5c   :  { %v19806_v33 = vsub.f32 %v31524_v36, %v19744_v57 }
 0xb5d   :  { %v31686_v43 = vpop.eup %26951  ;;  %v19864_v54 = vmul.f32 1.442695, %v19811_v15 }
 0xb5e   :  { %v19854_v17 = vmul.f32 1.442695, %v19806_v33  ;;  %v19922_v30 = vsel %vm1134_vm3, %v31686_v43, 0.0  ;;  %v31691_v62 = vpop.eup %26953 }
 0xb5f   :  { %19923 = vadd.xlane.f32.xlu1 %v19922_v30  ;;  %v19931_v36 = vsel %vm1134_vm3, %v31691_v62, 0.0 }
 0xb60   :  { %26957 = vpow2.f32 %v19854_v17 }
 0xb61   :  { %26959 = vpow2.f32 %v19856_v23 }
 0xb62   :  { %26961 = vpow2.f32 %v19860_v45 }
 0xb63   :  { %19932 = vadd.xlane.f32.xlu1 %v19931_v36  ;;  %v19750_v58 = vpop.xlane.xlu1 %19749 }
 0xb64   :  { %v19808_v52 = vsub.f32 %v31536_v5, %v19750_v58 }
 0xb65   :  { %v31697_v7 = vpop.eup %26955 }
 0xb66   :  { %v19858_v0 = vmul.f32 1.442695, %v19808_v52  ;;  %v19928_v14 = vsel %vm1134_vm3, %v31697_v7, 0.0 }
 0xb67   :  { %19929 = vadd.xlane.f32.xlu0 %v19928_v14  ;;  %v19765_v14 = vpop.xlane.xlu0 %19764 }
 0xb68   :  { %26963 = vpow2.f32 %v19858_v0 }
 0xb69   :  { %26965 = vpow2.f32 %v19864_v54 }
 0xb6b   :  { %v19756_v53 = vpop.xlane.xlu1 %19755 }
 0xb6c   :  { %v19810_v49 = vsub.f32 %v31548_v59, %v19756_v53  ;;  %v19813_v53 = vsub.f32 %v31532_v46, %v19765_v14 }
 0xb6d   :  { %v31702_v3 = vpop.eup %26957 }
 0xb6e   :  { %v19862_v57 = vmul.f32 1.442695, %v19810_v49  ;;  %v19934_v5 = vsel %vm1134_vm3, %v31702_v3, 0.0  ;;  %v31706_v33 = vpop.eup %26959  ;;  %v19868_v49 = vmul.f32 1.442695, %v19813_v53 }
 0xb6f   :  { %19935 = vadd.xlane.f32.xlu0 %v19934_v5  ;;  %v19937_v23 = vsel %vm1134_vm3, %v31706_v33, 0.0  ;;  %v31710_v9 = vpop.eup %26961 }
 0xb70   :  { %26967 = vpow2.f32 %v19862_v57  ;;  %v19943_v45 = vsel %vm1134_vm3, %v31710_v9, 0.0 }
 0xb73   :  { %19938 = vadd.xlane.f32.xlu0 %v19937_v23  ;;  %v19762_v17 = vpop.xlane.xlu1 %19761  ;;  %v19771_v23 = vpop.xlane.xlu0 %19770 }
 0xb74   :  { %v19812_v30 = vsub.f32 %v31560_v55, %v19762_v17 }
 0xb75   :  { %v31713_v59 = vpop.eup %26963 }
 0xb76   :  { %v19866_v18 = vmul.f32 1.442695, %v19812_v30  ;;  %v19940_v15 = vsel %vm1134_vm3, %v31713_v59, 0.0  ;;  %v31719_v36 = vpop.eup %26965 }
 0xb77   :  { %19944 = vadd.xlane.f32.xlu0 %v19943_v45  ;;  %19941 = vadd.xlane.f32.xlu1 %v19940_v15  ;;  %v19949_v58 = vsel %vm1134_vm3, %v31719_v36, 0.0  ;;  %v31737_v30 = vpop.xlane.xlu0 %19776 }
 0xb78   :  { %26969 = vpow2.f32 %v19866_v18 }
 0xb79   :  { %26971 = vpow2.f32 %v19868_v49 }
 0xb7b   :  { %19950 = vadd.xlane.f32.xlu0 %v19949_v58  ;;  %v19768_v57 = vpop.xlane.xlu1 %19767 }
 0xb7c   :  { %v19814_v5 = vsub.f32 %v31572_v47, %v19768_v57 }
 0xb7d   :  { %v31723_v52 = vpop.eup %26967 }
 0xb7e   :  { %v19946_v55 = vsel %vm1134_vm3, %v31723_v52, 0.0  ;;  %v19870_v17 = vmul.f32 1.442695, %v19814_v5 }
 0xb7f   :  { %19947 = vadd.xlane.f32.xlu1 %v19946_v55 }
 0xb80   :  { %26973 = vpow2.f32 %v19870_v17 }
 0xb83   :  { %v31741_v45 = vpop.xlane.xlu1 %19773 }
 0xb85   :  { %v31727_v54 = vpop.eup %26969 }
 0xb86   :  { %v19952_v0 = vsel %vm1134_vm3, %v31727_v54, 0.0  ;;  %v31739_v18 = vpop.eup %26971 }
 0xb87   :  { %19953 = vadd.xlane.f32.xlu1 %v19952_v0  ;;  %v19955_v46 = vsel %vm1134_vm3, %v31739_v18, 0.0 }
 0xb8d   :  { %v31753_v55 = vpop.eup %26973 }
 0xb8e   :  { %v19958_v14 = vsel %vm1134_vm3, %v31753_v55, 0.0 }
 0xb91   :  { %20730 = vrot.lane.b32.xlu0 %v33425_v26, %s27185_s24  ;;  %v31743_v26 = vpop.xlane.xlu0 %19782 }
 0xb95   :  { %v31749_v15 = vpop.xlane.xlu0 %19788 }
 0xb98   :  { %20806 = vrot.lane.b32.xlu1 %v33430_v50, %s27185_s24  ;;  %v31747_v50 = vpop.xlane.xlu1 %19779 }
 0xb9c   :  { %v31751_v47 = vpop.xlane.xlu1 %19785 }
 0xbb0   :  { %19956 = vadd.xlane.f32.xlu0 %v19955_v46 }
 0xbb7   :  { %v19891_v58 = vpop.xlane.xlu0 %19890 }
 0xbb8   :  { %26975 = vrcp.f32 %v19891_v58 }
 0xbba   :  { %v19888_v0 = vpop.xlane.xlu1 %19887 }
 0xbbb   :  { %26977 = vrcp.f32 %v19888_v0 }
 0xbbc   :  { %19959 = vadd.xlane.f32.xlu1 %v19958_v14 }
 0xbc2   :  { %v19894_v53 = vpop.xlane.xlu1 %19893 }
 0xbc3   :  { %26979 = vrcp.f32 %v19894_v53 }
 0xbc5   :  { %v26976_v49 = vpop.eup %26975 }
 0xbc6   :  { %v20015_v57 = vmul.f32 %v26976_v49, %v31621_v41  ;;  %v19897_v5 = vpop.xlane.xlu0 %19896  ;;  %20882 = vrot.lane.b32.xlu0 %v33427_v10, %s27185_s24  ;;  %v19815_v41 = vsub.f32 %v31544_v25, %v19771_v23 }
 0xbc7   :  { %26981 = vrcp.f32 %v19897_v5  ;;  %v19900_v17 = vpop.xlane.xlu1 %19899 }
 0xbc8   :  { %v26978_v46 = vpop.eup %26977  ;;  %26298 = vmatmul.mubr.msk.f32.vlgmr.msra.gmra.mxu0 %vm1134_vm3, %v20015_v57  ;;  %26983 = vrcp.f32 %v19900_v17  ;;  %v19872_v14 = vmul.f32 1.442695, %v19815_v41  ;;  %v19816_v57 = vsub.f32 %v31584_v19, %v31741_v45 }
 0xbc9   :  { %v20014_v58 = vmul.f32 %v26978_v46, %v31626_v8  ;;  %26306 = vmatpush3.msra.mxu0 %v31606_v60  ;;  %26307 = vmatprep.mubr.msk.f32.mxu0 %vm27176_vm2, %v33087_v44 }
 0xbca   :  { %v19903_v0 = vpop.xlane.xlu0 %19902  ;;  %26315 = vmatprep.subr.mxu0 %v33087_v44 }
 0xbcb   :  { %26985 = vrcp.f32 %v19903_v0  ;;  %26293 = vmatmul.mubr.msk.f32.vlgmr.msra.gmra.mxu1 %vm1134_vm3, %v20014_v58 }
 0xbcc   :  { %26301 = vmatpush3.msra.mxu1 %v31596_v1  ;;  %26302 = vmatprep.mubr.msk.f32.mxu1 %vm27176_vm2, %v33087_v44 }
 0xbcd   :  { %20958 = vrot.lane.b32.xlu1 %v33432_v27, %s27185_s24  ;;  %26310 = vmatprep.subr.mxu1 %v33087_v44 }
 0xbce   :  { %v19909_v10 = vpop.xlane.xlu0 %19908 }
 0xbcf   :  { %26987 = vrcp.f32 %v19909_v10  ;;  %v19906_v60 = vpop.xlane.xlu1 %19905 }
 0xbd0   :  { %v26980_v8 = vpop.eup %26979  ;;  %26989 = vrcp.f32 %v19906_v60 }
 0xbd1   :  { %v20016_v53 = vmul.f32 %v26980_v8, %v31633_v11  ;;  %26991 = vpow2.f32 %v19872_v14  ;;  %v19817_v8 = vsub.f32 %v31556_v21, %v31737_v30  ;;  %v19818_v21 = vsub.f32 %v31592_v32, %v31747_v50 }
 0xbd3   :  { %26303 = vmatmul.mubr.msk.f32.vlgmr.msra.gmra.mxu1 %vm1134_vm3, %v20016_v53 }
 0xbd4   :  { %v26982_v25 = vpop.eup %26981  ;;  %26311 = vmatpush3.msra.mxu1 %v31604_v12  ;;  %26312 = vmatprep.mubr.msk.f32.mxu1 %vm27176_vm2, %v33087_v44 }
 0xbd5   :  { %v26984_v27 = vpop.eup %26983  ;;  %v20017_v1 = vmul.f32 %v26982_v25, %v31638_v28  ;;  %26320 = vmatprep.subr.mxu1 %v33087_v44 }
 0xbd6   :  { %v20018_v23 = vmul.f32 %v26984_v27, %v31641_v61  ;;  %v19876_v27 = vmul.f32 1.442695, %v19817_v8 }
 0xbd7   :  { %26308 = vmatmul.mubr.msk.f32.vlgmr.msra.gmra.mxu0 %vm1134_vm3, %v20017_v1  ;;  %v19912_v49 = vpop.xlane.xlu1 %19911 }
 0xbd8   :  { %v26986_v11 = vpop.eup %26985  ;;  %26316 = vmatpush3.msra.mxu0 %v31608_v22  ;;  %26317 = vmatprep.mubr.msk.f32.mxu0 %vm27176_vm2, %v33087_v44  ;;  %26993 = vrcp.f32 %v19912_v49  ;;  %v19874_v22 = vmul.f32 1.442695, %v19816_v57  ;;  %v19878_v49 = vmul.f32 1.442695, %v19818_v21 }
 0xbd9   :  { %v20019_v12 = vmul.f32 %v26986_v11, %v31648_v35  ;;  %26325 = vmatprep.subr.mxu0 %v33087_v44  ;;  %26313 = vmatmul.mubr.msk.f32.vlgmr.msra.gmra.mxu1 %vm1134_vm3, %v20018_v23 }
 0xbda   :  { %26321 = vmatpush3.msra.mxu1 %v31610_v39  ;;  %26322 = vmatprep.mubr.msk.f32.mxu1 %vm27176_vm2, %v33087_v44  ;;  %26995 = vpow2.f32 %v19874_v22 }
 0xbdb   :  { %26318 = vmatmul.mubr.msk.f32.vlgmr.msra.gmra.mxu0 %vm1134_vm3, %v20019_v12  ;;  %26330 = vmatprep.subr.mxu1 %v33087_v44 }
 0xbdc   :  { %v26988_v19 = vpop.eup %26987  ;;  %26326 = vmatpush3.msra.mxu0 %v31612_v6  ;;  %26327 = vmatprep.mubr.msk.f32.mxu0 %vm27176_vm2, %v33087_v44  ;;  %v19915_v6 = vpop.xlane.xlu0 %19914 }
 0xbdd   :  { %v26990_v28 = vpop.eup %26989  ;;  %v20021_v61 = vmul.f32 %v26988_v19, %v31652_v13  ;;  %26335 = vmatprep.subr.mxu0 %v33087_v44  ;;  %26997 = vrcp.f32 %v19915_v6  ;;  %v19819_v19 = vsub.f32 %v31568_v42, %v31743_v26 }
 0xbde   :  { %v20020_v39 = vmul.f32 %v26990_v28, %v31655_v34  ;;  %v31806_v35 = vpop.eup %26991 }
 0xbdf   :  { %26328 = vmatmul.mubr.msk.f32.vlgmr.msra.gmra.mxu0 %vm1134_vm3, %v20021_v61  ;;  %v19961_v13 = vsel %vm1134_vm3, %v31806_v35, 0.0  ;;  %v19880_v61 = vmul.f32 1.442695, %v19819_v19 }
 0xbe0   :  { %26323 = vmatmul.mubr.msk.f32.vlgmr.msra.gmra.mxu1 %vm1134_vm3, %v20020_v39  ;;  %26337 = vmatprep.mubr.msk.f32.mxu0 %vm27176_vm2, %v33087_v44  ;;  %v19921_v5 = vpop.xlane.xlu0 %19920 }
 0xbe1   :  { %26331 = vmatpush3.msra.mxu1 %v31614_v63  ;;  %26332 = vmatprep.mubr.msk.f32.mxu1 %vm27176_vm2, %v33087_v44 }
 0xbe2   :  { %26340 = vmatprep.subr.mxu1 %v33087_v44 }
 0xbe4   :  { %v31820_v17 = vpop.xlane.xlu0 %19926 }
 0xbe5   :  { %v26994_v34 = vpop.eup %26993  ;;  %19962 = vadd.xlane.f32.xlu0 %v19961_v13 }
 0xbe6   :  { %v20022_v45 = vmul.f32 %v26994_v34, %v31668_v48  ;;  %v19918_v48 = vpop.xlane.xlu1 %19917 }
 0xbe7   :  { %v31818_v63 = vpop.eup %26995  ;;  %26999 = vrcp.f32 %v19918_v48 }
 0xbe8   :  { %26333 = vmatmul.mubr.msk.f32.vlgmr.msra.gmra.mxu1 %vm1134_vm3, %v20022_v45  ;;  %v19964_v46 = vsel %vm1134_vm3, %v31818_v63, 0.0  ;;  %27001 = vpow2.f32 %v19876_v27  ;;  %v19821_v45 = vsub.f32 %v31580_v51, %v31749_v15 }
 0xbe9   :  { %26342 = vmatprep.mubr.msk.f32.mxu1 %vm27176_vm2, %v33087_v44  ;;  %27003 = vpow2.f32 %v19878_v49 }
 0xbea   :  { %v19924_v10 = vpop.xlane.xlu1 %19923  ;;  %v26998_v25 = vpop.eup %26997  ;;  %27005 = vrcp.f32 %v19921_v5  ;;  %v19884_v48 = vmul.f32 1.442695, %v19821_v45 }
 0xbeb   :  { %27007 = vrcp.f32 %v19924_v10  ;;  %v33467_v10 = vld [vmem:[#allocation66_spill] sm:$0xff] }
 0xbec   :  { %27009 = vpow2.f32 %v19880_v61 }
 0xbee   :  { %v31838_v14 = vpop.xlane.xlu1 %19932 }
 0xbf0   :  { %v31824_v58 = vpop.xlane.xlu0 %19929 }
 0xbf1   :  { %19965 = vadd.xlane.f32.xlu1 %v19964_v46 }
 0xbf8   :  { %v31826_v0 = vpop.xlane.xlu0 %19935 }
 0xbfb   :  { %21034 = vrot.lane.b32.xlu0 %v33429_v56, %s27185_s24  ;;  %v20023_v56 = vmul.f32 %v26998_v25, %v31661_v29  ;;  %v27000_v29 = vpop.eup %26999 }
 0xbfc   :  { %v31830_v41 = vpop.xlane.xlu0 %19938  ;;  %v20024_v11 = vmul.f32 %v27000_v29, %v31680_v20  ;;  %v31856_v12 = vpop.eup %27001  ;;  %v33473_v29 = vld [vmem:[#allocation75_spill] sm:$0xff] }
 0xbfd   :  { %v19967_v32 = vsel %vm1134_vm3, %v31856_v12, 0.0  ;;  %v31864_v50 = vpop.eup %27003 }
 0xbfe   :  { %v19970_v20 = vsel %vm1134_vm3, %v31864_v50, 0.0  ;;  %v27006_v28 = vpop.eup %27005 }
 0xbff   :  { %v20025_v39 = vmul.f32 %v27006_v28, %v31666_v24  ;;  %v27008_v42 = vpop.eup %27007  ;;  %v33476_v28 = vld [vmem:[#allocation129_spill] sm:$0xff] }
 0xc00   :  { %v31832_v60 = vpop.xlane.xlu0 %19944  ;;  %v31843_v1 = vpop.xlane.xlu1 %19941  ;;  %v20026_v13 = vmul.f32 %v27008_v42, %v31686_v43 }
 0xc01   :  { %v31886_v34 = vpop.eup %27009 }
 0xc02   :  { %21110 = vrot.lane.b32.xlu1 %v33433_v4, %s27185_s24 }
 0xc04   :  { %v31840_v53 = vpop.xlane.xlu0 %19950 }
 0xc08   :  { %v20731_v23 = vpop.permute.xlu0 %20730  ;;  %v31849_v4 = vpop.xlane.xlu1 %19947 }
 0xc09   :  { %26336 = vmatpush3.msra.mxu0 %v20731_v23 }
 0xc0a   :  { %26338 = vmatmul.mubr.msk.f32.vlgmr.msra.gmra.mxu0 %vm1134_vm3, %v20023_v56  ;;  %26345 = vmatprep.subr.mxu0 %v33087_v44  ;;  %v33471_v56 = vld [vmem:[#allocation73_spill] sm:$0xff] }
 0xc0b   :  { %26347 = vmatprep.mubr.msk.f32.mxu0 %vm27176_vm2, %v33087_v44 }
 0xc10   :  { %v31853_v30 = vpop.xlane.xlu1 %19953 }
 0xc14   :  { %v20807_v57 = vpop.permute.xlu1 %20806 }
 0xc15   :  { %26341 = vmatpush3.msra.mxu1 %v20807_v57  ;;  %v33474_v57 = vld [vmem:[#allocation77_spill] sm:$0xff] }
 0xc16   :  { %26343 = vmatmul.mubr.msk.f32.vlgmr.msra.gmra.mxu1 %vm1134_vm3, %v20024_v11  ;;  %26350 = vmatprep.subr.mxu1 %v33087_v44 }
 0xc17   :  { %26352 = vmatprep.mubr.msk.f32.mxu1 %vm27176_vm2, %v33087_v44 }
 0xc1a   :  { %19968 = vadd.xlane.f32.xlu0 %v19967_v32 }
 0xc26   :  { %19971 = vadd.xlane.f32.xlu1 %v19970_v20  ;;  %v33475_v20 = vld [vmem:[#allocation79_spill] sm:$0xff] }
 0xc30   :  { %21186 = vrot.lane.b32.xlu0 %v33431_v2, %s27185_s24 }
 0xc37   :  { %21262 = vrot.lane.b32.xlu1 %v27679_v40, %s27185_s24  ;;  %v19820_v40 = vsub.f32 %v31600_v38, %v31751_v47  ;;  %v19973_v38 = vsel %vm1134_vm3, %v31886_v34, 0.0 }
 0xc39   :  { %v31874_v22 = vpop.xlane.xlu0 %19956  ;;  %v19882_v26 = vmul.f32 1.442695, %v19820_v40 }
 0xc3b   :  { %27011 = vpow2.f32 %v19882_v26  ;;  %v33478_v26 = vld [vmem:[#allocation69_spill] sm:$0xff] }
 0xc3c   :  { %27013 = vrcp.f32 %v31820_v17 }
 0xc3d   :  { %v20883_v6 = vpop.permute.xlu0 %20882  ;;  %27015 = vrcp.f32 %v31824_v58 }
 0xc3e   :  { %26346 = vmatpush3.msra.mxu0 %v20883_v6  ;;  %27017 = vpow2.f32 %v19884_v48  ;;  %v33477_v6 = vld [vmem:[#allocation151_spill] sm:$0xff] }
 0xc3f   :  { %26348 = vmatmul.mubr.msk.f32.vlgmr.msra.gmra.mxu0 %vm1134_vm3, %v20025_v39  ;;  %26355 = vmatprep.subr.mxu0 %v33087_v44  ;;  %27019 = vrcp.f32 %v31838_v14  ;;  %v33480_v14 = vld [vmem:[#allocation74_spill] sm:$0xff] }
 0xc40   :  { %26357 = vmatprep.mubr.msk.f32.mxu0 %vm27176_vm2, %v33087_v44  ;;  %27021 = vrcp.f32 %v31826_v0  ;;  %v33486_v0 = vld [vmem:[#allocation132_spill] sm:$0xff] }
 0xc41   :  { %27023 = vrcp.f32 %v31830_v41 }
 0xc42   :  { %27025 = vrcp.f32 %v31843_v1 }
 0xc43   :  { %27027 = vrcp.f32 %v31832_v60 }
 0xc44   :  { %27029 = vrcp.f32 %v31840_v53 }
 0xc45   :  { %v31883_v2 = vpop.xlane.xlu1 %19959  ;;  %27031 = vrcp.f32 %v31874_v22 }
 0xc48   :  { %v31894_v47 = vpop.eup %27011 }
 0xc49   :  { %v20959_v24 = vpop.permute.xlu1 %20958  ;;  %v19976_v43 = vsel %vm1134_vm3, %v31894_v47, 0.0  ;;  %v27014_v46 = vpop.eup %27013 }
 0xc4a   :  { %26351 = vmatpush3.msra.mxu1 %v20959_v24  ;;  %v20027_v17 = vmul.f32 %v27014_v46, %v31675_v31  ;;  %v27016_v15 = vpop.eup %27015  ;;  %v33470_v31 = vld [vmem:[#allocation70_spill] sm:$0xff]  ;;  %v33481_v46 = vld [vmem:[#allocation152_spill] sm:$0xff] }
 0xc4b   :  { %26353 = vmatmul.mubr.msk.f32.vlgmr.msra.gmra.mxu1 %vm1134_vm3, %v20026_v13  ;;  %26360 = vmatprep.subr.mxu1 %v33087_v44  ;;  %v20028_v58 = vmul.f32 %v27016_v15, %v31697_v7  ;;  %v31924_v27 = vpop.eup %27017  ;;  %v33472_v7 = vld [vmem:[#allocation72_spill] sm:$0xff]  ;;  %v33483_v15 = vld [vmem:[#allocation163_spill] sm:$0xff] }
 0xc4c   :  { %26362 = vmatprep.mubr.msk.f32.mxu1 %vm27176_vm2, %v33087_v44  ;;  %v19979_v23 = vsel %vm1134_vm3, %v31924_v27, 0.0 }
 0xc4f   :  { %19974 = vadd.xlane.f32.xlu0 %v19973_v38  ;;  %v33479_v38 = vld [vmem:[#allocation119_spill] sm:$0xff] }
 0xc5b   :  { %19977 = vadd.xlane.f32.xlu1 %v19976_v43 }
 0xc65   :  { %21338 = vrot.lane.b32.xlu0 %v27675_v37, %s27185_s24  ;;  %v33468_v37 = vld [vmem:[#allocation68_spill] sm:$0xff] }
 0xc6c   :  { %21414 = vrot.lane.b32.xlu1 %v33144_v16, %s27185_s24  ;;  %v33469_v16 = vld [vmem:[#allocation71_spill] sm:$0xff] }
 0xc6e   :  { %v31906_v5 = vpop.xlane.xlu0 %19962 }
 0xc6f   :  { %27033 = vrcp.f32 %v31906_v5 }
 0xc70   :  { %21490 = vrot.lane.b32.xlu1 %v33467_v10, %s27185_s24  ;;  %27035 = vrcp.f32 %v31849_v4 }
 0xc71   :  { %27037 = vrcp.f32 %v31853_v30 }
 0xc72   :  { %v21035_v8 = vpop.permute.xlu0 %21034 }
 0xc73   :  { %26356 = vmatpush3.msra.mxu0 %v21035_v8 }
 0xc74   :  { %26358 = vmatmul.mubr.msk.f32.vlgmr.msra.gmra.mxu0 %vm1134_vm3, %v20027_v17  ;;  %21642 = vrot.lane.b32.xlu1 %v33468_v37, %s27185_s24  ;;  %v33482_v17 = vld [vmem:[#allocation76_spill] sm:$0xff] }
 0xc75   :  { %26365 = vmatprep.subr.mxu0 %v33087_v44  ;;  %26367 = vmatprep.mubr.msk.f32.mxu0 %vm27176_vm2, %v33087_v44 }
 0xc78   :  { %21718 = vrot.lane.b32.xlu1 %v33469_v16, %s27185_s24  ;;  %v27020_v16 = vpop.eup %27019 }
 0xc7a   :  { %v31919_v51 = vpop.xlane.xlu1 %19965 }
 0xc7c   :  { %21794 = vrot.lane.b32.xlu1 %v33470_v31, %s27185_s24  ;;  %v33484_v31 = vld [vmem:[#allocation78_spill] sm:$0xff] }
 0xc7e   :  { %v21111_v25 = vpop.permute.xlu1 %21110 }
 0xc7f   :  { %26361 = vmatpush3.msra.mxu1 %v21111_v25 }
 0xc80   :  { %21870 = vrot.lane.b32.xlu1 %v33471_v56, %s27185_s24  ;;  %26363 = vmatmul.mubr.msk.f32.vlgmr.msra.gmra.mxu1 %vm1134_vm3, %v20028_v58  ;;  %v20029_v58 = vmul.f32 %v27020_v16, %v31691_v62  ;;  %v33485_v56 = vld [vmem:[#allocation120_spill] sm:$0xff]  ;;  %v33487_v62 = vld [vmem:[#allocation157_spill] sm:$0xff] }
 0xc81   :  { %26370 = vmatprep.subr.mxu1 %v33087_v44  ;;  %26372 = vmatprep.mubr.msk.f32.mxu1 %vm27176_vm2, %v33087_v44  ;;  %v33503_v16 = vld [vmem:[#allocation121_spill] sm:$0xff] }
 0xc84   :  { %19980 = vadd.xlane.f32.xlu0 %v19979_v23  ;;  %21946 = vrot.lane.b32.xlu1 %v33472_v7, %s27185_s24 }
 0xc88   :  { %v20194_v21 = vpop.f32.mrf.mxu0  ;;  %22022 = vrot.lane.b32.xlu1 %v33473_v29, %s27185_s24  ;;  %v33488_v29 = vld [vmem:[#allocation106_spill] sm:$0xff] }
 0xc8a   :  { %v26299_v49 = vpop.f32.mrf.mxu0 }
 0xc8b   :  { %v20118_v11 = vpop.f32.mrf.mxu1 }
 0xc8c   :  { %22174 = vrot.lane.b32.xlu1 %v33474_v57, %s27185_s24  ;;  %v27022_v57 = vpop.eup %27021 }
 0xc8d   :  { %v26294_v32 = vpop.f32.mrf.mxu1 }
 0xc8e   :  { %v33489_v32 = vld [vmem:[#allocation133_spill] sm:$0xff] }
 0xc90   :  { %22326 = vrot.lane.b32.xlu1 %v33475_v20, %s27185_s24  ;;  %v33490_v20 = vld [vmem:[#allocation134_spill] sm:$0xff] }
 0xc93   :  { %v20270_v19 = vpop.f32.mrf.mxu1 }
 0xc94   :  { %22538 = vrot.lane.b32.xlu1 %v33476_v28, %s27167_s8  ;;  %v20030_v28 = vmul.f32 %v27022_v57, %v31702_v3  ;;  %v33493_v3 = vld [vmem:[#allocation97_spill] sm:$0xff] }
 0xc95   :  { %v26304_v61 = vpop.f32.mrf.mxu1 }
 0xc97   :  { %v31945_v39 = vpop.f32.mrf.mxu0 }
 0xc98   :  { %22666 = vrot.lane.b32.xlu1 %v33477_v6, %s27164_s27  ;;  %v33491_v6 = vld [vmem:[#allocation52_spill] sm:$0xff] }
 0xc99   :  { %v26309_v40 = vpop.f32.mrf.mxu0  ;;  %v31949_v42 = vpop.f32.mrf.mxu1 }
 0xc9a   :  { %21566 = vrot.lane.b32.xlu0 %v33478_v26, %s27185_s24  ;;  %v33492_v40 = vld [vmem:[#allocation136_spill] sm:$0xff] }
 0xc9b   :  { %v31953_v13 = vpop.f32.mrf.mxu0  ;;  %v26314_v24 = vpop.f32.mrf.mxu1  ;;  %v33495_v26 = vld [vmem:[#allocation164_spill] sm:$0xff] }
 0xc9c   :  { %22542 = vrot.lane.b32.xlu1 %v33479_v38, %s27167_s8  ;;  %v33496_v24 = vld [vmem:[#allocation51_spill] sm:$0xff]  ;;  %v33497_v38 = vld [vmem:[#allocation158_spill] sm:$0xff] }
 0xc9d   :  { %v26319_v43 = vpop.f32.mrf.mxu0 }
 0xc9e   :  { %22098 = vrot.lane.b32.xlu0 %v33480_v14, %s27185_s24  ;;  %v33499_v43 = vld [vmem:[#allocation135_spill] sm:$0xff]  ;;  %v33500_v14 = vld [vmem:[#allocation138_spill] sm:$0xff] }
 0xc9f   :  { %v31959_v45 = vpop.f32.mrf.mxu0 }
 0xca0   :  { %22670 = vrot.lane.b32.xlu1 %v33481_v46, %s27164_s27  ;;  %v31963_v48 = vpop.f32.mrf.mxu1 }
 0xca1   :  { %v26329_v10 = vpop.f32.mrf.mxu0 }
 0xca2   :  { %22250 = vrot.lane.b32.xlu0 %v33482_v17, %s27185_s24  ;;  %v26324_v8 = vpop.f32.mrf.mxu1  ;;  %v33501_v17 = vld [vmem:[#allocation140_spill] sm:$0xff] }
 0xca3   :  { %v31968_v37 = vpop.xlane.xlu0 %19968  ;;  %v33502_v8 = vld [vmem:[#allocation153_spill] sm:$0xff] }
 0xca4   :  { %22510 = vrot.lane.b32.xlu1 %v33483_v15, %s27167_s8  ;;  %27039 = vrcp.f32 %v31968_v37 }
 0xca5   :  { %27041 = vrcp.f32 %v31883_v2 }
 0xca6   :  { %22402 = vrot.lane.b32.xlu0 %v33484_v31, %s27185_s24 }
 0xca7   :  { %v21187_v25 = vpop.permute.xlu0 %21186 }
 0xca8   :  { %26366 = vmatpush3.msra.mxu0 %v21187_v25  ;;  %22512 = vrot.lane.b32.xlu1 %v33485_v56, %s27167_s8  ;;  %v31977_v23 = vpop.f32.mrf.mxu1  ;;  %v27024_v25 = vpop.eup %27023 }
 0xca9   :  { %26368 = vmatmul.mubr.msk.f32.vlgmr.msra.gmra.mxu0 %vm1134_vm3, %v20029_v58  ;;  %26375 = vmatprep.subr.mxu0 %v33087_v44  ;;  %v20031_v41 = vmul.f32 %v27024_v25, %v31706_v33  ;;  %v27026_v1 = vpop.eup %27025 }
 0xcaa   :  { %22540 = vrot.lane.b32.xlu0 %v33486_v0, %s27167_s8  ;;  %v26334_v7 = vpop.f32.mrf.mxu1  ;;  %26377 = vmatprep.mubr.msk.f32.mxu0 %vm27176_vm2, %v33087_v44  ;;  %v20032_v0 = vmul.f32 %v27026_v1, %v31713_v59  ;;  %v27028_v60 = vpop.eup %27027  ;;  %v22961_v1 = vld [vmem:[#allocation8 + $0x8] sm:$0xff] }
 0xcab   :  { %v20033_v7 = vmul.f32 %v27028_v60, %v31710_v9  ;;  %v22960_v60 = vld [vmem:[#allocation8] sm:$0xff] }
 0xcac   :  { %22638 = vrot.lane.b32.xlu1 %v33487_v62, %s27164_s27  ;;  %v27030_v62 = vpop.eup %27029 }
 0xcad   :  { %v20035_v59 = vmul.f32 %v27030_v62, %v31719_v36 }
 0xcae   :  { %22668 = vrot.lane.b32.xlu0 %v33488_v29, %s27164_s27  ;;  %v27032_v29 = vpop.eup %27031 }
 0xcaf   :  { %v31989_v49 = vpop.xlane.xlu1 %19971  ;;  %v20037_v57 = vmul.f32 %v27032_v29, %v31739_v18  ;;  %v27034_v5 = vpop.eup %27033 }
 0xcb0   :  { %22640 = vrot.lane.b32.xlu1 %v33489_v32, %s27164_s27 }
 0xcb2   :  { %22544 = vrot.lane.b32.xlu0 %v33490_v20, %s27167_s8 }
 0xcb3   :  { %v21263_v61 = vpop.permute.xlu1 %21262 }
 0xcb4   :  { %22766 = vrot.lane.b32.xlu1 %v20118_v11, %s27186_s25  ;;  %26371 = vmatpush3.msra.mxu1 %v21263_v61  ;;  %v33494_v11 = vld [vmem:[#allocation98_spill] sm:$0xff] }
 0xcb5   :  { %26373 = vmatmul.mubr.msk.f32.vlgmr.msra.gmra.mxu1 %vm1134_vm3, %v20030_v28  ;;  %26380 = vmatprep.subr.mxu1 %v33087_v44  ;;  %v20039_v28 = vmul.f32 %v27034_v5, %v31806_v35 }
 0xcb6   :  { %22672 = vrot.lane.b32.xlu0 %v33491_v6, %s27164_s27  ;;  %26382 = vmatprep.mubr.msk.f32.mxu1 %vm27176_vm2, %v33087_v44 }
 0xcb8   :  { %22768 = vrot.lane.b32.xlu1 %v20194_v21, %s27186_s25  ;;  %v33498_v21 = vld [vmem:[#allocation111_spill] sm:$0xff] }
 0xcba   :  { %22546 = vrot.lane.b32.xlu0 %v33492_v40, %s27167_s8 }
 0xcbc   :  { %22514 = vrot.lane.b32.xlu1 %v33493_v3, %s27167_s8 }
 0xcbe   :  { %22548 = vrot.lane.b32.xlu0 %v33494_v11, %s27167_s8 }
 0xcc0   :  { %22516 = vrot.lane.b32.xlu1 %v33495_v26, %s27167_s8  ;;  %v27036_v26 = vpop.eup %27035 }
 0xcc1   :  { %v27038_v30 = vpop.eup %27037 }
 0xcc2   :  { %22674 = vrot.lane.b32.xlu0 %v33496_v24, %s27164_s27  ;;  %v27040_v37 = vpop.eup %27039 }
 0xcc4   :  { %22642 = vrot.lane.b32.xlu1 %v33497_v38, %s27164_s27  ;;  %v20034_v38 = vmul.f32 %v27036_v26, %v31723_v52  ;;  %v20041_v52 = vmul.f32 %v27040_v37, %v31856_v12 }
 0xcc6   :  { %22676 = vrot.lane.b32.xlu0 %v33498_v21, %s27164_s27  ;;  %v27042_v21 = vpop.eup %27041 }
 0xcc8   :  { %22644 = vrot.lane.b32.xlu1 %v33499_v43, %s27164_s27  ;;  %v20036_v43 = vmul.f32 %v27038_v30, %v31727_v54  ;;  %v20038_v54 = vmul.f32 %v27042_v21, %v31753_v55  ;;  %v33507_v30 = vld [vmem:[#allocation80_spill] sm:$0xff] }
 0xcca   :  { %22550 = vrot.lane.b32.xlu0 %v33500_v14, %s27167_s8  ;;  %v32022_v46 = vpop.f32.mrf.mxu0 }
 0xccc   :  { %v26339_v10 = vpop.f32.mrf.mxu0  ;;  %22770 = vrot.lane.b32.xlu1 %v20270_v19, %s27186_s25 }
 0xcce   :  { %22552 = vrot.lane.b32.xlu0 %v33501_v17, %s27167_s8 }
 0xcd2   :  { %22678 = vrot.lane.b32.xlu0 %v33502_v8, %s27164_s27 }
 0xcd6   :  { %22680 = vrot.lane.b32.xlu0 %v33503_v16, %s27164_s27  ;;  %v32032_v15 = vpop.f32.mrf.mxu1 }
 0xcd8   :  { %v19975_v31 = vpop.xlane.xlu0 %19974  ;;  %v26344_v58 = vpop.f32.mrf.mxu1 }
 0xcd9   :  { %27043 = vrcp.f32 %v19975_v31 }
 0xcda   :  { %27045 = vrcp.f32 %v31919_v51 }
 0xcdc   :  { %v21339_v19 = vpop.permute.xlu0 %21338 }
 0xcdd   :  { %26376 = vmatpush3.msra.mxu0 %v21339_v19 }
 0xcde   :  { %26378 = vmatmul.mubr.msk.f32.vlgmr.msra.gmra.mxu0 %vm1134_vm3, %v20031_v41  ;;  %26385 = vmatprep.subr.mxu0 %v33087_v44  ;;  %v22963_v41 = vld [vmem:[#allocation8 + $0x18] sm:$0xff] }
 0xcdf   :  { %26387 = vmatprep.mubr.msk.f32.mxu0 %vm27176_vm2, %v33087_v44 }
 0xce4   :  { %v32042_v56 = vpop.xlane.xlu1 %19977 }
 0xce6   :  { %v27044_v14 = vpop.eup %27043 }
 0xce7   :  { %v20043_v12 = vmul.f32 %v27044_v14, %v31886_v34  ;;  %v27046_v8 = vpop.eup %27045 }
 0xce8   :  { %v21415_v33 = vpop.permute.xlu1 %21414  ;;  %v20040_v31 = vmul.f32 %v27046_v8, %v31818_v63  ;;  %v22962_v63 = vld [vmem:[#allocation8 + $0x10] sm:$0xff]  ;;  %v33511_v8 = vld [vmem:[#allocation159_spill] sm:$0xff] }
 0xce9   :  { %26381 = vmatpush3.msra.mxu1 %v21415_v33 }
 0xcea   :  { %26383 = vmatmul.mubr.msk.f32.vlgmr.msra.gmra.mxu1 %vm1134_vm3, %v20032_v0  ;;  %26390 = vmatprep.subr.mxu1 %v33087_v44 }
 0xceb   :  { %26392 = vmatprep.mubr.msk.f32.mxu1 %vm27176_vm2, %v33087_v44 }
 0xcec   :  { %v21491_v53 = vpop.permute.xlu1 %21490 }
 0xced   :  { %26386 = vmatpush3.msra.mxu0 %v21491_v53 }
 0xcee   :  { %26388 = vmatmul.mubr.msk.f32.vlgmr.msra.gmra.mxu0 %vm1134_vm3, %v20033_v7  ;;  %26395 = vmatprep.subr.mxu0 %v33087_v44 }
 0xcef   :  { %26397 = vmatprep.mubr.msk.f32.mxu0 %vm27176_vm2, %v33087_v44 }
 0xcf0   :  { %v21643_v22 = vpop.permute.xlu1 %21642 }
 0xcf1   :  { %26396 = vmatpush3.msra.mxu0 %v21643_v22  ;;  %v33505_v22 = vld [vmem:[#allocation89_spill] sm:$0xff] }
 0xcf2   :  { %26398 = vmatmul.mubr.msk.f32.vlgmr.msra.gmra.mxu0 %vm1134_vm3, %v20035_v59  ;;  %26405 = vmatprep.subr.mxu0 %v33087_v44 }
 0xcf3   :  { %26407 = vmatprep.mubr.msk.f32.mxu0 %vm27176_vm2, %v33087_v44 }
 0xcf4   :  { %v21719_v9 = vpop.permute.xlu1 %21718 }
 0xcf8   :  { %v21795_v32 = vpop.permute.xlu1 %21794 }
 0xcf9   :  { %26406 = vmatpush3.msra.mxu0 %v21795_v32 }
 0xcfa   :  { %26408 = vmatmul.mubr.msk.f32.vlgmr.msra.gmra.mxu0 %vm1134_vm3, %v20037_v57  ;;  %26415 = vmatprep.subr.mxu0 %v33087_v44 }
 0xcfb   :  { %26417 = vmatprep.mubr.msk.f32.mxu0 %vm27176_vm2, %v33087_v44 }
 0xcfc   :  { %v21871_v36 = vpop.permute.xlu1 %21870 }
 0xcff   :  { %v32066_v20 = vpop.f32.mrf.mxu0 }
 0xd00   :  { %v21947_v61 = vpop.permute.xlu1 %21946 }
 0xd01   :  { %v26349_v6 = vpop.f32.mrf.mxu0  ;;  %26416 = vmatpush3.msra.mxu0 %v21947_v61 }
 0xd02   :  { %26418 = vmatmul.mubr.msk.f32.vlgmr.msra.gmra.mxu0 %vm1134_vm3, %v20039_v28  ;;  %26425 = vmatprep.subr.mxu0 %v33087_v44 }
 0xd03   :  { %26427 = vmatprep.mubr.msk.f32.mxu0 %vm27176_vm2, %v33087_v44 }
 0xd04   :  { %v22023_v18 = vpop.permute.xlu1 %22022 }
 0xd08   :  { %v22175_v35 = vpop.permute.xlu1 %22174 }
 0xd0b   :  { %v32077_v40 = vpop.f32.mrf.mxu1 }
 0xd0c   :  { %v32079_v4 = vpop.permute.xlu1 %22326 }
 0xd0d   :  { %v19981_v3 = vpop.xlane.xlu0 %19980  ;;  %v26354_v11 = vpop.f32.mrf.mxu1 }
 0xd0e   :  { %27047 = vrcp.f32 %v19981_v3 }
 0xd0f   :  { %27049 = vrcp.f32 %v31989_v49 }
 0xd10   :  { %v32082_v24 = vpop.permute.xlu1 %22538  ;;  %27051 = vrcp.f32 %v32042_v56 }
 0xd11   :  { %v21567_v2 = vpop.permute.xlu0 %21566 }
 0xd12   :  { %26391 = vmatpush3.msra.mxu1 %v21567_v2 }
 0xd13   :  { %26393 = vmatmul.mubr.msk.f32.vlgmr.msra.gmra.mxu1 %vm1134_vm3, %v20034_v38  ;;  %26400 = vmatprep.subr.mxu1 %v33087_v44 }
 0xd14   :  { %26401 = vmatpush3.msra.mxu1 %v21719_v9  ;;  %v32088_v51 = vpop.permute.xlu1 %22666  ;;  %26402 = vmatprep.mubr.msk.f32.mxu1 %vm27176_vm2, %v33087_v44 }
 0xd15   :  { %v22099_v49 = vpop.permute.xlu0 %22098  ;;  %26410 = vmatprep.subr.mxu1 %v33087_v44 }
 0xd16   :  { %26426 = vmatpush3.msra.mxu0 %v22099_v49  ;;  %v33508_v49 = vld [vmem:[#allocation142_spill] sm:$0xff] }
 0xd17   :  { %26403 = vmatmul.mubr.msk.f32.vlgmr.msra.gmra.mxu1 %vm1134_vm3, %v20036_v43  ;;  %26428 = vmatmul.mubr.msk.f32.vlgmr.msra.gmra.mxu0 %vm1134_vm3, %v20041_v52 }
 0xd18   :  { %26411 = vmatpush3.msra.mxu1 %v21871_v36  ;;  %v32098_v10 = vpop.permute.xlu1 %22542  ;;  %26435 = vmatprep.subr.mxu0 %v33087_v44 }
 0xd19   :  { %v22251_v17 = vpop.permute.xlu0 %22250  ;;  %26412 = vmatprep.mubr.msk.f32.mxu1 %vm27176_vm2, %v33087_v44  ;;  %26420 = vmatprep.subr.mxu1 %v33087_v44 }
 0xd1a   :  { %26436 = vmatpush3.msra.mxu0 %v22251_v17  ;;  %26437 = vmatprep.mubr.msk.f32.mxu0 %vm27176_vm2, %v33087_v44  ;;  %v33510_v17 = vld [vmem:[#allocation88_spill] sm:$0xff] }
 0xd1b   :  { %v27048_v16 = vpop.eup %27047  ;;  %26413 = vmatmul.mubr.msk.f32.vlgmr.msra.gmra.mxu1 %vm1134_vm3, %v20038_v54  ;;  %26438 = vmatmul.mubr.msk.f32.vlgmr.msra.gmra.mxu0 %vm1134_vm3, %v20043_v12  ;;  %v33509_v12 = vld [vmem:[#allocation50_spill] sm:$0xff] }
 0xd1c   :  { %v20045_v55 = vmul.f32 %v27048_v16, %v31924_v27  ;;  %26421 = vmatpush3.msra.mxu1 %v22023_v18  ;;  %v32111_v34 = vpop.permute.xlu1 %22670  ;;  %26445 = vmatprep.subr.mxu0 %v33087_v44  ;;  %v27050_v25 = vpop.eup %27049  ;;  %v33512_v16 = vld [vmem:[#allocation137_spill] sm:$0xff] }
 0xd1d   :  { %v22403_v58 = vpop.permute.xlu0 %22402  ;;  %26422 = vmatprep.mubr.msk.f32.mxu1 %vm27176_vm2, %v33087_v44  ;;  %26430 = vmatprep.subr.mxu1 %v33087_v44  ;;  %v20042_v19 = vmul.f32 %v27050_v25, %v31864_v50  ;;  %v27052_v56 = vpop.eup %27051 }
 0xd1e   :  { %26446 = vmatpush3.msra.mxu0 %v22403_v58  ;;  %26447 = vmatprep.mubr.msk.f32.mxu0 %vm27176_vm2, %v33087_v44  ;;  %v20044_v33 = vmul.f32 %v27052_v56, %v31894_v47 }
 0xd1f   :  { %26423 = vmatmul.mubr.msk.f32.vlgmr.msra.gmra.mxu1 %vm1134_vm3, %v20040_v31  ;;  %26448 = vmatmul.mubr.msk.f32.vlgmr.msra.gmra.mxu0 %vm1134_vm3, %v20045_v55  ;;  %v33514_v31 = vld [vmem:[#allocation165_spill] sm:$0xff] }
 0xd20   :  { %26431 = vmatpush3.msra.mxu1 %v22175_v35  ;;  %v22511_v27 = vpop.permute.xlu1 %22510  ;;  %26432 = vmatprep.mubr.msk.f32.mxu1 %vm27176_vm2, %v33087_v44 }
 0xd21   :  { %26440 = vmatprep.subr.mxu1 %v33087_v44  ;;  %26450 = vmatprep.subr.mxu0 %v22963_v41  ;;  %v22541_v55 = vpop.permute.xlu0 %22540 }
 0xd22   :  { %26451 = vmatpush3.msra.mxu0 %v22963_v41 }
 0xd23   :  { %26433 = vmatmul.mubr.msk.f32.vlgmr.msra.gmra.mxu1 %vm1134_vm3, %v20042_v19  ;;  %26452 = vmatprep.subr.mxu0 %v22962_v63 }
 0xd24   :  { %26441 = vmatpush3.msra.mxu1 %v32079_v4  ;;  %v22513_v0 = vpop.permute.xlu1 %22512  ;;  %26442 = vmatprep.mubr.msk.f32.mxu1 %vm27176_vm2, %v33087_v44  ;;  %v33504_v44 = vld [vmem:[#allocation107_spill] sm:$0xff] }
 0xd25   :  { %26453 = vmatpush3.msra.mxu0 %v22962_v63  ;;  %26506 = vmatprep.subr.mxu1 %v22963_v41  ;;  %v22862_v47 = vsel %vm1134_vm3, %v33504_v44, %v22511_v27  ;;  %v22863_v9 = vsel %vm1134_vm3, %v33505_v22, %v22513_v0  ;;  %v33506_v4 = vld [vmem:[#allocation91_spill] sm:$0xff]  ;;  %v22669_v58 = vpop.permute.xlu0 %22668  ;;  %v33517_v0 = vld [vmem:[#allocation113_spill] sm:$0xff] }
 0xd26   :  { %26454 = vmatprep.subr.mxu0 %v22961_v1 }
 0xd27   :  { %26443 = vmatmul.mubr.msk.f32.vlgmr.msra.gmra.mxu1 %vm1134_vm3, %v20044_v33  ;;  %26455 = vmatpush3.msra.mxu0 %v22961_v1 }
 0xd28   :  { %v22639_v50 = vpop.permute.xlu1 %22638  ;;  %26456 = vmatprep.subr.mxu0 %v22960_v60  ;;  %26510 = vmatpush3.msra.mxu1 %v22963_v41  ;;  %v33515_v41 = vld [vmem:[#allocation160_spill] sm:$0xff] }
 0xd29   :  { %26457 = vmatpush3.msra.mxu0 %v22960_v60  ;;  %26507 = vmatprep.subr.mxu1 %v22962_v63  ;;  %v22895_v53 = vsel %vm22894_vm5, %v22862_v47, %v22639_v50 }
 0xd2a   :  { %26511 = vmatpush3.msra.mxu1 %v22962_v63  ;;  %v32189_v63 = vpop.permute.xlu0 %22544 }
 0xd2b   :  { %26508 = vmatprep.subr.mxu1 %v22961_v1 }
 0xd2c   :  { %v22641_v7 = vpop.permute.xlu1 %22640  ;;  %26512 = vmatpush3.msra.mxu1 %v22961_v1 }
 0xd2d   :  { %26509 = vmatprep.subr.mxu1 %v22960_v60  ;;  %v22896_v29 = vsel %vm22894_vm5, %v22863_v9, %v22641_v7  ;;  %v33519_v7 = vld [vmem:[#allocation92_spill] sm:$0xff]  ;;  %v33520_v9 = vld [vmem:[#allocation161_spill] sm:$0xff] }
 0xd2e   :  { %26513 = vmatpush3.msra.mxu1 %v22960_v60 }
 0xd30   :  { %v22767_v62 = vpop.permute.xlu1 %22766 }
 0xd31   :  { %v32136_v59 = vsel %vm22927_vm4, %v22895_v53, %v22767_v62 }
 0xd32   :  { %26458 = vmatprep.mubr.msk.f32.mxu0 %vm804_vm1, %v32136_v59 }
 0xd34   :  { %v32143_v57 = vpop.f32.mrf.mxu0  ;;  %v22769_v32 = vpop.permute.xlu1 %22768 }
 0xd35   :  { %v32146_v36 = vsel %vm22927_vm4, %v22896_v29, %v22769_v32  ;;  %v33521_v29 = vld [vmem:[#allocation141_spill] sm:$0xff] }
 0xd36   :  { %v26359_v5 = vpop.f32.mrf.mxu0  ;;  %26459 = vmatmul.mubr.msk.f32.vlgmr.msra.gmra.mxu0 %vm804_vm1, %v32146_v36 }
 0xd38   :  { %v22515_v28 = vpop.permute.xlu1 %22514 }
 0xd39   :  { %v22864_v38 = vsel %vm1134_vm3, %v33507_v30, %v22515_v28 }
 0xd3c   :  { %v22517_v61 = vpop.permute.xlu1 %22516 }
 0xd3d   :  { %v22865_v3 = vsel %vm1134_vm3, %v33506_v4, %v22517_v61 }
 0xd40   :  { %v21182_v6 = vpop.f32.mrf.mxu1  ;;  %v22643_v18 = vpop.permute.xlu1 %22642 }
 0xd41   :  { %22794 = vrot.lane.b32.xlu1 %v21182_v6, %s27186_s25  ;;  %v22897_v2 = vsel %vm22894_vm5, %v22864_v38, %v22643_v18  ;;  %v33522_v18 = vld [vmem:[#allocation122_spill] sm:$0xff] }
 0xd42   :  { %v26364_v35 = vpop.f32.mrf.mxu1 }
 0xd43   :  { %v33523_v35 = vld [vmem:[#allocation166_spill] sm:$0xff] }
 0xd44   :  { %v22645_v11 = vpop.permute.xlu1 %22644 }
 0xd45   :  { %v32154_v26 = vsel %vm22894_vm5, %v22865_v3, %v22645_v11 }
 0xd48   :  { %v22771_v37 = vpop.permute.xlu1 %22770 }
 0xd49   :  { %v32160_v21 = vsel %vm22927_vm4, %v22897_v2, %v22771_v37 }
 0xd4a   :  { %26461 = vmatprep.mubr.msk.f32.mxu0 %vm804_vm1, %v32160_v21 }
 0xd69   :  { %v21258_v43 = vpop.f32.mrf.mxu0 }
 0xd6a   :  { %22796 = vrot.lane.b32.xlu0 %v21258_v43, %s27186_s25 }
 0xd6b   :  { %v26369_v52 = vpop.f32.mrf.mxu0 }
 0xd6e   :  { %22554 = vrot.lane.b32.xlu0 %v33508_v49, %s27167_s8  ;;  %v33526_v49 = vld [vmem:[#allocation101_spill] sm:$0xff] }
 0xd75   :  { %v21334_v14 = vpop.f32.mrf.mxu1 }
 0xd76   :  { %22798 = vrot.lane.b32.xlu1 %v21334_v14, %s27186_s25  ;;  %v22877_v14 = vsel %vm1134_vm3, %v33526_v49, %v22541_v55 }
 0xd77   :  { %v26374_v54 = vpop.f32.mrf.mxu1 }
 0xd7a   :  { %22772 = vrot.lane.b32.xlu1 %v31945_v39, %s27186_s25  ;;  %v33513_v39 = vld [vmem:[#allocation109_spill] sm:$0xff] }
 0xd7e   :  { %22518 = vrot.lane.b32.xlu1 %v33509_v12, %s27167_s8 }
 0xd82   :  { %22520 = vrot.lane.b32.xlu1 %v33510_v17, %s27167_s8 }
 0xd86   :  { %22646 = vrot.lane.b32.xlu1 %v33511_v8, %s27164_s27  ;;  %v33527_v8 = vld [vmem:[#allocation144_spill] sm:$0xff] }
 0xd8a   :  { %22648 = vrot.lane.b32.xlu1 %v33512_v16, %s27164_s27 }
 0xd8e   :  { %22774 = vrot.lane.b32.xlu1 %v31949_v42, %s27186_s25  ;;  %v33516_v42 = vld [vmem:[#allocation139_spill] sm:$0xff] }
 0xd92   :  { %22776 = vrot.lane.b32.xlu1 %v31953_v13, %s27186_s25  ;;  %v32195_v13 = vpop.permute.xlu0 %22672 }
 0xd96   :  { %22522 = vrot.lane.b32.xlu1 %v33513_v39, %s27167_s8  ;;  %v32200_v1 = vpop.permute.xlu0 %22546 }
 0xd9a   :  { %22524 = vrot.lane.b32.xlu1 %v33514_v31, %s27167_s8  ;;  %v32212_v53 = vpop.permute.xlu0 %22548 }
 0xd9e   :  { %v21410_v25 = vpop.f32.mrf.mxu0  ;;  %22650 = vrot.lane.b32.xlu1 %v33515_v41, %s27164_s27 }
 0xd9f   :  { %22800 = vrot.lane.b32.xlu0 %v21410_v25, %s27186_s25  ;;  %v33528_v25 = vld [vmem:[#allocation125_spill] sm:$0xff] }
 0xda0   :  { %v26379_v27 = vpop.f32.mrf.mxu0 }
 0xda2   :  { %22652 = vrot.lane.b32.xlu1 %v33516_v42, %s27164_s27  ;;  %v33530_v42 = vld [vmem:[#allocation96_spill] sm:$0xff] }
 0xda6   :  { %22778 = vrot.lane.b32.xlu1 %v31963_v48, %s27186_s25  ;;  %v33518_v48 = vld [vmem:[#allocation99_spill] sm:$0xff] }
 0xda7   :  { %v22876_v50 = vsel %vm1134_vm3, %v33518_v48, %v32082_v24  ;;  %v32221_v24 = vpop.permute.xlu0 %22674 }
 0xda8   :  { %v22909_v44 = vsel %vm22894_vm5, %v22876_v50, %v32088_v51 }
 0xdaa   :  { %22780 = vrot.lane.b32.xlu1 %v31959_v45, %s27186_s25  ;;  %v21486_v19 = vpop.f32.mrf.mxu1 }
 0xdab   :  { %22802 = vrot.lane.b32.xlu0 %v21486_v19, %s27186_s25  ;;  %v32227_v5 = vpop.permute.xlu0 %22676 }
 0xdac   :  { %v26384_v56 = vpop.f32.mrf.mxu1 }
 0xdad   :  { %v33531_v56 = vld [vmem:[#allocation54_spill] sm:$0xff] }
 0xdae   :  { %22526 = vrot.lane.b32.xlu1 %v33517_v0, %s27167_s8  ;;  %v21562_v33 = vpop.f32.mrf.mxu0 }
 0xdaf   :  { %22804 = vrot.lane.b32.xlu0 %v21562_v33, %s27186_s25  ;;  %v32233_v6 = vpop.permute.xlu0 %22550  ;;  %v33532_v33 = vld [vmem:[#allocation167_spill] sm:$0xff] }
 0xdb0   :  { %v26389_v60 = vpop.f32.mrf.mxu0 }
 0xdb1   :  { %v33533_v60 = vld [vmem:[#allocation118_spill] sm:$0xff] }
 0xdb2   :  { %22528 = vrot.lane.b32.xlu1 %v33519_v7, %s27167_s8  ;;  %v21714_v45 = vpop.f32.mrf.mxu0  ;;  %v22878_v48 = vsel %vm1134_vm3, %v33533_v60, %v32098_v10 }
 0xdb3   :  { %v22795_v47 = vpop.permute.xlu1 %22794  ;;  %v32239_v4 = vpop.permute.xlu0 %22552  ;;  %v22911_v7 = vsel %vm22894_vm5, %v22878_v48, %v32111_v34  ;;  %v33535_v34 = vld [vmem:[#allocation146_spill] sm:$0xff]  ;;  %v33547_v48 = vld [vmem:[#allocation95_spill] sm:$0xff] }
 0xdb4   :  { %v32215_v62 = vsel %vm22927_vm4, %v22909_v44, %v22795_v47  ;;  %v26399_v22 = vpop.f32.mrf.mxu0 }
 0xdb5   :  { %26479 = vmatprep.mubr.msk.f32.mxu1 %vm804_vm1, %v32215_v62  ;;  %v33534_v22 = vld [vmem:[#allocation145_spill] sm:$0xff] }
 0xdb6   :  { %22654 = vrot.lane.b32.xlu1 %v33520_v9, %s27164_s27 }
 0xdb7   :  { %v32243_v3 = vpop.permute.xlu0 %22678 }
 0xdba   :  { %22656 = vrot.lane.b32.xlu1 %v33521_v29, %s27164_s27  ;;  %v21866_v32 = vpop.f32.mrf.mxu0 }
 0xdbb   :  { %v32252_v37 = vpop.permute.xlu0 %22680 }
 0xdbc   :  { %v26409_v51 = vpop.f32.mrf.mxu0 }
 0xdbe   :  { %22782 = vrot.lane.b32.xlu1 %v31977_v23, %s27186_s25  ;;  %v33524_v23 = vld [vmem:[#allocation162_spill] sm:$0xff] }
 0xdc2   :  { %22784 = vrot.lane.b32.xlu1 %v32022_v46, %s27186_s25  ;;  %v32231_v28 = vpop.f32.mrf.mxu0  ;;  %v33525_v46 = vld [vmem:[#allocation143_spill] sm:$0xff] }
 0xdc4   :  { %v26419_v61 = vpop.f32.mrf.mxu0 }
 0xdc6   :  { %22530 = vrot.lane.b32.xlu1 %v33522_v18, %s27167_s8 }
 0xdca   :  { %22532 = vrot.lane.b32.xlu1 %v33523_v35, %s27167_s8  ;;  %v33539_v35 = vld [vmem:[#allocation81_spill] sm:$0xff] }
 0xdce   :  { %22658 = vrot.lane.b32.xlu1 %v33524_v23, %s27164_s27 }
 0xdd2   :  { %22660 = vrot.lane.b32.xlu1 %v33525_v46, %s27164_s27 }
 0xdd3   :  { %v21638_v11 = vpop.f32.mrf.mxu1 }
 0xdd4   :  { %22806 = vrot.lane.b32.xlu0 %v21638_v11, %s27186_s25 }
 0xdd5   :  { %v26394_v30 = vpop.f32.mrf.mxu1 }
 0xdd6   :  { %22786 = vrot.lane.b32.xlu1 %v32032_v15, %s27186_s25  ;;  %v22910_v15 = vsel %vm22894_vm5, %v22877_v14, %v22669_v58  ;;  %v33529_v58 = vld [vmem:[#allocation154_spill] sm:$0xff]  ;;  %v33540_v30 = vld [vmem:[#allocation93_spill] sm:$0xff]  ;;  %v33541_v14 = vld [vmem:[#allocation100_spill] sm:$0xff] }
 0xdd7   :  { %v21790_v38 = vpop.f32.mrf.mxu1  ;;  %v32250_v2 = vpop.f32.mrf.mxu0 }
 0xdd8   :  { %22808 = vrot.lane.b32.xlu0 %v21714_v45, %s27186_s25 }
 0xdd9   :  { %v26404_v43 = vpop.f32.mrf.mxu1  ;;  %v26429_v52 = vpop.f32.mrf.mxu0 }
 0xdda   :  { %22788 = vrot.lane.b32.xlu1 %v32066_v20, %s27186_s25 }
 0xddb   :  { %v21942_v54 = vpop.f32.mrf.mxu1  ;;  %v32259_v12 = vpop.f32.mrf.mxu0 }
 0xddc   :  { %v22797_v17 = vpop.permute.xlu0 %22796  ;;  %22556 = vrot.lane.b32.xlu0 %v33527_v8, %s27167_s8 }
 0xddd   :  { %v32265_v16 = vsel %vm22927_vm4, %v22910_v15, %v22797_v17  ;;  %v26414_v39 = vpop.f32.mrf.mxu1  ;;  %v26439_v31 = vpop.f32.mrf.mxu0  ;;  %v33542_v15 = vld [vmem:[#allocation148_spill] sm:$0xff] }
 0xdde   :  { %22534 = vrot.lane.b32.xlu1 %v33528_v25, %s27167_s8  ;;  %26480 = vmatmul.mubr.msk.f32.vlgmr.msra.gmra.mxu1 %vm804_vm1, %v32265_v16  ;;  %v33543_v39 = vld [vmem:[#allocation103_spill] sm:$0xff] }
 0xddf   :  { %v22094_v20 = vpop.f32.mrf.mxu1  ;;  %v32271_v55 = vpop.f32.mrf.mxu0  ;;  %v33544_v31 = vld [vmem:[#allocation155_spill] sm:$0xff] }
 0xde0   :  { %22682 = vrot.lane.b32.xlu0 %v33529_v58, %s27164_s27  ;;  %v32340_v8 = vpop.permute.xlu0 %22554 }
 0xde1   :  { %v26424_v41 = vpop.f32.mrf.mxu1  ;;  %v26449_v27 = vpop.f32.mrf.mxu0 }
 0xde2   :  { %22536 = vrot.lane.b32.xlu1 %v33530_v42, %s27167_s8  ;;  %v33545_v42 = vld [vmem:[#allocation128_spill] sm:$0xff] }
 0xde3   :  { %v32277_v19 = vpop.f32.mrf.mxu1 }
 0xde4   :  { %22684 = vrot.lane.b32.xlu0 %v33531_v56, %s27164_s27 }
 0xde5   :  { %v26434_v0 = vpop.f32.mrf.mxu1 }
 0xde6   :  { %22662 = vrot.lane.b32.xlu1 %v33532_v33, %s27164_s27  ;;  %v33546_v0 = vld [vmem:[#allocation82_spill] sm:$0xff] }
 0xde7   :  { %v32286_v50 = vpop.f32.mrf.mxu1 }
 0xde8   :  { %22810 = vrot.lane.b32.xlu0 %v21790_v38, %s27186_s25  ;;  %v22799_v45 = vpop.permute.xlu1 %22798 }
 0xde9   :  { %v32292_v44 = vsel %vm22927_vm4, %v22911_v7, %v22799_v45  ;;  %v26444_v47 = vpop.f32.mrf.mxu1  ;;  %v33548_v45 = vld [vmem:[#allocation85_spill] sm:$0xff] }
 0xdea   :  { %22664 = vrot.lane.b32.xlu1 %v33534_v22, %s27164_s27  ;;  %26482 = vmatprep.mubr.msk.f32.mxu1 %vm804_vm1, %v32292_v44  ;;  %v22880_v47 = vsel %vm1134_vm3, %v33548_v45, %v32200_v1  ;;  %v33549_v1 = vld [vmem:[#allocation105_spill] sm:$0xff] }
 0xdec   :  { %22812 = vrot.lane.b32.xlu0 %v21866_v32, %s27186_s25  ;;  %v22773_v10 = vpop.permute.xlu1 %22772  ;;  %v33536_v32 = vld [vmem:[#allocation147_spill] sm:$0xff] }
 0xded   :  { %v32301_v9 = vsel %vm22927_vm4, %v32154_v26, %v22773_v10  ;;  %v33537_v26 = vld [vmem:[#allocation53_spill] sm:$0xff]  ;;  %v22913_v10 = vsel %vm22894_vm5, %v22880_v47, %v32221_v24 }
 0xdee   :  { %22790 = vrot.lane.b32.xlu1 %v32077_v40, %s27186_s25  ;;  %26462 = vmatmul.mubr.msk.f32.gmra.mxu0 %vm804_vm1, %v32301_v9  ;;  %v33538_v40 = vld [vmem:[#allocation124_spill] sm:$0xff] }
 0xdf0   :  { %22558 = vrot.lane.b32.xlu0 %v33535_v34, %s27167_s8  ;;  %v22519_v29 = vpop.permute.xlu1 %22518 }
 0xdf1   :  { %v22866_v23 = vsel %vm1134_vm3, %v33539_v35, %v22519_v29 }
 0xdf2   :  { %22792 = vrot.lane.b32.xlu1 %v32143_v57, %s27186_s25 }
 0xdf4   :  { %22560 = vrot.lane.b32.xlu0 %v33536_v32, %s27167_s8  ;;  %v22521_v51 = vpop.permute.xlu1 %22520 }
 0xdf5   :  { %v22867_v38 = vsel %vm1134_vm3, %v33540_v30, %v22521_v51  ;;  %v33550_v51 = vld [vmem:[#allocation102_spill] sm:$0xff] }
 0xdf8   :  { %22686 = vrot.lane.b32.xlu0 %v33537_v26, %s27164_s27  ;;  %v22647_v61 = vpop.permute.xlu1 %22646 }
 0xdf9   :  { %v22899_v46 = vsel %vm22894_vm5, %v22866_v23, %v22647_v61 }
 0xdfc   :  { %22688 = vrot.lane.b32.xlu0 %v33538_v40, %s27164_s27  ;;  %v22649_v18 = vpop.permute.xlu1 %22648 }
 0xdfd   :  { %v22900_v43 = vsel %vm22894_vm5, %v22867_v38, %v22649_v18  ;;  %v33551_v18 = vld [vmem:[#allocation149_spill] sm:$0xff] }
 0xe00   :  { %22814 = vrot.lane.b32.xlu0 %v21942_v54, %s27186_s25  ;;  %v22775_v57 = vpop.permute.xlu1 %22774 }
 0xe01   :  { %v32322_v11 = vsel %vm22927_vm4, %v22899_v46, %v22775_v57  ;;  %v33553_v46 = vld [vmem:[#allocation56_spill] sm:$0xff] }
 0xe02   :  { %26464 = vmatprep.mubr.msk.f32.mxu0 %vm804_vm1, %v32322_v11 }
 0xe04   :  { %22816 = vrot.lane.b32.xlu0 %v32231_v28, %s27186_s25  ;;  %v22777_v52 = vpop.permute.xlu1 %22776  ;;  %v22879_v28 = vsel %vm1134_vm3, %v33543_v39, %v32189_v63 }
 0xe05   :  { %v32332_v49 = vsel %vm22927_vm4, %v22900_v43, %v22777_v52  ;;  %v22912_v58 = vsel %vm22894_vm5, %v22879_v28, %v32195_v13 }
 0xe06   :  { %26465 = vmatmul.mubr.msk.f32.gmra.mxu0 %vm804_vm1, %v32332_v49 }
 0xe08   :  { %22562 = vrot.lane.b32.xlu0 %v33541_v14, %s27167_s8  ;;  %v22523_v54 = vpop.permute.xlu1 %22522  ;;  %v33555_v14 = vld [vmem:[#allocation67_spill] sm:$0xff] }
 0xe09   :  { %v22868_v63 = vsel %vm1134_vm3, %v33546_v0, %v22523_v54 }
 0xe0c   :  { %22564 = vrot.lane.b32.xlu0 %v33542_v15, %s27167_s8  ;;  %v22525_v17 = vpop.permute.xlu1 %22524 }
 0xe0d   :  { %v22869_v7 = vsel %vm1134_vm3, %v33547_v48, %v22525_v17 }
 0xe10   :  { %22690 = vrot.lane.b32.xlu0 %v33544_v31, %s27164_s27  ;;  %v22651_v25 = vpop.permute.xlu1 %22650  ;;  %v33557_v31 = vld [vmem:[#allocation150_spill] sm:$0xff] }
 0xe11   :  { %v22801_v41 = vpop.permute.xlu0 %22800  ;;  %v22901_v33 = vsel %vm22894_vm5, %v22868_v63, %v22651_v25 }
 0xe12   :  { %v32350_v27 = vsel %vm22927_vm4, %v22912_v58, %v22801_v41  ;;  %v33558_v58 = vld [vmem:[#allocation55_spill] sm:$0xff] }
 0xe13   :  { %26483 = vmatmul.mubr.msk.f32.gmra.mxu1 %vm804_vm1, %v32350_v27 }
 0xe14   :  { %22692 = vrot.lane.b32.xlu0 %v33545_v42, %s27164_s27  ;;  %v22653_v56 = vpop.permute.xlu1 %22652 }
 0xe15   :  { %v22902_v22 = vsel %vm22894_vm5, %v22869_v7, %v22653_v56  ;;  %v33560_v56 = vld [vmem:[#allocation115_spill] sm:$0xff] }
 0xe16   :  { %v22882_v0 = vsel %vm1134_vm3, %v33560_v56, %v32233_v6  ;;  %v33562_v6 = vld [vmem:[#allocation108_spill] sm:$0xff] }
 0xe17   :  { %v22915_v63 = vsel %vm22894_vm5, %v22882_v0, %v32243_v3  ;;  %v22883_v3 = vsel %vm1134_vm3, %v33562_v6, %v32239_v4  ;;  %v33569_v6 = vld [vmem:[#allocation112_spill] sm:$0xff] }
 0xe18   :  { %22818 = vrot.lane.b32.xlu0 %v22094_v20, %s27186_s25  ;;  %v22779_v60 = vpop.permute.xlu1 %22778 }
 0xe19   :  { %v32361_v13 = vsel %vm22927_vm4, %v22901_v33, %v22779_v60  ;;  %v33561_v60 = vld [vmem:[#allocation86_spill] sm:$0xff] }
 0xe1a   :  { %26467 = vmatprep.mubr.msk.f32.mxu0 %vm804_vm1, %v32361_v13 }
 0xe1c   :  { %22820 = vrot.lane.b32.xlu0 %v32250_v2, %s27186_s25  ;;  %v22781_v20 = vpop.permute.xlu1 %22780  ;;  %v22881_v2 = vsel %vm1134_vm3, %v33549_v1, %v32212_v53  ;;  %v33552_v53 = vld [vmem:[#allocation156_spill] sm:$0xff] }
 0xe1d   :  { %v32376_v34 = vsel %vm22927_vm4, %v22902_v22, %v22781_v20  ;;  %v22803_v29 = vpop.permute.xlu0 %22802  ;;  %v22914_v26 = vsel %vm22894_vm5, %v22881_v2, %v32227_v5  ;;  %v33554_v5 = vld [vmem:[#allocation84_spill] sm:$0xff]  ;;  %v22916_v20 = vsel %vm22894_vm5, %v22883_v3, %v32252_v37 }
 0xe1e   :  { %v32379_v32 = vsel %vm22927_vm4, %v22913_v10, %v22803_v29  ;;  %26468 = vmatmul.mubr.msk.f32.gmra.mxu0 %vm804_vm1, %v32376_v34  ;;  %v33563_v29 = vld [vmem:[#allocation87_spill] sm:$0xff] }
 0xe1f   :  { %26485 = vmatprep.mubr.msk.f32.mxu1 %vm804_vm1, %v32379_v32 }
 0xe20   :  { %22566 = vrot.lane.b32.xlu0 %v33550_v51, %s27167_s8  ;;  %v22527_v24 = vpop.permute.xlu1 %22526 }
 0xe21   :  { %v22805_v61 = vpop.permute.xlu0 %22804  ;;  %v22870_v30 = vsel %vm1134_vm3, %v33554_v5, %v22527_v24 }
 0xe22   :  { %v32393_v40 = vsel %vm22927_vm4, %v22914_v26, %v22805_v61 }
 0xe23   :  { %26486 = vmatmul.mubr.msk.f32.gmra.mxu1 %vm804_vm1, %v32393_v40 }
 0xe24   :  { %22568 = vrot.lane.b32.xlu0 %v33551_v18, %s27167_s8  ;;  %v22529_v35 = vpop.permute.xlu1 %22528 }
 0xe25   :  { %v22871_v54 = vsel %vm1134_vm3, %v33555_v14, %v22529_v35 }
 0xe28   :  { %22694 = vrot.lane.b32.xlu0 %v33552_v53, %s27164_s27  ;;  %v22655_v23 = vpop.permute.xlu1 %22654  ;;  %v33564_v53 = vld [vmem:[#allocation117_spill] sm:$0xff] }
 0xe29   :  { %v22903_v38 = vsel %vm22894_vm5, %v22870_v30, %v22655_v23  ;;  %v33565_v30 = vld [vmem:[#allocation110_spill] sm:$0xff] }
 0xe2c   :  { %22696 = vrot.lane.b32.xlu0 %v33553_v46, %s27164_s27  ;;  %v22657_v57 = vpop.permute.xlu1 %22656 }
 0xe2d   :  { %v22904_v15 = vsel %vm22894_vm5, %v22871_v54, %v22657_v57  ;;  %v33566_v54 = vld [vmem:[#allocation90_spill] sm:$0xff] }
 0xe30   :  { %22822 = vrot.lane.b32.xlu0 %v32277_v19, %s27186_s25  ;;  %v22783_v43 = vpop.permute.xlu1 %22782  ;;  %v33556_v19 = vld [vmem:[#allocation104_spill] sm:$0xff] }
 0xe31   :  { %v32409_v52 = vsel %vm22927_vm4, %v22903_v38, %v22783_v43 }
 0xe32   :  { %26470 = vmatprep.mubr.msk.f32.mxu0 %vm804_vm1, %v32409_v52 }
 0xe34   :  { %22824 = vrot.lane.b32.xlu0 %v32259_v12, %s27186_s25  ;;  %v22785_v17 = vpop.permute.xlu1 %22784  ;;  %v33559_v12 = vld [vmem:[#allocation131_spill] sm:$0xff] }
 0xe35   :  { %v32419_v39 = vsel %vm22927_vm4, %v22904_v15, %v22785_v17 }
 0xe36   :  { %26471 = vmatmul.mubr.msk.f32.gmra.mxu0 %vm804_vm1, %v32419_v39 }
 0xe38   :  { %22570 = vrot.lane.b32.xlu0 %v33556_v19, %s27167_s8  ;;  %v22531_v28 = vpop.permute.xlu1 %22530 }
 0xe39   :  { %v22872_v48 = vsel %vm1134_vm3, %v33561_v60, %v22531_v28 }
 0xe3c   :  { %22572 = vrot.lane.b32.xlu0 %v33557_v31, %s27167_s8  ;;  %v22533_v25 = vpop.permute.xlu1 %22532 }
 0xe40   :  { %22698 = vrot.lane.b32.xlu0 %v33558_v58, %s27164_s27  ;;  %v22659_v41 = vpop.permute.xlu1 %22658 }
 0xe41   :  { %v22905_v45 = vsel %vm22894_vm5, %v22872_v48, %v22659_v41 }
 0xe44   :  { %22700 = vrot.lane.b32.xlu0 %v33559_v12, %s27164_s27  ;;  %v22661_v42 = vpop.permute.xlu1 %22660 }
 0xe46   :  { %v22807_v33 = vpop.permute.xlu0 %22806 }
 0xe47   :  { %v32439_v7 = vsel %vm22927_vm4, %v22915_v63, %v22807_v33  ;;  %v33568_v33 = vld [vmem:[#allocation123_spill] sm:$0xff] }
 0xe48   :  { %22826 = vrot.lane.b32.xlu0 %v32286_v50, %s27186_s25  ;;  %26488 = vmatprep.mubr.msk.f32.mxu1 %vm804_vm1, %v32439_v7  ;;  %v22787_v47 = vpop.permute.xlu1 %22786  ;;  %v22873_v50 = vsel %vm1134_vm3, %v33563_v29, %v22533_v25  ;;  %v33567_v25 = vld [vmem:[#allocation94_spill] sm:$0xff] }
 0xe49   :  { %v32450_v22 = vsel %vm22927_vm4, %v22905_v45, %v22787_v47  ;;  %v22906_v2 = vsel %vm22894_vm5, %v22873_v50, %v22661_v42 }
 0xe4a   :  { %v22809_v10 = vpop.permute.xlu0 %22808  ;;  %26473 = vmatprep.mubr.msk.f32.mxu0 %vm804_vm1, %v32450_v22 }
 0xe4b   :  { %v32459_v1 = vsel %vm22927_vm4, %v22916_v20, %v22809_v10 }
 0xe4c   :  { %22828 = vrot.lane.b32.xlu0 %v32271_v55, %s27186_s25  ;;  %26489 = vmatmul.mubr.msk.f32.gmra.mxu1 %vm804_vm1, %v32459_v1  ;;  %v22789_v4 = vpop.permute.xlu1 %22788  ;;  %v22884_v55 = vsel %vm1134_vm3, %v33564_v53, %v32340_v8  ;;  %v33571_v53 = vld [vmem:[#allocation114_spill] sm:$0xff] }
 0xe4d   :  { %v32467_v37 = vsel %vm22927_vm4, %v22906_v2, %v22789_v4 }
 0xe4e   :  { %v22557_v51 = vpop.permute.xlu0 %22556  ;;  %26474 = vmatmul.mubr.msk.f32.gmra.mxu0 %vm804_vm1, %v32467_v37 }
 0xe4f   :  { %v22885_v38 = vsel %vm1134_vm3, %v33565_v30, %v22557_v51 }
 0xe50   :  { %v22535_v24 = vpop.permute.xlu1 %22534 }
 0xe51   :  { %v22874_v15 = vsel %vm1134_vm3, %v33566_v54, %v22535_v24  ;;  %v33570_v24 = vld [vmem:[#allocation126_spill] sm:$0xff]  ;;  %v33572_v54 = vld [vmem:[#allocation127_spill] sm:$0xff] }
 0xe52   :  { %v22683_v26 = vpop.permute.xlu0 %22682 }
 0xe53   :  { %v22917_v23 = vsel %vm22894_vm5, %v22884_v55, %v22683_v26 }
 0xe54   :  { %v22537_v61 = vpop.permute.xlu1 %22536 }
 0xe55   :  { %v22875_v58 = vsel %vm1134_vm3, %v33567_v25, %v22537_v61  ;;  %v33573_v25 = vld [vmem:[#allocation116_spill] sm:$0xff] }
 0xe56   :  { %v22685_v18 = vpop.permute.xlu0 %22684 }
 0xe57   :  { %v22918_v43 = vsel %vm22894_vm5, %v22885_v38, %v22685_v18 }
 0xe58   :  { %v22663_v35 = vpop.permute.xlu1 %22662 }
 0xe59   :  { %v22907_v17 = vsel %vm22894_vm5, %v22874_v15, %v22663_v35 }
 0xe5a   :  { %v22811_v46 = vpop.permute.xlu0 %22810 }
 0xe5b   :  { %v32476_v57 = vsel %vm22927_vm4, %v22917_v23, %v22811_v46 }
 0xe5c   :  { %26491 = vmatprep.mubr.msk.f32.mxu1 %vm804_vm1, %v32476_v57  ;;  %v22665_v5 = vpop.permute.xlu1 %22664 }
 0xe5d   :  { %v22908_v41 = vsel %vm22894_vm5, %v22875_v58, %v22665_v5 }
 0xe5e   :  { %v22813_v14 = vpop.permute.xlu0 %22812 }
 0xe5f   :  { %v32486_v8 = vsel %vm22927_vm4, %v22918_v43, %v22813_v14 }
 0xe60   :  { %26492 = vmatmul.mubr.msk.f32.gmra.mxu1 %vm804_vm1, %v32486_v8  ;;  %v22791_v19 = vpop.permute.xlu1 %22790 }
 0xe61   :  { %v32492_v28 = vsel %vm22927_vm4, %v22907_v17, %v22791_v19 }
 0xe62   :  { %v22559_v31 = vpop.permute.xlu0 %22558  ;;  %26476 = vmatprep.mubr.msk.f32.mxu0 %vm804_vm1, %v32492_v28 }
 0xe63   :  { %v22886_v60 = vsel %vm1134_vm3, %v33568_v33, %v22559_v31 }
 0xe64   :  { %v22793_v12 = vpop.permute.xlu1 %22792 }
 0xe65   :  { %v32500_v42 = vsel %vm22927_vm4, %v22908_v41, %v22793_v12 }
 0xe66   :  { %v22561_v56 = vpop.permute.xlu0 %22560  ;;  %26477 = vmatmul.mubr.msk.f32.gmra.mxu0 %vm804_vm1, %v32500_v42 }
 0xe67   :  { %v22887_v3 = vsel %vm1134_vm3, %v33569_v6, %v22561_v56 }
 0xe6a   :  { %v22687_v0 = vpop.permute.xlu0 %22686 }
 0xe6b   :  { %v22919_v48 = vsel %vm22894_vm5, %v22886_v60, %v22687_v0 }
 0xe6e   :  { %v22689_v63 = vpop.permute.xlu0 %22688 }
 0xe6f   :  { %v22920_v20 = vsel %vm22894_vm5, %v22887_v3, %v22689_v63 }
 0xe72   :  { %v22815_v45 = vpop.permute.xlu0 %22814 }
 0xe73   :  { %v32508_v47 = vsel %vm22927_vm4, %v22919_v48, %v22815_v45  ;;  %v33574_v48 = vld [vmem:[#allocation130_spill] sm:$0xff] }
 0xe74   :  { %26494 = vmatprep.mubr.msk.f32.mxu1 %vm804_vm1, %v32508_v47 }
 0xe76   :  { %v22817_v10 = vpop.permute.xlu0 %22816 }
 0xe77   :  { %v32516_v29 = vsel %vm22927_vm4, %v22920_v20, %v22817_v10  ;;  %v33575_v10 = vld [vmem:[#allocation83_spill] sm:$0xff] }
 0xe78   :  { %26495 = vmatmul.mubr.msk.f32.gmra.mxu1 %vm804_vm1, %v32516_v29 }
 0xe7a   :  { %v22563_v50 = vpop.permute.xlu0 %22562 }
 0xe7b   :  { %v22888_v26 = vsel %vm1134_vm3, %v33570_v24, %v22563_v50  ;;  %v26460_v24 = vpop.f32.mrf.mxu0 }
 0xe7e   :  { %v22565_v2 = vpop.permute.xlu0 %22564 }
 0xe7f   :  { %v22889_v55 = vsel %vm1134_vm3, %v33571_v53, %v22565_v2  ;;  %v32571_v53 = vld [vmem:[%s32881_s4] ss:$0 sm:$0xff]  ;;  %s27187_s4 = smov [#allocation10]  }
 0xe80   :  { %s24067_s30 = sshll.u32 %s27187_s4, 4  ;;  %s24068_s30 = int_to_ptr.vmem [resolvable:$true] %s24067_s30 }
 0xe81   :  { %s27133_s6 = scalar_lea.vmem %s24068_s30, 1024  ;;  %p27138_p7 = scmp.lt.s32.totalorder %s24068_s30, %s24068_s30 }
 0xe82   :  { %v22691_v4 = vpop.permute.xlu0 %22690  ;;  %p27134_p6 = scmp.ne.s32.totalorder %s24068_s30, %s27133_s6  ;;  %p27139_p8 = scmp.lt.s32.totalorder %s27133_s6, %s27133_s6 }
 0xe83   :  { %v22921_v61 = vsel %vm22894_vm5, %v22888_v26, %v22691_v4  ;;  %v23133_v26 = vpop.f32.mrf.mxu0 }
 0xe84   :  { %p27140_p9 = por %p27139_p8, %p27138_p7 }
 0xe86   :  { %v22693_v51 = vpop.permute.xlu0 %22692  ;;  %p27141_p10 = pnand %p27140_p9, %p27134_p6 }
 0xe87   :  { %v22922_v23 = vsel %vm22894_vm5, %v22889_v55, %v22693_v51 }
 0xe8a   :  { %v22819_v18 = vpop.permute.xlu0 %22818 }
 0xe8b   :  { %v32524_v35 = vsel %vm22927_vm4, %v22921_v61, %v22819_v18 }
 0xe8c   :  { %26497 = vmatprep.mubr.msk.f32.mxu1 %vm804_vm1, %v32524_v35 }
 0xe8e   :  { %v22821_v46 = vpop.permute.xlu0 %22820 }
 0xe8f   :  { %v32532_v5 = vsel %vm22927_vm4, %v22922_v23, %v22821_v46  ;;  %v23134_v23 = vadd.f32 %v32571_v53, %v23133_v26 }
 0xe90   :  { %26498 = vmatmul.mubr.msk.f32.gmra.mxu1 %vm804_vm1, %v32532_v5 }
 0xe92   :  { %v22567_v30 = vpop.permute.xlu0 %22566 }
 0xe93   :  { %v22890_v15 = vsel %vm1134_vm3, %v33572_v54, %v22567_v30 }
 0xe96   :  { %v22569_v38 = vpop.permute.xlu0 %22568 }
 0xe97   :  { %v22891_v58 = vsel %vm1134_vm3, %v33573_v25, %v22569_v38  ;;  %v23139_v38 = vadd.f32 %v26460_v24, %v32571_v53 }
 0xe9a   :  { %v22695_v43 = vpop.permute.xlu0 %22694 }
 0xe9b   :  { %v22923_v17 = vsel %vm22894_vm5, %v22890_v15, %v22695_v43 }
 0xe9e   :  { %v22697_v14 = vpop.permute.xlu0 %22696 }
 0xe9f   :  { %v22924_v41 = vsel %vm22894_vm5, %v22891_v58, %v22697_v14  ;;  %v23292_v14 = vmax.f32 %v23134_v23, 0.0 }
 0xea2   :  { %v22823_v19 = vpop.permute.xlu0 %22822 }
 0xea3   :  { %v32540_v31 = vsel %vm22927_vm4, %v22923_v17, %v22823_v19  ;;  %v23293_v19 = vmax.f32 %v23139_v38, 0.0 }
 0xea4   :  { %26500 = vmatprep.mubr.msk.f32.mxu1 %vm804_vm1, %v32540_v31 }
 0xea6   :  { %v22825_v12 = vpop.permute.xlu0 %22824 }
 0xea7   :  { %v32548_v56 = vsel %vm22927_vm4, %v22924_v41, %v22825_v12  ;;  %v23324_v41 = vadd.f32 %v23292_v14, %v32136_v59 }
 0xea8   :  { %26501 = vmatmul.mubr.msk.f32.gmra.mxu1 %vm804_vm1, %v32548_v56 }
 0xeaa   :  { %v22571_v0 = vpop.permute.xlu0 %22570 }
 0xeab   :  { %v22892_v45 = vsel %vm1134_vm3, %v33574_v48, %v22571_v0 }
 0xeae   :  { %v22573_v63 = vpop.permute.xlu0 %22572  ;;  %v26463_v61 = vpop.f32.mrf.mxu0 }
 0xeaf   :  { %v22893_v50 = vsel %vm1134_vm3, %v33575_v10, %v22573_v63  ;;  %v23149_v46 = vadd.f32 %v26463_v61, %v32571_v53  ;;  %v23325_v63 = vadd.f32 %v23293_v19, %v32146_v36  ;;  %v33583_v19 = vld [vmem:[#allocation22_spill] sm:$0xff] }
 0xeb0   :  { %v23143_v18 = vpop.f32.mrf.mxu0 }
 0xeb1   :  { %v23144_v55 = vadd.f32 %v32571_v53, %v23143_v18  ;;  %v23295_v54 = vmax.f32 %v23149_v46, 0.0 }
 0xeb2   :  { %v22699_v33 = vpop.permute.xlu0 %22698 }
 0xeb3   :  { %v22925_v6 = vsel %vm22894_vm5, %v22892_v45, %v22699_v33  ;;  %v23294_v43 = vmax.f32 %v23144_v55, 0.0  ;;  %v23327_v12 = vadd.f32 %v23295_v54, %v32301_v9  ;;  %v33576_v33 = vld [vmem:[#allocation20_spill] sm:$0xff]  ;;  %v33579_v9 = vld [vmem:[#allocation19_spill] sm:$0xff] }
 0xeb4   :  { %v23357_v26 = vadd.f32 %v23325_v63, %v33579_v9 }
 0xeb5   :  { %v23326_v25 = vadd.f32 %v23294_v43, %v32160_v21  ;;  %v33581_v43 = vld [vmem:[#allocation25_spill] sm:$0xff] }
 0xeb6   :  { %v22701_v60 = vpop.permute.xlu0 %22700 }
 0xeb7   :  { %v22926_v2 = vsel %vm22894_vm5, %v22893_v50, %v22701_v60  ;;  %v23358_v60 = vadd.f32 %v23326_v25, %v33576_v33  ;;  %v33578_v50 = vld [vmem:[#allocation21_spill] sm:$0xff] }
 0xeba   :  { %v22827_v3 = vpop.permute.xlu0 %22826 }
 0xebb   :  { %v32556_v20 = vsel %vm22927_vm4, %v22925_v6, %v22827_v3  ;;  %v33577_v3 = vld [vmem:[#allocation18_spill] sm:$0xff] }
 0xebc   :  { %26503 = vmatprep.mubr.msk.f32.mxu1 %vm804_vm1, %v32556_v20  ;;  %v23356_v10 = vadd.f32 %v23324_v41, %v33577_v3 }
 0xebe   :  { %v22829_v4 = vpop.permute.xlu0 %22828  ;;  %v23388_v61 = vcombine.low %v23356_v10, %v23358_v60  ;;  %v23389_v46 = vcombine.high %v23356_v10, %v23358_v60 }
 0xebf   :  { %v32564_v51 = vsel %vm22927_vm4, %v22926_v2, %v22829_v4  ;;  %v23359_v2 = vadd.f32 %v23327_v12, %v33578_v50  ;;  %v33584_v12 = vld [vmem:[#allocation24_spill] sm:$0xff] }
 0xec0   :  { %26504 = vmatmul.mubr.msk.f32.gmra.mxu1 %vm804_vm1, %v32564_v51 }
 0xec1   :  { %v23404_v23 = vcombine.low %v23357_v26, %v23359_v2 }
 0xec6   :  { %v26466_v30 = vpop.f32.mrf.mxu0 }
 0xec7   :  { %v23159_v17 = vadd.f32 %v26466_v30, %v32571_v53  ;;  %v33580_v30 = vld [vmem:[#allocation23_spill] sm:$0xff] }
 0xec8   :  { %v23153_v15 = vpop.f32.mrf.mxu0 }
 0xec9   :  { %v23154_v58 = vadd.f32 %v32571_v53, %v23153_v15  ;;  %v23297_v0 = vmax.f32 %v23159_v17, 0.0  ;;  %v33582_v15 = vld [vmem:[#allocation16_spill] sm:$0xff] }
 0xeca   :  { %v23396_v17 = vrot.slane %v23388_v61, %v33582_v15 }
 0xecb   :  { %v23296_v45 = vmax.f32 %v23154_v58, 0.0  ;;  %v23329_v4 = vadd.f32 %v23297_v0, %v32332_v49  ;;  %v23405_v49 = vcombine.high %v23357_v26, %v23359_v2  ;;  %v23403_v0 = vrot.slane %v23389_v46, %v33582_v15 }
 0xecd   :  { %v23328_v36 = vadd.f32 %v23296_v45, %v32322_v11  ;;  %v23361_v38 = vadd.f32 %v23329_v4, %v33580_v30  ;;  %v23419_v60 = vrot.slane %v23405_v49, %v33582_v15 }
 0xecf   :  { %v23360_v25 = vadd.f32 %v23328_v36, %v33583_v19  ;;  %v23468_v10 = vcombine.low %v23403_v0, %v23419_v60  ;;  %v26481_v19 = vpop.f32.mrf.mxu1 }
 0xede   :  { %v26469_v48 = vpop.f32.mrf.mxu0 }
 0xedf   :  { %v23169_v6 = vadd.f32 %v26469_v48, %v32571_v53 }
 0xee0   :  { %v23163_v21 = vpop.f32.mrf.mxu0 }
 0xee1   :  { %v23299_v24 = vmax.f32 %v23169_v6, 0.0  ;;  %v23164_v59 = vadd.f32 %v32571_v53, %v23163_v21  ;;  %v33585_v21 = vld [vmem:[#allocation17_spill] sm:$0xff] }
 0xee2   :  { %v32617_v61 = vrot.slane %v23468_v10, %v33585_v21 }
 0xee3   :  { %v23331_v18 = vadd.f32 %v23299_v24, %v32376_v34  ;;  %v23298_v55 = vmax.f32 %v23164_v59, 0.0  ;;  %v23412_v34 = vrot.slane %v23404_v23, %v33582_v15 }
 0xee5   :  { %v23363_v14 = vadd.f32 %v23331_v18, %v33581_v43  ;;  %v23330_v54 = vadd.f32 %v23298_v55, %v32361_v13  ;;  %v23452_v48 = vcombine.low %v23396_v17, %v23412_v34  ;;  %v23453_v36 = vcombine.high %v23396_v17, %v23412_v34 }
 0xee7   :  { %v23436_v58 = vcombine.low %v23361_v38, %v23363_v14  ;;  %v23437_v41 = vcombine.high %v23361_v38, %v23363_v14  ;;  %v23362_v11 = vadd.f32 %v23330_v54, %v33584_v12  ;;  %v32606_v4 = vrot.slane %v23452_v48, %v33585_v21 }
 0xee8   :  { %v23469_v38 = vcombine.high %v23403_v0, %v23419_v60  ;;  %v23467_v43 = vrot.slane %v23453_v36, %v33585_v21 }
 0xee9   :  { %v23420_v63 = vcombine.low %v23360_v25, %v23362_v11  ;;  %v23421_v33 = vcombine.high %v23360_v25, %v23362_v11  ;;  %v23444_v13 = vrot.slane %v23436_v58, %v33582_v15  ;;  %v23451_v45 = vrot.slane %v23437_v41, %v33582_v15  ;;  %v23203_v58 = vpop.f32.mrf.mxu1 }
 0xeea   :  { %v23483_v49 = vrot.slane %v23469_v38, %v33585_v21 }
 0xeeb   :  { %v23428_v6 = vrot.slane %v23420_v63, %v33582_v15  ;;  %v23435_v3 = vrot.slane %v23421_v33, %v33582_v15  ;;  %v26484_v12 = vpop.f32.mrf.mxu1 }
 0xeec   :  { %v23219_v10 = vadd.f32 %v26484_v12, %v32571_v53 }
 0xeed   :  { %v23484_v50 = vcombine.low %v23428_v6, %v23444_v13  ;;  %v23500_v2 = vcombine.low %v23435_v3, %v23451_v45  ;;  %v23485_v9 = vcombine.high %v23428_v6, %v23444_v13  ;;  %v23501_v23 = vcombine.high %v23435_v3, %v23451_v45  ;;  %v23213_v11 = vpop.f32.mrf.mxu1 }
 0xeee   :  { %v23209_v6 = vadd.f32 %v26481_v19, %v32571_v53  ;;  %v23214_v3 = vadd.f32 %v32571_v53, %v23213_v11 }
 0xeef   :  { %v32609_v24 = vrot.slane %v23484_v50, %v33585_v21  ;;  %v32612_v59 = vrot.slane %v23500_v2, %v33585_v21  ;;  %v23499_v30 = vrot.slane %v23485_v9, %v33585_v21  ;;  %v23515_v54 = vrot.slane %v23501_v23, %v33585_v21  ;;  %v26487_v34 = vpop.f32.mrf.mxu1 }
 0xef0   :  { %v23229_v13 = vadd.f32 %v26487_v34, %v32571_v53  ;;  %v23307_v36 = vmax.f32 %v23209_v6, 0.0  ;;  %v23308_v23 = vmax.f32 %v23214_v3, 0.0 }
 0xef1   :  { %v23517_v26 = vcombine.high %v32606_v4, %v32609_v24  ;;  %v23516_v18 = vcombine.low %v32606_v4, %v32609_v24  ;;  %v23520_v55 = vcombine.low %v32617_v61, %v32612_v59  ;;  %v23521_v46 = vcombine.high %v32617_v61, %v32612_v59  ;;  %v23223_v63 = vpop.f32.mrf.mxu1 }
 0xef2   :  { %v23518_v14 = vcombine.low %v23467_v43, %v23499_v30  ;;  %v23522_v17 = vcombine.low %v23483_v49, %v23515_v54  ;;  %v23519_v25 = vcombine.high %v23467_v43, %v23499_v30  ;;  %v23523_v41 = vcombine.high %v23483_v49, %v23515_v54 }
 0xef3   :  { %23936 = vrot.lane.b32.xlu1 %v23517_v26, %s27169_s2  ;;  %v23224_v60 = vadd.f32 %v32571_v53, %v23223_v63  ;;  %v23311_v9 = vmax.f32 %v23229_v13, 0.0  ;;  %v23309_v30 = vmax.f32 %v23219_v10, 0.0  ;;  %v33586_v63 = vld [vmem:[#allocation36_spill] sm:$0xff] }
 0xef5   :  { %v23310_v50 = vmax.f32 %v23224_v60, 0.0  ;;  %v23343_v19 = vadd.f32 %v23311_v9, %v32393_v40  ;;  %v23341_v34 = vadd.f32 %v23309_v30, %v32350_v27  ;;  %v33590_v9 = vld [vmem:[#allocation35_spill] sm:$0xff] }
 0xef6   :  { %v26472_v0 = vpop.f32.mrf.mxu0 }
 0xef7   :  { %23984 = vrot.lane.b32.xlu1 %v23521_v46, %s27169_s2  ;;  %v23342_v43 = vadd.f32 %v23310_v50, %v32379_v32  ;;  %v23179_v12 = vadd.f32 %v26472_v0, %v32571_v53 }
 0xef8   :  { %v23173_v33 = vpop.f32.mrf.mxu0 }
 0xef9   :  { %v23301_v50 = vmax.f32 %v23179_v12, 0.0 }
 0xefb   :  { %23952 = vrot.lane.b32.xlu1 %v23518_v14, %s27171_s15  ;;  %v23174_v14 = vadd.f32 %v32571_v53, %v23173_v33  ;;  %v23374_v33 = vadd.f32 %v23342_v43, %v33586_v63 }
 0xefd   :  { %v23300_v60 = vmax.f32 %v23174_v14, 0.0 }
 0xeff   :  { %24000 = vrot.lane.b32.xlu1 %v23522_v17, %s27171_s15  ;;  %v23204_v17 = vadd.f32 %v32571_v53, %v23203_v58  ;;  %v33587_v58 = vld [vmem:[#allocation37_spill] sm:$0xff] }
 0xf00   :  { %v23375_v3 = vadd.f32 %v23343_v19, %v33587_v58 }
 0xf01   :  { %v23306_v6 = vmax.f32 %v23204_v17, 0.0 }
 0xf03   :  { %23968 = vrot.lane.b32.xlu1 %v23519_v25, %s27170_s3  ;;  %v23339_v25 = vadd.f32 %v23307_v36, %v32265_v16  ;;  %v33588_v16 = vld [vmem:[#allocation33_spill] sm:$0xff] }
 0xf05   :  { %v32656_v10 = vadd.f32 %v23339_v25, %v33588_v16 }
 0xf07   :  { %24016 = vrot.lane.b32.xlu1 %v23523_v41, %s27170_s3  ;;  %v23340_v41 = vadd.f32 %v23308_v23, %v32292_v44  ;;  %v33589_v44 = vld [vmem:[#allocation34_spill] sm:$0xff] }
 0xf09   :  { %v23372_v0 = vadd.f32 %v23340_v41, %v33589_v44  ;;  %v33591_v41 = vld [vmem:[#allocation39_spill] sm:$0xff] }
 0xf0b   :  { %v23660_v30 = vcombine.low %v23372_v0, %v23374_v33  ;;  %v23661_v25 = vcombine.high %v23372_v0, %v23374_v33  ;;  %v33598_v0 = vld [vmem:[#allocation27_spill] sm:$0xff] }
 0xf0c   :  { %v26490_v45 = vpop.f32.mrf.mxu1 }
 0xf0d   :  { %v23239_v46 = vadd.f32 %v26490_v45, %v32571_v53 }
 0xf0e   :  { %v26475_v48 = vpop.f32.mrf.mxu0  ;;  %v23233_v26 = vpop.f32.mrf.mxu1 }
 0xf0f   :  { %v23189_v54 = vadd.f32 %v26475_v48, %v32571_v53  ;;  %v23234_v49 = vadd.f32 %v32571_v53, %v23233_v26  ;;  %v23313_v11 = vmax.f32 %v23239_v46, 0.0  ;;  %v23373_v26 = vadd.f32 %v23341_v34, %v33590_v9  ;;  %v33592_v34 = vld [vmem:[#allocation28_spill] sm:$0xff] }
 0xf10   :  { %v23183_v2 = vpop.f32.mrf.mxu0 }
 0xf11   :  { %v23184_v38 = vadd.f32 %v32571_v53, %v23183_v2  ;;  %v23303_v48 = vmax.f32 %v23189_v54, 0.0  ;;  %v23312_v13 = vmax.f32 %v23234_v49, 0.0  ;;  %v23345_v27 = vadd.f32 %v23313_v11, %v32459_v1 }
 0xf12   :  { %v23338_v54 = vadd.f32 %v23306_v6, %v32215_v62  ;;  %v23676_v49 = vcombine.low %v23373_v26, %v23375_v3  ;;  %v23677_v19 = vcombine.high %v23373_v26, %v23375_v3  ;;  %v32675_v62 = vrot.slane %v23660_v30, %v33582_v15  ;;  %v33597_v3 = vld [vmem:[#allocation40_spill] sm:$0xff] }
 0xf13   :  { %v23302_v32 = vmax.f32 %v23184_v38, 0.0  ;;  %v23332_v38 = vadd.f32 %v23300_v60, %v32409_v52  ;;  %v23335_v43 = vadd.f32 %v23303_v48, %v32467_v37  ;;  %v23344_v14 = vadd.f32 %v23312_v13, %v32439_v7  ;;  %v33593_v52 = vld [vmem:[#allocation41_spill] sm:$0xff]  ;;  %v33596_v13 = vld [vmem:[#allocation38_spill] sm:$0xff] }
 0xf14   :  { %v23377_v12 = vadd.f32 %v23345_v27, %v33591_v41  ;;  %v33595_v48 = vld [vmem:[#allocation29_spill] sm:$0xff]  ;;  %v23684_v44 = vrot.slane %v23676_v49, %v33582_v15 }
 0xf15   :  { %v23334_v36 = vadd.f32 %v23302_v32, %v32450_v22  ;;  %v23333_v22 = vadd.f32 %v23301_v50, %v32419_v39  ;;  %v23367_v33 = vadd.f32 %v23335_v43, %v33595_v48  ;;  %v23376_v39 = vadd.f32 %v23344_v14, %v33596_v13 }
 0xf17   :  { %v23366_v32 = vadd.f32 %v23334_v36, %v33592_v34  ;;  %v23365_v50 = vadd.f32 %v23333_v22, %v33598_v0 }
 0xf20   :  { %v26493_v45 = vpop.f32.mrf.mxu1 }
 0xf21   :  { %v23249_v40 = vadd.f32 %v26493_v45, %v32571_v53 }
 0xf22   :  { %v23243_v2 = vpop.f32.mrf.mxu1 }
 0xf23   :  { %v23315_v23 = vmax.f32 %v23249_v40, 0.0  ;;  %v23244_v46 = vadd.f32 %v32571_v53, %v23243_v2  ;;  %v32688_v2 = vrot.slane %v23677_v19, %v33582_v15 }
 0xf25   :  { %v23347_v1 = vadd.f32 %v23315_v23, %v32486_v8  ;;  %v23314_v17 = vmax.f32 %v23244_v46, 0.0  ;;  %v33594_v8 = vld [vmem:[#allocation26_spill] sm:$0xff]  ;;  %v23724_v23 = vcombine.low %v32675_v62, %v23684_v44  ;;  %v23540_v46 = vcombine.low %v23365_v50, %v23367_v33 }
 0xf26   :  { %v26478_v11 = vpop.f32.mrf.mxu0  ;;  %v23364_v60 = vadd.f32 %v23332_v38, %v33594_v8  ;;  %v33601_v8 = vld [vmem:[#allocation30_spill] sm:$0xff] }
 0xf27   :  { %v23379_v63 = vadd.f32 %v23347_v1, %v33593_v52  ;;  %v23346_v37 = vadd.f32 %v23314_v17, %v32476_v57  ;;  %v23199_v7 = vadd.f32 %v26478_v11, %v32571_v53  ;;  %v32683_v57 = vrot.slane %v23661_v25, %v33582_v15  ;;  %v33599_v25 = vld [vmem:[#allocation31_spill] sm:$0xff]  ;;  %v33600_v52 = vld [vmem:[#allocation32_spill] sm:$0xff] }
 0xf28   :  { %v23193_v45 = vpop.f32.mrf.mxu0  ;;  %v23524_v9 = vcombine.low %v23364_v60, %v23366_v32  ;;  %v23525_v19 = vcombine.high %v23364_v60, %v23366_v32  ;;  %v23548_v13 = vrot.slane %v23540_v46, %v33582_v15  ;;  %v32707_v32 = vrot.slane %v23724_v23, %v33585_v21 }
 0xf29   :  { %v23708_v6 = vcombine.low %v23377_v12, %v23379_v63  ;;  %v23709_v58 = vcombine.high %v23377_v12, %v23379_v63  ;;  %v23378_v40 = vadd.f32 %v23346_v37, %v33597_v3  ;;  %v23305_v16 = vmax.f32 %v23199_v7, 0.0 }
 0xf2a   :  { %v23194_v27 = vadd.f32 %v32571_v53, %v23193_v45  ;;  %v23740_v17 = vcombine.low %v32683_v57, %v32688_v2  ;;  %v23541_v12 = vcombine.high %v23365_v50, %v23367_v33  ;;  %v23370_v63 = vadd.f32 %v23338_v54, %v33600_v52 }
 0xf2b   :  { %v23692_v26 = vcombine.low %v23376_v39, %v23378_v40  ;;  %v23693_v36 = vcombine.high %v23376_v39, %v23378_v40  ;;  %v23337_v30 = vadd.f32 %v23305_v16, %v32500_v42  ;;  %v23716_v43 = vrot.slane %v23708_v6, %v33582_v15 }
 0xf2c   :  { %v23304_v38 = vmax.f32 %v23194_v27, 0.0  ;;  %v23723_v14 = vrot.slane %v23709_v58, %v33582_v15  ;;  %v23532_v42 = vrot.slane %v23524_v9, %v33582_v15  ;;  %v23539_v33 = vrot.slane %v23525_v19, %v33582_v15 }
 0xf2d   :  { %v23700_v49 = vrot.slane %v23692_v26, %v33582_v15  ;;  %v23707_v1 = vrot.slane %v23693_v36, %v33582_v15  ;;  %v23369_v22 = vadd.f32 %v23337_v30, %v33599_v25  ;;  %v32717_v45 = vrot.slane %v23740_v17, %v33585_v21 }
 0xf2e   :  { %v23336_v41 = vadd.f32 %v23304_v38, %v32492_v28  ;;  %v23588_v6 = vcombine.low %v23532_v42, %v23548_v13  ;;  %v23725_v27 = vcombine.high %v32675_v62, %v23684_v44  ;;  %v23741_v17 = vcombine.high %v32683_v57, %v32688_v2 }
 0xf2f   :  { %v23756_v11 = vcombine.low %v23700_v49, %v23716_v43  ;;  %v23772_v34 = vcombine.low %v23707_v1, %v23723_v14  ;;  %v23572_v37 = vcombine.low %v23369_v22, %v32656_v10  ;;  %v23573_v7 = vcombine.high %v23369_v22, %v32656_v10 }
 0xf30   :  { %v23368_v48 = vadd.f32 %v23336_v41, %v33601_v8  ;;  %v23555_v10 = vrot.slane %v23541_v12, %v33582_v15  ;;  %v23757_v58 = vcombine.high %v23700_v49, %v23716_v43  ;;  %v23773_v30 = vcombine.high %v23707_v1, %v23723_v14 }
 0xf31   :  { %v32710_v28 = vrot.slane %v23756_v11, %v33585_v21  ;;  %v32713_v60 = vrot.slane %v23772_v34, %v33585_v21  ;;  %v23580_v40 = vrot.slane %v23572_v37, %v33582_v15  ;;  %v23587_v16 = vrot.slane %v23573_v7, %v33582_v15 }
 0xf32   :  { %v23556_v54 = vcombine.low %v23368_v48, %v23370_v63  ;;  %v23557_v39 = vcombine.high %v23368_v48, %v23370_v63  ;;  %v23604_v36 = vcombine.low %v23539_v33, %v23555_v10  ;;  %v23771_v43 = vrot.slane %v23757_v58, %v33585_v21 }
 0xf33   :  { %v23789_v3 = vcombine.high %v32707_v32, %v32710_v28  ;;  %v23788_v9 = vcombine.low %v32707_v32, %v32710_v28  ;;  %v23792_v26 = vcombine.low %v32717_v45, %v32713_v60  ;;  %v23793_v38 = vcombine.high %v32717_v45, %v32713_v60 }
 0xf34   :  { %v23564_v0 = vrot.slane %v23556_v54, %v33582_v15  ;;  %v23571_v50 = vrot.slane %v23557_v39, %v33582_v15  ;;  %v32736_v49 = vrot.slane %v23588_v6, %v33585_v21  ;;  %v23739_v14 = vrot.slane %v23725_v27, %v33585_v21 }
 0xf35   :  { %23940 = vrot.lane.b32.xlu1 %v23789_v3, %s27169_s2  ;;  %v32751_v25 = vrot.slane %v23604_v36, %v33585_v21  ;;  %v23787_v41 = vrot.slane %v23773_v30, %v33585_v21  ;;  %v23589_v12 = vcombine.high %v23532_v42, %v23548_v13  ;;  %v23755_v11 = vrot.slane %v23741_v17, %v33585_v21 }
 0xf36   :  { %v23620_v23 = vcombine.low %v23564_v0, %v23580_v40  ;;  %v23636_v46 = vcombine.low %v23571_v50, %v23587_v16  ;;  %v23621_v1 = vcombine.high %v23564_v0, %v23580_v40  ;;  %v23790_v22 = vcombine.low %v23739_v14, %v23771_v43 }
 0xf37   :  { %v23637_v34 = vcombine.high %v23571_v50, %v23587_v16  ;;  %v23794_v37 = vcombine.low %v23755_v11, %v23787_v41  ;;  %v23605_v42 = vcombine.high %v23539_v33, %v23555_v10  ;;  %v23603_v7 = vrot.slane %v23589_v12, %v33585_v21 }
 0xf38   :  { %v32739_v62 = vrot.slane %v23620_v23, %v33585_v21  ;;  %v32742_v44 = vrot.slane %v23636_v46, %v33585_v21  ;;  %v23635_v63 = vrot.slane %v23621_v1, %v33585_v21  ;;  %v23791_v13 = vcombine.high %v23739_v14, %v23771_v43  ;;  %v26496_v3 = vpop.f32.mrf.mxu1 }
 0xf39   :  { %23988 = vrot.lane.b32.xlu1 %v23793_v38, %s27169_s2  ;;  %v23651_v48 = vrot.slane %v23637_v34, %v33585_v21  ;;  %v23619_v54 = vrot.slane %v23605_v42, %v33585_v21  ;;  %v23795_v6 = vcombine.high %v23755_v11, %v23787_v41 }
 0xf3a   :  { %v23653_v19 = vcombine.high %v32736_v49, %v32739_v62  ;;  %v23652_v57 = vcombine.low %v32736_v49, %v32739_v62  ;;  %v23656_v2 = vcombine.low %v32751_v25, %v32742_v44  ;;  %v23657_v52 = vcombine.high %v32751_v25, %v32742_v44  ;;  %v23253_v16 = vpop.f32.mrf.mxu1 }
 0xf3b   :  { %v23654_v8 = vcombine.low %v23603_v7, %v23635_v63  ;;  %v23658_v39 = vcombine.low %v23619_v54, %v23651_v48  ;;  %v23655_v33 = vcombine.high %v23603_v7, %v23635_v63  ;;  %v23659_v10 = vcombine.high %v23619_v54, %v23651_v48 }
 0xf3c   :  { %23938 = vrot.lane.b32.xlu0 %v23653_v19, %s27169_s2  ;;  %v23254_v43 = vadd.f32 %v32571_v53, %v23253_v16  ;;  %v23259_v19 = vadd.f32 %v26496_v3, %v32571_v53 }
 0xf3d   :  { %23956 = vrot.lane.b32.xlu1 %v23790_v22, %s27171_s15 }
 0xf3e   :  { %v23316_v41 = vmax.f32 %v23254_v43, 0.0  ;;  %v23317_v63 = vmax.f32 %v23259_v19, 0.0 }
 0xf40   :  { %23986 = vrot.lane.b32.xlu0 %v23657_v52, %s27169_s2  ;;  %v23348_v59 = vadd.f32 %v23316_v41, %v32508_v47  ;;  %v23349_v7 = vadd.f32 %v23317_v63, %v32516_v29 }
 0xf41   :  { %24004 = vrot.lane.b32.xlu1 %v23794_v37, %s27171_s15 }
 0xf44   :  { %23954 = vrot.lane.b32.xlu0 %v23654_v8, %s27171_s15  ;;  %v33602_v8 = vld [vmem:[#allocation44_spill] sm:$0xff] }
 0xf45   :  { %23972 = vrot.lane.b32.xlu1 %v23791_v13, %s27170_s3 }
 0xf48   :  { %24002 = vrot.lane.b32.xlu0 %v23658_v39, %s27171_s15 }
 0xf49   :  { %24020 = vrot.lane.b32.xlu1 %v23795_v6, %s27170_s3  ;;  %v33603_v6 = vld [vmem:[#allocation42_spill] sm:$0xff] }
 0xf4c   :  { %23970 = vrot.lane.b32.xlu0 %v23655_v33, %s27170_s3  ;;  %v23380_v33 = vadd.f32 %v23348_v59, %v33603_v6 }
 0xf50   :  { %24018 = vrot.lane.b32.xlu0 %v23659_v10, %s27170_s3  ;;  %v26499_v0 = vpop.f32.mrf.mxu1  ;;  %v33604_v10 = vld [vmem:[#allocation45_spill] sm:$0xff] }
 0xf51   :  { %v23269_v17 = vadd.f32 %v26499_v0, %v32571_v53 }
 0xf52   :  { %v23263_v27 = vpop.f32.mrf.mxu1 }
 0xf53   :  { %v23264_v23 = vadd.f32 %v32571_v53, %v23263_v27  ;;  %v23319_v12 = vmax.f32 %v23269_v17, 0.0 }
 0xf55   :  { %v23318_v22 = vmax.f32 %v23264_v23, 0.0  ;;  %v23351_v61 = vadd.f32 %v23319_v12, %v32532_v5  ;;  %v33605_v5 = vld [vmem:[#allocation43_spill] sm:$0xff] }
 0xf56   :  { %v23381_v16 = vadd.f32 %v23349_v7, %v33605_v5 }
 0xf57   :  { %v23350_v37 = vadd.f32 %v23318_v22, %v32524_v35 }
 0xf59   :  { %v23382_v48 = vadd.f32 %v23350_v37, %v33602_v8 }
 0xf5b   :  { %v23796_v0 = vcombine.low %v23380_v33, %v23382_v48  ;;  %v23797_v23 = vcombine.high %v23380_v33, %v23382_v48 }
 0xf65   :  { %v23937_v58 = vpop.permute.xlu1 %23936 }
 0xf66   :  { %v24028_v46 = vsel %vm804_vm1, %v23516_v18, %v23937_v58  ;;  %v23383_v58 = vadd.f32 %v23351_v61, %v33604_v10 }
 0xf68   :  { %v26502_v14 = vpop.f32.mrf.mxu1 }
 0xf69   :  { %v23985_v40 = vpop.permute.xlu1 %23984  ;;  %v23279_v52 = vadd.f32 %v26502_v14, %v32571_v53  ;;  %v23804_v14 = vrot.slane %v23796_v0, %v33582_v15 }
 0xf6a   :  { %v24042_v4 = vsel %vm804_vm1, %v23520_v55, %v23985_v40  ;;  %v23273_v11 = vpop.f32.mrf.mxu1 }
 0xf6b   :  { %v23274_v42 = vadd.f32 %v32571_v53, %v23273_v11  ;;  %v23321_v55 = vmax.f32 %v23279_v52, 0.0 }
 0xf6d   :  { %v23953_v50 = vpop.permute.xlu1 %23952  ;;  %v23320_v54 = vmax.f32 %v23274_v42, 0.0  ;;  %v23353_v3 = vadd.f32 %v23321_v55, %v32548_v56  ;;  %v23813_v56 = vcombine.high %v23381_v16, %v23383_v58 }
 0xf6e   :  { %v24033_v30 = vsel %vm24032_vm6, %v24028_v46, %v23953_v50  ;;  %v33606_v46 = vld [vmem:[#allocation47_spill] sm:$0xff] }
 0xf6f   :  { %v23352_v29 = vadd.f32 %v23320_v54, %v32540_v31  ;;  %v23827_v12 = vrot.slane %v23813_v56, %v33582_v15 }
 0xf71   :  { %v24001_v36 = vpop.permute.xlu1 %24000 }
 0xf72   :  { %v24046_v24 = vsel %vm24032_vm6, %v24042_v4, %v24001_v36  ;;  %v23812_v36 = vcombine.low %v23381_v16, %v23383_v58  ;;  %v33609_v4 = vld [vmem:[#allocation48_spill] sm:$0xff] }
 0xf75   :  { %v23969_v38 = vpop.permute.xlu1 %23968 }
 0xf76   :  { %v24038_v1 = vsel %vm24037_vm7, %v24033_v30, %v23969_v38  ;;  %v23385_v30 = vadd.f32 %v23353_v3, %v33606_v46  ;;  %v33607_v38 = vld [vmem:[#allocation49_spill] sm:$0xff] }
 0xf77   :  { %24054 = vst [vmem:[#allocation10] sm:$0xff] %v24038_v1 }
 0xf79   :  { %v24017_v18 = vpop.permute.xlu1 %24016 }
 0xf7a   :  { %v24050_v34 = vsel %vm24037_vm7, %v24046_v24, %v24017_v18  ;;  %v23811_v24 = vrot.slane %v23797_v23, %v33582_v15 }
 0xf7b   :  { %24055 = vst [vmem:[#allocation10 + $0x8] sm:$0xff] %v24050_v34 }
 0xf7c   :  { %v23876_v37 = vcombine.low %v23811_v24, %v23827_v12  ;;  %v23877_v58 = vcombine.high %v23811_v24, %v23827_v12 }
 0xf7e   :  { %v32825_v8 = vrot.slane %v23876_v37, %v33585_v21 }
 0xf80   :  { %v26505_v13 = vpop.f32.mrf.mxu1 }
 0xf81   :  { %v23289_v39 = vadd.f32 %v26505_v13, %v32571_v53 }
 0xf82   :  { %v23283_v35 = vpop.f32.mrf.mxu1 }
 0xf83   :  { %v23323_v40 = vmax.f32 %v23289_v39, 0.0  ;;  %v23284_v47 = vadd.f32 %v32571_v53, %v23283_v35  ;;  %v33608_v53 = vld [vmem:[#allocation46_spill] sm:$0xff] }
 0xf84   :  { %v23384_v1 = vadd.f32 %v23352_v29, %v33608_v53 }
 0xf85   :  { %v23355_v50 = vadd.f32 %v23323_v40, %v32564_v51  ;;  %v23322_v27 = vmax.f32 %v23284_v47, 0.0  ;;  %v23820_v51 = vrot.slane %v23812_v36, %v33582_v15  ;;  %v23891_v47 = vrot.slane %v23877_v58, %v33585_v21 }
 0xf87   :  { %v23387_v43 = vadd.f32 %v23355_v50, %v33607_v38  ;;  %v23354_v17 = vadd.f32 %v23322_v27, %v32556_v20  ;;  %v23860_v11 = vcombine.low %v23804_v14, %v23820_v51 }
 0xf89   :  { %v23844_v19 = vcombine.low %v23385_v30, %v23387_v43  ;;  %v23845_v22 = vcombine.high %v23385_v30, %v23387_v43  ;;  %v23386_v31 = vadd.f32 %v23354_v17, %v33609_v4  ;;  %v23868_v61 = vrot.slane %v23860_v11, %v33585_v21 }
 0xf8b   :  { %v23828_v18 = vcombine.low %v23384_v1, %v23386_v31  ;;  %v23829_v41 = vcombine.high %v23384_v1, %v23386_v31  ;;  %v23852_v20 = vrot.slane %v23844_v19, %v33582_v15  ;;  %v23859_v34 = vrot.slane %v23845_v22, %v33582_v15 }
 0xf8d   :  { %v23836_v52 = vrot.slane %v23828_v18, %v33582_v15  ;;  %v23843_v63 = vrot.slane %v23829_v41, %v33582_v15  ;;  %v23861_v15 = vcombine.high %v23804_v14, %v23820_v51 }
 0xf8f   :  { %v23892_v42 = vcombine.low %v23836_v52, %v23852_v20  ;;  %v23908_v59 = vcombine.low %v23843_v63, %v23859_v34  ;;  %v23893_v48 = vcombine.high %v23836_v52, %v23852_v20  ;;  %v23909_v6 = vcombine.high %v23843_v63, %v23859_v34 }
 0xf90   :  { %v23875_v35 = vrot.slane %v23861_v15, %v33585_v21 }
 0xf91   :  { %v23900_v55 = vrot.slane %v23892_v42, %v33585_v21  ;;  %v32822_v7 = vrot.slane %v23908_v59, %v33585_v21  ;;  %v23907_v10 = vrot.slane %v23893_v48, %v33585_v21  ;;  %v23923_v40 = vrot.slane %v23909_v6, %v33585_v21 }
 0xf93   :  { %v23925_v13 = vcombine.high %v23868_v61, %v23900_v55  ;;  %v23924_v54 = vcombine.low %v23868_v61, %v23900_v55  ;;  %v23928_v39 = vcombine.low %v32825_v8, %v32822_v7  ;;  %v23929_v33 = vcombine.high %v32825_v8, %v32822_v7 }
 0xf94   :  { %v23926_v3 = vcombine.low %v23875_v35, %v23907_v10  ;;  %v23930_v5 = vcombine.low %v23891_v47, %v23923_v40  ;;  %v23927_v16 = vcombine.high %v23875_v35, %v23907_v10  ;;  %v23931_v29 = vcombine.high %v23891_v47, %v23923_v40 }
 0xf95   :  { %23942 = vrot.lane.b32.xlu0 %v23925_v13, %s27169_s2 }
 0xf99   :  { %23990 = vrot.lane.b32.xlu0 %v23929_v33, %s27169_s2 }
 0xf9d   :  { %23958 = vrot.lane.b32.xlu0 %v23926_v3, %s27171_s15 }
 0xfa1   :  { %24006 = vrot.lane.b32.xlu0 %v23930_v5, %s27171_s15 }
 0xfa5   :  { %23974 = vrot.lane.b32.xlu0 %v23927_v16, %s27170_s3 }
 0xfa7   :  { %v23941_v0 = vpop.permute.xlu1 %23940 }
 0xfa8   :  { %v24030_v21 = vsel %vm804_vm1, %v23788_v9, %v23941_v0 }
 0xfa9   :  { %24022 = vrot.lane.b32.xlu0 %v23931_v29, %s27170_s3 }
 0xfab   :  { %v23989_v50 = vpop.permute.xlu1 %23988 }
 0xfac   :  { %v24044_v56 = vsel %vm804_vm1, %v23792_v26, %v23989_v50 }
 0xfae   :  { %v23939_v27 = vpop.permute.xlu0 %23938 }
 0xfaf   :  { %v23957_v36 = vpop.permute.xlu1 %23956  ;;  %v24029_v28 = vsel %vm804_vm1, %v23652_v57, %v23939_v27 }
 0xfb0   :  { %v24035_v38 = vsel %vm24032_vm6, %v24030_v21, %v23957_v36 }
 0xfb2   :  { %v23987_v23 = vpop.permute.xlu0 %23986 }
 0xfb3   :  { %v24005_v46 = vpop.permute.xlu1 %24004  ;;  %v24043_v60 = vsel %vm804_vm1, %v23656_v2, %v23987_v23 }
 0xfb4   :  { %v24048_v53 = vsel %vm24032_vm6, %v24044_v56, %v24005_v46 }
 0xfb6   :  { %v23955_v30 = vpop.permute.xlu0 %23954 }
 0xfb7   :  { %v23973_v43 = vpop.permute.xlu1 %23972  ;;  %v24034_v9 = vsel %vm24032_vm6, %v24029_v28, %v23955_v30 }
 0xfb8   :  { %v24040_v17 = vsel %vm24037_vm7, %v24035_v38, %v23973_v43 }
 0xfb9   :  { %24058 = vst [vmem:[#allocation10 + $0x20] sm:$0xff] %v24040_v17 }
 0xfba   :  { %v24003_v14 = vpop.permute.xlu0 %24002 }
 0xfbb   :  { %v24021_v1 = vpop.permute.xlu1 %24020  ;;  %v24047_v45 = vsel %vm24032_vm6, %v24043_v60, %v24003_v14 }
 0xfbc   :  { %v24052_v32 = vsel %vm24037_vm7, %v24048_v53, %v24021_v1 }
 0xfbd   :  { %24059 = vst [vmem:[#allocation10 + $0x28] sm:$0xff] %v24052_v32 }
 0xfbe   :  { %v23971_v19 = vpop.permute.xlu0 %23970 }
 0xfbf   :  { %v24039_v22 = vsel %vm24037_vm7, %v24034_v9, %v23971_v19 }
 0xfc0   :  { %24056 = vst [vmem:[#allocation10 + $0x10] sm:$0xff] %v24039_v22 }
 0xfc2   :  { %v24019_v26 = vpop.permute.xlu0 %24018 }
 0xfc3   :  { %v24051_v4 = vsel %vm24037_vm7, %v24047_v45, %v24019_v26 }
 0xfc4   :  { %24057 = vst [vmem:[#allocation10 + $0x18] sm:$0xff] %v24051_v4 }
0x1007   :  { %v23943_v49 = vpop.permute.xlu0 %23942 }
0x1008   :  { %v24031_v51 = vsel %vm804_vm1, %v23924_v54, %v23943_v49 }
0x100b   :  { %v23991_v62 = vpop.permute.xlu0 %23990 }
0x100c   :  { %v24045_v44 = vsel %vm804_vm1, %v23928_v39, %v23991_v62 }
0x100f   :  { %v23959_v57 = vpop.permute.xlu0 %23958 }
0x1010   :  { %v24036_v24 = vsel %vm24032_vm6, %v24031_v51, %v23959_v57 }
0x1013   :  { %v24007_v31 = vpop.permute.xlu0 %24006 }
0x1014   :  { %v24049_v25 = vsel %vm24032_vm6, %v24045_v44, %v24007_v31 }
0x1017   :  { %v23975_v18 = vpop.permute.xlu0 %23974 }
0x1018   :  { %v24041_v41 = vsel %vm24037_vm7, %v24036_v24, %v23975_v18 }
0x1019   :  { %24060 = vst [vmem:[#allocation10 + $0x30] sm:$0xff] %v24041_v41 }
0x101b   :  { %v24023_v2 = vpop.permute.xlu0 %24022 }
0x101c   :  { %v24053_v12 = vsel %vm24037_vm7, %v24049_v25, %v24023_v2 }
0x101d   :  { %24061 = vst [vmem:[#allocation10 + $0x38] sm:$0xff] %v24053_v12 }
0x101e   :  { %27144 = shalt.err (!%p27141_p10)
}
0x101f   :  { %24073 = dma.vmem_to_hbm [thread:$0]  %s24068_s30, 1024, %s32882_s5, [#allocation4], %s27163_s26, %s27163_s26, %s27164_s27  }
0x1020   :  { %27159 = dma.done.wait [#allocation4], 1024  }
0x1021   :  { %27160 = vsyncadd [#allocation4], 4294966272 }
0x1022   :  { %24077 = vsyncpa [#allocation3], 1 }
0x1023   :  { %24078 = vsyncpa [#allocation6], 1 }
0x1024   :  { %24079 = vsyncpa [#allocation9], 1 }
0x1025   :  { %24080 = vsyncpa [#allocation4], 1 }

</bundles_post_ra>
